<compile_context>
chip_gen: v6e
topology: v6e:2x2x1
jax: 0.10.0
libtpu: 0.0.40
codegen_flags: <defaults>
</compile_context>

<pallas_src>
import numpy as np
import jax
import jax.numpy as jnp
from jax.experimental import pallas as pl
from jax.experimental.pallas import tpu as pltpu

EGO_INPUT_CHANNEL = 4   # `ego_input_channel` global in the PyTorch source
FEATURE = 32            # `feature` ctor argument

# (Cin, Cout, K) per layer, exactly matching ego_SAD.ego_encoder
LAYER_DEFS = [
    (EGO_INPUT_CHANNEL, 4, 3),
    (4, 8, 3),
    (8, 16, 3),
    (16, 32, 3),
    (32, 64, 3),
    (64, 128, 3),
    (128, 256, 3),
    (256, FEATURE, 2),   # final Conv2d(256, feature, 2), no ReLU after it
]
N_LAYERS = len(LAYER_DEFS)
COMPACT_AFTER = 3        # compact rows after this (0-based) layer index


def _round_up(x, m):
    return ((x + m - 1) // m) * m


def prepare_ego_sad_params(params, w_in, c_in):
    """Per-layer column-Toeplitz taps (bf16, 128-lane padded) + tiled biases.

    params: list of (weight HWIO (K,K,Cin,Cout), bias (Cout,) or (1,Cout)).
    Returns (taps, biases):
      taps[i]  : (KH, lane_in_pad_i, lane_out_pad_i) bf16   (zero-padded)
      biases[i]: (1, lane_out_pad_i) f32                    (zero-padded)
    """
    taps, biases = [], []
    w_cur = w_in
    lane_in_pad = _round_up(w_in * c_in, 128)
    for (wgt, b) in params:
        kh_n, kw_n, cin, cout = wgt.shape
        w_out = w_cur - kw_n + 1
        lane_out = w_out * cout
        lane_out_pad = _round_up(lane_out, 128)
        w_np = np.asarray(wgt, dtype=np.float32)
        t = np.zeros((kh_n, lane_in_pad, lane_out_pad), np.float32)
        for kh in range(kh_n):
            for kw in range(kw_n):
                for wo in range(w_out):
                    wi = wo + kw
                    t[kh, wi * cin:(wi + 1) * cin,
                      wo * cout:(wo + 1) * cout] = w_np[kh, kw]
        taps.append(jnp.asarray(t, dtype=jnp.bfloat16))
        b_np = np.asarray(b, dtype=np.float32).reshape(-1)          # (Cout,)
        b_pad = np.zeros((1, lane_out_pad), np.float32)
        b_pad[0, :lane_out] = np.tile(b_np, w_out)
        biases.append(jnp.asarray(b_pad))
        w_cur = w_out
        lane_in_pad = lane_out_pad
    return taps, biases


def _make_kernel(nb, h, compact_after, compact_h):
    """Kernel closure for a block of `nb` images of height `h`."""

    def kernel(x_ref, *refs):
        t_refs = refs[:N_LAYERS]              # Toeplitz taps (K, lane_in, lane_out)
        b_refs = refs[N_LAYERS:2 * N_LAYERS]  # (1, lane_out) f32
        o_ref = refs[2 * N_LAYERS]            # (nb*out_h, lane_out_final) f32
        s_ref = refs[2 * N_LAYERS + 1]        # bf16 slab (nb*h + 2, lane_max)

        # Deterministic slab: no uninitialised VMEM ever feeds a matmul.
        s_ref[...] = jnp.zeros(s_ref.shape, s_ref.dtype)

        rows_in = nb * h
        # Layer-0 activation slab = the (already bf16, 128-lane) input block.
        s_ref[pl.ds(0, rows_in), pl.ds(0, x_ref.shape[1])] = x_ref[...]

        block_h = h
        acc = None
        for li in range(N_LAYERS):
            t_ref = t_refs[li]
            k_taps, lane_in, lane_out = t_ref.shape
            m = nb * block_h
            # One MXU matmul per kh tap: row shift via sublane offset; the
            # kw/channel contraction is folded into the Toeplitz tap.
            acc = jnp.dot(s_ref[pl.ds(0, m), pl.ds(0, lane_in)], t_ref[0],
                          preferred_element_type=jnp.float32)
            for kh in range(1, k_taps):
                acc = acc + jnp.dot(
                    s_ref[pl.ds(kh, m), pl.ds(0, lane_in)], t_ref[kh],
                    preferred_element_type=jnp.float32)
            acc = acc + b_refs[li][...]                  # bias: once per layer, f32
            if li < N_LAYERS - 1:
                acc = jnp.maximum(acc, 0.0)              # ReLU (not after last)
                s_ref[pl.ds(0, m), pl.ds(0, lane_out)] = acc.astype(s_ref.dtype)
                if compact_after is not None and li == compact_after:
                    # Row compaction: only `compact_h` rows per image are
                    # still valid; pack them densely so the deep layers run
                    # with M = nb*compact_h instead of nb*h.  Copies go to
                    # strictly lower rows, so in-place is safe.
                    for n in range(1, nb):               # n == 0 already in place
                        s_ref[pl.ds(n * compact_h, compact_h),
                              pl.ds(0, lane_out)] = (
                            s_ref[pl.ds(n * block_h, compact_h),
                                  pl.ds(0, lane_out)])
                    block_h = compact_h
        o_ref[...] = acc                                 # f32, lane-dense (128)

    return kernel


def ego_sad_forward(x_nchw, params, block_n=32):
    """x_nchw: (N, C, H, W); params: list of (HWIO weight, bias) per layer."""
    N, C, H, W = x_nchw.shape
    assert C == LAYER_DEFS[0][0]
    taps, biases = prepare_ego_sad_params(params, W, C)
    feature = LAYER_DEFS[-1][1]

    h_out, w_out = H, W
    for (_, _, k) in LAYER_DEFS:
        h_out, w_out = h_out - k + 1, w_out - k + 1
    assert h_out >= 1 and w_out >= 1, "spatial size too small for ego_SAD"

    # Prefer >=2 grid steps so the "parallel" axis can use both TCs on v7x.
    nb = max(1, min(block_n, -(-N // 2)))
    num_blocks = pl.cdiv(N, nb)
    n_pad = num_blocks * nb

    # Rows per image still valid after layer COMPACT_AFTER (4 K=3 convs).
    compact_h = H - sum(k - 1 for (_, _, k) in LAYER_DEFS[:COMPACT_AFTER + 1])
    use_compact = ((nb * compact_h) % 8 == 0) or (num_blocks == 1)
    compact_after = COMPACT_AFTER if use_compact else None
    out_h_blk = compact_h if use_compact else H

    lane_in0 = _round_up(W * C, 128)
    lane_out_final = taps[-1].shape[2]                  # already 128-padded
    lane_max = max([lane_in0] + [t.shape[2] for t in taps])
    rows = nb * H

    # NCHW -> NHWC -> lane-dense bf16 slab (n_pad*H, lane_in0)
    x = jnp.transpose(x_nchw, (0, 2, 3, 1)).astype(jnp.float32)
    if n_pad != N:
        x = jnp.concatenate(
            [x, jnp.zeros((n_pad - N, H, W, C), jnp.float32)], axis=0)
    x2d = x.reshape(n_pad * H, W * C)
    if lane_in0 != W * C:
        x2d = jnp.concatenate(
            [x2d, jnp.zeros((n_pad * H, lane_in0 - W * C), jnp.float32)],
            axis=1)
    x2d = x2d.astype(jnp.bfloat16)

    in_specs = [pl.BlockSpec((rows, lane_in0), lambda n: (n, 0))]
    for t in taps:
        in_specs.append(pl.BlockSpec(t.shape, lambda n: (0, 0, 0)))
    for b in biases:
        in_specs.append(pl.BlockSpec(b.shape, lambda n: (0, 0)))
    out_specs = pl.BlockSpec((nb * out_h_blk, lane_out_final), lambda n: (n, 0))

    kernel = _make_kernel(nb, H, compact_after, compact_h)

    out2d = pl.pallas_call(
        kernel,
        out_shape=jax.ShapeDtypeStruct((n_pad * out_h_blk, lane_out_final),
                                       jnp.float32),
        grid=(num_blocks,),
        in_specs=in_specs,
        out_specs=out_specs,
        scratch_shapes=[pltpu.VMEM((rows + 2, lane_max), jnp.bfloat16)],
        compiler_params=pltpu.CompilerParams(
            dimension_semantics=("parallel",),
            vmem_limit_bytes=32 * 1024 * 1024,
        ),
    )(x2d, *taps, *biases)

    # Valid rows of image n: first h_out rows of its out_h_blk-row block;
    # valid lanes: first w_out*feature ((w, c) interleaved).
    out = out2d.reshape(n_pad, out_h_blk, lane_out_final)
    out = out[:N, :h_out, :w_out * feature].reshape(N, h_out, w_out, feature)
    return jnp.transpose(out, (0, 3, 1, 2))             # (N, F, Ho, Wo)


def ref_forward(x_nchw, params):
    """Pure-JAX f32 reference (lax.conv) for correctness check."""
    x = jnp.transpose(x_nchw, (0, 2, 3, 1)).astype(jnp.float32)
    for i, (w, b) in enumerate(params):
        x = jax.lax.conv_general_dilated(
            x, w, window_strides=(1, 1), padding="VALID",
            dimension_numbers=("NHWC", "HWIO", "NHWC"))
        x = x + b.reshape(1, 1, 1, -1)
        if i < N_LAYERS - 1:
            x = jnp.maximum(x, 0.0)
    return jnp.transpose(x, (0, 3, 1, 2))


if __name__ == "__main__":
    key = jax.random.PRNGKey(0)

    # Deterministic init.  He-style weight scale keeps activations O(1)
    # through the 8 layers so the bf16-vs-f32 comparison below is meaningful
    # (i.e. not dominated by the bias terms).
    params = []
    for (cin, cout, k) in LAYER_DEFS:
        key, kw_key, kb_key = jax.random.split(key, 3)
        w_bound = (6.0 / (cin * k * k)) ** 0.5
        b_bound = 1.0 / (cin * k * k) ** 0.5
        wgt = jax.random.uniform(kw_key, (k, k, cin, cout), jnp.float32,
                                 -w_bound, w_bound)
        bias = jax.random.uniform(kb_key, (1, cout), jnp.float32,
                                  -b_bound, b_bound)
        params.append((wgt, bias))

    key, kx = jax.random.split(key)
    x = jax.random.normal(kx, (2, EGO_INPUT_CHANNEL, 16, 16), jnp.float32)  # NCHW

    out = jax.block_until_ready(ego_sad_forward(x, params))
    assert out.shape == (2, FEATURE, 1, 1), out.shape

    ref = jax.block_until_ready(ref_forward(x, params))
    # bf16 taps/activations vs f32 reference: relative Frobenius error check.
    rel = float(jnp.linalg.norm(out - ref) / (jnp.linalg.norm(ref) + 1e-30))
    if rel > 5e-2:
        raise AssertionError(
            f"Pallas output deviates from JAX reference (rel err {rel:.4f})")

    print("KERNEL_OK")
</pallas_src>

<mosaic_0001>
module attributes {stable_mosaic.version = 11 : i64} {
  func.func @kernel(%arg0: i32, %arg1: memref<16x128xbf16, #tpu.memory_space<vmem>>, %arg2: memref<3x128x128xbf16, #tpu.memory_space<vmem>>, %arg3: memref<3x128x128xbf16, #tpu.memory_space<vmem>>, %arg4: memref<3x128x256xbf16, #tpu.memory_space<vmem>>, %arg5: memref<3x256x256xbf16, #tpu.memory_space<vmem>>, %arg6: memref<3x256x384xbf16, #tpu.memory_space<vmem>>, %arg7: memref<3x384x512xbf16, #tpu.memory_space<vmem>>, %arg8: memref<3x512x512xbf16, #tpu.memory_space<vmem>>, %arg9: memref<2x512x128xbf16, #tpu.memory_space<vmem>>, %arg10: memref<1x128xf32, #tpu.memory_space<vmem>>, %arg11: memref<1x128xf32, #tpu.memory_space<vmem>>, %arg12: memref<1x256xf32, #tpu.memory_space<vmem>>, %arg13: memref<1x256xf32, #tpu.memory_space<vmem>>, %arg14: memref<1x384xf32, #tpu.memory_space<vmem>>, %arg15: memref<1x512xf32, #tpu.memory_space<vmem>>, %arg16: memref<1x512xf32, #tpu.memory_space<vmem>>, %arg17: memref<1x128xf32, #tpu.memory_space<vmem>>, %arg18: memref<8x128xf32, #tpu.memory_space<vmem>>, %arg19: memref<18x512xbf16, #tpu.memory_space<vmem>>) attributes {dimension_semantics = [#tpu.dimension_semantics<parallel>], iteration_bounds = array<i64: 2>, scalar_prefetch = 0 : i64, scratch_operands = 1 : i64, tpu.core_type = #tpu.core_type<tc>, window_params = [{transform_indices = @transform_0, window_bounds = array<i64: 16, 128>}, {pipeline_mode = #tpu.pipeline_mode<synchronous>, transform_indices = @transform_1, window_bounds = array<i64: 3, 128, 128>}, {pipeline_mode = #tpu.pipeline_mode<synchronous>, transform_indices = @transform_2, window_bounds = array<i64: 3, 128, 128>}, {pipeline_mode = #tpu.pipeline_mode<synchronous>, transform_indices = @transform_3, window_bounds = array<i64: 3, 128, 256>}, {pipeline_mode = #tpu.pipeline_mode<synchronous>, transform_indices = @transform_4, window_bounds = array<i64: 3, 256, 256>}, {pipeline_mode = #tpu.pipeline_mode<synchronous>, transform_indices = @transform_5, window_bounds = array<i64: 3, 256, 384>}, {pipeline_mode = #tpu.pipeline_mode<synchronous>, transform_indices = @transform_6, window_bounds = array<i64: 3, 384, 512>}, {pipeline_mode = #tpu.pipeline_mode<synchronous>, transform_indices = @transform_7, window_bounds = array<i64: 3, 512, 512>}, {pipeline_mode = #tpu.pipeline_mode<synchronous>, transform_indices = @transform_8, window_bounds = array<i64: 2, 512, 128>}, {pipeline_mode = #tpu.pipeline_mode<synchronous>, transform_indices = @transform_9, window_bounds = array<i64: 1, 128>}, {pipeline_mode = #tpu.pipeline_mode<synchronous>, transform_indices = @transform_10, window_bounds = array<i64: 1, 128>}, {pipeline_mode = #tpu.pipeline_mode<synchronous>, transform_indices = @transform_11, window_bounds = array<i64: 1, 256>}, {pipeline_mode = #tpu.pipeline_mode<synchronous>, transform_indices = @transform_12, window_bounds = array<i64: 1, 256>}, {pipeline_mode = #tpu.pipeline_mode<synchronous>, transform_indices = @transform_13, window_bounds = array<i64: 1, 384>}, {pipeline_mode = #tpu.pipeline_mode<synchronous>, transform_indices = @transform_14, window_bounds = array<i64: 1, 512>}, {pipeline_mode = #tpu.pipeline_mode<synchronous>, transform_indices = @transform_15, window_bounds = array<i64: 1, 512>}, {pipeline_mode = #tpu.pipeline_mode<synchronous>, transform_indices = @transform_16, window_bounds = array<i64: 1, 128>}, {transform_indices = @transform_17, window_bounds = array<i64: 8, 128>}]} {
    %cst = arith.constant 0.000000e+00 : bf16
    %0 = vector.broadcast %cst : bf16 to vector<18x512xbf16>
    %c0 = arith.constant 0 : index
    %c0_0 = arith.constant 0 : index
    %1 = vector.load %arg19[%c0, %c0_0] : memref<18x512xbf16, #tpu.memory_space<vmem>>, vector<18x512xbf16>
    tpu.vector_store %arg19[%c0, %c0_0], %0 {strides = array<i32>} : memref<18x512xbf16, #tpu.memory_space<vmem>>, vector<18x512xbf16>,
    %c0_1 = arith.constant 0 : index
    %c0_2 = arith.constant 0 : index
    %2 = vector.load %arg1[%c0_1, %c0_2] : memref<16x128xbf16, #tpu.memory_space<vmem>>, vector<16x128xbf16>
    %c0_3 = arith.constant 0 : index
    %c0_4 = arith.constant 0 : index
    %3 = vector.load %arg19[%c0_3, %c0_4] : memref<18x512xbf16, #tpu.memory_space<vmem>>, vector<16x128xbf16>
    tpu.vector_store %arg19[%c0_3, %c0_4], %2 {strides = array<i32>} : memref<18x512xbf16, #tpu.memory_space<vmem>>, vector<16x128xbf16>,
    %c0_5 = arith.constant 0 : index
    %c0_6 = arith.constant 0 : index
    %4 = vector.load %arg19[%c0_5, %c0_6] : memref<18x512xbf16, #tpu.memory_space<vmem>>, vector<16x128xbf16>
    %c0_7 = arith.constant 0 : index
    %c0_8 = arith.constant 0 : index
    %c0_9 = arith.constant 0 : index
    %5 = vector.load %arg2[%c0_7, %c0_8, %c0_9] : memref<3x128x128xbf16, #tpu.memory_space<vmem>>, vector<1x128x128xbf16>
    %6 = vector.shape_cast %5 : vector<1x128x128xbf16> to vector<128x128xbf16>
    %cst_10 = arith.constant dense<0.000000e+00> : vector<16x128xf32>
    %7 = tpu.matmul %4, %6, %cst_10 {dimension_numbers = #tpu.dot_dimension_numbers<[1], [0], [0], [1], [0, 0, 1, 1], [], []>} : vector<16x128xbf16>, vector<128x128xbf16>, vector<16x128xf32> -> vector<16x128xf32>
    %c1 = arith.constant 1 : index
    %c0_11 = arith.constant 0 : index
    %8 = vector.load %arg19[%c1, %c0_11] : memref<18x512xbf16, #tpu.memory_space<vmem>>, vector<16x128xbf16>
    %c1_12 = arith.constant 1 : index
    %c0_13 = arith.constant 0 : index
    %c0_14 = arith.constant 0 : index
    %9 = vector.load %arg2[%c1_12, %c0_13, %c0_14] : memref<3x128x128xbf16, #tpu.memory_space<vmem>>, vector<1x128x128xbf16>
    %10 = vector.shape_cast %9 : vector<1x128x128xbf16> to vector<128x128xbf16>
    %cst_15 = arith.constant dense<0.000000e+00> : vector<16x128xf32>
    %11 = tpu.matmul %8, %10, %cst_15 {dimension_numbers = #tpu.dot_dimension_numbers<[1], [0], [0], [1], [0, 0, 1, 1], [], []>} : vector<16x128xbf16>, vector<128x128xbf16>, vector<16x128xf32> -> vector<16x128xf32>
    %12 = arith.addf %7, %11 : vector<16x128xf32>
    %c2 = arith.constant 2 : index
    %c0_16 = arith.constant 0 : index
    %13 = vector.load %arg19[%c2, %c0_16] : memref<18x512xbf16, #tpu.memory_space<vmem>>, vector<16x128xbf16>
    %c2_17 = arith.constant 2 : index
    %c0_18 = arith.constant 0 : index
    %c0_19 = arith.constant 0 : index
    %14 = vector.load %arg2[%c2_17, %c0_18, %c0_19] : memref<3x128x128xbf16, #tpu.memory_space<vmem>>, vector<1x128x128xbf16>
    %15 = vector.shape_cast %14 : vector<1x128x128xbf16> to vector<128x128xbf16>
    %cst_20 = arith.constant dense<0.000000e+00> : vector<16x128xf32>
    %16 = tpu.matmul %13, %15, %cst_20 {dimension_numbers = #tpu.dot_dimension_numbers<[1], [0], [0], [1], [0, 0, 1, 1], [], []>} : vector<16x128xbf16>, vector<128x128xbf16>, vector<16x128xf32> -> vector<16x128xf32>
    %17 = arith.addf %12, %16 : vector<16x128xf32>
    %c0_21 = arith.constant 0 : index
    %c0_22 = arith.constant 0 : index
    %18 = vector.load %arg10[%c0_21, %c0_22] : memref<1x128xf32, #tpu.memory_space<vmem>>, vector<1x128xf32>
    %19 = vector.broadcast %18 : vector<1x128xf32> to vector<16x128xf32>
    %20 = arith.addf %17, %19 : vector<16x128xf32>
    %cst_23 = arith.constant 0.000000e+00 : f32
    %21 = vector.broadcast %cst_23 : f32 to vector<16x128xf32>
    %22 = arith.maximumf %20, %21 : vector<16x128xf32>
    %23 = arith.truncf %22 : vector<16x128xf32> to vector<16x128xbf16>
    %c0_24 = arith.constant 0 : index
    %c0_25 = arith.constant 0 : index
    %24 = vector.load %arg19[%c0_24, %c0_25] : memref<18x512xbf16, #tpu.memory_space<vmem>>, vector<16x128xbf16>
    tpu.vector_store %arg19[%c0_24, %c0_25], %23 {strides = array<i32>} : memref<18x512xbf16, #tpu.memory_space<vmem>>, vector<16x128xbf16>,
    %c0_26 = arith.constant 0 : index
    %c0_27 = arith.constant 0 : index
    %25 = vector.load %arg19[%c0_26, %c0_27] : memref<18x512xbf16, #tpu.memory_space<vmem>>, vector<16x128xbf16>
    %c0_28 = arith.constant 0 : index
    %c0_29 = arith.constant 0 : index
    %c0_30 = arith.constant 0 : index
    %26 = vector.load %arg3[%c0_28, %c0_29, %c0_30] : memref<3x128x128xbf16, #tpu.memory_space<vmem>>, vector<1x128x128xbf16>
    %27 = vector.shape_cast %26 : vector<1x128x128xbf16> to vector<128x128xbf16>
    %cst_31 = arith.constant dense<0.000000e+00> : vector<16x128xf32>
    %28 = tpu.matmul %25, %27, %cst_31 {dimension_numbers = #tpu.dot_dimension_numbers<[1], [0], [0], [1], [0, 0, 1, 1], [], []>} : vector<16x128xbf16>, vector<128x128xbf16>, vector<16x128xf32> -> vector<16x128xf32>
    %c1_32 = arith.constant 1 : index
    %c0_33 = arith.constant 0 : index
    %29 = vector.load %arg19[%c1_32, %c0_33] : memref<18x512xbf16, #tpu.memory_space<vmem>>, vector<16x128xbf16>
    %c1_34 = arith.constant 1 : index
    %c0_35 = arith.constant 0 : index
    %c0_36 = arith.constant 0 : index
    %30 = vector.load %arg3[%c1_34, %c0_35, %c0_36] : memref<3x128x128xbf16, #tpu.memory_space<vmem>>, vector<1x128x128xbf16>
    %31 = vector.shape_cast %30 : vector<1x128x128xbf16> to vector<128x128xbf16>
    %cst_37 = arith.constant dense<0.000000e+00> : vector<16x128xf32>
    %32 = tpu.matmul %29, %31, %cst_37 {dimension_numbers = #tpu.dot_dimension_numbers<[1], [0], [0], [1], [0, 0, 1, 1], [], []>} : vector<16x128xbf16>, vector<128x128xbf16>, vector<16x128xf32> -> vector<16x128xf32>
    %33 = arith.addf %28, %32 : vector<16x128xf32>
    %c2_38 = arith.constant 2 : index
    %c0_39 = arith.constant 0 : index
    %34 = vector.load %arg19[%c2_38, %c0_39] : memref<18x512xbf16, #tpu.memory_space<vmem>>, vector<16x128xbf16>
    %c2_40 = arith.constant 2 : index
    %c0_41 = arith.constant 0 : index
    %c0_42 = arith.constant 0 : index
    %35 = vector.load %arg3[%c2_40, %c0_41, %c0_42] : memref<3x128x128xbf16, #tpu.memory_space<vmem>>, vector<1x128x128xbf16>
    %36 = vector.shape_cast %35 : vector<1x128x128xbf16> to vector<128x128xbf16>
    %cst_43 = arith.constant dense<0.000000e+00> : vector<16x128xf32>
    %37 = tpu.matmul %34, %36, %cst_43 {dimension_numbers = #tpu.dot_dimension_numbers<[1], [0], [0], [1], [0, 0, 1, 1], [], []>} : vector<16x128xbf16>, vector<128x128xbf16>, vector<16x128xf32> -> vector<16x128xf32>
    %38 = arith.addf %33, %37 : vector<16x128xf32>
    %c0_44 = arith.constant 0 : index
    %c0_45 = arith.constant 0 : index
    %39 = vector.load %arg11[%c0_44, %c0_45] : memref<1x128xf32, #tpu.memory_space<vmem>>, vector<1x128xf32>
    %40 = vector.broadcast %39 : vector<1x128xf32> to vector<16x128xf32>
    %41 = arith.addf %38, %40 : vector<16x128xf32>
    %cst_46 = arith.constant 0.000000e+00 : f32
    %42 = vector.broadcast %cst_46 : f32 to vector<16x128xf32>
    %43 = arith.maximumf %41, %42 : vector<16x128xf32>
    %44 = arith.truncf %43 : vector<16x128xf32> to vector<16x128xbf16>
    %c0_47 = arith.constant 0 : index
    %c0_48 = arith.constant 0 : index
    %45 = vector.load %arg19[%c0_47, %c0_48] : memref<18x512xbf16, #tpu.memory_space<vmem>>, vector<16x128xbf16>
    tpu.vector_store %arg19[%c0_47, %c0_48], %44 {strides = array<i32>} : memref<18x512xbf16, #tpu.memory_space<vmem>>, vector<16x128xbf16>,
    %c0_49 = arith.constant 0 : index
    %c0_50 = arith.constant 0 : index
    %46 = vector.load %arg19[%c0_49, %c0_50] : memref<18x512xbf16, #tpu.memory_space<vmem>>, vector<16x128xbf16>
    %c0_51 = arith.constant 0 : index
    %c0_52 = arith.constant 0 : index
    %c0_53 = arith.constant 0 : index
    %47 = vector.load %arg4[%c0_51, %c0_52, %c0_53] : memref<3x128x256xbf16, #tpu.memory_space<vmem>>, vector<1x128x256xbf16>
    %48 = vector.shape_cast %47 : vector<1x128x256xbf16> to vector<128x256xbf16>
    %cst_54 = arith.constant dense<0.000000e+00> : vector<16x256xf32>
    %49 = tpu.matmul %46, %48, %cst_54 {dimension_numbers = #tpu.dot_dimension_numbers<[1], [0], [0], [1], [0, 0, 1, 1], [], []>} : vector<16x128xbf16>, vector<128x256xbf16>, vector<16x256xf32> -> vector<16x256xf32>
    %c1_55 = arith.constant 1 : index
    %c0_56 = arith.constant 0 : index
    %50 = vector.load %arg19[%c1_55, %c0_56] : memref<18x512xbf16, #tpu.memory_space<vmem>>, vector<16x128xbf16>
    %c1_57 = arith.constant 1 : index
    %c0_58 = arith.constant 0 : index
    %c0_59 = arith.constant 0 : index
    %51 = vector.load %arg4[%c1_57, %c0_58, %c0_59] : memref<3x128x256xbf16, #tpu.memory_space<vmem>>, vector<1x128x256xbf16>
    %52 = vector.shape_cast %51 : vector<1x128x256xbf16> to vector<128x256xbf16>
    %cst_60 = arith.constant dense<0.000000e+00> : vector<16x256xf32>
    %53 = tpu.matmul %50, %52, %cst_60 {dimension_numbers = #tpu.dot_dimension_numbers<[1], [0], [0], [1], [0, 0, 1, 1], [], []>} : vector<16x128xbf16>, vector<128x256xbf16>, vector<16x256xf32> -> vector<16x256xf32>
    %54 = arith.addf %49, %53 : vector<16x256xf32>
    %c2_61 = arith.constant 2 : index
    %c0_62 = arith.constant 0 : index
    %55 = vector.load %arg19[%c2_61, %c0_62] : memref<18x512xbf16, #tpu.memory_space<vmem>>, vector<16x128xbf16>
    %c2_63 = arith.constant 2 : index
    %c0_64 = arith.constant 0 : index
    %c0_65 = arith.constant 0 : index
    %56 = vector.load %arg4[%c2_63, %c0_64, %c0_65] : memref<3x128x256xbf16, #tpu.memory_space<vmem>>, vector<1x128x256xbf16>
    %57 = vector.shape_cast %56 : vector<1x128x256xbf16> to vector<128x256xbf16>
    %cst_66 = arith.constant dense<0.000000e+00> : vector<16x256xf32>
    %58 = tpu.matmul %55, %57, %cst_66 {dimension_numbers = #tpu.dot_dimension_numbers<[1], [0], [0], [1], [0, 0, 1, 1], [], []>} : vector<16x128xbf16>, vector<128x256xbf16>, vector<16x256xf32> -> vector<16x256xf32>
    %59 = arith.addf %54, %58 : vector<16x256xf32>
    %c0_67 = arith.constant 0 : index
    %c0_68 = arith.constant 0 : index
    %60 = vector.load %arg12[%c0_67, %c0_68] : memref<1x256xf32, #tpu.memory_space<vmem>>, vector<1x256xf32>
    %61 = vector.broadcast %60 : vector<1x256xf32> to vector<16x256xf32>
    %62 = arith.addf %59, %61 : vector<16x256xf32>
    %cst_69 = arith.constant 0.000000e+00 : f32
    %63 = vector.broadcast %cst_69 : f32 to vector<16x256xf32>
    %64 = arith.maximumf %62, %63 : vector<16x256xf32>
    %65 = arith.truncf %64 : vector<16x256xf32> to vector<16x256xbf16>
    %c0_70 = arith.constant 0 : index
    %c0_71 = arith.constant 0 : index
    %66 = vector.load %arg19[%c0_70, %c0_71] : memref<18x512xbf16, #tpu.memory_space<vmem>>, vector<16x256xbf16>
    tpu.vector_store %arg19[%c0_70, %c0_71], %65 {strides = array<i32>} : memref<18x512xbf16, #tpu.memory_space<vmem>>, vector<16x256xbf16>,
    %c0_72 = arith.constant 0 : index
    %c0_73 = arith.constant 0 : index
    %67 = vector.load %arg19[%c0_72, %c0_73] : memref<18x512xbf16, #tpu.memory_space<vmem>>, vector<16x256xbf16>
    %c0_74 = arith.constant 0 : index
    %c0_75 = arith.constant 0 : index
    %c0_76 = arith.constant 0 : index
    %68 = vector.load %arg5[%c0_74, %c0_75, %c0_76] : memref<3x256x256xbf16, #tpu.memory_space<vmem>>, vector<1x256x256xbf16>
    %69 = vector.shape_cast %68 : vector<1x256x256xbf16> to vector<256x256xbf16>
    %cst_77 = arith.constant dense<0.000000e+00> : vector<16x256xf32>
    %70 = tpu.matmul %67, %69, %cst_77 {dimension_numbers = #tpu.dot_dimension_numbers<[1], [0], [0], [1], [0, 0, 1, 1], [], []>} : vector<16x256xbf16>, vector<256x256xbf16>, vector<16x256xf32> -> vector<16x256xf32>
    %c1_78 = arith.constant 1 : index
    %c0_79 = arith.constant 0 : index
    %71 = vector.load %arg19[%c1_78, %c0_79] : memref<18x512xbf16, #tpu.memory_space<vmem>>, vector<16x256xbf16>
    %c1_80 = arith.constant 1 : index
    %c0_81 = arith.constant 0 : index
    %c0_82 = arith.constant 0 : index
    %72 = vector.load %arg5[%c1_80, %c0_81, %c0_82] : memref<3x256x256xbf16, #tpu.memory_space<vmem>>, vector<1x256x256xbf16>
    %73 = vector.shape_cast %72 : vector<1x256x256xbf16> to vector<256x256xbf16>
    %cst_83 = arith.constant dense<0.000000e+00> : vector<16x256xf32>
    %74 = tpu.matmul %71, %73, %cst_83 {dimension_numbers = #tpu.dot_dimension_numbers<[1], [0], [0], [1], [0, 0, 1, 1], [], []>} : vector<16x256xbf16>, vector<256x256xbf16>, vector<16x256xf32> -> vector<16x256xf32>
    %75 = arith.addf %70, %74 : vector<16x256xf32>
    %c2_84 = arith.constant 2 : index
    %c0_85 = arith.constant 0 : index
    %76 = vector.load %arg19[%c2_84, %c0_85] : memref<18x512xbf16, #tpu.memory_space<vmem>>, vector<16x256xbf16>
    %c2_86 = arith.constant 2 : index
    %c0_87 = arith.constant 0 : index
    %c0_88 = arith.constant 0 : index
    %77 = vector.load %arg5[%c2_86, %c0_87, %c0_88] : memref<3x256x256xbf16, #tpu.memory_space<vmem>>, vector<1x256x256xbf16>
    %78 = vector.shape_cast %77 : vector<1x256x256xbf16> to vector<256x256xbf16>
    %cst_89 = arith.constant dense<0.000000e+00> : vector<16x256xf32>
    %79 = tpu.matmul %76, %78, %cst_89 {dimension_numbers = #tpu.dot_dimension_numbers<[1], [0], [0], [1], [0, 0, 1, 1], [], []>} : vector<16x256xbf16>, vector<256x256xbf16>, vector<16x256xf32> -> vector<16x256xf32>
    %80 = arith.addf %75, %79 : vector<16x256xf32>
    %c0_90 = arith.constant 0 : index
    %c0_91 = arith.constant 0 : index
    %81 = vector.load %arg13[%c0_90, %c0_91] : memref<1x256xf32, #tpu.memory_space<vmem>>, vector<1x256xf32>
    %82 = vector.broadcast %81 : vector<1x256xf32> to vector<16x256xf32>
    %83 = arith.addf %80, %82 : vector<16x256xf32>
    %cst_92 = arith.constant 0.000000e+00 : f32
    %84 = vector.broadcast %cst_92 : f32 to vector<16x256xf32>
    %85 = arith.maximumf %83, %84 : vector<16x256xf32>
    %86 = arith.truncf %85 : vector<16x256xf32> to vector<16x256xbf16>
    %c0_93 = arith.constant 0 : index
    %c0_94 = arith.constant 0 : index
    %87 = vector.load %arg19[%c0_93, %c0_94] : memref<18x512xbf16, #tpu.memory_space<vmem>>, vector<16x256xbf16>
    tpu.vector_store %arg19[%c0_93, %c0_94], %86 {strides = array<i32>} : memref<18x512xbf16, #tpu.memory_space<vmem>>, vector<16x256xbf16>,
    %c0_95 = arith.constant 0 : index
    %c0_96 = arith.constant 0 : index
    %88 = vector.load %arg19[%c0_95, %c0_96] : memref<18x512xbf16, #tpu.memory_space<vmem>>, vector<8x256xbf16>
    %c0_97 = arith.constant 0 : index
    %c0_98 = arith.constant 0 : index
    %c0_99 = arith.constant 0 : index
    %89 = vector.load %arg6[%c0_97, %c0_98, %c0_99] : memref<3x256x384xbf16, #tpu.memory_space<vmem>>, vector<1x256x384xbf16>
    %90 = vector.shape_cast %89 : vector<1x256x384xbf16> to vector<256x384xbf16>
    %cst_100 = arith.constant dense<0.000000e+00> : vector<8x384xf32>
    %91 = tpu.matmul %88, %90, %cst_100 {dimension_numbers = #tpu.dot_dimension_numbers<[1], [0], [0], [1], [0, 0, 1, 1], [], []>} : vector<8x256xbf16>, vector<256x384xbf16>, vector<8x384xf32> -> vector<8x384xf32>
    %c1_101 = arith.constant 1 : index
    %c0_102 = arith.constant 0 : index
    %92 = vector.load %arg19[%c1_101, %c0_102] : memref<18x512xbf16, #tpu.memory_space<vmem>>, vector<8x256xbf16>
    %c1_103 = arith.constant 1 : index
    %c0_104 = arith.constant 0 : index
    %c0_105 = arith.constant 0 : index
    %93 = vector.load %arg6[%c1_103, %c0_104, %c0_105] : memref<3x256x384xbf16, #tpu.memory_space<vmem>>, vector<1x256x384xbf16>
    %94 = vector.shape_cast %93 : vector<1x256x384xbf16> to vector<256x384xbf16>
    %cst_106 = arith.constant dense<0.000000e+00> : vector<8x384xf32>
    %95 = tpu.matmul %92, %94, %cst_106 {dimension_numbers = #tpu.dot_dimension_numbers<[1], [0], [0], [1], [0, 0, 1, 1], [], []>} : vector<8x256xbf16>, vector<256x384xbf16>, vector<8x384xf32> -> vector<8x384xf32>
    %96 = arith.addf %91, %95 : vector<8x384xf32>
    %c2_107 = arith.constant 2 : index
    %c0_108 = arith.constant 0 : index
    %97 = vector.load %arg19[%c2_107, %c0_108] : memref<18x512xbf16, #tpu.memory_space<vmem>>, vector<8x256xbf16>
    %c2_109 = arith.constant 2 : index
    %c0_110 = arith.constant 0 : index
    %c0_111 = arith.constant 0 : index
    %98 = vector.load %arg6[%c2_109, %c0_110, %c0_111] : memref<3x256x384xbf16, #tpu.memory_space<vmem>>, vector<1x256x384xbf16>
    %99 = vector.shape_cast %98 : vector<1x256x384xbf16> to vector<256x384xbf16>
    %cst_112 = arith.constant dense<0.000000e+00> : vector<8x384xf32>
    %100 = tpu.matmul %97, %99, %cst_112 {dimension_numbers = #tpu.dot_dimension_numbers<[1], [0], [0], [1], [0, 0, 1, 1], [], []>} : vector<8x256xbf16>, vector<256x384xbf16>, vector<8x384xf32> -> vector<8x384xf32>
    %101 = arith.addf %96, %100 : vector<8x384xf32>
    %c0_113 = arith.constant 0 : index
    %c0_114 = arith.constant 0 : index
    %102 = vector.load %arg14[%c0_113, %c0_114] : memref<1x384xf32, #tpu.memory_space<vmem>>, vector<1x384xf32>
    %103 = vector.broadcast %102 : vector<1x384xf32> to vector<8x384xf32>
    %104 = arith.addf %101, %103 : vector<8x384xf32>
    %cst_115 = arith.constant 0.000000e+00 : f32
    %105 = vector.broadcast %cst_115 : f32 to vector<8x384xf32>
    %106 = arith.maximumf %104, %105 : vector<8x384xf32>
    %107 = arith.truncf %106 : vector<8x384xf32> to vector<8x384xbf16>
    %c0_116 = arith.constant 0 : index
    %c0_117 = arith.constant 0 : index
    %108 = vector.load %arg19[%c0_116, %c0_117] : memref<18x512xbf16, #tpu.memory_space<vmem>>, vector<8x384xbf16>
    tpu.vector_store %arg19[%c0_116, %c0_117], %107 {strides = array<i32>} : memref<18x512xbf16, #tpu.memory_space<vmem>>, vector<8x384xbf16>,
    %c0_118 = arith.constant 0 : index
    %c0_119 = arith.constant 0 : index
    %109 = vector.load %arg19[%c0_118, %c0_119] : memref<18x512xbf16, #tpu.memory_space<vmem>>, vector<8x384xbf16>
    %c0_120 = arith.constant 0 : index
    %c0_121 = arith.constant 0 : index
    %c0_122 = arith.constant 0 : index
    %110 = vector.load %arg7[%c0_120, %c0_121, %c0_122] : memref<3x384x512xbf16, #tpu.memory_space<vmem>>, vector<1x384x512xbf16>
    %111 = vector.shape_cast %110 : vector<1x384x512xbf16> to vector<384x512xbf16>
    %cst_123 = arith.constant dense<0.000000e+00> : vector<8x512xf32>
    %112 = tpu.matmul %109, %111, %cst_123 {dimension_numbers = #tpu.dot_dimension_numbers<[1], [0], [0], [1], [0, 0, 1, 1], [], []>} : vector<8x384xbf16>, vector<384x512xbf16>, vector<8x512xf32> -> vector<8x512xf32>
    %c1_124 = arith.constant 1 : index
    %c0_125 = arith.constant 0 : index
    %113 = vector.load %arg19[%c1_124, %c0_125] : memref<18x512xbf16, #tpu.memory_space<vmem>>, vector<8x384xbf16>
    %c1_126 = arith.constant 1 : index
    %c0_127 = arith.constant 0 : index
    %c0_128 = arith.constant 0 : index
    %114 = vector.load %arg7[%c1_126, %c0_127, %c0_128] : memref<3x384x512xbf16, #tpu.memory_space<vmem>>, vector<1x384x512xbf16>
    %115 = vector.shape_cast %114 : vector<1x384x512xbf16> to vector<384x512xbf16>
    %cst_129 = arith.constant dense<0.000000e+00> : vector<8x512xf32>
    %116 = tpu.matmul %113, %115, %cst_129 {dimension_numbers = #tpu.dot_dimension_numbers<[1], [0], [0], [1], [0, 0, 1, 1], [], []>} : vector<8x384xbf16>, vector<384x512xbf16>, vector<8x512xf32> -> vector<8x512xf32>
    %117 = arith.addf %112, %116 : vector<8x512xf32>
    %c2_130 = arith.constant 2 : index
    %c0_131 = arith.constant 0 : index
    %118 = vector.load %arg19[%c2_130, %c0_131] : memref<18x512xbf16, #tpu.memory_space<vmem>>, vector<8x384xbf16>
    %c2_132 = arith.constant 2 : index
    %c0_133 = arith.constant 0 : index
    %c0_134 = arith.constant 0 : index
    %119 = vector.load %arg7[%c2_132, %c0_133, %c0_134] : memref<3x384x512xbf16, #tpu.memory_space<vmem>>, vector<1x384x512xbf16>
    %120 = vector.shape_cast %119 : vector<1x384x512xbf16> to vector<384x512xbf16>
    %cst_135 = arith.constant dense<0.000000e+00> : vector<8x512xf32>
    %121 = tpu.matmul %118, %120, %cst_135 {dimension_numbers = #tpu.dot_dimension_numbers<[1], [0], [0], [1], [0, 0, 1, 1], [], []>} : vector<8x384xbf16>, vector<384x512xbf16>, vector<8x512xf32> -> vector<8x512xf32>
    %122 = arith.addf %117, %121 : vector<8x512xf32>
    %c0_136 = arith.constant 0 : index
    %c0_137 = arith.constant 0 : index
    %123 = vector.load %arg15[%c0_136, %c0_137] : memref<1x512xf32, #tpu.memory_space<vmem>>, vector<1x512xf32>
    %124 = vector.broadcast %123 : vector<1x512xf32> to vector<8x512xf32>
    %125 = arith.addf %122, %124 : vector<8x512xf32>
    %cst_138 = arith.constant 0.000000e+00 : f32
    %126 = vector.broadcast %cst_138 : f32 to vector<8x512xf32>
    %127 = arith.maximumf %125, %126 : vector<8x512xf32>
    %128 = arith.truncf %127 : vector<8x512xf32> to vector<8x512xbf16>
    %c0_139 = arith.constant 0 : index
    %c0_140 = arith.constant 0 : index
    %129 = vector.load %arg19[%c0_139, %c0_140] : memref<18x512xbf16, #tpu.memory_space<vmem>>, vector<8x512xbf16>
    tpu.vector_store %arg19[%c0_139, %c0_140], %128 {strides = array<i32>} : memref<18x512xbf16, #tpu.memory_space<vmem>>, vector<8x512xbf16>,
    %c0_141 = arith.constant 0 : index
    %c0_142 = arith.constant 0 : index
    %130 = vector.load %arg19[%c0_141, %c0_142] : memref<18x512xbf16, #tpu.memory_space<vmem>>, vector<8x512xbf16>
    %c0_143 = arith.constant 0 : index
    %c0_144 = arith.constant 0 : index
    %c0_145 = arith.constant 0 : index
    %131 = vector.load %arg8[%c0_143, %c0_144, %c0_145] : memref<3x512x512xbf16, #tpu.memory_space<vmem>>, vector<1x512x512xbf16>
    %132 = vector.shape_cast %131 : vector<1x512x512xbf16> to vector<512x512xbf16>
    %cst_146 = arith.constant dense<0.000000e+00> : vector<8x512xf32>
    %133 = tpu.matmul %130, %132, %cst_146 {dimension_numbers = #tpu.dot_dimension_numbers<[1], [0], [0], [1], [0, 0, 1, 1], [], []>} : vector<8x512xbf16>, vector<512x512xbf16>, vector<8x512xf32> -> vector<8x512xf32>
    %c1_147 = arith.constant 1 : index
    %c0_148 = arith.constant 0 : index
    %134 = vector.load %arg19[%c1_147, %c0_148] : memref<18x512xbf16, #tpu.memory_space<vmem>>, vector<8x512xbf16>
    %c1_149 = arith.constant 1 : index
    %c0_150 = arith.constant 0 : index
    %c0_151 = arith.constant 0 : index
    %135 = vector.load %arg8[%c1_149, %c0_150, %c0_151] : memref<3x512x512xbf16, #tpu.memory_space<vmem>>, vector<1x512x512xbf16>
    %136 = vector.shape_cast %135 : vector<1x512x512xbf16> to vector<512x512xbf16>
    %cst_152 = arith.constant dense<0.000000e+00> : vector<8x512xf32>
    %137 = tpu.matmul %134, %136, %cst_152 {dimension_numbers = #tpu.dot_dimension_numbers<[1], [0], [0], [1], [0, 0, 1, 1], [], []>} : vector<8x512xbf16>, vector<512x512xbf16>, vector<8x512xf32> -> vector<8x512xf32>
    %138 = arith.addf %133, %137 : vector<8x512xf32>
    %c2_153 = arith.constant 2 : index
    %c0_154 = arith.constant 0 : index
    %139 = vector.load %arg19[%c2_153, %c0_154] : memref<18x512xbf16, #tpu.memory_space<vmem>>, vector<8x512xbf16>
    %c2_155 = arith.constant 2 : index
    %c0_156 = arith.constant 0 : index
    %c0_157 = arith.constant 0 : index
    %140 = vector.load %arg8[%c2_155, %c0_156, %c0_157] : memref<3x512x512xbf16, #tpu.memory_space<vmem>>, vector<1x512x512xbf16>
    %141 = vector.shape_cast %140 : vector<1x512x512xbf16> to vector<512x512xbf16>
    %cst_158 = arith.constant dense<0.000000e+00> : vector<8x512xf32>
    %142 = tpu.matmul %139, %141, %cst_158 {dimension_numbers = #tpu.dot_dimension_numbers<[1], [0], [0], [1], [0, 0, 1, 1], [], []>} : vector<8x512xbf16>, vector<512x512xbf16>, vector<8x512xf32> -> vector<8x512xf32>
    %143 = arith.addf %138, %142 : vector<8x512xf32>
    %c0_159 = arith.constant 0 : index
    %c0_160 = arith.constant 0 : index
    %144 = vector.load %arg16[%c0_159, %c0_160] : memref<1x512xf32, #tpu.memory_space<vmem>>, vector<1x512xf32>
    %145 = vector.broadcast %144 : vector<1x512xf32> to vector<8x512xf32>
    %146 = arith.addf %143, %145 : vector<8x512xf32>
    %cst_161 = arith.constant 0.000000e+00 : f32
    %147 = vector.broadcast %cst_161 : f32 to vector<8x512xf32>
    %148 = arith.maximumf %146, %147 : vector<8x512xf32>
    %149 = arith.truncf %148 : vector<8x512xf32> to vector<8x512xbf16>
    %c0_162 = arith.constant 0 : index
    %c0_163 = arith.constant 0 : index
    %150 = vector.load %arg19[%c0_162, %c0_163] : memref<18x512xbf16, #tpu.memory_space<vmem>>, vector<8x512xbf16>
    tpu.vector_store %arg19[%c0_162, %c0_163], %149 {strides = array<i32>} : memref<18x512xbf16, #tpu.memory_space<vmem>>, vector<8x512xbf16>,
    %c0_164 = arith.constant 0 : index
    %c0_165 = arith.constant 0 : index
    %151 = vector.load %arg19[%c0_164, %c0_165] : memref<18x512xbf16, #tpu.memory_space<vmem>>, vector<8x512xbf16>
    %c0_166 = arith.constant 0 : index
    %c0_167 = arith.constant 0 : index
    %c0_168 = arith.constant 0 : index
    %152 = vector.load %arg9[%c0_166, %c0_167, %c0_168] : memref<2x512x128xbf16, #tpu.memory_space<vmem>>, vector<1x512x128xbf16>
    %153 = vector.shape_cast %152 : vector<1x512x128xbf16> to vector<512x128xbf16>
    %cst_169 = arith.constant dense<0.000000e+00> : vector<8x128xf32>
    %154 = tpu.matmul %151, %153, %cst_169 {dimension_numbers = #tpu.dot_dimension_numbers<[1], [0], [0], [1], [0, 0, 1, 1], [], []>} : vector<8x512xbf16>, vector<512x128xbf16>, vector<8x128xf32> -> vector<8x128xf32>
    %c1_170 = arith.constant 1 : index
    %c0_171 = arith.constant 0 : index
    %155 = vector.load %arg19[%c1_170, %c0_171] : memref<18x512xbf16, #tpu.memory_space<vmem>>, vector<8x512xbf16>
    %c1_172 = arith.constant 1 : index
    %c0_173 = arith.constant 0 : index
    %c0_174 = arith.constant 0 : index
    %156 = vector.load %arg9[%c1_172, %c0_173, %c0_174] : memref<2x512x128xbf16, #tpu.memory_space<vmem>>, vector<1x512x128xbf16>
    %157 = vector.shape_cast %156 : vector<1x512x128xbf16> to vector<512x128xbf16>
    %cst_175 = arith.constant dense<0.000000e+00> : vector<8x128xf32>
    %158 = tpu.matmul %155, %157, %cst_175 {dimension_numbers = #tpu.dot_dimension_numbers<[1], [0], [0], [1], [0, 0, 1, 1], [], []>} : vector<8x512xbf16>, vector<512x128xbf16>, vector<8x128xf32> -> vector<8x128xf32>
    %159 = arith.addf %154, %158 : vector<8x128xf32>
    %c0_176 = arith.constant 0 : index
    %c0_177 = arith.constant 0 : index
    %160 = vector.load %arg17[%c0_176, %c0_177] : memref<1x128xf32, #tpu.memory_space<vmem>>, vector<1x128xf32>
    %161 = vector.broadcast %160 : vector<1x128xf32> to vector<8x128xf32>
    %162 = arith.addf %159, %161 : vector<8x128xf32>
    %c0_178 = arith.constant 0 : index
    %c0_179 = arith.constant 0 : index
    %163 = vector.load %arg18[%c0_178, %c0_179] : memref<8x128xf32, #tpu.memory_space<vmem>>, vector<8x128xf32>
    tpu.vector_store %arg18[%c0_178, %c0_179], %162 {strides = array<i32>} : memref<8x128xf32, #tpu.memory_space<vmem>>, vector<8x128xf32>,
    return
  }
  func.func @transform_0(%arg0: i32) -> (i32, i32) {
    %c0_i32 = arith.constant 0 : i32
    %c0_i32_0 = arith.constant 0 : i32
    return %arg0, %c0_i32 : i32, i32
  }
  func.func @transform_1(%arg0: i32) -> (i32, i32, i32) {
    %c0_i32 = arith.constant 0 : i32
    %c0_i32_0 = arith.constant 0 : i32
    %c0_i32_1 = arith.constant 0 : i32
    %c0_i32_2 = arith.constant 0 : i32
    return %c0_i32, %c0_i32_0, %c0_i32_1 : i32, i32, i32
  }
  func.func @transform_2(%arg0: i32) -> (i32, i32, i32) {
    %c0_i32 = arith.constant 0 : i32
    %c0_i32_0 = arith.constant 0 : i32
    %c0_i32_1 = arith.constant 0 : i32
    %c0_i32_2 = arith.constant 0 : i32
    return %c0_i32, %c0_i32_0, %c0_i32_1 : i32, i32, i32
  }
  func.func @transform_3(%arg0: i32) -> (i32, i32, i32) {
    %c0_i32 = arith.constant 0 : i32
    %c0_i32_0 = arith.constant 0 : i32
    %c0_i32_1 = arith.constant 0 : i32
    %c0_i32_2 = arith.constant 0 : i32
    return %c0_i32, %c0_i32_0, %c0_i32_1 : i32, i32, i32
  }
  func.func @transform_4(%arg0: i32) -> (i32, i32, i32) {
    %c0_i32 = arith.constant 0 : i32
    %c0_i32_0 = arith.constant 0 : i32
    %c0_i32_1 = arith.constant 0 : i32
    %c0_i32_2 = arith.constant 0 : i32
    return %c0_i32, %c0_i32_0, %c0_i32_1 : i32, i32, i32
  }
  func.func @transform_5(%arg0: i32) -> (i32, i32, i32) {
    %c0_i32 = arith.constant 0 : i32
    %c0_i32_0 = arith.constant 0 : i32
    %c0_i32_1 = arith.constant 0 : i32
    %c0_i32_2 = arith.constant 0 : i32
    return %c0_i32, %c0_i32_0, %c0_i32_1 : i32, i32, i32
  }
  func.func @transform_6(%arg0: i32) -> (i32, i32, i32) {
    %c0_i32 = arith.constant 0 : i32
    %c0_i32_0 = arith.constant 0 : i32
    %c0_i32_1 = arith.constant 0 : i32
    %c0_i32_2 = arith.constant 0 : i32
    return %c0_i32, %c0_i32_0, %c0_i32_1 : i32, i32, i32
  }
  func.func @transform_7(%arg0: i32) -> (i32, i32, i32) {
    %c0_i32 = arith.constant 0 : i32
    %c0_i32_0 = arith.constant 0 : i32
    %c0_i32_1 = arith.constant 0 : i32
    %c0_i32_2 = arith.constant 0 : i32
    return %c0_i32, %c0_i32_0, %c0_i32_1 : i32, i32, i32
  }
  func.func @transform_8(%arg0: i32) -> (i32, i32, i32) {
    %c0_i32 = arith.constant 0 : i32
    %c0_i32_0 = arith.constant 0 : i32
    %c0_i32_1 = arith.constant 0 : i32
    %c0_i32_2 = arith.constant 0 : i32
    return %c0_i32, %c0_i32_0, %c0_i32_1 : i32, i32, i32
  }
  func.func @transform_9(%arg0: i32) -> (i32, i32) {
    %c0_i32 = arith.constant 0 : i32
    %c0_i32_0 = arith.constant 0 : i32
    %c0_i32_1 = arith.constant 0 : i32
    return %c0_i32, %c0_i32_0 : i32, i32
  }
  func.func @transform_10(%arg0: i32) -> (i32, i32) {
    %c0_i32 = arith.constant 0 : i32
    %c0_i32_0 = arith.constant 0 : i32
    %c0_i32_1 = arith.constant 0 : i32
    return %c0_i32, %c0_i32_0 : i32, i32
  }
  func.func @transform_11(%arg0: i32) -> (i32, i32) {
    %c0_i32 = arith.constant 0 : i32
    %c0_i32_0 = arith.constant 0 : i32
    %c0_i32_1 = arith.constant 0 : i32
    return %c0_i32, %c0_i32_0 : i32, i32
  }
  func.func @transform_12(%arg0: i32) -> (i32, i32) {
    %c0_i32 = arith.constant 0 : i32
    %c0_i32_0 = arith.constant 0 : i32
    %c0_i32_1 = arith.constant 0 : i32
    return %c0_i32, %c0_i32_0 : i32, i32
  }
  func.func @transform_13(%arg0: i32) -> (i32, i32) {
    %c0_i32 = arith.constant 0 : i32
    %c0_i32_0 = arith.constant 0 : i32
    %c0_i32_1 = arith.constant 0 : i32
    return %c0_i32, %c0_i32_0 : i32, i32
  }
  func.func @transform_14(%arg0: i32) -> (i32, i32) {
    %c0_i32 = arith.constant 0 : i32
    %c0_i32_0 = arith.constant 0 : i32
    %c0_i32_1 = arith.constant 0 : i32
    return %c0_i32, %c0_i32_0 : i32, i32
  }
  func.func @transform_15(%arg0: i32) -> (i32, i32) {
    %c0_i32 = arith.constant 0 : i32
    %c0_i32_0 = arith.constant 0 : i32
    %c0_i32_1 = arith.constant 0 : i32
    return %c0_i32, %c0_i32_0 : i32, i32
  }
  func.func @transform_16(%arg0: i32) -> (i32, i32) {
    %c0_i32 = arith.constant 0 : i32
    %c0_i32_0 = arith.constant 0 : i32
    %c0_i32_1 = arith.constant 0 : i32
    return %c0_i32, %c0_i32_0 : i32, i32
  }
  func.func @transform_17(%arg0: i32) -> (i32, i32) {
    %c0_i32 = arith.constant 0 : i32
    %c0_i32_0 = arith.constant 0 : i32
    return %arg0, %c0_i32 : i32, i32
  }
}

</mosaic_0001>

<bundles_post_ra>
// kernel: tpu_custom_call.1
= control target key start
LH: loop header
LB: loop body
LE: loop exit
PB: predicated region body
PF: predicated region fallthrough
CT: control target
= control target key end

     0   :  { %s15031_s0 = inlined_call_operand.hbm [shape: bf16[32,128], index: 0, kind: input, shape index: {}]   ;;  %s15032_s1 = inlined_call_operand.hbm [shape: bf16[3,128,128], index: 1, kind: input, shape index: {}]   ;;  %s15033_s2 = inlined_call_operand.hbm [shape: bf16[3,128,128], index: 2, kind: input, shape index: {}]   ;;  %s15034_s3 = inlined_call_operand.hbm [shape: bf16[3,128,256], index: 3, kind: input, shape index: {}]   ;;  %s15035_s4 = inlined_call_operand.hbm [shape: bf16[3,256,256], index: 4, kind: input, shape index: {}]   ;;  %s15036_s5 = inlined_call_operand.hbm [shape: bf16[3,256,384], index: 5, kind: input, shape index: {}]   ;;  %s15037_s6 = inlined_call_operand.hbm [shape: bf16[3,384,512], index: 6, kind: input, shape index: {}]   ;;  %s15038_s7 = inlined_call_operand.hbm [shape: bf16[3,512,512], index: 7, kind: input, shape index: {}]   ;;  %s15039_s8 = inlined_call_operand.hbm [shape: bf16[2,512,128], index: 8, kind: input, shape index: {}]   ;;  %s15040_s9 = inlined_call_operand.hbm [shape: f32[1,128], index: 9, kind: input, shape index: {}]   ;;  %s15041_s10 = inlined_call_operand.hbm [shape: f32[1,128], index: 10, kind: input, shape index: {}]   ;;  %s15042_s11 = inlined_call_operand.hbm [shape: f32[1,256], index: 11, kind: input, shape index: {}]   ;;  %s15043_s12 = inlined_call_operand.hbm [shape: f32[1,256], index: 12, kind: input, shape index: {}]   ;;  %s15044_s13 = inlined_call_operand.hbm [shape: f32[1,384], index: 13, kind: input, shape index: {}]   ;;  %s15045_s14 = inlined_call_operand.hbm [shape: f32[1,512], index: 14, kind: input, shape index: {}]   ;;  %s15046_s15 = inlined_call_operand.hbm [shape: f32[1,512], index: 15, kind: input, shape index: {}]   ;;  %s15047_s16 = inlined_call_operand.hbm [shape: f32[1,128], index: 16, kind: input, shape index: {}]   ;;  %s15048_s17 = inlined_call_operand.hbm [shape: f32[16,128], index: 17, kind: output, shape index: {}]  }
   0x1   :  { %15067 = sst [smem:[#allocation44_spill]] %s15031_s0 }
   0x2   :  { %15068 = sst [smem:[#allocation45_spill]] %s15032_s1 }
   0x3   :  { %15069 = sst [smem:[#allocation46_spill]] %s15033_s2 }
   0x4   :  { %15070 = sst [smem:[#allocation47_spill]] %s15034_s3 }
   0x5   :  { %15071 = sst [smem:[#allocation48_spill]] %s15035_s4 }
   0x6   :  { %15072 = sst [smem:[#allocation49_spill]] %s15036_s5 }
   0x7   :  { %15073 = sst [smem:[#allocation50_spill]] %s15037_s6 }
   0x8   :  { %15074 = sst [smem:[#allocation51_spill]] %s15038_s7 }
   0x9   :  { %15075 = sst [smem:[#allocation52_spill]] %s15039_s8 }
   0xa   :  { %15076 = sst [smem:[#allocation53_spill]] %s15040_s9 }
   0xb   :  { %15077 = sst [smem:[#allocation54_spill]] %s15048_s17 }
   0xc   :  { %22 = vsyncpa [#allocation4], 0 }
   0xd   :  { %24 = vsyncpa [#allocation4 + $0x1], 0 }
   0xe   :  { %25 = vsyncpa [#allocation7], 0 }
   0xf   :  { %26 = vsyncpa [#allocation10], 0 }
  0x10   :  { %27 = vsyncpa [#allocation13], 0 }
  0x11   :  { %28 = vsyncpa [#allocation16], 0 }
  0x12   :  { %29 = vsyncpa [#allocation19], 0 }
  0x13   :  { %30 = vsyncpa [#allocation22], 0 }
  0x14   :  { %31 = vsyncpa [#allocation25], 0 }
  0x15   :  { %32 = vsyncpa [#allocation28], 0 }
  0x16   :  { %33 = vsyncpa [#allocation5], 0 }
  0x17   :  { %35 = vsyncpa [#allocation5 + $0x1], 0  ;;  %s14331_s24 = smov 0   ;;  %s14333_s25 = smov 0  }
  0x18   :  { %s14335_s26 = smov 0   ;;  %s14337_s27 = smov 0  }
  0x19 LB: > { %15078 = sst [smem:[#allocation41_spill]] %s14198_s24  ;;  %s14212_s28 = smov [#allocation6]   ;;  %s14210_s27 = sphi %s14337_s27, %s15136_s27   ;;  %s14206_s26 = sphi %s14335_s26, %s15135_s26   ;;  %s14202_s25 = sphi %s14333_s25, %s15134_s25   ;;  %s14198_s24 = sphi %s14331_s24, %s15133_s24  }
  0x1a   : > { %s446_s29 = sshll.u32 %s14212_s28, 4  ;;  %s14352_s0 = sadd.s32 4294967295, %s14210_s27   ;;  %s447_s29 = int_to_ptr.vmem [resolvable:$true] %s446_s29 }
  0x1b   : > { %15079 = sst [smem:[#allocation42_spill]] %s14352_s0  ;;  %p10368_p0 = scmp.ge.s32.totalorder %s14210_s27, 1 }
  0x1c   : > { %p15062_p1 = scmp.eq.s32.totalorder %s14352_s0, 0  ;;  %p434_p2 = scmp.lt.s32.totalorder %s14210_s27, 3 }
  0x1d   : > { %s14213_s18 = smov [#allocation9]   ;;  %s14214_s20 = smov [#allocation12]  }
  0x1e   : > { %p14357_p3 = pnand %p10368_p0, %p434_p2  ;;  %s472_s19 = sshll.u32 %s14213_s18, 4  ;;  %s14370_s19 = int_to_ptr.vmem [resolvable:$true] %s472_s19 }
  0x1f   : > { %s14372_s21 = sshll.u32 %s14214_s20, 4  ;;  %s13681_s23 = scalar_lea.vmem %s447_s29, 3072  ;;  %s499_s21 = int_to_ptr.vmem [resolvable:$true] %s14372_s21 }
  0x20   : > { %s15080_s30 = scalar_select %p14357_p3, 1, 0 }
  0x21   : > { %p11962_p5 = pneg %p14357_p3  ;;  %p13682_p8 = scmp.ne.s32.totalorder %s447_s29, %s13681_s23 }
  0x22   : > { %15081 = sst [smem:[#allocation43_spill]] %s15080_s30  ;;  %p13689_p11 = scmp.lt.s32.totalorder %s447_s29, %s447_s29 }
  0x23   : > { %p14366_p6 = pnand %p11962_p5, %p15062_p1  ;;  %p13690_p12 = scmp.lt.s32.totalorder %s13681_s23, %s13681_s23 }
  0x25   : > { %p14376_p7 = pneg %p14366_p6  ;;  %p13691_p13 = por %p13690_p12, %p13689_p11 }
  0x27   : > { %p13684_p9 = pnand %p13682_p8, %p14376_p7 }
  0x29   : > { %p13685_p10 = pneg %p13684_p9 }
  0x2b   : > { %p13692_p0 = pnand %p13691_p13, %p13685_p10 }
  0x2d   : > { %13695 = shalt.err (!%p13692_p0)
}
  0x2e   : > { %s15055_s28 = smov 64   ;;  %s15057_s18 = smov 4  }
  0x2f   : > { %s15084_s30 = sld [smem:[#allocation45_spill]]  ;;  %s13707_s0 = scalar_lea.vmem %s14370_s19, 6144 }
  0x30   : > { %p13708_p2 = scmp.ne.s32.totalorder %s14370_s19, %s13707_s0  ;;  %p13715_p9 = scmp.lt.s32.totalorder %s14370_s19, %s14370_s19 }
  0x31   : > { %p13716_p10 = scmp.lt.s32.totalorder %s13707_s0, %s13707_s0 }
  0x32   : > { %p13710_p5 = pnand %p13708_p2, %p14376_p7 }
  0x33   : > { %p13717_p11 = por %p13716_p10, %p13715_p9 }
  0x34   : > { %p13711_p8 = pneg %p13710_p5 }
  0x35   : > { %11965 = dma.hbm_to_vmem [thread:$0]  (!%p14366_p6), %s15084_s30, 3072, %s447_s29, [#allocation7], %s15055_s28, %s15055_s28, %s15057_s18  }
  0x36   : > { %p13718_p12 = pnand %p13717_p11, %p13711_p8 }
  0x38   : > { %13721 = shalt.err (!%p13718_p12)
}
  0x39   : > { %s15059_s23 = smov 128   ;;  %s15060_s24 = smov 8  }
  0x3a   : > { %s15085_s3 = sld [smem:[#allocation47_spill]]  ;;  %s13733_s30 = scalar_lea.vmem %s499_s21, 18432 }
  0x3b   : > { %p13734_p13 = scmp.ne.s32.totalorder %s499_s21, %s13733_s30  ;;  %p13741_p5 = scmp.lt.s32.totalorder %s499_s21, %s499_s21 }
  0x3c   : > { %p13742_p8 = scmp.lt.s32.totalorder %s13733_s30, %s13733_s30 }
  0x3d   : > { %p13736_p0 = pnand %p13734_p13, %p14376_p7 }
  0x3e   : > { %p13743_p9 = por %p13742_p8, %p13741_p5 }
  0x3f   : > { %p13737_p2 = pneg %p13736_p0 }
  0x40   : > { %11971 = dma.hbm_to_vmem [thread:$0]  (!%p14366_p6), %s15085_s3, 6144, %s14370_s19, [#allocation10], %s15059_s23, %s15059_s23, %s15060_s24  }
  0x41   : > { %p13744_p10 = pnand %p13743_p9, %p13737_p2 }
  0x43   : > { %13747 = shalt.err (!%p13744_p10)
}
  0x44   : > { %s14219_s0 = smov 192   ;;  %s14220_s20 = smov 12  }
  0x45   : > { %s15086_s5 = sld [smem:[#allocation49_spill]]  ;;  %s14221_s19 = smov [#allocation15]  }
  0x46   : > { %s524_s17 = sshll.u32 %s14221_s19, 4  ;;  %s14222_s29 = smov [#allocation18]   ;;  %s525_s17 = int_to_ptr.vmem [resolvable:$true] %s524_s17 }
  0x47   : > { %s551_s23 = sshll.u32 %s14222_s29, 4  ;;  %s13759_s24 = scalar_lea.vmem %s525_s17, 49152  ;;  %s552_s23 = int_to_ptr.vmem [resolvable:$true] %s551_s23 }
  0x48   : > { %p13760_p11 = scmp.ne.s32.totalorder %s525_s17, %s13759_s24  ;;  %p13767_p0 = scmp.lt.s32.totalorder %s525_s17, %s525_s17 }
  0x49   : > { %p13768_p2 = scmp.lt.s32.totalorder %s13759_s24, %s13759_s24 }
  0x4a   : > { %p13762_p12 = pnand %p13760_p11, %p14376_p7 }
  0x4b   : > { %11977 = dma.hbm_to_vmem [thread:$0]  (!%p14366_p6), %s15086_s5, 18432, %s499_s21, [#allocation13], %s14219_s0, %s14219_s0, %s14220_s20  }
  0x4c   : > { %p13763_p13 = pneg %p13762_p12  ;;  %p13769_p5 = por %p13768_p2, %p13767_p0 }
  0x4e   : > { %p13770_p8 = pnand %p13769_p5, %p13763_p13 }
  0x50   : > { %13773 = shalt.err (!%p13770_p8)
}
  0x51   : > { %s15061_s30 = smov 256   ;;  %s15064_s28 = smov 16  }
  0x52   : > { %s15087_s7 = sld [smem:[#allocation51_spill]]  ;;  %s13785_s0 = scalar_lea.vmem %s552_s23, 16 }
  0x53   : > { %p13786_p9 = scmp.ne.s32.totalorder %s552_s23, %s13785_s0  ;;  %s13792_s24 = scalar_lea.vmem %s552_s23, 32 }
  0x54   : > { %p13793_p12 = scmp.lt.s32.totalorder %s552_s23, %s552_s23  ;;  %p13794_p13 = scmp.lt.s32.totalorder %s13792_s24, %s13785_s0 }
  0x55   : > { %p13788_p10 = pnand %p13786_p9, %p14376_p7 }
  0x56   : > { %p13795_p0 = por %p13794_p13, %p13793_p12 }
  0x57   : > { %p13789_p11 = pneg %p13788_p10 }
  0x58   : > { %11983 = dma.hbm_to_vmem [thread:$0]  (!%p14366_p6), %s15087_s7, 49152, %s525_s17, [#allocation16], %s15061_s30, %s15061_s30, %s15064_s28  }
  0x59   : > { %p13796_p2 = pnand %p13795_p0, %p13789_p11 }
  0x5b   : > { %13799 = shalt.err (!%p13796_p2)
}
  0x5c   : > { %s15088_s9 = sld [smem:[#allocation53_spill]]  ;;  %s14225_s17 = smov [#allocation21]  }
  0x5d   : > { %s573_s29 = sshll.u32 %s14225_s17, 4  ;;  %s14226_s21 = smov [#allocation24]   ;;  %s574_s29 = int_to_ptr.vmem [resolvable:$true] %s573_s29 }
  0x5e   : > { %s595_s18 = sshll.u32 %s14226_s21, 4  ;;  %s13811_s30 = scalar_lea.vmem %s574_s29, 32  ;;  %s596_s18 = int_to_ptr.vmem [resolvable:$true] %s595_s18 }
  0x5f   : > { %p13812_p5 = scmp.ne.s32.totalorder %s574_s29, %s13811_s30  ;;  %p13819_p10 = scmp.lt.s32.totalorder %s574_s29, %s574_s29 }
  0x60   : > { %p13820_p11 = scmp.lt.s32.totalorder %s13811_s30, %s13811_s30 }
  0x61   : > { %p13814_p8 = pnand %p13812_p5, %p14376_p7 }
  0x62   : > { %11989 = dma.hbm_to_vmem [thread:$0]  (!%p14366_p6), %s15088_s9, 16, %s552_s23, [#allocation19]  }
  0x63   : > { %p13815_p9 = pneg %p13814_p8  ;;  %p13821_p12 = por %p13820_p11, %p13819_p10 }
  0x65   : > { %p13822_p13 = pnand %p13821_p12, %p13815_p9 }
  0x67   : > { %13825 = shalt.err (!%p13822_p13)
}
  0x68   : > { %11995 = dma.hbm_to_vmem [thread:$0]  (!%p14366_p6), %s15042_s11, 32, %s574_s29, [#allocation22]  }
  0x69   : > { %s13837_s23 = scalar_lea.vmem %s596_s18, 48  ;;  %s13844_s20 = scalar_lea.vmem %s596_s18, 64 }
  0x6a   : > { %p13838_p0 = scmp.ne.s32.totalorder %s596_s18, %s13837_s23  ;;  %p13845_p5 = scmp.lt.s32.totalorder %s596_s18, %s596_s18 }
  0x6b   : > { %p13846_p8 = scmp.lt.s32.totalorder %s13844_s20, %s13837_s23 }
  0x6c   : > { %p13840_p2 = pnand %p13838_p0, %p14376_p7 }
  0x6d   : > { %p13847_p1 = por %p13846_p8, %p13845_p5 }
  0x6e   : > { %p13841_p4 = pneg %p13840_p2 }
  0x70   : > { %p13848_p10 = pnand %p13847_p1, %p13841_p4 }
  0x72   : > { %13851 = shalt.err (!%p13848_p10)
}
  0x73   : > { %12001 = dma.hbm_to_vmem [thread:$0]  (!%p14366_p6), %s15044_s13, 48, %s596_s18, [#allocation25]  }
  0x74   : > { %s14227_s17 = smov [#allocation27]   ;;  %s14228_s21 = smov [#allocation8]  }
  0x75   : > { %s617_s29 = sshll.u32 %s14227_s17, 4  ;;  %s459_s0 = sshll.u32 %s14228_s21, 4  ;;  %s618_s29 = int_to_ptr.vmem [resolvable:$true] %s617_s29  ;;  %s460_s0 = int_to_ptr.vmem [resolvable:$true] %s459_s0 }
  0x76   : > { %s13863_s24 = scalar_lea.vmem %s618_s29, 64  ;;  %p13871_p13 = scmp.lt.s32.totalorder %s618_s29, %s618_s29 }
  0x77   : > { %p13864_p9 = scmp.ne.s32.totalorder %s618_s29, %s13863_s24  ;;  %p13872_p1 = scmp.lt.s32.totalorder %s13863_s24, %s13863_s24 }
  0x79   : > { %p13866_p11 = pnand %p13864_p9, %p14376_p7  ;;  %p13873_p4 = por %p13872_p1, %p13871_p13 }
  0x7b   : > { %p13867_p12 = pneg %p13866_p11 }
  0x7d   : > { %p13874_p0 = pnand %p13873_p4, %p13867_p12 }
  0x7f   : > { %13877 = shalt.err (!%p13874_p0)
}
  0x80   : > { %12007 = dma.hbm_to_vmem [thread:$0]  (!%p14366_p6), %s15046_s15, 64, %s618_s29, [#allocation28]  }
  0x81   : > { %s13889_s18 = scalar_lea.vmem %s460_s0, 3072  ;;  %p13897_p10 = scmp.lt.s32.totalorder %s460_s0, %s460_s0 }
  0x82   : > { %p13890_p2 = scmp.ne.s32.totalorder %s460_s0, %s13889_s18  ;;  %p13898_p9 = scmp.lt.s32.totalorder %s13889_s18, %s13889_s18 }
  0x84   : > { %p13892_p5 = pnand %p13890_p2, %p14376_p7  ;;  %p13899_p11 = por %p13898_p9, %p13897_p10 }
  0x86   : > { %p13893_p8 = pneg %p13892_p5 }
  0x88   : > { %p13900_p3 = pnand %p13899_p11, %p13893_p8 }
  0x8a   : > { %13903 = shalt.err (!%p13900_p3)
}
  0x8b   : > { %s15089_s30 = smov 4   ;;  %s15090_s19 = smov 64  }
  0x8c   : > { %s15091_s2 = sld [smem:[#allocation46_spill]]  ;;  %s14229_s29 = smov [#allocation11]  }
  0x8d   : > { %s485_s24 = sshll.u32 %s14229_s29, 4  ;;  %s14230_s23 = smov [#allocation14]   ;;  %s486_s24 = int_to_ptr.vmem [resolvable:$true] %s485_s24 }
  0x8e   : > { %s511_s20 = sshll.u32 %s14230_s23, 4  ;;  %s13915_s28 = scalar_lea.vmem %s486_s24, 12288  ;;  %s512_s20 = int_to_ptr.vmem [resolvable:$true] %s511_s20 }
  0x8f   : > { %p13916_p12 = scmp.ne.s32.totalorder %s486_s24, %s13915_s28  ;;  %p13923_p1 = scmp.lt.s32.totalorder %s486_s24, %s486_s24 }
  0x90   : > { %p13924_p4 = scmp.lt.s32.totalorder %s13915_s28, %s13915_s28 }
  0x91   : > { %p13918_p13 = pnand %p13916_p12, %p14376_p7 }
  0x92   : > { %11968 = dma.hbm_to_vmem [thread:$0]  (!%p14366_p6), %s15091_s2, 3072, %s460_s0, [#allocation7], %s15090_s19, %s15090_s19, %s15089_s30  }
  0x93   : > { %p13919_p3 = pneg %p13918_p13  ;;  %p13925_p0 = por %p13924_p4, %p13923_p1 }
  0x95   : > { %p13926_p2 = pnand %p13925_p0, %p13919_p3 }
  0x97   : > { %13929 = shalt.err (!%p13926_p2)
}
  0x98   : > { %s15092_s18 = smov 8   ;;  %s15093_s17 = smov 128  }
  0x99   : > { %s15094_s4 = sld [smem:[#allocation48_spill]]  ;;  %s13941_s29 = scalar_lea.vmem %s512_s20, 36864 }
  0x9a   : > { %p13942_p5 = scmp.ne.s32.totalorder %s512_s20, %s13941_s29  ;;  %p13949_p9 = scmp.lt.s32.totalorder %s512_s20, %s512_s20 }
  0x9b   : > { %p13950_p11 = scmp.lt.s32.totalorder %s13941_s29, %s13941_s29 }
  0x9c   : > { %p13944_p8 = pnand %p13942_p5, %p14376_p7 }
  0x9d   : > { %p13951_p12 = por %p13950_p11, %p13949_p9 }
  0x9e   : > { %p13945_p10 = pneg %p13944_p8 }
  0x9f   : > { %11974 = dma.hbm_to_vmem [thread:$0]  (!%p14366_p6), %s15094_s4, 12288, %s486_s24, [#allocation10], %s15093_s17, %s15093_s17, %s15092_s18  }
  0xa0   : > { %p13952_p13 = pnand %p13951_p12, %p13945_p10 }
  0xa2   : > { %13955 = shalt.err (!%p13952_p13)
}
  0xa3   : > { %s15095_s28 = smov 16   ;;  %s15096_s23 = smov 256  }
  0xa4   : > { %s15097_s6 = sld [smem:[#allocation50_spill]]  ;;  %s14231_s24 = smov [#allocation17]  }
  0xa5   : > { %s537_s18 = sshll.u32 %s14231_s24, 4  ;;  %s14232_s17 = smov [#allocation20]   ;;  %s538_s18 = int_to_ptr.vmem [resolvable:$true] %s537_s18 }
  0xa6   : > { %s562_s21 = sshll.u32 %s14232_s17, 4  ;;  %s13967_s3 = scalar_lea.vmem %s538_s18, 8192  ;;  %s563_s21 = int_to_ptr.vmem [resolvable:$true] %s562_s21 }
  0xa7   : > { %p13968_p3 = scmp.ne.s32.totalorder %s538_s18, %s13967_s3  ;;  %p13975_p0 = scmp.lt.s32.totalorder %s538_s18, %s538_s18 }
  0xa8   : > { %p13976_p2 = scmp.lt.s32.totalorder %s13967_s3, %s13967_s3 }
  0xa9   : > { %p13970_p1 = pnand %p13968_p3, %p14376_p7 }
  0xaa   : > { %11980 = dma.hbm_to_vmem [thread:$0]  (!%p14366_p6), %s15097_s6, 36864, %s512_s20, [#allocation13], %s15096_s23, %s15096_s23, %s15095_s28  }
  0xab   : > { %p13971_p4 = pneg %p13970_p1  ;;  %p13977_p5 = por %p13976_p2, %p13975_p0 }
  0xad   : > { %p13978_p8 = pnand %p13977_p5, %p13971_p4 }
  0xaf   : > { %13981 = shalt.err (!%p13978_p8)
}
  0xb0   : > { %s15098_s8 = sld [smem:[#allocation52_spill]]  ;;  %s13993_s29 = scalar_lea.vmem %s563_s21, 16 }
  0xb1   : > { %p13994_p10 = scmp.ne.s32.totalorder %s563_s21, %s13993_s29  ;;  %s14000_s3 = scalar_lea.vmem %s563_s21, 32 }
  0xb2   : > { %p14001_p12 = scmp.lt.s32.totalorder %s563_s21, %s563_s21  ;;  %p14002_p13 = scmp.lt.s32.totalorder %s14000_s3, %s13993_s29 }
  0xb3   : > { %p13996_p9 = pnand %p13994_p10, %p14376_p7 }
  0xb4   : > { %p14003_p3 = por %p14002_p13, %p14001_p12 }
  0xb5   : > { %p13997_p11 = pneg %p13996_p9 }
  0xb6   : > { %11986 = dma.hbm_to_vmem [thread:$0]  (!%p14366_p6), %s15098_s8, 8192, %s538_s18, [#allocation16], %s15090_s19, %s15090_s19, %s15089_s30  }
  0xb7   : > { %p14004_p1 = pnand %p14003_p3, %p13997_p11 }
  0xb9   : > { %14007 = shalt.err (!%p14004_p1)
}
  0xba   : > { %11992 = dma.hbm_to_vmem [thread:$0]  (!%p14366_p6), %s15041_s10, 16, %s563_s21, [#allocation19]  }
  0xbb   : > { %s14233_s0 = smov [#allocation23]   ;;  %s14234_s18 = smov [#allocation26]  }
  0xbc   : > { %s584_s24 = sshll.u32 %s14233_s0, 4  ;;  %s606_s17 = sshll.u32 %s14234_s18, 4  ;;  %s585_s24 = int_to_ptr.vmem [resolvable:$true] %s584_s24  ;;  %s607_s17 = int_to_ptr.vmem [resolvable:$true] %s606_s17 }
  0xbd   : > { %s14019_s2 = scalar_lea.vmem %s585_s24, 32  ;;  %p14027_p5 = scmp.lt.s32.totalorder %s585_s24, %s585_s24 }
  0xbe   : > { %p14020_p4 = scmp.ne.s32.totalorder %s585_s24, %s14019_s2  ;;  %p14028_p8 = scmp.lt.s32.totalorder %s14019_s2, %s14019_s2 }
  0xc0   : > { %p14022_p0 = pnand %p14020_p4, %p14376_p7  ;;  %p14029_p10 = por %p14028_p8, %p14027_p5 }
  0xc2   : > { %p14023_p2 = pneg %p14022_p0 }
  0xc4   : > { %p14030_p9 = pnand %p14029_p10, %p14023_p2 }
  0xc6   : > { %14033 = shalt.err (!%p14030_p9)
}
  0xc7   : > { %11998 = dma.hbm_to_vmem [thread:$0]  (!%p14366_p6), %s15043_s12, 32, %s585_s24, [#allocation22]  }
  0xc8   : > { %s14045_s21 = scalar_lea.vmem %s607_s17, 64  ;;  %p14053_p3 = scmp.lt.s32.totalorder %s607_s17, %s607_s17 }
  0xc9   : > { %p14046_p11 = scmp.ne.s32.totalorder %s607_s17, %s14045_s21  ;;  %p14054_p1 = scmp.lt.s32.totalorder %s14045_s21, %s14045_s21 }
  0xcb   : > { %p14048_p12 = pnand %p14046_p11, %p14376_p7  ;;  %p14055_p4 = por %p14054_p1, %p14053_p3 }
  0xcd   : > { %p14049_p13 = pneg %p14048_p12 }
  0xcf   : > { %p14056_p0 = pnand %p14055_p4, %p14049_p13 }
  0xd1   : > { %14059 = shalt.err (!%p14056_p0)
}
  0xd2   : > { %12004 = dma.hbm_to_vmem [thread:$0]  (!%p14366_p6), %s15045_s14, 64, %s607_s17, [#allocation25]  }
  0xd3   : > { %s14235_s23 = smov [#allocation29]  }
  0xd4   : > { %s628_s0 = sshll.u32 %s14235_s23, 4  ;;  %s629_s0 = int_to_ptr.vmem [resolvable:$true] %s628_s0 }
  0xd5   : > { %s14071_s24 = scalar_lea.vmem %s629_s0, 16  ;;  %s14078_s18 = scalar_lea.vmem %s629_s0, 32 }
  0xd6   : > { %p14072_p2 = scmp.ne.s32.totalorder %s629_s0, %s14071_s24  ;;  %p14079_p10 = scmp.lt.s32.totalorder %s629_s0, %s629_s0 }
  0xd7   : > { %p14080_p9 = scmp.lt.s32.totalorder %s14078_s18, %s14071_s24 }
  0xd8   : > { %p14074_p5 = pnand %p14072_p2, %p14376_p7 }
  0xd9   : > { %p14081_p11 = por %p14080_p9, %p14079_p10 }
  0xda   : > { %p14075_p8 = pneg %p14074_p5 }
  0xdc   : > { %p14082_p12 = pnand %p14081_p11, %p14075_p8 }
  0xde   : > { %14085 = shalt.err (!%p14082_p12)
}
  0xdf   : > { %s15099_s22 = sld [smem:[#allocation41_spill]]  ;;  %s10367_s29 = sadd.s32 4294967294, %s14210_s27  }
  0xe0   : > { %s15100_s17 = sld [smem:[#allocation42_spill]]  ;;  %s14521_s1 = sadd.s32 1, %s14210_s27  }
  0xe1   : > { %12010 = dma.hbm_to_vmem [thread:$0]  (!%p14366_p6), %s15047_s16, 16, %s629_s0, [#allocation28]  }
  0xe2   : > { %s45_s21 = ssub.s32 %s14210_s27, %s14521_s1  ;;  %s48_s3 = sadd.s32 1, %s14206_s26 }
  0xe3   : > { %p46_p7 = scmp.eq.s32.totalorder %s45_s21, 0  ;;  %p55_p13 = scmp.ne.s32.totalorder %s14206_s26, %s14202_s25 }
  0xe4   : > { %p56_p3 = scmp.eq.s32.totalorder %s14210_s27, 0  ;;  %p427_p5 = scmp.eq.s32.totalorder %s10367_s29, 1 }
  0xe5   : > { %p61_p1 = scmp.ne.s32.totalorder %s14202_s25, %s15099_s22  ;;  %p12035_p8 = scmp.lt.s32.totalorder %s14210_s27, 2 }
  0xe6   : > { %s14532_s28 = scalar_select %p46_p7, %s14206_s26, %s48_s3  }
  0xe7   : > { %p14534_p4 = por %p56_p3, %p55_p13  ;;  %p15102_p0 = scmp.eq.s32.totalorder %s15100_s17, 0 }
  0xe8   : > { %p421_p2 = scmp.eq.s32.totalorder %s15100_s17, 1  ;;  %s639_s24 = sand.u32 1, %s14206_s26  }
  0xe9   : > { %p14540_p6 = por %p15102_p0, %p61_p1  ;;  %p14551_p9 = por %p427_p5, %p61_p1 }
  0xea   : > { %p14547_p10 = por %p421_p2, %p55_p13  ;;  %s10386_s20 = sshll.u32 %s639_s24, 3 }
  0xeb   : > { %s15103_s0 = scalar_select %p14540_p6, 1, 0 }
  0xec   : > { %s15104_s18 = scalar_select %p14547_p10, 1, 0 }
  0xed   : > { %s15105_s2 = scalar_select %p14551_p9, 1, 0 }
  0xee   : > { %s11551_s22 = sshll.u32 %s14210_s27, 7  ;;  %s15106_s4 = sld [smem:[#allocation44_spill]] }
  0xef   : > { %s643_s17 = scalar_lea.vmem [#allocation3], %s10386_s20  ;;  %p14565_p11 = pnand %p12035_p8, %p14534_p4 }
  0xf0   : > { %s650_s29 = sshll.u32 %s643_s17, 4  ;;  %s14569_s7 = scalar_lea.sflag [#allocation4], %s639_s24  ;;  %s14561_s29 = int_to_ptr.vmem [resolvable:$true] %s650_s29 }
  0xf1   : > { %p14088_p7 = pneg %p14565_p11 }
  0xf4   : > { %s14559_s5 = scalar_lea.hbm %s15106_s4, %s11551_s22  ;;  %s14091_s20 = scalar_lea.hbm %s15106_s4, 256 }
  0xf5   : > { %s14086_s8 = scalar_lea.hbm %s14559_s5, 128  ;;  %p14092_p1 = scmp.lt.s32.totalorder %s14559_s5, %s15106_s4 }
  0xf6   : > { %p14087_p12 = scmp.ne.s32.totalorder %s14559_s5, %s14086_s8  ;;  %p14093_p4 = scmp.lt.s32.totalorder %s14091_s20, %s14086_s8 }
  0xf8   : > { %p14089_p13 = pnand %p14088_p7, %p14087_p12  ;;  %p14094_p0 = por %p14093_p4, %p14092_p1 }
  0xfa   : > { %p14090_p3 = pneg %p14089_p13 }
  0xfc   : > { %p14095_p2 = pnand %p14094_p0, %p14090_p3 }
  0xfe   : > { %14098 = shalt.err (!%p14095_p2)
}
  0xff   : > { %s14099_s23 = scalar_lea.vmem %s14561_s29, 128  ;;  %s14236_s24 = smov [#allocation3]  }
 0x100   : > { %p14100_p5 = scmp.ne.s32.totalorder %s14561_s29, %s14099_s23  ;;  %s14104_s9 = sshll.u32 %s14236_s24, 4  ;;  %s14105_s9 = int_to_ptr.vmem [resolvable:$false] %s14104_s9 }
 0x101   : > { %s14106_s22 = scalar_lea.vmem %s14105_s9, 256  ;;  %p14107_p13 = scmp.lt.s32.totalorder %s14561_s29, %s14105_s9 }
 0x102   : > { %p14102_p8 = pnand %p14100_p5, %p14088_p7  ;;  %p14108_p9 = scmp.lt.s32.totalorder %s14106_s22, %s14099_s23 }
 0x104   : > { %p14103_p12 = pneg %p14102_p8  ;;  %p14109_p10 = por %p14108_p9, %p14107_p13 }
 0x106   : > { %p14110_p6 = pnand %p14109_p10, %p14103_p12 }
 0x108   : > { %14113 = shalt.err (!%p14110_p6)
}
 0x109   : > { %12014 = dma.hbm_to_vmem [thread:$0]  (!%p14565_p11), %s14559_s5, 128, %s14561_s29, %s14569_s7, %s15090_s19, %s15090_s19, %s15089_s30  }
 0x10a   : > { %s15108_s8 = sld [smem:[#allocation43_spill]] }
 0x110   : > { %p15109_p7 = scmp.ne.s32.totalorder %s15108_s8, 0 }
 0x111   : > { %s14596_s21 = sand.u32 (!%p15109_p7), 1, %s14202_s25   ;;  %p15110_p6 = scmp.ne.s32.totalorder (!%p15109_p7), %s15103_s0, 0 }
 0x112   : > { %662 = sbr.rel (%p15109_p7) target bundleno = 2955 (0xb8b), region = 88  ;;  %s10390_s9 = sshll.u32 (!%p15109_p7), %s14596_s21, 3 }
 0x113   : > { %s665_s20 = scalar_lea.sflag (!%p15109_p7), [#allocation4], %s14596_s21  ;;  %s14602_s6 = scalar_lea.vmem (!%p15109_p7), [#allocation3], %s10390_s9 }
 0x117   : > { %14157 = dma.done.wait (%p15110_p6), %s665_s20, 128  }
 0x118   : > { %14159 = vsyncadd (%p15110_p6), %s665_s20, 4294967168  ;;  %s15111_s5 = sld [smem:[#allocation42_spill]] }
 0x11e   : > { %p15112_p10 = scmp.eq.s32.totalorder %s15111_s5, 0 }
 0x120   : > { %14161 = dma.done.wait (%p15112_p10), [#allocation7], 6144   ;;  %p15113_p9 = pmov %p15112_p10 }
 0x122   : > { %14163 = vsyncadd (%p15113_p9), [#allocation7], 4294961152  ;;  %p15114_p11 = pmov %p15113_p9 }
 0x123   : > { %p15115_p3 = pmov %p15113_p9 }
 0x124   : > { %14165 = dma.done.wait (%p15114_p11), [#allocation10], 18432  }
 0x125   : > { %14167 = vsyncadd (%p15115_p3), [#allocation10], 4294948864  ;;  %p15116_p1 = pmov %p15115_p3 }
 0x127   : > { %14169 = dma.done.wait (%p15116_p1), [#allocation13], 55296   ;;  %p15117_p4 = pmov %p15116_p1 }
 0x128   : > { %p15118_p0 = pmov %p15116_p1 }
 0x129   : > { %14171 = vsyncadd (%p15117_p4), [#allocation13], 4294912000 }
 0x12a   : > { %14173 = dma.done.wait (%p15118_p0), [#allocation16], 57344   ;;  %p15119_p2 = pmov %p15118_p0 }
 0x12b   : > { %p15120_p5 = pmov %p15118_p0 }
 0x12c   : > { %14175 = vsyncadd (%p15119_p2), [#allocation16], 4294909952 }
 0x12d   : > { %14177 = dma.done.wait (%p15120_p5), [#allocation19], 32   ;;  %p15121_p8 = pmov %p15118_p0 }
 0x12e   : > { %p15122_p12 = pmov %p15118_p0 }
 0x12f   : > { %14179 = vsyncadd (%p15121_p8), [#allocation19], 4294967264 }
 0x130   : > { %14181 = dma.done.wait (%p15122_p12), [#allocation22], 64   ;;  %p15123_p13 = pmov %p15118_p0 }
 0x131   : > { %p15124_p7 = pmov %p15118_p0 }
 0x132   : > { %14183 = vsyncadd (%p15123_p13), [#allocation22], 4294967232 }
 0x133   : > { %14185 = dma.done.wait (%p15124_p7), [#allocation25], 112   ;;  %p15125_p6 = pmov %p15118_p0 }
 0x134   : > { %p15126_p10 = pmov %p15118_p0 }
 0x135   : > { %14187 = vsyncadd (%p15125_p6), [#allocation25], 4294967184 }
 0x136   : > { %14189 = dma.done.wait (%p15126_p10), [#allocation28], 80   ;;  %p15127_p9 = pmov %p15118_p0 }
 0x137   : > { %v14237_v0 = vmov 0.0   ;;  %v14238_v1 = vmov 0   ;;  %vm14239_vm0 = vmmov 0   ;;  %v12112_v2 = vld [vmem:[#allocation6 + $0x78] sm:$0xff]   ;;  %v12114_v4 = vld [vmem:[#allocation6 + $0x70] sm:$0xff]   ;;  %v12116_v6 = vld [vmem:[#allocation6 + $0x68] sm:$0xff]  }
 0x138   : > { %14191 = vsyncadd (%p15127_p9), [#allocation28], 4294967216  ;;  %11774 = vmatprep.subr.bf16.mxu0 %v14237_v0  ;;  %11794 = vmatprep.subr.bf16.mxu1 %v14237_v0  ;;  %785 = vst [vmem:[#allocation2 + $0x28] sm:$0xff] %v14238_v1  ;;  %v12113_v3 = vld [vmem:[#allocation6 + $0x38] sm:$0xff]   ;;  %v12115_v5 = vld [vmem:[#allocation6 + $0x30] sm:$0xff]   ;;  %vm1053_vm2 = vcmask 1046528  }
 0x139   : > { %787 = vst [vmem:[#allocation2 + $0x8] sm:$0xff] %v14238_v1  ;;  %789 = vst [vmem:[#allocation2 + $0x18] sm:$0x11] %v14238_v1  ;;  %11790 = vmatprep.mubr.msk.bf16.mxu0 %vm14239_vm0, %v14237_v0  ;;  %11810 = vmatprep.mubr.msk.bf16.mxu1 %vm14239_vm0, %v14237_v0  ;;  %v12117_v7 = vld [vmem:[#allocation6 + $0x28] sm:$0xff]   ;;  %v12118_v8 = vld [vmem:[#allocation6 + $0x60] sm:$0xff]   ;;  %s11548_s7 = sshll.u32 %s15111_s5, 7 }
 0x13a   : > { %786 = vst [vmem:[#allocation2 + $0x10] sm:$0xff] %v14238_v1  ;;  %788 = vst [vmem:[#allocation2] sm:$0xff] %v14238_v1  ;;  %11775 = vmatpush3.bf16.msra.mxu0 %v12112_v2  ;;  %11795 = vmatpush3.bf16.msra.mxu1 %v12113_v3  ;;  %v12119_v9 = vld [vmem:[#allocation6 + $0x20] sm:$0xff]   ;;  %v12120_v10 = vld [vmem:[#allocation6 + $0x58] sm:$0xff]   ;;  %vm839_vm1 = vsmask.f32 7424 }
 0x13b   : > { %11776 = vmatprep.subr.bf16.mxu0 %v14237_v0  ;;  %11796 = vmatprep.subr.bf16.mxu1 %v14237_v0  ;;  %v12121_v11 = vld [vmem:[#allocation6 + $0x18] sm:$0xff]   ;;  %v12122_v14 = vld [vmem:[#allocation6 + $0x50] sm:$0xff]   ;;  %v12124_v17 = vld [vmem:[#allocation6 + $0x48] sm:$0xff]   ;;  %s782_s30 = scalar_lea.vmem [#allocation30], %s10390_s9  ;;  %s15128_s3 = sld [smem:[#allocation54_spill]] }
 0x13c   : > { %v791_v12 = vld [vmem:[%s14602_s6] sm:$0xf]  ;;  %v792_v13 = vld [vmem:[%s14602_s6 + $0x4] sm:$0xf]  ;;  %v12125_v18 = vld [vmem:[#allocation6 + $0x8] sm:$0xff]   ;;  %s10145_s19 = sshll.u32 %s782_s30, 4  ;;  %s10146_s19 = int_to_ptr.vmem [resolvable:$true] %s10145_s19 }
 0x13d   : > { %793 = vst [vmem:[#allocation2 + $0x28] sm:$0xf] %v791_v12  ;;  %794 = vst [vmem:[#allocation2 + $0x8] sm:$0xf] %v792_v13  ;;  %v12123_v15 = vld [vmem:[#allocation6 + $0x10] sm:$0xff]   ;;  %v12126_v21 = vld [vmem:[#allocation6 + $0x40] sm:$0xff]  }
 0x13e   : > { %11777 = vmatpush3.bf16.msra.mxu0 %v12114_v4  ;;  %11797 = vmatpush3.bf16.msra.mxu1 %v12115_v5  ;;  %v12127_v24 = vld [vmem:[#allocation6] sm:$0xff]   ;;  %v12129_v29 = vld [vmem:[#allocation6 + $0xb8] sm:$0xff]   ;;  %v12130_v32 = vld [vmem:[#allocation6 + $0xb0] sm:$0xff]   ;;  %s10132_s23 = scalar_lea.sflag [#allocation5], %s14596_s21  ;;  %s14114_s24 = scalar_lea.vmem %s10146_s19, 128 }
 0x13f   : > { %11778 = vmatprep.subr.bf16.mxu0 %v14237_v0  ;;  %11798 = vmatprep.subr.bf16.mxu1 %v14237_v0  ;;  %v12131_v33 = vld [vmem:[#allocation6 + $0xa8] sm:$0xff]   ;;  %v12132_v34 = vld [vmem:[#allocation6 + $0xa0] sm:$0xff]   ;;  %v12133_v35 = vld [vmem:[#allocation6 + $0x98] sm:$0xff]   ;;  %p14115_p11 = scmp.ne.s32.totalorder %s10146_s19, %s14114_s24  ;;  %p15129_p3 = scmp.ne.s32.totalorder %s15104_s18, 0 }
 0x140   : > { %v14657_v16 = vld [vmem:[#allocation2 + $0x18] ss:$0 sps:$4 sm:$0x11]   ;;  %v12134_v36 = vld [vmem:[#allocation6 + $0x90] sm:$0xff]   ;;  %v12135_v38 = vld [vmem:[#allocation6 + $0x88] sm:$0xff]   ;;  %s14240_s22 = smov [#allocation30]  }
 0x141   : > { %v848_v23 = vshll.u32 %v14657_v16, 16  ;;  %v12136_v40 = vld [vmem:[#allocation6 + $0x80] sm:$0xff]   ;;  %v1055_v42 = vrot.slane %v14657_v16, 1  ;;  %v12137_v44 = vld [vmem:[#allocation8 + $0x38] sm:$0xff]   ;;  %v12138_v45 = vld [vmem:[#allocation8 + $0x30] sm:$0xff]   ;;  %s10143_s17 = scalar_lea.hbm %s15128_s3, %s11548_s7  ;;  %p14116_p1 = pnand %p14115_p11, %p15129_p3 }
 0x142   : > { %11779 = vmatpush3.bf16.msra.mxu0 %v12116_v6  ;;  %11799 = vmatpush3.bf16.msra.mxu1 %v12117_v7  ;;  %v12139_v46 = vld [vmem:[#allocation8 + $0x78] sm:$0xff]   ;;  %v12140_v47 = vld [vmem:[#allocation8 + $0x28] sm:$0xff]   ;;  %v12141_v48 = vld [vmem:[#allocation8 + $0x70] sm:$0xff]   ;;  %s14118_s8 = sshll.u32 %s14240_s22, 4  ;;  %s14119_s8 = int_to_ptr.vmem [resolvable:$false] %s14118_s8 }
 0x143   : > { %11780 = vmatprep.subr.bf16.mxu0 %v14237_v0  ;;  %11800 = vmatprep.subr.bf16.mxu1 %v14237_v0  ;;  %v850_v28 = vrot.slane %v848_v23, 1  ;;  %v12142_v49 = vld [vmem:[#allocation8 + $0x20] sm:$0xff]   ;;  %v12143_v50 = vld [vmem:[#allocation8 + $0x68] sm:$0xff]   ;;  %v12144_v51 = vld [vmem:[#allocation8 + $0x18] sm:$0xff]   ;;  %p14117_p4 = pneg %p14116_p1  ;;  %s14120_s9 = scalar_lea.vmem %s14119_s8, 256 }
 0x144   : > { %v795_v19 = vld [vmem:[#allocation2 + $0x28] sm:$0xf]  ;;  %v12145_v52 = vld [vmem:[#allocation8 + $0x60] sm:$0xff]   ;;  %v12146_v53 = vld [vmem:[#allocation8 + $0x10] sm:$0xff]   ;;  %p14121_p0 = scmp.lt.s32.totalorder %s10146_s19, %s14119_s8  ;;  %p14122_p2 = scmp.lt.s32.totalorder %s14120_s9, %s14114_s24 }
 0x145   : > { %v796_v20 = vld [vmem:[#allocation2 + $0x8] sm:$0xf]  ;;  %v12147_v54 = vld [vmem:[#allocation8 + $0x58] sm:$0xff]   ;;  %v12149_v56 = vld [vmem:[#allocation8 + $0x50] sm:$0xff]  }
 0x146   : > { %11781 = vmatpush3.bf16.msra.mxu0 %v12118_v8  ;;  %11801 = vmatpush3.bf16.msra.mxu1 %v12119_v9  ;;  %v10408_v22 = vcombine.low %v795_v19, %v796_v20  ;;  %v1032_v37 = vld [vmem:[#allocation2 + $0x28] sm:$0xe]  ;;  %v12150_v57 = vld [vmem:[#allocation8] sm:$0xff]   ;;  %p14123_p5 = por %p14122_p2, %p14121_p0 }
 0x147   : > { %11782 = vmatprep.subr.bf16.mxu0 %v14237_v0  ;;  %11802 = vmatprep.subr.bf16.mxu1 %v14237_v0  ;;  %v10426_v39 = vcombine.low %v1032_v37, %v796_v20  ;;  %v12148_v55 = vld [vmem:[#allocation8 + $0x8] sm:$0xff]   ;;  %v12152_v59 = vld [vmem:[#allocation8 + $0x40] sm:$0xff]   ;;  %v12153_v20 = vld [vmem:[#allocation2 + $0x18] ss:$0 sps:$4 sm:$0x11]  }
 0x148   : > { %v841_v25 = vshrl.u32 %v10408_v22, 16  ;;  %v843_v26 = vshll.u32 %v10408_v22, 16  ;;  %v12151_v58 = vld [vmem:[#allocation8 + $0x48] sm:$0xff]   ;;  %v10435_v5 = vld [vmem:[#allocation18] ss:$0 sm:$0xff]  ;;  %v12159_v37 = vld [vmem:[#allocation8 + $0x90] sm:$0xff]   ;;  %p14124_p8 = pnand %p14123_p5, %p14117_p4 }
 0x149   : > { %v1054_v41 = vrot.slane %v10426_v39, 1 }
 0x14a   : > { %11783 = vmatpush3.bf16.msra.mxu0 %v12120_v10  ;;  %11803 = vmatpush3.bf16.msra.mxu1 %v12121_v11  ;;  %v845_v27 = vrot.slane %v843_v26, 1  ;;  %v13650_v26 = vld [vmem:[#allocation2 + $0x10] sm:$0xff] }
 0x14b   : > { %11784 = vmatprep.subr.bf16.mxu0 %v14237_v0  ;;  %11804 = vmatprep.subr.bf16.mxu1 %v14237_v0  ;;  %v1056_v43 = vsel %vm1053_vm2, %v1054_v41, %v1055_v42 }
 0x14c   : > { %v846_v30 = vor.u32 %v845_v27, %v841_v25 }
 0x14e   : > { %11785 = vmatpush3.bf16.msra.mxu0 %v12122_v14  ;;  %11805 = vmatpush3.bf16.msra.mxu1 %v12123_v15  ;;  %v851_v31 = vsel %vm839_vm1, %v846_v30, %v850_v28  ;;  %v12154_v30 = vld [vmem:[#allocation8 + $0xb8] sm:$0xff]  }
 0x14f   : > { %11786 = vmatprep.subr.bf16.mxu0 %v14237_v0  ;;  %11806 = vmatprep.subr.bf16.mxu1 %v14237_v0 }
 0x152   : > { %11787 = vmatpush3.bf16.msra.mxu0 %v12124_v17  ;;  %11807 = vmatpush3.bf16.msra.mxu1 %v12125_v18 }
 0x153   : > { %11788 = vmatprep.subr.bf16.mxu0 %v14237_v0  ;;  %11808 = vmatprep.subr.bf16.mxu1 %v14237_v0 }
 0x156   : > { %11789 = vmatpush3.bf16.msra.mxu0 %v12126_v21  ;;  %11809 = vmatpush3.bf16.msra.mxu1 %v12127_v24  ;;  %v1222_v24 = vshll.u32 %v12153_v20, 16 }
 0x157   : > { %11814 = vmatprep.subr.bf16.mxu0 %v14237_v0  ;;  %11834 = vmatprep.subr.bf16.mxu1 %v14237_v0 }
 0x159   : > { %11791 = vmatmul.mubr.bf16.vlgmr.msra.gmra.mxu0 %v851_v31  ;;  %11811 = vmatmul.mubr.bf16.vlgmr.msra.gmra.mxu1 %v10408_v22 }
 0x15a   : > { %11815 = vmatpush3.bf16.msra.mxu0 %v12129_v29  ;;  %11830 = vmatprep.mubr.msk.bf16.mxu0 %vm14239_vm0, %v14237_v0  ;;  %v1224_v29 = vrot.slane %v1222_v24, 1  ;;  %v10465_v24 = vld [vmem:[#allocation20] ss:$0 sm:$0xff] }
 0x15b   : > { %11816 = vmatprep.subr.bf16.mxu0 %v14237_v0  ;;  %11850 = vmatprep.mubr.msk.bf16.mxu1 %vm14239_vm0, %v14237_v0 }
 0x15c   : > { %11835 = vmatpush3.bf16.msra.mxu1 %v12139_v46  ;;  %v12164_v46 = vld [vmem:[#allocation9 + $0x74] ss:$8 sps:$4 sm:$0xff]  }
 0x15d   : > { %11836 = vmatprep.subr.bf16.mxu1 %v14237_v0 }
 0x15e   : > { %11817 = vmatpush3.bf16.msra.mxu0 %v12130_v32 }
 0x15f   : > { %11818 = vmatprep.subr.bf16.mxu0 %v14237_v0 }
 0x160   : > { %11837 = vmatpush3.bf16.msra.mxu1 %v12141_v48  ;;  %v12168_v48 = vld [vmem:[#allocation9 + $0xf0] ss:$8 sps:$4 sm:$0xff]  }
 0x161   : > { %11838 = vmatprep.subr.bf16.mxu1 %v14237_v0 }
 0x162   : > { %11819 = vmatpush3.bf16.msra.mxu0 %v12131_v33  ;;  %v12155_v33 = vld [vmem:[#allocation8 + $0xb0] sm:$0xff]  }
 0x163   : > { %11820 = vmatprep.subr.bf16.mxu0 %v14237_v0 }
 0x164   : > { %11839 = vmatpush3.bf16.msra.mxu1 %v12143_v50  ;;  %v12165_v50 = vld [vmem:[#allocation9 + $0x60] ss:$8 sps:$4 sm:$0xff]  }
 0x165   : > { %11840 = vmatprep.subr.bf16.mxu1 %v14237_v0 }
 0x166   : > { %11821 = vmatpush3.bf16.msra.mxu0 %v12132_v34  ;;  %v12156_v34 = vld [vmem:[#allocation8 + $0xa8] sm:$0xff]  }
 0x167   : > { %11822 = vmatprep.subr.bf16.mxu0 %v14237_v0 }
 0x168   : > { %11841 = vmatpush3.bf16.msra.mxu1 %v12145_v52  ;;  %v12176_v52 = vld [vmem:[#allocation9 + $0xe4] ss:$8 sps:$4 sm:$0xff]  }
 0x169   : > { %11842 = vmatprep.subr.bf16.mxu1 %v14237_v0 }
 0x16a   : > { %11823 = vmatpush3.bf16.msra.mxu0 %v12133_v35  ;;  %v12157_v35 = vld [vmem:[#allocation8 + $0xa0] sm:$0xff]  }
 0x16b   : > { %11824 = vmatprep.subr.bf16.mxu0 %v14237_v0 }
 0x16c   : > { %11843 = vmatpush3.bf16.msra.mxu1 %v12147_v54  ;;  %v12179_v54 = vld [vmem:[#allocation9 + $0x44] ss:$8 sps:$4 sm:$0xff]  }
 0x16d   : > { %11844 = vmatprep.subr.bf16.mxu1 %v14237_v0 }
 0x16e   : > { %11825 = vmatpush3.bf16.msra.mxu0 %v12134_v36  ;;  %v12158_v36 = vld [vmem:[#allocation8 + $0x98] sm:$0xff]  }
 0x16f   : > { %11826 = vmatprep.subr.bf16.mxu0 %v14237_v0 }
 0x170   : > { %11845 = vmatpush3.bf16.msra.mxu1 %v12149_v56  ;;  %v12182_v56 = vld [vmem:[#allocation9 + $0xd4] ss:$8 sps:$4 sm:$0xff]  }
 0x171   : > { %11846 = vmatprep.subr.bf16.mxu1 %v14237_v0 }
 0x172   : > { %11827 = vmatpush3.bf16.msra.mxu0 %v12135_v38  ;;  %v12160_v38 = vld [vmem:[#allocation8 + $0x88] sm:$0xff]  }
 0x173   : > { %11828 = vmatprep.subr.bf16.mxu0 %v14237_v0 }
 0x174   : > { %11847 = vmatpush3.bf16.msra.mxu1 %v12151_v58  ;;  %v12185_v58 = vld [vmem:[#allocation9 + $0x34] ss:$8 sps:$4 sm:$0xff]  }
 0x175   : > { %11848 = vmatprep.subr.bf16.mxu1 %v14237_v0 }
 0x176   : > { %11829 = vmatpush3.bf16.msra.mxu0 %v12136_v40  ;;  %v12161_v40 = vld [vmem:[#allocation8 + $0x80] sm:$0xff]  }
 0x177   : > { %11854 = vmatprep.subr.bf16.mxu0 %v14237_v0 }
 0x178   : > { %11849 = vmatpush3.bf16.msra.mxu1 %v12152_v59  ;;  %v12183_v59 = vld [vmem:[#allocation9 + $0x30] ss:$8 sps:$4 sm:$0xff]  }
 0x179   : > { %11831 = vmatmul.mubr.bf16.vlgmr.msra.gmra.mxu0 %v1056_v43  ;;  %11874 = vmatprep.subr.bf16.mxu1 %v14237_v0  ;;  %v1428_v43 = vrot.slane %v12153_v20, 1 }
 0x17a   : > { %11870 = vmatprep.mubr.msk.bf16.mxu0 %vm14239_vm0, %v14237_v0  ;;  %11855 = vmatpush3.bf16.msra.mxu0 %v12137_v44 }
 0x17b   : > { %11856 = vmatprep.subr.bf16.mxu0 %v14237_v0 }
 0x17e   : > { %11857 = vmatpush3.bf16.msra.mxu0 %v12138_v45  ;;  %v12162_v45 = vld [vmem:[#allocation9 + $0x70] ss:$8 sps:$4 sm:$0xff]  }
 0x17f   : > { %11858 = vmatprep.subr.bf16.mxu0 %v14237_v0 }
 0x182   : > { %11859 = vmatpush3.bf16.msra.mxu0 %v12140_v47  ;;  %v12167_v47 = vld [vmem:[#allocation9 + $0x64] ss:$8 sps:$4 sm:$0xff]  }
 0x183   : > { %11860 = vmatprep.subr.bf16.mxu0 %v14237_v0 }
 0x186   : > { %11861 = vmatpush3.bf16.msra.mxu0 %v12142_v49  ;;  %v12170_v49 = vld [vmem:[#allocation9 + $0xf4] ss:$8 sps:$4 sm:$0xff]  }
 0x187   : > { %11862 = vmatprep.subr.bf16.mxu0 %v14237_v0 }
 0x18a   : > { %11863 = vmatpush3.bf16.msra.mxu0 %v12144_v51  ;;  %v12173_v51 = vld [vmem:[#allocation9 + $0x54] ss:$8 sps:$4 sm:$0xff]  }
 0x18b   : > { %11864 = vmatprep.subr.bf16.mxu0 %v14237_v0 }
 0x18e   : > { %11865 = vmatpush3.bf16.msra.mxu0 %v12146_v53  ;;  %v12174_v53 = vld [vmem:[#allocation9 + $0xe0] ss:$8 sps:$4 sm:$0xff]  }
 0x18f   : > { %11866 = vmatprep.subr.bf16.mxu0 %v14237_v0 }
 0x192   : > { %11867 = vmatpush3.bf16.msra.mxu0 %v12148_v55  ;;  %v12177_v55 = vld [vmem:[#allocation9 + $0x40] ss:$8 sps:$4 sm:$0xff]  }
 0x193   : > { %11868 = vmatprep.subr.bf16.mxu0 %v14237_v0 }
 0x196   : > { %11869 = vmatpush3.bf16.msra.mxu0 %v12150_v57  ;;  %v12180_v57 = vld [vmem:[#allocation9 + $0xd0] ss:$8 sps:$4 sm:$0xff]  }
 0x197   : > { %1680 = vmatprep.subr.bf16.mxu0 %v12170_v49 }
 0x219   : > { %v935_v60 = vpop.f32.mrf.mxu0  ;;  %v1025_v61 = vpop.f32.mrf.mxu1 }
 0x21a   : > { %v1026_v6 = vadd.f32 %v1025_v61, %v935_v60  ;;  %v12188_v60 = vld [vmem:[#allocation9 + $0xc4] ss:$8 sps:$4 sm:$0xff]   ;;  %v12186_v61 = vld [vmem:[#allocation9 + $0xc0] ss:$8 sps:$4 sm:$0xff]  }
 0x21b   : > { %v11792_v62 = vpop.f32.mrf.mxu0  ;;  %v11812_v63 = vpop.f32.mrf.mxu1 }
 0x21c   : > { %v12191_v62 = vld [vmem:[#allocation9 + $0x24] ss:$8 sps:$4 sm:$0xff]   ;;  %v12189_v63 = vld [vmem:[#allocation9 + $0x20] ss:$8 sps:$4 sm:$0xff]  }
 0x21d   : > { %v938_v1 = vpop.f32.mrf.mxu0  ;;  %v1028_v2 = vpop.f32.mrf.mxu1 }
 0x21e   : > { %v1029_v10 = vadd.f32 %v1028_v2, %v938_v1  ;;  %v12194_v1 = vld [vmem:[#allocation9 + $0xb4] ss:$8 sps:$4 sm:$0xff]   ;;  %v12192_v2 = vld [vmem:[#allocation9 + $0xb0] ss:$8 sps:$4 sm:$0xff]  }
 0x21f   : > { %v11793_v3 = vpop.f32.mrf.mxu0  ;;  %v11813_v4 = vpop.f32.mrf.mxu1 }
 0x220   : > { %v12195_v3 = vld [vmem:[#allocation9 + $0x10] ss:$8 sps:$4 sm:$0xff]   ;;  %v12197_v4 = vld [vmem:[#allocation9 + $0x14] ss:$8 sps:$4 sm:$0xff]  }
 0x239   : > { %v1140_v7 = vpop.f32.mrf.mxu0 }
 0x23a   : > { %v1147_v8 = vadd.f32 %v1140_v7, %v1026_v6  ;;  %v12200_v6 = vld [vmem:[#allocation9 + $0xa4] ss:$8 sps:$4 sm:$0xff]  }
 0x23b   : > { %v11832_v9 = vpop.f32.mrf.mxu0  ;;  %v12203_v7 = vld [vmem:[#allocation9 + $0x4] ss:$8 sps:$4 sm:$0xff]  }
 0x23c   : > { %v1156_v11 = vadd.f32 %v10435_v5, %v1147_v8  ;;  %v12201_v8 = vld [vmem:[#allocation9] ss:$8 sps:$4 sm:$0xff]   ;;  %v12206_v9 = vld [vmem:[#allocation9 + $0x94] ss:$8 sps:$4 sm:$0xff]  }
 0x23d   : > { %v1143_v12 = vpop.f32.mrf.mxu0 }
 0x23e   : > { %v1158_v13 = vmax.f32 %v1156_v11, 0.0  ;;  %v1148_v14 = vadd.f32 %v1143_v12, %v1029_v10  ;;  %v12204_v10 = vld [vmem:[#allocation9 + $0x90] ss:$8 sps:$4 sm:$0xff]   ;;  %v12207_v11 = vld [vmem:[#allocation9 + $0x80] ss:$8 sps:$4 sm:$0xff]  }
 0x23f   : > { %v11833_v15 = vpop.f32.mrf.mxu0  ;;  %v12209_v12 = vld [vmem:[#allocation9 + $0x84] ss:$8 sps:$4 sm:$0xff]  }
 0x240   : > { %v11552_v16 = vpack.c.bf16 %v1158_v13, %v1158_v13  ;;  %v1157_v17 = vadd.f32 %v10435_v5, %v1148_v14  ;;  %v12198_v5 = vld [vmem:[#allocation9 + $0xa0] ss:$8 sps:$4 sm:$0xff]   ;;  %v12212_v13 = vld [vmem:[#allocation9 + $0x174] ss:$8 sps:$4 sm:$0xff]  }
 0x242   : > { %1168 = vst [vmem:[#allocation2 + $0x28] sm:$0xf] %v11552_v16  ;;  %v1159_v18 = vmax.f32 %v1157_v17, 0.0 }
 0x244   : > { %v11553_v19 = vpack.c.bf16 %v1159_v18, %v1159_v18 }
 0x246   : > { %1169 = vst [vmem:[#allocation2 + $0x8] sm:$0xf] %v11553_v19 }
 0x249   : > { %v1170_v21 = vld [vmem:[#allocation2 + $0x28] sm:$0xf] }
 0x24a   : > { %v1406_v39 = vld [vmem:[#allocation2 + $0x28] sm:$0xe] }
 0x24d   : > { %v1171_v22 = vld [vmem:[#allocation2 + $0x8] sm:$0xf] }
 0x24e   : > { %v10438_v23 = vcombine.low %v1170_v21, %v1171_v22  ;;  %v10456_v41 = vcombine.low %v1406_v39, %v1171_v22 }
 0x250   : > { %11871 = vmatmul.mubr.bf16.vlgmr.msra.gmra.mxu0 %v10438_v23  ;;  %v1217_v25 = vshll.u32 %v10438_v23, 16  ;;  %v1215_v27 = vshrl.u32 %v10438_v23, 16  ;;  %v1427_v42 = vrot.slane %v10456_v41, 1 }
 0x251   : > { %1712 = vmatprep.mubr.bf16.mxu0 %v13650_v26  ;;  %1681 = vmatpush1.bf16.msra.mxu0 %v12168_v48  ;;  %v12216_v48 = vld [vmem:[#allocation9 + $0x164] ss:$8 sps:$4 sm:$0xff]  }
 0x252   : > { %v1219_v28 = vrot.slane %v1217_v25, 1  ;;  %v1429_v44 = vsel %vm1053_vm2, %v1427_v42, %v1428_v43  ;;  %1682 = vmatprep.subr.bf16.mxu0 %v12176_v52  ;;  %v12217_v52 = vld [vmem:[#allocation9 + $0x150] ss:$8 sps:$4 sm:$0xff]  }
 0x254   : > { %v1220_v31 = vor.u32 %v1219_v28, %v1215_v27 }
 0x255   : > { %1683 = vmatpush1.bf16.msra.mxu0 %v12174_v53  ;;  %v12222_v53 = vld [vmem:[#allocation9 + $0x144] ss:$8 sps:$4 sm:$0xff]  }
 0x256   : > { %v1225_v32 = vsel %vm839_vm1, %v1220_v31, %v1224_v29  ;;  %1684 = vmatprep.subr.bf16.mxu0 %v12182_v56  ;;  %v12223_v56 = vld [vmem:[#allocation9 + $0x130] ss:$8 sps:$4 sm:$0xff]  }
 0x257   : > { %11851 = vmatmul.mubr.bf16.vlgmr.msra.gmra.mxu1 %v1225_v32 }
 0x258   : > { %11875 = vmatpush3.bf16.msra.mxu1 %v12154_v30  ;;  %11890 = vmatprep.mubr.msk.bf16.mxu1 %vm14239_vm0, %v14237_v0 }
 0x259   : > { %11876 = vmatprep.subr.bf16.mxu1 %v14237_v0  ;;  %1685 = vmatpush1.bf16.msra.mxu0 %v12180_v57  ;;  %v12228_v57 = vld [vmem:[#allocation9 + $0x124] ss:$8 sps:$4 sm:$0xff]  }
 0x25a   : > { %1686 = vmatprep.subr.bf16.mxu0 %v12188_v60  ;;  %v12229_v60 = vld [vmem:[#allocation9 + $0x110] ss:$8 sps:$4 sm:$0xff]  }
 0x25c   : > { %11877 = vmatpush3.bf16.msra.mxu1 %v12155_v33 }
 0x25d   : > { %11878 = vmatprep.subr.bf16.mxu1 %v14237_v0  ;;  %1687 = vmatpush1.bf16.msra.mxu0 %v12186_v61  ;;  %v12234_v61 = vld [vmem:[#allocation9 + $0x104] ss:$8 sps:$4 sm:$0xff]  }
 0x25e   : > { %1688 = vmatprep.subr.bf16.mxu0 %v12194_v1  ;;  %v12232_v1 = vld [vmem:[#allocation9 + $0x100] ss:$8 sps:$4 sm:$0xff]  }
 0x260   : > { %11879 = vmatpush3.bf16.msra.mxu1 %v12156_v34 }
 0x261   : > { %11880 = vmatprep.subr.bf16.mxu1 %v14237_v0  ;;  %1689 = vmatpush1.bf16.msra.mxu0 %v12192_v2 }
 0x262   : > { %1690 = vmatprep.subr.bf16.mxu0 %v12200_v6  ;;  %v12235_v6 = vld [vmem:[#allocation11 + $0x70] ss:$8 sps:$4 sm:$0xff]  }
 0x264   : > { %11881 = vmatpush3.bf16.msra.mxu1 %v12157_v35 }
 0x265   : > { %11882 = vmatprep.subr.bf16.mxu1 %v14237_v0  ;;  %1691 = vmatpush1.bf16.msra.mxu0 %v12198_v5  ;;  %v12237_v5 = vld [vmem:[#allocation11 + $0x74] ss:$8 sps:$4 sm:$0xff]  }
 0x266   : > { %1692 = vmatprep.subr.bf16.mxu0 %v12206_v9  ;;  %v12243_v9 = vld [vmem:[#allocation11 + $0x174] ss:$8 sps:$4 sm:$0xff]  }
 0x268   : > { %11883 = vmatpush3.bf16.msra.mxu1 %v12158_v36 }
 0x269   : > { %11884 = vmatprep.subr.bf16.mxu1 %v14237_v0  ;;  %1693 = vmatpush1.bf16.msra.mxu0 %v12204_v10  ;;  %v12241_v10 = vld [vmem:[#allocation11 + $0x170] ss:$8 sps:$4 sm:$0xff]  }
 0x26a   : > { %1694 = vmatprep.subr.bf16.mxu0 %v12209_v12  ;;  %v12244_v12 = vld [vmem:[#allocation11 + $0x50] ss:$8 sps:$4 sm:$0xff]  }
 0x26c   : > { %11885 = vmatpush3.bf16.msra.mxu1 %v12159_v37  ;;  %v12213_v37 = vld [vmem:[#allocation2 + $0x18] ss:$0 sps:$4 sm:$0x11]  }
 0x26d   : > { %11886 = vmatprep.subr.bf16.mxu1 %v14237_v0  ;;  %1695 = vmatpush1.bf16.msra.mxu0 %v12207_v11  ;;  %v1595_v41 = vshll.u32 %v12213_v37, 16  ;;  %v12246_v11 = vld [vmem:[#allocation11 + $0x54] ss:$8 sps:$4 sm:$0xff]  }
 0x26e   : > { %1952 = vmatprep.subr.bf16.mxu0 %v12212_v13  ;;  %v12249_v13 = vld [vmem:[#allocation11 + $0x164] ss:$8 sps:$4 sm:$0xff]  }
 0x270   : > { %11887 = vmatpush3.bf16.msra.mxu1 %v12160_v38 }
 0x271   : > { %11888 = vmatprep.subr.bf16.mxu1 %v14237_v0  ;;  %v12171_v0 = vld [vmem:[#allocation9 + $0x50] ss:$8 sps:$4 sm:$0xff]  }
 0x274   : > { %11889 = vmatpush3.bf16.msra.mxu1 %v12161_v40 }
 0x275   : > { %1804 = vmatprep.subr.bf16.mxu1 %v12164_v46  ;;  %v12210_v46 = vld [vmem:[#allocation9 + $0x170] ss:$8 sps:$4 sm:$0xff]  }
 0x277   : > { %11891 = vmatmul.mubr.bf16.vlgmr.msra.gmra.mxu1 %v1429_v44 }
 0x278   : > { %1836 = vmatprep.mubr.bf16.mxu1 %v13650_v26  ;;  %1805 = vmatpush1.bf16.msra.mxu1 %v12162_v45  ;;  %v1597_v45 = vrot.slane %v1595_v41, 1  ;;  %v12291_v41 = vld [vmem:[#allocation11 + $0x1f4] ss:$8 sps:$4 sm:$0xff]  }
 0x279   : > { %1806 = vmatprep.subr.bf16.mxu1 %v12167_v47 }
 0x27c   : > { %1807 = vmatpush1.bf16.msra.mxu1 %v12165_v50  ;;  %v12214_v50 = vld [vmem:[#allocation9 + $0x160] ss:$8 sps:$4 sm:$0xff]  }
 0x27d   : > { %1808 = vmatprep.subr.bf16.mxu1 %v12173_v51  ;;  %v13651_v51 = vld [vmem:[#allocation2 + $0x10] sm:$0xff] }
 0x280   : > { %1809 = vmatpush1.bf16.msra.mxu1 %v12171_v0  ;;  %v12219_v0 = vld [vmem:[#allocation9 + $0x154] ss:$8 sps:$4 sm:$0xff]  }
 0x281   : > { %1810 = vmatprep.subr.bf16.mxu1 %v12179_v54  ;;  %v12220_v54 = vld [vmem:[#allocation9 + $0x140] ss:$8 sps:$4 sm:$0xff]  }
 0x284   : > { %1811 = vmatpush1.bf16.msra.mxu1 %v12177_v55  ;;  %v12225_v55 = vld [vmem:[#allocation9 + $0x134] ss:$8 sps:$4 sm:$0xff]  }
 0x285   : > { %1812 = vmatprep.subr.bf16.mxu1 %v12185_v58  ;;  %v12226_v58 = vld [vmem:[#allocation9 + $0x120] ss:$8 sps:$4 sm:$0xff]  }
 0x288   : > { %1813 = vmatpush1.bf16.msra.mxu1 %v12183_v59  ;;  %v12231_v59 = vld [vmem:[#allocation9 + $0x114] ss:$8 sps:$4 sm:$0xff]  }
 0x289   : > { %1814 = vmatprep.subr.bf16.mxu1 %v12191_v62 }
 0x28c   : > { %1815 = vmatpush1.bf16.msra.mxu1 %v12189_v63 }
 0x28d   : > { %1816 = vmatprep.subr.bf16.mxu1 %v12197_v4 }
 0x290   : > { %1817 = vmatpush1.bf16.msra.mxu1 %v12195_v3  ;;  %v1869_v3 = vrot.slane %v12213_v37, 1  ;;  %v12280_v37 = vld [vmem:[#allocation11 + $0xf0] ss:$8 sps:$4 sm:$0xff]  }
 0x291   : > { %1818 = vmatprep.subr.bf16.mxu1 %v12203_v7  ;;  %v12240_v7 = vld [vmem:[#allocation11 + $0x64] ss:$8 sps:$4 sm:$0xff]  }
 0x294   : > { %1819 = vmatpush1.bf16.msra.mxu1 %v12201_v8  ;;  %v12238_v8 = vld [vmem:[#allocation11 + $0x60] ss:$8 sps:$4 sm:$0xff]  }
 0x295   : > { %2300 = vmatprep.subr.bf16.mxu1 %v12243_v9 }
 0x310   : > { %v1399_v14 = vpop.f32.mrf.mxu0 }
 0x312   : > { %v11872_v15 = vpop.f32.mrf.mxu0 }
 0x313   : > { %v12252_v15 = vld [vmem:[#allocation11 + $0x44] ss:$8 sps:$4 sm:$0xff]  }
 0x314   : > { %v1402_v16 = vpop.f32.mrf.mxu0 }
 0x316   : > { %v11873_v17 = vpop.f32.mrf.mxu0 }
 0x317   : > { %v1309_v18 = vpop.f32.mrf.mxu1  ;;  %v12255_v17 = vld [vmem:[#allocation11 + $0x154] ss:$8 sps:$4 sm:$0xff]  }
 0x318   : > { %v1400_v22 = vadd.f32 %v1399_v14, %v1309_v18  ;;  %v12247_v14 = vld [vmem:[#allocation11 + $0x160] ss:$8 sps:$4 sm:$0xff]   ;;  %v12253_v18 = vld [vmem:[#allocation11 + $0x150] ss:$8 sps:$4 sm:$0xff]  }
 0x319   : > { %v11852_v19 = vpop.f32.mrf.mxu1 }
 0x31a   : > { %v12258_v19 = vld [vmem:[#allocation11 + $0x34] ss:$8 sps:$4 sm:$0xff]  }
 0x31b   : > { %v1312_v20 = vpop.f32.mrf.mxu1 }
 0x31c   : > { %v1403_v27 = vadd.f32 %v1402_v16, %v1312_v20  ;;  %v12250_v16 = vld [vmem:[#allocation11 + $0x40] ss:$8 sps:$4 sm:$0xff]   ;;  %v12256_v20 = vld [vmem:[#allocation11 + $0x30] ss:$8 sps:$4 sm:$0xff]  }
 0x31d   : > { %v11853_v21 = vpop.f32.mrf.mxu1 }
 0x31e   : > { %v12261_v21 = vld [vmem:[#allocation11 + $0x144] ss:$8 sps:$4 sm:$0xff]  }
 0x337   : > { %v1513_v23 = vpop.f32.mrf.mxu1 }
 0x338   : > { %v1520_v25 = vadd.f32 %v1513_v23, %v1400_v22  ;;  %v12259_v22 = vld [vmem:[#allocation11 + $0x140] ss:$8 sps:$4 sm:$0xff]   ;;  %v12264_v23 = vld [vmem:[#allocation11 + $0x24] ss:$8 sps:$4 sm:$0xff]  }
 0x339   : > { %v11892_v26 = vpop.f32.mrf.mxu1 }
 0x33a   : > { %v1529_v28 = vadd.f32 %v10465_v24, %v1520_v25  ;;  %v12267_v25 = vld [vmem:[#allocation11 + $0x134] ss:$8 sps:$4 sm:$0xff]   ;;  %v12265_v26 = vld [vmem:[#allocation11 + $0x130] ss:$8 sps:$4 sm:$0xff]  }
 0x33b   : > { %v1516_v29 = vpop.f32.mrf.mxu1 }
 0x33c   : > { %v1531_v30 = vmax.f32 %v1529_v28, 0.0  ;;  %v1521_v31 = vadd.f32 %v1516_v29, %v1403_v27  ;;  %v12268_v27 = vld [vmem:[#allocation11 + $0x10] ss:$8 sps:$4 sm:$0xff]   ;;  %v12270_v28 = vld [vmem:[#allocation11 + $0x14] ss:$8 sps:$4 sm:$0xff]  }
 0x33d   : > { %v11893_v32 = vpop.f32.mrf.mxu1  ;;  %v12273_v29 = vld [vmem:[#allocation11 + $0x124] ss:$8 sps:$4 sm:$0xff]  }
 0x33e   : > { %v11554_v33 = vpack.c.bf16 %v1531_v30, %v1531_v30  ;;  %v1530_v34 = vadd.f32 %v10465_v24, %v1521_v31  ;;  %v12262_v24 = vld [vmem:[#allocation11 + $0x20] ss:$8 sps:$4 sm:$0xff]   ;;  %v12276_v31 = vld [vmem:[#allocation11 + $0x4] ss:$8 sps:$4 sm:$0xff]   ;;  %v12279_v32 = vld [vmem:[#allocation11 + $0x114] ss:$8 sps:$4 sm:$0xff]  }
 0x33f   : > { %v12271_v30 = vld [vmem:[#allocation11 + $0x120] ss:$8 sps:$4 sm:$0xff]  }
 0x340   : > { %1541 = vst [vmem:[#allocation2 + $0x28] sm:$0xf] %v11554_v33  ;;  %v1532_v35 = vmax.f32 %v1530_v34, 0.0  ;;  %v12274_v33 = vld [vmem:[#allocation11] ss:$8 sps:$4 sm:$0xff]  }
 0x341   : > { %v12282_v34 = vld [vmem:[#allocation11 + $0xf4] ss:$8 sps:$4 sm:$0xff]  }
 0x342   : > { %v11555_v36 = vpack.c.bf16 %v1532_v35, %v1532_v35  ;;  %v12277_v35 = vld [vmem:[#allocation11 + $0x110] ss:$8 sps:$4 sm:$0xff]  }
 0x344   : > { %1542 = vst [vmem:[#allocation2 + $0x8] sm:$0xf] %v11555_v36  ;;  %v12285_v36 = vld [vmem:[#allocation11 + $0x104] ss:$8 sps:$4 sm:$0xff]  }
 0x347   : > { %v1543_v38 = vld [vmem:[#allocation2 + $0x28] sm:$0xf] }
 0x348   : > { %v1847_v62 = vld [vmem:[#allocation2 + $0x28] sm:$0xe] }
 0x34b   : > { %v1544_v39 = vld [vmem:[#allocation2 + $0x8] sm:$0xf] }
 0x34c   : > { %v10468_v40 = vcombine.low %v1543_v38, %v1544_v39  ;;  %v10502_v63 = vcombine.low %v1847_v62, %v1544_v39  ;;  %v12288_v38 = vld [vmem:[#allocation11 + $0xe4] ss:$8 sps:$4 sm:$0xff]   ;;  %v12283_v39 = vld [vmem:[#allocation11 + $0x100] ss:$8 sps:$4 sm:$0xff]  }
 0x34d   : > { %v12324_v62 = vld [vmem:[#allocation11 + $0x84] ss:$8 sps:$4 sm:$0xff]  }
 0x34e   : > { %1837 = vmatmul.mubr.bf16.vlgmr.msra.gmra.mxu1 %v10468_v40  ;;  %v1590_v42 = vshll.u32 %v10468_v40, 16  ;;  %v1588_v43 = vshrl.u32 %v10468_v40, 16  ;;  %v1868_v2 = vrot.slane %v10502_v63, 1  ;;  %v12286_v40 = vld [vmem:[#allocation11 + $0xe0] ss:$8 sps:$4 sm:$0xff]  }
 0x34f   : > { %2301 = vmatpush1.bf16.msra.mxu1 %v12241_v10  ;;  %v12322_v63 = vld [vmem:[#allocation11 + $0x80] ss:$8 sps:$4 sm:$0xff]  }
 0x350   : > { %v1592_v44 = vrot.slane %v1590_v42, 1  ;;  %v1870_v4 = vsel %vm1053_vm2, %v1868_v2, %v1869_v3  ;;  %2302 = vmatprep.subr.bf16.mxu1 %v12249_v13  ;;  %v12289_v42 = vld [vmem:[#allocation11 + $0x1f0] ss:$8 sps:$4 sm:$0xff]   ;;  %v12327_v2 = vld [vmem:[#allocation11 + $0x194] ss:$8 sps:$4 sm:$0xff]  }
 0x351   : > { %v12328_v3 = vld [vmem:[#allocation11 + $0x180] ss:$8 sps:$4 sm:$0xff]  }
 0x352   : > { %v1593_v47 = vor.u32 %v1592_v44, %v1588_v43  ;;  %v12294_v43 = vld [vmem:[#allocation11 + $0xd4] ss:$8 sps:$4 sm:$0xff]   ;;  %v12292_v44 = vld [vmem:[#allocation11 + $0xd0] ss:$8 sps:$4 sm:$0xff]  }
 0x353   : > { %2303 = vmatpush1.bf16.msra.mxu1 %v12247_v14  ;;  %v1999_v14 = vld [vmem:[#allocation21] sm:$0x3] }
 0x354   : > { %v1598_v49 = vsel %vm839_vm1, %v1593_v47, %v1597_v45  ;;  %2304 = vmatprep.subr.bf16.mxu1 %v12255_v17  ;;  %v12297_v45 = vld [vmem:[#allocation11 + $0x1e4] ss:$8 sps:$4 sm:$0xff]  }
 0x355   : > { %1713 = vmatmul.mubr.bf16.vlgmr.msra.gmra.mxu0 %v1598_v49  ;;  %v12300_v47 = vld [vmem:[#allocation11 + $0xc4] ss:$8 sps:$4 sm:$0xff]   ;;  %v12303_v49 = vld [vmem:[#allocation11 + $0x1d4] ss:$8 sps:$4 sm:$0xff]  }
 0x356   : > { %1953 = vmatpush1.bf16.msra.mxu0 %v12210_v46  ;;  %1984 = vmatprep.mubr.bf16.mxu0 %v13651_v51  ;;  %v12295_v46 = vld [vmem:[#allocation11 + $0x1e0] ss:$8 sps:$4 sm:$0xff]   ;;  %v12306_v51 = vld [vmem:[#allocation11 + $0xb4] ss:$8 sps:$4 sm:$0xff]  }
 0x357   : > { %1954 = vmatprep.subr.bf16.mxu0 %v12216_v48  ;;  %2305 = vmatpush1.bf16.msra.mxu1 %v12253_v18  ;;  %v12298_v48 = vld [vmem:[#allocation11 + $0xc0] ss:$8 sps:$4 sm:$0xff]  }
 0x358   : > { %2306 = vmatprep.subr.bf16.mxu1 %v12261_v21 }
 0x35a   : > { %1955 = vmatpush1.bf16.msra.mxu0 %v12214_v50  ;;  %v12301_v50 = vld [vmem:[#allocation11 + $0x1d0] ss:$8 sps:$4 sm:$0xff]  }
 0x35b   : > { %1956 = vmatprep.subr.bf16.mxu0 %v12219_v0  ;;  %2307 = vmatpush1.bf16.msra.mxu1 %v12259_v22  ;;  %v12304_v0 = vld [vmem:[#allocation11 + $0xb0] ss:$8 sps:$4 sm:$0xff]  }
 0x35c   : > { %2308 = vmatprep.subr.bf16.mxu1 %v12267_v25 }
 0x35e   : > { %1957 = vmatpush1.bf16.msra.mxu0 %v12217_v52  ;;  %v12309_v52 = vld [vmem:[#allocation11 + $0x1c4] ss:$8 sps:$4 sm:$0xff]  }
 0x35f   : > { %1958 = vmatprep.subr.bf16.mxu0 %v12222_v53  ;;  %2309 = vmatpush1.bf16.msra.mxu1 %v12265_v26  ;;  %v12307_v53 = vld [vmem:[#allocation11 + $0x1c0] ss:$8 sps:$4 sm:$0xff]  }
 0x360   : > { %2310 = vmatprep.subr.bf16.mxu1 %v12273_v29 }
 0x362   : > { %1959 = vmatpush1.bf16.msra.mxu0 %v12220_v54  ;;  %v12312_v54 = vld [vmem:[#allocation11 + $0xa4] ss:$8 sps:$4 sm:$0xff]  }
 0x363   : > { %1960 = vmatprep.subr.bf16.mxu0 %v12225_v55  ;;  %2311 = vmatpush1.bf16.msra.mxu1 %v12271_v30  ;;  %v12310_v55 = vld [vmem:[#allocation11 + $0xa0] ss:$8 sps:$4 sm:$0xff]  }
 0x364   : > { %2312 = vmatprep.subr.bf16.mxu1 %v12279_v32 }
 0x366   : > { %1961 = vmatpush1.bf16.msra.mxu0 %v12223_v56  ;;  %v12315_v56 = vld [vmem:[#allocation11 + $0x1b4] ss:$8 sps:$4 sm:$0xff]  }
 0x367   : > { %1962 = vmatprep.subr.bf16.mxu0 %v12228_v57  ;;  %2313 = vmatpush1.bf16.msra.mxu1 %v12277_v35  ;;  %v12313_v57 = vld [vmem:[#allocation11 + $0x1b0] ss:$8 sps:$4 sm:$0xff]  }
 0x368   : > { %2314 = vmatprep.subr.bf16.mxu1 %v12285_v36 }
 0x36a   : > { %1963 = vmatpush1.bf16.msra.mxu0 %v12226_v58  ;;  %v12318_v58 = vld [vmem:[#allocation11 + $0x94] ss:$8 sps:$4 sm:$0xff]  }
 0x36b   : > { %1964 = vmatprep.subr.bf16.mxu0 %v12231_v59  ;;  %2315 = vmatpush1.bf16.msra.mxu1 %v12283_v39  ;;  %v12316_v59 = vld [vmem:[#allocation11 + $0x90] ss:$8 sps:$4 sm:$0xff]  }
 0x36c   : > { %2316 = vmatprep.subr.bf16.mxu1 %v12291_v41 }
 0x36e   : > { %1965 = vmatpush1.bf16.msra.mxu0 %v12229_v60  ;;  %v12321_v60 = vld [vmem:[#allocation11 + $0x1a4] ss:$8 sps:$4 sm:$0xff]  }
 0x36f   : > { %1966 = vmatprep.subr.bf16.mxu0 %v12234_v61  ;;  %2317 = vmatpush2.bf16.msra.mxu1 %v12289_v42  ;;  %v12319_v61 = vld [vmem:[#allocation11 + $0x1a0] ss:$8 sps:$4 sm:$0xff]  }
 0x370   : > { %2318 = vmatprep.subr.bf16.mxu1 %v12297_v45 }
 0x372   : > { %1967 = vmatpush1.bf16.msra.mxu0 %v12232_v1  ;;  %v12325_v1 = vld [vmem:[#allocation11 + $0x190] ss:$8 sps:$4 sm:$0xff]  }
 0x373   : > { %2505 = vmatprep.subr.bf16.mxu0 %v12237_v5  ;;  %2319 = vmatpush2.bf16.msra.mxu1 %v12295_v46  ;;  %v12334_v5 = vld [vmem:[#allocation11 + $0x274] ss:$8 sps:$4 sm:$0xff]  }
 0x374   : > { %2320 = vmatprep.subr.bf16.mxu1 %v12303_v49 }
 0x375   : > { %1985 = vmatmul.mubr.bf16.vlgmr.msra.gmra.mxu0 %v1870_v4  ;;  %v12330_v4 = vld [vmem:[#allocation11 + $0x184] ss:$8 sps:$4 sm:$0xff]  }
 0x376   : > { %2506 = vmatpush1.bf16.msra.mxu0 %v12235_v6 }
 0x377   : > { %2507 = vmatprep.subr.bf16.mxu0 %v12240_v7  ;;  %2321 = vmatpush2.bf16.msra.mxu1 %v12301_v50  ;;  %v2001_v7 = vlaneseq }
 0x378   : > { %2322 = vmatprep.subr.bf16.mxu1 %v12309_v52 }
 0x379   : > { %v14712_v9 = vshrl.u32 %v2001_v7, 7 }
 0x37a   : > { %2508 = vmatpush1.bf16.msra.mxu0 %v12238_v8 }
 0x37b   : > { %2509 = vmatprep.subr.bf16.mxu0 %v12246_v11  ;;  %2323 = vmatpush2.bf16.msra.mxu1 %v12307_v53 }
 0x37c   : > { %2324 = vmatprep.subr.bf16.mxu1 %v12315_v56 }
 0x37e   : > { %2510 = vmatpush1.bf16.msra.mxu0 %v12244_v12  ;;  %v14715_v12 = vsub.s32 0, %v14712_v9 }
 0x37f   : > { %2511 = vmatprep.subr.bf16.mxu0 %v12252_v15  ;;  %2325 = vmatpush2.bf16.msra.mxu1 %v12313_v57  ;;  %v14718_v15 = vsub.s32 1, %v14712_v9 }
 0x380   : > { %2326 = vmatprep.subr.bf16.mxu1 %v12321_v60  ;;  %v2004_v18 = vrot.slane %v1999_v14, %v14715_v12 }
 0x382   : > { %2512 = vmatpush1.bf16.msra.mxu0 %v12250_v16 }
 0x383   : > { %2513 = vmatprep.subr.bf16.mxu0 %v12258_v19  ;;  %2327 = vmatpush2.bf16.msra.mxu1 %v12319_v61 }
 0x384   : > { %2328 = vmatprep.subr.bf16.mxu1 %v12327_v2 }
 0x386   : > { %2514 = vmatpush1.bf16.msra.mxu0 %v12256_v20 }
 0x387   : > { %2515 = vmatprep.subr.bf16.mxu0 %v12264_v23  ;;  %2329 = vmatpush2.bf16.msra.mxu1 %v12325_v1  ;;  %v2008_v23 = vrot.slane %v1999_v14, %v14718_v15  ;;  %v12344_v14 = vld [vmem:[#allocation11 + $0x244] ss:$8 sps:$4 sm:$0xff]  }
 0x388   : > { %2330 = vmatprep.subr.bf16.mxu1 %v12330_v4 }
 0x38a   : > { %2516 = vmatpush1.bf16.msra.mxu0 %v12262_v24 }
 0x38b   : > { %2517 = vmatprep.subr.bf16.mxu0 %v12270_v28  ;;  %2331 = vmatpush2.bf16.msra.mxu1 %v12328_v3  ;;  %v12332_v3 = vld [vmem:[#allocation11 + $0x270] ss:$8 sps:$4 sm:$0xff]  }
 0x38c   : > { %2755 = vmatprep.subr.bf16.mxu1 %v12334_v5 }
 0x38e   : > { %2518 = vmatpush1.bf16.msra.mxu0 %v12268_v27 }
 0x38f   : > { %2519 = vmatprep.subr.bf16.mxu0 %v12276_v31 }
 0x392   : > { %2520 = vmatpush1.bf16.msra.mxu0 %v12274_v33 }
 0x393   : > { %2521 = vmatprep.subr.bf16.mxu0 %v12282_v34  ;;  %v2067_v34 = vld [vmem:[#allocation2 + $0x18] sm:$0x11] }
 0x394   : > { %v10524_v41 = vcombine.high %v2067_v34, %v2067_v34  ;;  %v10523_v42 = vcombine.low %v2067_v34, %v2067_v34  ;;  %v12369_v34 = vld [vmem:[#allocation11 + $0x2b0] ss:$8 sps:$4 sm:$0xff]  }
 0x396   : > { %2522 = vmatpush2.bf16.msra.mxu0 %v12280_v37  ;;  %v2134_v46 = vshll.u32 %v10524_v41, 16  ;;  %v2588_v56 = vrot.slane %v10523_v42, 1  ;;  %v2591_v61 = vrot.slane %v10524_v41, 1  ;;  %v12381_v41 = vld [vmem:[#allocation12 + $0x228] ss:$12 sps:$4 sm:$0xff]  }
 0x397   : > { %2523 = vmatprep.subr.bf16.mxu0 %v12288_v38 }
 0x39a   : > { %2524 = vmatpush2.bf16.msra.mxu0 %v12286_v40 }
 0x39b   : > { %2525 = vmatprep.subr.bf16.mxu0 %v12294_v43 }
 0x39e   : > { %2526 = vmatpush2.bf16.msra.mxu0 %v12292_v44 }
 0x39f   : > { %2527 = vmatprep.subr.bf16.mxu0 %v12300_v47  ;;  %v2122_v47 = vshll.u32 %v10523_v42, 16  ;;  %v12383_v42 = vld [vmem:[#allocation12 + $0x22c] ss:$12 sps:$4 sm:$0xff]  }
 0x3a2   : > { %2528 = vmatpush2.bf16.msra.mxu0 %v12298_v48 }
 0x3a3   : > { %2529 = vmatprep.subr.bf16.mxu0 %v12306_v51  ;;  %v2136_v51 = vrot.slane %v2134_v46, 1  ;;  %v12408_v46 = vld [vmem:[#allocation12 + $0x2f0] ss:$12 sps:$4 sm:$0xff]  }
 0x3a6   : > { %2530 = vmatpush2.bf16.msra.mxu0 %v12304_v0 }
 0x3a7   : > { %2531 = vmatprep.subr.bf16.mxu0 %v12312_v54  ;;  %v2124_v54 = vrot.slane %v2122_v47, 1  ;;  %v12387_v47 = vld [vmem:[#allocation12 + $0x1f8] ss:$12 sps:$4 sm:$0xff]  }
 0x3aa   : > { %2532 = vmatpush2.bf16.msra.mxu0 %v12310_v55 }
 0x3ab   : > { %2533 = vmatprep.subr.bf16.mxu0 %v12318_v58 }
 0x3ae   : > { %2534 = vmatpush2.bf16.msra.mxu0 %v12316_v59 }
 0x3af   : > { %2535 = vmatprep.subr.bf16.mxu0 %v12324_v62 }
 0x3b2   : > { %2536 = vmatpush2.bf16.msra.mxu0 %v12322_v63 }
 0x3b3   : > { %3247 = vmatprep.subr.bf16.mxu0 %v12383_v42 }
 0x40e   : > { %v1838_v10 = vpop.f32.mrf.mxu1 }
 0x410   : > { %v1840_v13 = vpop.f32.mrf.mxu1 }
 0x412   : > { %v1842_v19 = vpop.f32.mrf.mxu1 }
 0x414   : > { %v1844_v28 = vpop.f32.mrf.mxu1 }
 0x415   : > { %v1714_v6 = vpop.f32.mrf.mxu0 }
 0x416   : > { %v1839_v17 = vadd.f32 %v1838_v10, %v1714_v6  ;;  %v12338_v6 = vld [vmem:[#allocation11 + $0x264] ss:$8 sps:$4 sm:$0xff]   ;;  %v12336_v10 = vld [vmem:[#allocation11 + $0x260] ss:$8 sps:$4 sm:$0xff]  }
 0x417   : > { %v1716_v8 = vpop.f32.mrf.mxu0 }
 0x418   : > { %v1841_v21 = vadd.f32 %v1840_v13, %v1716_v8  ;;  %v12339_v13 = vld [vmem:[#allocation11 + $0x250] ss:$8 sps:$4 sm:$0xff]  }
 0x419   : > { %v1718_v11 = vpop.f32.mrf.mxu0 }
 0x41a   : > { %v1843_v25 = vadd.f32 %v1842_v19, %v1718_v11  ;;  %v12341_v11 = vld [vmem:[#allocation11 + $0x254] ss:$8 sps:$4 sm:$0xff]   ;;  %v12350_v19 = vld [vmem:[#allocation11 + $0x224] ss:$8 sps:$4 sm:$0xff]  }
 0x41b   : > { %v1720_v16 = vpop.f32.mrf.mxu0 }
 0x41c   : > { %v1845_v30 = vadd.f32 %v1844_v28, %v1720_v16  ;;  %v12342_v16 = vld [vmem:[#allocation11 + $0x240] ss:$8 sps:$4 sm:$0xff]  }
 0x41d   : > { %v12360_v28 = vld [vmem:[#allocation11 + $0x2e0] ss:$8 sps:$4 sm:$0xff]  }
 0x435   : > { %v1986_v20 = vpop.f32.mrf.mxu0 }
 0x436   : > { %v1995_v22 = vadd.f32 %v1986_v20, %v1839_v17  ;;  %v12347_v17 = vld [vmem:[#allocation11 + $0x234] ss:$8 sps:$4 sm:$0xff]   ;;  %v12348_v20 = vld [vmem:[#allocation11 + $0x220] ss:$8 sps:$4 sm:$0xff]  }
 0x437   : > { %v1988_v24 = vpop.f32.mrf.mxu0 }
 0x438   : > { %v2011_v26 = vadd.f32 %v2004_v18, %v1995_v22  ;;  %v1996_v27 = vadd.f32 %v1988_v24, %v1841_v21  ;;  %v12353_v21 = vld [vmem:[#allocation11 + $0x214] ss:$8 sps:$4 sm:$0xff]   ;;  %v12351_v22 = vld [vmem:[#allocation11 + $0x210] ss:$8 sps:$4 sm:$0xff]   ;;  %v12354_v24 = vld [vmem:[#allocation11 + $0x200] ss:$8 sps:$4 sm:$0xff]  }
 0x439   : > { %v1990_v29 = vpop.f32.mrf.mxu0 }
 0x43a   : > { %v2012_v31 = vadd.f32 %v2008_v23, %v1996_v27  ;;  %v1997_v32 = vadd.f32 %v1990_v29, %v1843_v25  ;;  %v2015_v35 = vmax.f32 %v2011_v26, 0.0  ;;  %v12359_v25 = vld [vmem:[#allocation11 + $0x2f4] ss:$8 sps:$4 sm:$0xff]   ;;  %v12357_v26 = vld [vmem:[#allocation11 + $0x2f0] ss:$8 sps:$4 sm:$0xff]  }
 0x43b   : > { %v1992_v33 = vpop.f32.mrf.mxu0  ;;  %v12362_v27 = vld [vmem:[#allocation11 + $0x2e4] ss:$8 sps:$4 sm:$0xff]   ;;  %v12365_v29 = vld [vmem:[#allocation11 + $0x2d4] ss:$8 sps:$4 sm:$0xff]  }
 0x43c   : > { %v2016_v36 = vmax.f32 %v2012_v31, 0.0  ;;  %v2013_v37 = vadd.f32 %v2004_v18, %v1997_v32  ;;  %v1998_v38 = vadd.f32 %v1992_v33, %v1845_v30  ;;  %v12345_v18 = vld [vmem:[#allocation11 + $0x230] ss:$8 sps:$4 sm:$0xff]   ;;  %v12368_v31 = vld [vmem:[#allocation11 + $0x2c4] ss:$8 sps:$4 sm:$0xff]  }
 0x43d   : > { %v12363_v30 = vld [vmem:[#allocation11 + $0x2d0] ss:$8 sps:$4 sm:$0xff]   ;;  %v12366_v32 = vld [vmem:[#allocation11 + $0x2c0] ss:$8 sps:$4 sm:$0xff]   ;;  %v12371_v33 = vld [vmem:[#allocation11 + $0x2b4] ss:$8 sps:$4 sm:$0xff]  }
 0x43e   : > { %v11556_v39 = vpack.c.bf16 %v2016_v36, %v2015_v35  ;;  %v2014_v40 = vadd.f32 %v2008_v23, %v1998_v38  ;;  %v2017_v43 = vmax.f32 %v2013_v37, 0.0  ;;  %v12356_v23 = vld [vmem:[#allocation11 + $0x204] ss:$8 sps:$4 sm:$0xff]   ;;  %v12377_v37 = vld [vmem:[#allocation11 + $0x294] ss:$8 sps:$4 sm:$0xff]  }
 0x43f   : > { %v12375_v38 = vld [vmem:[#allocation11 + $0x290] ss:$8 sps:$4 sm:$0xff]  }
 0x440   : > { %2031 = vst [vmem:[#allocation2 + $0x28] sm:$0xff] %v11556_v39  ;;  %v2018_v44 = vmax.f32 %v2014_v40, 0.0  ;;  %v13657_v49 = vpack.c.bf16 %v2017_v43, %v2015_v35  ;;  %v12374_v35 = vld [vmem:[#allocation11 + $0x2a4] ss:$8 sps:$4 sm:$0xff]   ;;  %v12378_v40 = vld [vmem:[#allocation11 + $0x280] ss:$8 sps:$4 sm:$0xff]  }
 0x441   : > { %v12380_v39 = vld [vmem:[#allocation11 + $0x284] ss:$8 sps:$4 sm:$0xff]  }
 0x442   : > { %v11557_v45 = vpack.c.bf16 %v2018_v44, %v2017_v43  ;;  %v13656_v48 = vpack.c.bf16 %v2018_v44, %v2016_v36  ;;  %v2117_v0 = vshll.u32 %v13657_v49, 16  ;;  %v2115_v53 = vshrl.u32 %v13657_v49, 16  ;;  %v12372_v36 = vld [vmem:[#allocation11 + $0x2a0] ss:$8 sps:$4 sm:$0xff]   ;;  %v12384_v44 = vld [vmem:[#allocation12 + $0x210] ss:$12 sps:$4 sm:$0xff]  }
 0x443   : > { %v12386_v43 = vld [vmem:[#allocation12 + $0x214] ss:$12 sps:$4 sm:$0xff]  }
 0x444   : > { %v2129_v50 = vshll.u32 %v13656_v48, 16  ;;  %2537 = vmatprep.mubr.bf16.mxu0 %v13656_v48  ;;  %v2127_v52 = vshrl.u32 %v13656_v48, 16  ;;  %v2119_v58 = vrot.slane %v2117_v0, 1  ;;  %v12392_v48 = vld [vmem:[#allocation12 + $0x1e4] ss:$12 sps:$4 sm:$0xff]  }
 0x445   : > { %2538 = vmatmul.mubr.bf16.vlgmr.msra.gmra.mxu0 %v13657_v49  ;;  %v12390_v49 = vld [vmem:[#allocation12 + $0x1e0] ss:$12 sps:$4 sm:$0xff]  }
 0x446   : > { %v2131_v57 = vrot.slane %v2129_v50, 1  ;;  %v2120_v63 = vor.u32 %v2119_v58, %v2115_v53  ;;  %3248 = vmatpush1.bf16.msra.mxu0 %v12381_v41  ;;  %v12395_v50 = vld [vmem:[#allocation12 + $0x1cc] ss:$12 sps:$4 sm:$0xff]   ;;  %v12398_v0 = vld [vmem:[#allocation12 + $0x1b4] ss:$12 sps:$4 sm:$0xff]  }
 0x447   : > { %v2548_v55 = vld [vmem:[#allocation2 + $0x28] sm:$0xee]  ;;  %3249 = vmatprep.subr.bf16.mxu0 %v12386_v43 }
 0x448   : > { %v10590_v59 = vcombine.high %v2548_v55, %v11557_v45  ;;  %v10589_v60 = vcombine.low %v2548_v55, %v11557_v45  ;;  %v2132_v62 = vor.u32 %v2131_v57, %v2127_v52  ;;  %v2125_v5 = vsel %vm839_vm1, %v2120_v63, %v2124_v54  ;;  %v12389_v45 = vld [vmem:[#allocation12 + $0x1fc] ss:$12 sps:$4 sm:$0xff]   ;;  %v12399_v54 = vld [vmem:[#allocation12 + $0x198] ss:$12 sps:$4 sm:$0xff]  }
 0x449   : > { %v12396_v52 = vld [vmem:[#allocation12 + $0x1b0] ss:$12 sps:$4 sm:$0xff]   ;;  %v12407_v57 = vld [vmem:[#allocation12 + $0x2ec] ss:$12 sps:$4 sm:$0xff]   ;;  %v12405_v58 = vld [vmem:[#allocation12 + $0x2e8] ss:$12 sps:$4 sm:$0xff]  }
 0x44a   : > { %v2590_v1 = vrot.slane %v10590_v59, 1  ;;  %v2587_v2 = vrot.slane %v10589_v60, 1  ;;  %v2137_v4 = vsel %vm839_vm1, %v2132_v62, %v2136_v51  ;;  %3250 = vmatpush1.bf16.msra.mxu0 %v12384_v44  ;;  %v12393_v51 = vld [vmem:[#allocation12 + $0x1c8] ss:$12 sps:$4 sm:$0xff]   ;;  %v12404_v55 = vld [vmem:[#allocation12 + $0x184] ss:$12 sps:$4 sm:$0xff]  }
 0x44b   : > { %2332 = vmatprep.mubr.bf16.mxu1 %v2137_v4  ;;  %3251 = vmatprep.subr.bf16.mxu0 %v12389_v45  ;;  %v12401_v53 = vld [vmem:[#allocation12 + $0x19c] ss:$12 sps:$4 sm:$0xff]   ;;  %v12412_v60 = vld [vmem:[#allocation12 + $0x2d4] ss:$12 sps:$4 sm:$0xff]   ;;  %v12414_v63 = vld [vmem:[#allocation12 + $0x218] ss:$12 sps:$4 sm:$0xff]  }
 0x44c   : > { %v14725_v7 = vsel %vm1053_vm2, %v2587_v2, %v2588_v56  ;;  %2333 = vmatmul.mubr.bf16.vlgmr.msra.gmra.mxu1 %v2125_v5  ;;  %v2592_v8 = vsel %vm1053_vm2, %v2590_v1, %v2591_v61  ;;  %v12402_v56 = vld [vmem:[#allocation12 + $0x180] ss:$12 sps:$4 sm:$0xff]   ;;  %v12409_v59 = vld [vmem:[#allocation12 + $0x230] ss:$12 sps:$4 sm:$0xff]   ;;  %v12413_v61 = vld [vmem:[#allocation12 + $0x2d8] ss:$12 sps:$4 sm:$0xff]  }
 0x44d   : > { %2756 = vmatpush1.bf16.msra.mxu1 %v12332_v3  ;;  %2787 = vmatprep.mubr.bf16.mxu1 %v2592_v8  ;;  %v12410_v62 = vld [vmem:[#allocation12 + $0x2d0] ss:$12 sps:$4 sm:$0xff]   ;;  %v12418_v2 = vld [vmem:[#allocation12 + $0x2c0] ss:$12 sps:$4 sm:$0xff]   ;;  %v12415_v3 = vld [vmem:[#allocation12 + $0x2b8] ss:$12 sps:$4 sm:$0xff]  }
 0x44e   : > { %2757 = vmatprep.subr.bf16.mxu1 %v12338_v6  ;;  %3252 = vmatpush1.bf16.msra.mxu0 %v12387_v47  ;;  %v12417_v1 = vld [vmem:[#allocation12 + $0x2bc] ss:$12 sps:$4 sm:$0xff]   ;;  %v12419_v4 = vld [vmem:[#allocation12 + $0x200] ss:$12 sps:$4 sm:$0xff]   ;;  %v12422_v5 = vld [vmem:[#allocation12 + $0x2a4] ss:$12 sps:$4 sm:$0xff]  }
 0x44f   : > { %3253 = vmatprep.subr.bf16.mxu0 %v12392_v48  ;;  %v12423_v6 = vld [vmem:[#allocation12 + $0x2a8] ss:$12 sps:$4 sm:$0xff]  }
 0x450   : > { %v12424_v8 = vld [vmem:[#allocation12 + $0x1e8] ss:$12 sps:$4 sm:$0xff]  }
 0x451   : > { %2758 = vmatpush1.bf16.msra.mxu1 %v12336_v10  ;;  %v12427_v10 = vld [vmem:[#allocation12 + $0x28c] ss:$12 sps:$4 sm:$0xff]  }
 0x452   : > { %2759 = vmatprep.subr.bf16.mxu1 %v12341_v11  ;;  %3254 = vmatpush1.bf16.msra.mxu0 %v12390_v49  ;;  %v12428_v11 = vld [vmem:[#allocation12 + $0x290] ss:$12 sps:$4 sm:$0xff]  }
 0x453   : > { %3255 = vmatprep.subr.bf16.mxu0 %v12395_v50 }
 0x455   : > { %2760 = vmatpush1.bf16.msra.mxu1 %v12339_v13  ;;  %v12425_v13 = vld [vmem:[#allocation12 + $0x288] ss:$12 sps:$4 sm:$0xff]  }
 0x456   : > { %2761 = vmatprep.subr.bf16.mxu1 %v12344_v14  ;;  %3256 = vmatpush1.bf16.msra.mxu0 %v12393_v51  ;;  %v12429_v14 = vld [vmem:[#allocation12 + $0x1d0] ss:$12 sps:$4 sm:$0xff]  }
 0x457   : > { %3257 = vmatprep.subr.bf16.mxu0 %v12398_v0 }
 0x459   : > { %2762 = vmatpush1.bf16.msra.mxu1 %v12342_v16  ;;  %v12432_v16 = vld [vmem:[#allocation12 + $0x274] ss:$12 sps:$4 sm:$0xff]  }
 0x45a   : > { %2763 = vmatprep.subr.bf16.mxu1 %v12347_v17  ;;  %3258 = vmatpush1.bf16.msra.mxu0 %v12396_v52  ;;  %v12433_v17 = vld [vmem:[#allocation12 + $0x278] ss:$12 sps:$4 sm:$0xff]  }
 0x45b   : > { %3259 = vmatprep.subr.bf16.mxu0 %v12401_v53 }
 0x45d   : > { %2764 = vmatpush1.bf16.msra.mxu1 %v12345_v18  ;;  %v12430_v18 = vld [vmem:[#allocation12 + $0x270] ss:$12 sps:$4 sm:$0xff]  }
 0x45e   : > { %2765 = vmatprep.subr.bf16.mxu1 %v12350_v19  ;;  %3260 = vmatpush1.bf16.msra.mxu0 %v12399_v54  ;;  %v12434_v19 = vld [vmem:[#allocation12 + $0x1b8] ss:$12 sps:$4 sm:$0xff]  }
 0x45f   : > { %3261 = vmatprep.subr.bf16.mxu0 %v12404_v55 }
 0x461   : > { %2766 = vmatpush1.bf16.msra.mxu1 %v12348_v20  ;;  %v12437_v20 = vld [vmem:[#allocation12 + $0x25c] ss:$12 sps:$4 sm:$0xff]  }
 0x462   : > { %2767 = vmatprep.subr.bf16.mxu1 %v12353_v21  ;;  %3262 = vmatpush1.bf16.msra.mxu0 %v12402_v56  ;;  %v12438_v21 = vld [vmem:[#allocation12 + $0x260] ss:$12 sps:$4 sm:$0xff]  }
 0x463   : > { %3263 = vmatprep.subr.bf16.mxu0 %v12407_v57 }
 0x465   : > { %2768 = vmatpush1.bf16.msra.mxu1 %v12351_v22  ;;  %v12435_v22 = vld [vmem:[#allocation12 + $0x258] ss:$12 sps:$4 sm:$0xff]  }
 0x466   : > { %2769 = vmatprep.subr.bf16.mxu1 %v12356_v23  ;;  %3264 = vmatpush2.bf16.msra.mxu0 %v12405_v58  ;;  %v12439_v23 = vld [vmem:[#allocation12 + $0x1a0] ss:$12 sps:$4 sm:$0xff]  }
 0x467   : > { %3265 = vmatprep.subr.bf16.mxu0 %v12412_v60 }
 0x469   : > { %2770 = vmatpush1.bf16.msra.mxu1 %v12354_v24  ;;  %v12442_v24 = vld [vmem:[#allocation12 + $0x244] ss:$12 sps:$4 sm:$0xff]  }
 0x46a   : > { %2771 = vmatprep.subr.bf16.mxu1 %v12359_v25  ;;  %3266 = vmatpush2.bf16.msra.mxu0 %v12410_v62  ;;  %v12443_v25 = vld [vmem:[#allocation12 + $0x248] ss:$12 sps:$4 sm:$0xff]  }
 0x46b   : > { %3267 = vmatprep.subr.bf16.mxu0 %v12417_v1 }
 0x46d   : > { %2772 = vmatpush2.bf16.msra.mxu1 %v12357_v26  ;;  %v12440_v26 = vld [vmem:[#allocation12 + $0x240] ss:$12 sps:$4 sm:$0xff]  }
 0x46e   : > { %2773 = vmatprep.subr.bf16.mxu1 %v12362_v27  ;;  %3268 = vmatpush2.bf16.msra.mxu0 %v12415_v3  ;;  %v12444_v27 = vld [vmem:[#allocation12 + $0x188] ss:$12 sps:$4 sm:$0xff]  }
 0x46f   : > { %3269 = vmatprep.subr.bf16.mxu0 %v12422_v5 }
 0x471   : > { %2774 = vmatpush2.bf16.msra.mxu1 %v12360_v28  ;;  %v12447_v28 = vld [vmem:[#allocation12 + $0xac] ss:$12 sps:$4 sm:$0xff]  }
 0x472   : > { %2775 = vmatprep.subr.bf16.mxu1 %v12365_v29  ;;  %v12448_v29 = vld [vmem:[#allocation12 + $0x170] ss:$12 sps:$4 sm:$0xff]  }
 0x475   : > { %2776 = vmatpush2.bf16.msra.mxu1 %v12363_v30 }
 0x476   : > { %2777 = vmatprep.subr.bf16.mxu1 %v12368_v31 }
 0x479   : > { %2778 = vmatpush2.bf16.msra.mxu1 %v12366_v32 }
 0x47a   : > { %2779 = vmatprep.subr.bf16.mxu1 %v12371_v33 }
 0x47d   : > { %2780 = vmatpush2.bf16.msra.mxu1 %v12369_v34 }
 0x47e   : > { %2781 = vmatprep.subr.bf16.mxu1 %v12374_v35  ;;  %v2802_v35 = vld [vmem:[#allocation23] sm:$0x3] }
 0x47f   : > { %v2811_v43 = vrot.slane %v2802_v35, %v14718_v15 }
 0x481   : > { %2782 = vmatpush2.bf16.msra.mxu1 %v12372_v36 }
 0x482   : > { %2783 = vmatprep.subr.bf16.mxu1 %v12377_v37 }
 0x485   : > { %2784 = vmatpush2.bf16.msra.mxu1 %v12375_v38  ;;  %v2807_v38 = vrot.slane %v2802_v35, %v14715_v12  ;;  %v12474_v35 = vld [vmem:[#allocation12 + $0x38] ss:$12 sps:$4 sm:$0xff]  }
 0x486   : > { %2785 = vmatprep.subr.bf16.mxu1 %v12380_v39 }
 0x489   : > { %2786 = vmatpush2.bf16.msra.mxu1 %v12378_v40 }
 0x48a   : > { %11620 = vmatprep.subr.bf16.mxu1 %v12408_v46 }
 0x48c   : > { %2788 = vmatmul.mubr.bf16.vlgmr.msra.gmra.mxu1 %v14725_v7  ;;  %v12420_v7 = vld [vmem:[#allocation12 + $0x2a0] ss:$12 sps:$4 sm:$0xff]  }
 0x48d   : > { %11621 = vmatpush3.bf16.msra.mxu1 %v12409_v59  ;;  %3270 = vmatpush2.bf16.msra.mxu0 %v12420_v7 }
 0x48e   : > { %11622 = vmatprep.subr.bf16.mxu1 %v12413_v61  ;;  %3271 = vmatprep.subr.bf16.mxu0 %v12427_v10  ;;  %v12445_v10 = vld [vmem:[#allocation12 + $0xa8] ss:$12 sps:$4 sm:$0xff]  }
 0x491   : > { %11623 = vmatpush3.bf16.msra.mxu1 %v12414_v63  ;;  %3272 = vmatpush2.bf16.msra.mxu0 %v12425_v13  ;;  %v12449_v13 = vld [vmem:[#allocation12 + $0xb0] ss:$12 sps:$4 sm:$0xff]  }
 0x492   : > { %11624 = vmatprep.subr.bf16.mxu1 %v12418_v2  ;;  %3273 = vmatprep.subr.bf16.mxu0 %v12432_v16  ;;  %v12453_v16 = vld [vmem:[#allocation12 + $0x158] ss:$12 sps:$4 sm:$0xff]  }
 0x495   : > { %11625 = vmatpush3.bf16.msra.mxu1 %v12419_v4  ;;  %3274 = vmatpush2.bf16.msra.mxu0 %v12430_v18  ;;  %v12450_v18 = vld [vmem:[#allocation12 + $0x90] ss:$12 sps:$4 sm:$0xff]  }
 0x496   : > { %11626 = vmatprep.subr.bf16.mxu1 %v12423_v6  ;;  %3275 = vmatprep.subr.bf16.mxu0 %v12437_v20  ;;  %v12457_v20 = vld [vmem:[#allocation12 + $0x7c] ss:$12 sps:$4 sm:$0xff]  }
 0x499   : > { %11627 = vmatpush3.bf16.msra.mxu1 %v12424_v8  ;;  %3276 = vmatpush2.bf16.msra.mxu0 %v12435_v22  ;;  %v12455_v22 = vld [vmem:[#allocation12 + $0x78] ss:$12 sps:$4 sm:$0xff]  }
 0x49a   : > { %11628 = vmatprep.subr.bf16.mxu1 %v12428_v11  ;;  %3277 = vmatprep.subr.bf16.mxu0 %v12442_v24  ;;  %v12462_v24 = vld [vmem:[#allocation12 + $0x64] ss:$12 sps:$4 sm:$0xff]  }
 0x49d   : > { %11629 = vmatpush3.bf16.msra.mxu1 %v12429_v14  ;;  %3278 = vmatpush2.bf16.msra.mxu0 %v12440_v26  ;;  %v12452_v14 = vld [vmem:[#allocation12 + $0x94] ss:$12 sps:$4 sm:$0xff]  }
 0x49e   : > { %11630 = vmatprep.subr.bf16.mxu1 %v12433_v17  ;;  %3588 = vmatprep.subr.bf16.mxu0 %v12447_v28  ;;  %v12460_v26 = vld [vmem:[#allocation12 + $0x60] ss:$12 sps:$4 sm:$0xff]  }
 0x49f   : > { %v12467_v28 = vld [vmem:[#allocation12 + $0x4c] ss:$12 sps:$4 sm:$0xff]  }
 0x4a1   : > { %11631 = vmatpush3.bf16.msra.mxu1 %v12434_v19  ;;  %v12454_v19 = vld [vmem:[#allocation12 + $0x98] ss:$12 sps:$4 sm:$0xff]  }
 0x4a2   : > { %11632 = vmatprep.subr.bf16.mxu1 %v12438_v21  ;;  %v12458_v21 = vld [vmem:[#allocation12 + $0x140] ss:$12 sps:$4 sm:$0xff]  }
 0x4a5   : > { %11633 = vmatpush3.bf16.msra.mxu1 %v12439_v23  ;;  %v12459_v23 = vld [vmem:[#allocation12 + $0x80] ss:$12 sps:$4 sm:$0xff]  }
 0x4a6   : > { %11634 = vmatprep.subr.bf16.mxu1 %v12443_v25  ;;  %v12463_v25 = vld [vmem:[#allocation12 + $0x128] ss:$12 sps:$4 sm:$0xff]  }
 0x4a9   : > { %11635 = vmatpush3.bf16.msra.mxu1 %v12444_v27  ;;  %v12464_v27 = vld [vmem:[#allocation12 + $0x68] ss:$12 sps:$4 sm:$0xff]  }
 0x4aa   : > { %11642 = vmatprep.subr.bf16.mxu1 %v12448_v29  ;;  %v12468_v29 = vld [vmem:[#allocation12 + $0x110] ss:$12 sps:$4 sm:$0xff]  }
 0x505   : > { %v2539_v32 = vpop.f32.mrf.mxu0 }
 0x507   : > { %v2541_v34 = vpop.f32.mrf.mxu0 }
 0x509   : > { %v2543_v39 = vpop.f32.mrf.mxu0 }
 0x50b   : > { %v2545_v48 = vpop.f32.mrf.mxu0 }
 0x50c   : > { %v2334_v30 = vpop.f32.mrf.mxu1 }
 0x50d   : > { %v2540_v37 = vadd.f32 %v2539_v32, %v2334_v30  ;;  %v12465_v30 = vld [vmem:[#allocation12 + $0x48] ss:$12 sps:$4 sm:$0xff]  }
 0x50e   : > { %v2336_v31 = vpop.f32.mrf.mxu1  ;;  %v12472_v32 = vld [vmem:[#allocation12 + $0x34] ss:$12 sps:$4 sm:$0xff]  }
 0x50f   : > { %v2542_v41 = vadd.f32 %v2541_v34, %v2336_v31  ;;  %v12469_v31 = vld [vmem:[#allocation12 + $0x50] ss:$12 sps:$4 sm:$0xff]  }
 0x510   : > { %v2338_v33 = vpop.f32.mrf.mxu1  ;;  %v12470_v34 = vld [vmem:[#allocation12 + $0x30] ss:$12 sps:$4 sm:$0xff]  }
 0x511   : > { %v2544_v45 = vadd.f32 %v2543_v39, %v2338_v33  ;;  %v12473_v33 = vld [vmem:[#allocation12 + $0xf8] ss:$12 sps:$4 sm:$0xff]   ;;  %v12479_v39 = vld [vmem:[#allocation12 + $0x20] ss:$12 sps:$4 sm:$0xff]  }
 0x512   : > { %v2340_v36 = vpop.f32.mrf.mxu1 }
 0x513   : > { %v2546_v50 = vadd.f32 %v2545_v48, %v2340_v36  ;;  %v12477_v36 = vld [vmem:[#allocation12 + $0x1c] ss:$12 sps:$4 sm:$0xff]  }
 0x514   : > { %v12485_v48 = vld [vmem:[#allocation12 + $0x168] ss:$12 sps:$4 sm:$0xff]  }
 0x54c   : > { %v2789_v40 = vpop.f32.mrf.mxu1 }
 0x54d   : > { %v2798_v42 = vadd.f32 %v2789_v40, %v2540_v37  ;;  %v12478_v37 = vld [vmem:[#allocation12 + $0xe0] ss:$12 sps:$4 sm:$0xff]   ;;  %v12482_v40 = vld [vmem:[#allocation12 + $0x4] ss:$12 sps:$4 sm:$0xff]  }
 0x54e   : > { %v2791_v44 = vpop.f32.mrf.mxu1 }
 0x54f   : > { %v2814_v46 = vadd.f32 %v2807_v38, %v2798_v42  ;;  %v2799_v47 = vadd.f32 %v2791_v44, %v2542_v41  ;;  %v12483_v41 = vld [vmem:[#allocation12 + $0xc8] ss:$12 sps:$4 sm:$0xff]   ;;  %v12480_v42 = vld [vmem:[#allocation12] ss:$12 sps:$4 sm:$0xff]  }
 0x550   : > { %v2793_v49 = vpop.f32.mrf.mxu1  ;;  %v12487_v44 = vld [vmem:[#allocation12 + $0x16c] ss:$12 sps:$4 sm:$0xff]  }
 0x551   : > { %v2815_v51 = vadd.f32 %v2811_v43, %v2799_v47  ;;  %v2800_v0 = vadd.f32 %v2793_v49, %v2544_v45  ;;  %v14731_v53 = vmax.f32 %v2814_v46, 0.0  ;;  %v12490_v45 = vld [vmem:[#allocation12 + $0x3ac] ss:$12 sps:$4 sm:$0xff]   ;;  %v12488_v49 = vld [vmem:[#allocation12 + $0x3a8] ss:$12 sps:$4 sm:$0xff]  }
 0x552   : > { %v2795_v52 = vpop.f32.mrf.mxu1 }
 0x553   : > { %v2819_v54 = vmax.f32 %v2815_v51, 0.0  ;;  %v2816_v55 = vadd.f32 %v2807_v38, %v2800_v0  ;;  %v2801_v56 = vadd.f32 %v2795_v52, %v2546_v50  ;;  %v12475_v38 = vld [vmem:[#allocation12 + $0x18] ss:$12 sps:$4 sm:$0xff]   ;;  %v14744_v50 = vpack.c.bf16 %v14731_v53, %v14731_v53  ;;  %v12493_v51 = vld [vmem:[#allocation12 + $0x154] ss:$12 sps:$4 sm:$0xff]  }
 0x554   : > { %v12496_v0 = vld [vmem:[#allocation12 + $0x394] ss:$12 sps:$4 sm:$0xff]  }
 0x555   : > { %v11558_v57 = vpack.c.bf16 %v2819_v54, %v14731_v53  ;;  %v2817_v58 = vadd.f32 %v2811_v43, %v2801_v56  ;;  %v2820_v59 = vmax.f32 %v2816_v55, 0.0  ;;  %v13658_v17 = vpack.c.bf16 %v2819_v54, %v2819_v54  ;;  %v12484_v43 = vld [vmem:[#allocation12 + $0x8] ss:$12 sps:$4 sm:$0xff]   ;;  %v12491_v54 = vld [vmem:[#allocation12 + $0x150] ss:$12 sps:$4 sm:$0xff]  }
 0x556   : > { %v12494_v55 = vld [vmem:[#allocation12 + $0x390] ss:$12 sps:$4 sm:$0xff]   ;;  %v12497_v53 = vld [vmem:[#allocation12 + $0x138] ss:$12 sps:$4 sm:$0xff]  }
 0x557   : > { %2834 = vst [vmem:[#allocation2 + $0x28] sm:$0xff] %v11558_v57  ;;  %v2821_v60 = vmax.f32 %v2817_v58, 0.0  ;;  %v12499_v56 = vld [vmem:[#allocation12 + $0x13c] ss:$12 sps:$4 sm:$0xff]   ;;  %v12500_v58 = vld [vmem:[#allocation12 + $0x378] ss:$12 sps:$4 sm:$0xff]  }
 0x559   : > { %v11559_v61 = vpack.c.bf16 %v2821_v60, %v2820_v59  ;;  %v12505_v59 = vld [vmem:[#allocation12 + $0x124] ss:$12 sps:$4 sm:$0xff]  }
 0x55a   : > { %v12508_v60 = vld [vmem:[#allocation12 + $0x364] ss:$12 sps:$4 sm:$0xff]  }
 0x55b   : > { %2835 = vst [vmem:[#allocation2 + $0x8] sm:$0xff] %v11559_v61  ;;  %v12503_v61 = vld [vmem:[#allocation12 + $0x120] ss:$12 sps:$4 sm:$0xff]  }
 0x55e   : > { %v14738_v46 = vld [vmem:[#allocation2 + $0x28] sm:$0xee] }
 0x562   : > { %v14734_v62 = vld [vmem:[#allocation2 + $0x8] sm:$0x11] }
 0x563   : > { %v10626_v63 = vcombine.high %v11558_v57, %v14734_v62  ;;  %v10625_v1 = vcombine.low %v11558_v57, %v14734_v62  ;;  %v10726_v47 = vcombine.high %v14738_v46, %v14734_v62  ;;  %v12502_v57 = vld [vmem:[#allocation12 + $0x37c] ss:$12 sps:$4 sm:$0xff]  }
 0x565   : > { %v2985_v2 = vshll.u32 %v10626_v63, 16  ;;  %v2978_v3 = vshll.u32 %v10625_v1, 16  ;;  %v2983_v4 = vshrl.u32 %v10626_v63, 16  ;;  %v2976_v6 = vshrl.u32 %v10625_v1, 16  ;;  %v12506_v63 = vld [vmem:[#allocation12 + $0x360] ss:$12 sps:$4 sm:$0xff]  }
 0x566   : > { %v14747_v52 = vrot.slane %v10726_v47, 1  ;;  %v12511_v1 = vld [vmem:[#allocation12 + $0x10c] ss:$12 sps:$4 sm:$0xff]  }
 0x567   : > { %v2987_v5 = vrot.slane %v2985_v2, 1  ;;  %v2980_v7 = vrot.slane %v2978_v3, 1  ;;  %v12514_v2 = vld [vmem:[#allocation12 + $0x34c] ss:$12 sps:$4 sm:$0xff]   ;;  %v12509_v3 = vld [vmem:[#allocation12 + $0x108] ss:$12 sps:$4 sm:$0xff]  }
 0x568   : > { %v12563_v47 = vld [vmem:[#allocation12 + $0x3d8] ss:$12 sps:$4 sm:$0xff]  }
 0x569   : > { %v2988_v8 = vor.u32 %v2987_v5, %v2983_v4  ;;  %v2981_v11 = vor.u32 %v2980_v7, %v2976_v6  ;;  %v12512_v4 = vld [vmem:[#allocation12 + $0x348] ss:$12 sps:$4 sm:$0xff]   ;;  %v12515_v7 = vld [vmem:[#allocation12 + $0xf0] ss:$12 sps:$4 sm:$0xff]  }
 0x56a   : > { %v12517_v5 = vld [vmem:[#allocation12 + $0xf4] ss:$12 sps:$4 sm:$0xff]  }
 0x56b   : > { %3279 = vmatprep.mubr.bf16.mxu0 %v2988_v8  ;;  %3320 = vmatprep.mubr.bf16.mxu1 %v2988_v8  ;;  %v12520_v6 = vld [vmem:[#allocation12 + $0x334] ss:$12 sps:$4 sm:$0xff]   ;;  %v12518_v8 = vld [vmem:[#allocation12 + $0x330] ss:$12 sps:$4 sm:$0xff]  }
 0x56c   : > { %3280 = vmatmul.mubr.bf16.vlgmr.msra.gmra.mxu0 %v2981_v11  ;;  %3321 = vmatmul.mubr.bf16.vlgmr.msra.gmra.mxu1 %v2981_v11  ;;  %v12526_v11 = vld [vmem:[#allocation12 + $0x31c] ss:$12 sps:$4 sm:$0xff]  }
 0x56d   : > { %3589 = vmatpush1.bf16.msra.mxu0 %v12445_v10  ;;  %11643 = vmatpush3.bf16.msra.mxu1 %v12449_v13  ;;  %v12523_v10 = vld [vmem:[#allocation12 + $0xdc] ss:$12 sps:$4 sm:$0xff]   ;;  %v12521_v13 = vld [vmem:[#allocation12 + $0xd8] ss:$12 sps:$4 sm:$0xff]  }
 0x56e   : > { %3620 = vmatprep.mubr.bf16.mxu0 %v13658_v17  ;;  %3661 = vmatprep.mubr.bf16.mxu1 %v13658_v17  ;;  %v12532_v17 = vld [vmem:[#allocation12 + $0x304] ss:$12 sps:$4 sm:$0xff]  }
 0x56f   : > { %3590 = vmatprep.subr.bf16.mxu0 %v12452_v14  ;;  %11644 = vmatprep.subr.bf16.mxu1 %v12453_v16  ;;  %v12524_v14 = vld [vmem:[#allocation12 + $0x318] ss:$12 sps:$4 sm:$0xff]  }
 0x570   : > { %v12529_v16 = vld [vmem:[#allocation12 + $0xc4] ss:$12 sps:$4 sm:$0xff]  }
 0x571   : > { %3591 = vmatpush1.bf16.msra.mxu0 %v12450_v18  ;;  %11645 = vmatpush3.bf16.msra.mxu1 %v12454_v19  ;;  %v12527_v18 = vld [vmem:[#allocation12 + $0xc0] ss:$12 sps:$4 sm:$0xff]  }
 0x572   : > { %3592 = vmatprep.subr.bf16.mxu0 %v12457_v20  ;;  %11646 = vmatprep.subr.bf16.mxu1 %v12458_v21  ;;  %v12530_v19 = vld [vmem:[#allocation12 + $0x300] ss:$12 sps:$4 sm:$0xff]   ;;  %v12536_v21 = vld [vmem:[#allocation12 + $0x470] ss:$12 sps:$4 sm:$0xff]  }
 0x573   : > { %v12535_v20 = vld [vmem:[#allocation12 + $0x46c] ss:$12 sps:$4 sm:$0xff]  }
 0x575   : > { %3593 = vmatpush1.bf16.msra.mxu0 %v12455_v22  ;;  %11647 = vmatpush3.bf16.msra.mxu1 %v12459_v23  ;;  %v12533_v22 = vld [vmem:[#allocation12 + $0x468] ss:$12 sps:$4 sm:$0xff]   ;;  %v12537_v23 = vld [vmem:[#allocation12 + $0x3b0] ss:$12 sps:$4 sm:$0xff]  }
 0x576   : > { %3594 = vmatprep.subr.bf16.mxu0 %v12462_v24  ;;  %11648 = vmatprep.subr.bf16.mxu1 %v12463_v25  ;;  %v12540_v24 = vld [vmem:[#allocation12 + $0x454] ss:$12 sps:$4 sm:$0xff]   ;;  %v12541_v25 = vld [vmem:[#allocation12 + $0x458] ss:$12 sps:$4 sm:$0xff]  }
 0x579   : > { %3595 = vmatpush1.bf16.msra.mxu0 %v12460_v26  ;;  %11649 = vmatpush3.bf16.msra.mxu1 %v12464_v27  ;;  %v12538_v26 = vld [vmem:[#allocation12 + $0x450] ss:$12 sps:$4 sm:$0xff]   ;;  %v12542_v27 = vld [vmem:[#allocation12 + $0x398] ss:$12 sps:$4 sm:$0xff]  }
 0x57a   : > { %3596 = vmatprep.subr.bf16.mxu0 %v12467_v28  ;;  %11650 = vmatprep.subr.bf16.mxu1 %v12468_v29  ;;  %v12545_v28 = vld [vmem:[#allocation12 + $0x43c] ss:$12 sps:$4 sm:$0xff]   ;;  %v12546_v29 = vld [vmem:[#allocation12 + $0x440] ss:$12 sps:$4 sm:$0xff]  }
 0x57d   : > { %3597 = vmatpush1.bf16.msra.mxu0 %v12465_v30  ;;  %11651 = vmatpush3.bf16.msra.mxu1 %v12469_v31  ;;  %v12543_v30 = vld [vmem:[#allocation12 + $0x438] ss:$12 sps:$4 sm:$0xff]   ;;  %v12547_v31 = vld [vmem:[#allocation12 + $0x380] ss:$12 sps:$4 sm:$0xff]  }
 0x57e   : > { %3598 = vmatprep.subr.bf16.mxu0 %v12472_v32  ;;  %11652 = vmatprep.subr.bf16.mxu1 %v12473_v33  ;;  %v12550_v32 = vld [vmem:[#allocation12 + $0x424] ss:$12 sps:$4 sm:$0xff]   ;;  %v12551_v33 = vld [vmem:[#allocation12 + $0x428] ss:$12 sps:$4 sm:$0xff]  }
 0x581   : > { %3599 = vmatpush1.bf16.msra.mxu0 %v12470_v34  ;;  %11653 = vmatpush3.bf16.msra.mxu1 %v12474_v35  ;;  %v12548_v34 = vld [vmem:[#allocation12 + $0x420] ss:$12 sps:$4 sm:$0xff]   ;;  %v12552_v35 = vld [vmem:[#allocation12 + $0x368] ss:$12 sps:$4 sm:$0xff]  }
 0x582   : > { %3600 = vmatprep.subr.bf16.mxu0 %v12477_v36  ;;  %11654 = vmatprep.subr.bf16.mxu1 %v12478_v37  ;;  %v12555_v36 = vld [vmem:[#allocation12 + $0x40c] ss:$12 sps:$4 sm:$0xff]   ;;  %v12556_v37 = vld [vmem:[#allocation12 + $0x410] ss:$12 sps:$4 sm:$0xff]  }
 0x585   : > { %3601 = vmatpush1.bf16.msra.mxu0 %v12475_v38  ;;  %11655 = vmatpush3.bf16.msra.mxu1 %v12479_v39  ;;  %v12553_v38 = vld [vmem:[#allocation12 + $0x408] ss:$12 sps:$4 sm:$0xff]   ;;  %v12557_v39 = vld [vmem:[#allocation12 + $0x350] ss:$12 sps:$4 sm:$0xff]  }
 0x586   : > { %3602 = vmatprep.subr.bf16.mxu0 %v12482_v40  ;;  %11656 = vmatprep.subr.bf16.mxu1 %v12483_v41  ;;  %v12560_v40 = vld [vmem:[#allocation12 + $0x3f4] ss:$12 sps:$4 sm:$0xff]   ;;  %v12561_v41 = vld [vmem:[#allocation12 + $0x3f8] ss:$12 sps:$4 sm:$0xff]  }
 0x589   : > { %3603 = vmatpush1.bf16.msra.mxu0 %v12480_v42  ;;  %11657 = vmatpush3.bf16.msra.mxu1 %v12484_v43  ;;  %v12558_v42 = vld [vmem:[#allocation12 + $0x3f0] ss:$12 sps:$4 sm:$0xff]   ;;  %v12562_v43 = vld [vmem:[#allocation12 + $0x338] ss:$12 sps:$4 sm:$0xff]  }
 0x58a   : > { %3604 = vmatprep.subr.bf16.mxu0 %v12487_v44  ;;  %4000 = vmatprep.subr.bf16.mxu1 %v12490_v45  ;;  %v12565_v44 = vld [vmem:[#allocation12 + $0x3dc] ss:$12 sps:$4 sm:$0xff]   ;;  %v12566_v45 = vld [vmem:[#allocation12 + $0x3e0] ss:$12 sps:$4 sm:$0xff]  }
 0x58c   : > { %3662 = vmatmul.mubr.bf16.vlgmr.msra.gmra.mxu1 %v14744_v50 }
 0x58d   : > { %3605 = vmatpush2.bf16.msra.mxu0 %v12485_v48  ;;  %4001 = vmatpush1.bf16.msra.mxu1 %v12488_v49  ;;  %v12567_v48 = vld [vmem:[#allocation12 + $0x320] ss:$12 sps:$4 sm:$0xff]   ;;  %v12570_v49 = vld [vmem:[#allocation12 + $0x3c4] ss:$12 sps:$4 sm:$0xff]  }
 0x58e   : > { %4032 = vmatprep.mubr.bf16.mxu1 %v14747_v52  ;;  %3606 = vmatprep.subr.bf16.mxu0 %v12493_v51  ;;  %v12568_v51 = vld [vmem:[#allocation12 + $0x3c0] ss:$12 sps:$4 sm:$0xff]  }
 0x58f   : > { %4002 = vmatprep.subr.bf16.mxu1 %v12496_v0  ;;  %v12572_v0 = vld [vmem:[#allocation12 + $0x308] ss:$12 sps:$4 sm:$0xff]  }
 0x591   : > { %3607 = vmatpush2.bf16.msra.mxu0 %v12491_v54  ;;  %4003 = vmatpush1.bf16.msra.mxu1 %v12494_v55  ;;  %v14754_v55 = vld [vmem:[#allocation2 + $0x10] sm:$0xff] }
 0x592   : > { %3608 = vmatprep.subr.bf16.mxu0 %v12499_v56  ;;  %4004 = vmatprep.subr.bf16.mxu1 %v12502_v57  ;;  %v12573_v56 = vld [vmem:[#allocation14 + $0x3e0] ss:$16 sps:$4 sm:$0xff]   ;;  %v12575_v57 = vld [vmem:[#allocation14 + $0x3e4] ss:$16 sps:$4 sm:$0xff]  }
 0x595   : > { %3609 = vmatpush2.bf16.msra.mxu0 %v12497_v53  ;;  %4005 = vmatpush1.bf16.msra.mxu1 %v12500_v58  ;;  %v12578_v53 = vld [vmem:[#allocation14 + $0x3c4] ss:$16 sps:$4 sm:$0xff]   ;;  %v12576_v58 = vld [vmem:[#allocation14 + $0x3c0] ss:$16 sps:$4 sm:$0xff]  }
 0x596   : > { %3610 = vmatprep.subr.bf16.mxu0 %v12505_v59  ;;  %4006 = vmatprep.subr.bf16.mxu1 %v12508_v60  ;;  %v12581_v59 = vld [vmem:[#allocation14 + $0x3a4] ss:$16 sps:$4 sm:$0xff]   ;;  %v12579_v60 = vld [vmem:[#allocation14 + $0x3a0] ss:$16 sps:$4 sm:$0xff]  }
 0x599   : > { %3611 = vmatpush2.bf16.msra.mxu0 %v12503_v61  ;;  %4007 = vmatpush1.bf16.msra.mxu1 %v12506_v63  ;;  %v12587_v61 = vld [vmem:[#allocation14 + $0x364] ss:$16 sps:$4 sm:$0xff]   ;;  %v12585_v63 = vld [vmem:[#allocation14 + $0x360] ss:$16 sps:$4 sm:$0xff]  }
 0x59a   : > { %3612 = vmatprep.subr.bf16.mxu0 %v12511_v1  ;;  %4008 = vmatprep.subr.bf16.mxu1 %v12514_v2  ;;  %v12588_v1 = vld [vmem:[#allocation14 + $0x340] ss:$16 sps:$4 sm:$0xff]   ;;  %v12590_v2 = vld [vmem:[#allocation14 + $0x344] ss:$16 sps:$4 sm:$0xff]  }
 0x59d   : > { %3613 = vmatpush2.bf16.msra.mxu0 %v12509_v3  ;;  %4009 = vmatpush1.bf16.msra.mxu1 %v12512_v4  ;;  %v12593_v3 = vld [vmem:[#allocation14 + $0x324] ss:$16 sps:$4 sm:$0xff]   ;;  %v12600_v4 = vld [vmem:[#allocation14 + $0x5e0] ss:$16 sps:$4 sm:$0xff]  }
 0x59e   : > { %3614 = vmatprep.subr.bf16.mxu0 %v12517_v5  ;;  %4010 = vmatprep.subr.bf16.mxu1 %v12520_v6  ;;  %v12591_v5 = vld [vmem:[#allocation14 + $0x320] ss:$16 sps:$4 sm:$0xff]   ;;  %v12602_v6 = vld [vmem:[#allocation14 + $0x5e4] ss:$16 sps:$4 sm:$0xff]  }
 0x5a1   : > { %3615 = vmatpush2.bf16.msra.mxu0 %v12515_v7  ;;  %4011 = vmatpush1.bf16.msra.mxu1 %v12518_v8  ;;  %v12596_v7 = vld [vmem:[#allocation14 + $0x304] ss:$16 sps:$4 sm:$0xff]   ;;  %v12594_v8 = vld [vmem:[#allocation14 + $0x300] ss:$16 sps:$4 sm:$0xff]  }
 0x5a2   : > { %3616 = vmatprep.subr.bf16.mxu0 %v12523_v10  ;;  %4012 = vmatprep.subr.bf16.mxu1 %v12526_v11  ;;  %v12599_v10 = vld [vmem:[#allocation14 + $0x4e4] ss:$16 sps:$4 sm:$0xff]   ;;  %v12597_v11 = vld [vmem:[#allocation14 + $0x4e0] ss:$16 sps:$4 sm:$0xff]  }
 0x5a5   : > { %3617 = vmatpush2.bf16.msra.mxu0 %v12521_v13  ;;  %4013 = vmatpush1.bf16.msra.mxu1 %v12524_v14  ;;  %v12605_v13 = vld [vmem:[#allocation14 + $0x4c4] ss:$16 sps:$4 sm:$0xff]   ;;  %v12603_v14 = vld [vmem:[#allocation14 + $0x4c0] ss:$16 sps:$4 sm:$0xff]  }
 0x5a6   : > { %3618 = vmatprep.subr.bf16.mxu0 %v12529_v16  ;;  %4014 = vmatprep.subr.bf16.mxu1 %v12532_v17  ;;  %v12611_v16 = vld [vmem:[#allocation14 + $0x4a4] ss:$16 sps:$4 sm:$0xff]   ;;  %v12609_v17 = vld [vmem:[#allocation14 + $0x4a0] ss:$16 sps:$4 sm:$0xff]  }
 0x5a9   : > { %3619 = vmatpush2.bf16.msra.mxu0 %v12527_v18  ;;  %4015 = vmatpush1.bf16.msra.mxu1 %v12530_v19  ;;  %v12617_v18 = vld [vmem:[#allocation14 + $0x484] ss:$16 sps:$4 sm:$0xff]  }
 0x5aa   : > { %4016 = vmatprep.subr.bf16.mxu1 %v12535_v20  ;;  %11664 = vmatprep.subr.bf16.mxu0 %v12536_v21  ;;  %v12608_v19 = vld [vmem:[#allocation14 + $0x5c4] ss:$16 sps:$4 sm:$0xff]   ;;  %v12615_v20 = vld [vmem:[#allocation14 + $0x480] ss:$16 sps:$4 sm:$0xff]  }
 0x5ab   : > { %v12606_v21 = vld [vmem:[#allocation14 + $0x5c0] ss:$16 sps:$4 sm:$0xff]  }
 0x5ac   : > { %3621 = vmatmul.mubr.bf16.vlgmr.msra.gmra.mxu0 %v14744_v50  ;;  %v12571_v50 = vld [vmem:[#allocation12 + $0x3c8] ss:$12 sps:$4 sm:$0xff]  }
 0x5ad   : > { %4017 = vmatpush2.bf16.msra.mxu1 %v12533_v22  ;;  %11665 = vmatpush3.bf16.msra.mxu0 %v12537_v23  ;;  %v12623_v22 = vld [vmem:[#allocation14 + $0x464] ss:$16 sps:$4 sm:$0xff]  }
 0x5ae   : > { %4073 = vmatprep.mubr.bf16.mxu0 %v14747_v52  ;;  %4018 = vmatprep.subr.bf16.mxu1 %v12540_v24  ;;  %v10725_v52 = vcombine.low %v14738_v46, %v14734_v62  ;;  %v12584_v62 = vld [vmem:[#allocation14 + $0x384] ss:$16 sps:$4 sm:$0xff]   ;;  %v12582_v46 = vld [vmem:[#allocation14 + $0x380] ss:$16 sps:$4 sm:$0xff]  }
 0x5af   : > { %11666 = vmatprep.subr.bf16.mxu0 %v12541_v25  ;;  %v12614_v23 = vld [vmem:[#allocation14 + $0x5a4] ss:$16 sps:$4 sm:$0xff]   ;;  %v12621_v24 = vld [vmem:[#allocation14 + $0x460] ss:$16 sps:$4 sm:$0xff]  }
 0x5b0   : > { %v3740_v54 = vrot.slane %v10725_v52, 1  ;;  %v12612_v25 = vld [vmem:[#allocation14 + $0x5a0] ss:$16 sps:$4 sm:$0xff]  }
 0x5b1   : > { %4019 = vmatpush2.bf16.msra.mxu1 %v12538_v26  ;;  %11667 = vmatpush3.bf16.msra.mxu0 %v12542_v27  ;;  %v12629_v26 = vld [vmem:[#allocation14 + $0x444] ss:$16 sps:$4 sm:$0xff]  }
 0x5b2   : > { %4020 = vmatprep.subr.bf16.mxu1 %v12545_v28  ;;  %11668 = vmatprep.subr.bf16.mxu0 %v12546_v29  ;;  %v12620_v27 = vld [vmem:[#allocation14 + $0x584] ss:$16 sps:$4 sm:$0xff]   ;;  %v12627_v28 = vld [vmem:[#allocation14 + $0x440] ss:$16 sps:$4 sm:$0xff]  }
 0x5b3   : > { %v12618_v29 = vld [vmem:[#allocation14 + $0x580] ss:$16 sps:$4 sm:$0xff]  }
 0x5b5   : > { %4021 = vmatpush2.bf16.msra.mxu1 %v12543_v30  ;;  %11669 = vmatpush3.bf16.msra.mxu0 %v12547_v31  ;;  %v12635_v30 = vld [vmem:[#allocation14 + $0x424] ss:$16 sps:$4 sm:$0xff]  }
 0x5b6   : > { %4022 = vmatprep.subr.bf16.mxu1 %v12550_v32  ;;  %11670 = vmatprep.subr.bf16.mxu0 %v12551_v33  ;;  %v12626_v31 = vld [vmem:[#allocation14 + $0x564] ss:$16 sps:$4 sm:$0xff]   ;;  %v12633_v32 = vld [vmem:[#allocation14 + $0x420] ss:$16 sps:$4 sm:$0xff]  }
 0x5b7   : > { %v12624_v33 = vld [vmem:[#allocation14 + $0x560] ss:$16 sps:$4 sm:$0xff]  }
 0x5b9   : > { %4023 = vmatpush2.bf16.msra.mxu1 %v12548_v34  ;;  %11671 = vmatpush3.bf16.msra.mxu0 %v12552_v35  ;;  %v12632_v34 = vld [vmem:[#allocation14 + $0x544] ss:$16 sps:$4 sm:$0xff]   ;;  %v12630_v35 = vld [vmem:[#allocation14 + $0x540] ss:$16 sps:$4 sm:$0xff]  }
 0x5ba   : > { %4024 = vmatprep.subr.bf16.mxu1 %v12555_v36  ;;  %11672 = vmatprep.subr.bf16.mxu0 %v12556_v37  ;;  %v12639_v36 = vld [vmem:[#allocation14 + $0x400] ss:$16 sps:$4 sm:$0xff]   ;;  %v12641_v37 = vld [vmem:[#allocation14 + $0x404] ss:$16 sps:$4 sm:$0xff]  }
 0x5bd   : > { %4025 = vmatpush2.bf16.msra.mxu1 %v12553_v38  ;;  %11673 = vmatpush3.bf16.msra.mxu0 %v12557_v39  ;;  %v12638_v38 = vld [vmem:[#allocation14 + $0x524] ss:$16 sps:$4 sm:$0xff]   ;;  %v12636_v39 = vld [vmem:[#allocation14 + $0x520] ss:$16 sps:$4 sm:$0xff]  }
 0x5be   : > { %4026 = vmatprep.subr.bf16.mxu1 %v12560_v40  ;;  %11674 = vmatprep.subr.bf16.mxu0 %v12561_v41  ;;  %v12647_v40 = vld [vmem:[#allocation14 + $0x5ec] ss:$16 sps:$4 sm:$0xff]   ;;  %v12644_v41 = vld [vmem:[#allocation14 + $0x504] ss:$16 sps:$4 sm:$0xff]  }
 0x5c1   : > { %4027 = vmatpush2.bf16.msra.mxu1 %v12558_v42  ;;  %11675 = vmatpush3.bf16.msra.mxu0 %v12562_v43  ;;  %v12642_v42 = vld [vmem:[#allocation14 + $0x500] ss:$16 sps:$4 sm:$0xff]   ;;  %v12650_v43 = vld [vmem:[#allocation14 + $0x3ec] ss:$16 sps:$4 sm:$0xff]  }
 0x5c2   : > { %4028 = vmatprep.subr.bf16.mxu1 %v12565_v44  ;;  %11676 = vmatprep.subr.bf16.mxu0 %v12566_v45 }
 0x5c5   : > { %4029 = vmatpush2.bf16.msra.mxu1 %v12563_v47  ;;  %11677 = vmatpush3.bf16.msra.mxu0 %v12567_v48 }
 0x5c6   : > { %4030 = vmatprep.subr.bf16.mxu1 %v12570_v49  ;;  %11678 = vmatprep.subr.bf16.mxu0 %v12571_v50 }
 0x5c9   : > { %4031 = vmatpush2.bf16.msra.mxu1 %v12568_v51  ;;  %11679 = vmatpush3.bf16.msra.mxu0 %v12572_v0 }
 0x5ca   : > { %4836 = vmatprep.subr.bf16.mxu0 %v12575_v57  ;;  %4877 = vmatprep.subr.bf16.mxu1 %v12602_v6 }
 0x5cc   : > { %4033 = vmatmul.mubr.bf16.vlgmr.msra.gmra.mxu1 %v3740_v54  ;;  %4074 = vmatmul.mubr.bf16.vlgmr.msra.gmra.mxu0 %v3740_v54 }
 0x5cd   : > { %4909 = vmatprep.mubr.bf16.mxu1 %v14754_v55  ;;  %4837 = vmatpush1.bf16.msra.mxu0 %v12573_v56 }
 0x5ce   : > { %4838 = vmatprep.subr.bf16.mxu0 %v12578_v53  ;;  %4878 = vmatpush1.bf16.msra.mxu1 %v12600_v4 }
 0x5cf   : > { %4879 = vmatprep.subr.bf16.mxu1 %v12608_v19 }
 0x5d1   : > { %4839 = vmatpush1.bf16.msra.mxu0 %v12576_v58 }
 0x5d2   : > { %4840 = vmatprep.subr.bf16.mxu0 %v12581_v59  ;;  %4880 = vmatpush1.bf16.msra.mxu1 %v12606_v21 }
 0x5d3   : > { %4881 = vmatprep.subr.bf16.mxu1 %v12614_v23 }
 0x5d5   : > { %4841 = vmatpush1.bf16.msra.mxu0 %v12579_v60 }
 0x5d6   : > { %4842 = vmatprep.subr.bf16.mxu0 %v12584_v62  ;;  %4882 = vmatpush1.bf16.msra.mxu1 %v12612_v25 }
 0x5d7   : > { %4883 = vmatprep.subr.bf16.mxu1 %v12620_v27 }
 0x5d9   : > { %4843 = vmatpush1.bf16.msra.mxu0 %v12582_v46 }
 0x5da   : > { %4844 = vmatprep.subr.bf16.mxu0 %v12587_v61  ;;  %4884 = vmatpush1.bf16.msra.mxu1 %v12618_v29  ;;  %v14769_v29 = vld [vmem:[#allocation2 + $0x8] sm:$0x11] }
 0x5db   : > { %4885 = vmatprep.subr.bf16.mxu1 %v12626_v31 }
 0x5dd   : > { %4845 = vmatpush1.bf16.msra.mxu0 %v12585_v63  ;;  %v4084_v63 = vld [vmem:[#allocation24] sm:$0x7] }
 0x5de   : > { %4846 = vmatprep.subr.bf16.mxu0 %v12590_v2  ;;  %4886 = vmatpush1.bf16.msra.mxu1 %v12624_v33  ;;  %v4089_v2 = vrot.slane %v4084_v63, %v14715_v12 }
 0x5df   : > { %4887 = vmatprep.subr.bf16.mxu1 %v12632_v34 }
 0x5e1   : > { %4847 = vmatpush1.bf16.msra.mxu0 %v12588_v1 }
 0x5e2   : > { %4848 = vmatprep.subr.bf16.mxu0 %v12593_v3  ;;  %4888 = vmatpush1.bf16.msra.mxu1 %v12630_v35  ;;  %v14759_v3 = vsub.s32 2, %v14712_v9 }
 0x5e3   : > { %4889 = vmatprep.subr.bf16.mxu1 %v12638_v38 }
 0x5e5   : > { %4849 = vmatpush1.bf16.msra.mxu0 %v12591_v5 }
 0x5e6   : > { %4850 = vmatprep.subr.bf16.mxu0 %v12596_v7  ;;  %4890 = vmatpush1.bf16.msra.mxu1 %v12636_v39 }
 0x5e7   : > { %4891 = vmatprep.subr.bf16.mxu1 %v12644_v41 }
 0x5e9   : > { %4851 = vmatpush1.bf16.msra.mxu0 %v12594_v8  ;;  %v4093_v8 = vrot.slane %v4084_v63, %v14718_v15 }
 0x5ea   : > { %4852 = vmatprep.subr.bf16.mxu0 %v12599_v10  ;;  %4892 = vmatpush1.bf16.msra.mxu1 %v12642_v42  ;;  %v14775_v42 = vld [vmem:[#allocation2] sm:$0x1] }
 0x5eb   : > { %4918 = vmatprep.subr.bf16.mxu1 %v12650_v43  ;;  %v12654_v43 = vld [vmem:[#allocation14 + $0x5cc] ss:$16 sps:$4 sm:$0xff]  }
 0x5ed   : > { %4853 = vmatpush2.bf16.msra.mxu0 %v12597_v11 }
 0x5ee   : > { %4854 = vmatprep.subr.bf16.mxu0 %v12605_v13 }
 0x5f1   : > { %4855 = vmatpush2.bf16.msra.mxu0 %v12603_v14 }
 0x5f2   : > { %4856 = vmatprep.subr.bf16.mxu0 %v12611_v16 }
 0x5f5   : > { %4857 = vmatpush2.bf16.msra.mxu0 %v12609_v17  ;;  %v4097_v17 = vrot.slane %v4084_v63, %v14759_v3  ;;  %v12669_v63 = vld [vmem:[#allocation14 + $0x38c] ss:$16 sps:$4 sm:$0xff]  }
 0x5f6   : > { %4858 = vmatprep.subr.bf16.mxu0 %v12617_v18 }
 0x5f9   : > { %4859 = vmatpush2.bf16.msra.mxu0 %v12615_v20 }
 0x5fa   : > { %4860 = vmatprep.subr.bf16.mxu0 %v12623_v22 }
 0x5fd   : > { %4861 = vmatpush2.bf16.msra.mxu0 %v12621_v24 }
 0x5fe   : > { %4862 = vmatprep.subr.bf16.mxu0 %v12629_v26 }
 0x601   : > { %4863 = vmatpush2.bf16.msra.mxu0 %v12627_v28 }
 0x602   : > { %4864 = vmatprep.subr.bf16.mxu0 %v12635_v30 }
 0x605   : > { %4865 = vmatpush2.bf16.msra.mxu0 %v12633_v32 }
 0x606   : > { %4866 = vmatprep.subr.bf16.mxu0 %v12641_v37 }
 0x609   : > { %4867 = vmatpush2.bf16.msra.mxu0 %v12639_v36 }
 0x60a   : > { %4959 = vmatprep.subr.bf16.mxu0 %v12647_v40  ;;  %v12645_v40 = vld [vmem:[#allocation14 + $0x5e8] ss:$16 sps:$4 sm:$0xff]  }
 0x62c   : > { %v3281_v44 = vpop.f32.mrf.mxu0  ;;  %v11636_v45 = vpop.f32.mrf.mxu1 }
 0x62e   : > { %v3283_v47 = vpop.f32.mrf.mxu0  ;;  %v11637_v48 = vpop.f32.mrf.mxu1 }
 0x62f   : > { %v11638_v49 = vadd.f32 %v11637_v48, %v11636_v45  ;;  %v12660_v48 = vld [vmem:[#allocation14 + $0x5ac] ss:$16 sps:$4 sm:$0xff]  }
 0x630   : > { %v3285_v50 = vpop.f32.mrf.mxu0  ;;  %v11639_v51 = vpop.f32.mrf.mxu1 }
 0x632   : > { %v3286_v0 = vpop.f32.mrf.mxu0  ;;  %v11640_v52 = vpop.f32.mrf.mxu1 }
 0x633   : > { %v12658_v0 = vld [vmem:[#allocation14 + $0x5a8] ss:$16 sps:$4 sm:$0xff]  }
 0x634   : > { %v12648_v52 = vld [vmem:[#allocation14 + $0x3e8] ss:$16 sps:$4 sm:$0xff]  }
 0x64c   : > { %v11658_v54 = vpop.f32.mrf.mxu1 }
 0x64e   : > { %v11659_v56 = vpop.f32.mrf.mxu1 }
 0x64f   : > { %v11660_v57 = vadd.f32 %v11659_v56, %v11658_v54  ;;  %v12657_v56 = vld [vmem:[#allocation14 + $0x3cc] ss:$16 sps:$4 sm:$0xff]  }
 0x650   : > { %v11661_v53 = vpop.f32.mrf.mxu1 }
 0x651   : > { %v3664_v58 = vadd.f32 %v11660_v57, %v11638_v49  ;;  %v12666_v57 = vld [vmem:[#allocation14 + $0x58c] ss:$16 sps:$4 sm:$0xff]   ;;  %v12664_v53 = vld [vmem:[#allocation14 + $0x588] ss:$16 sps:$4 sm:$0xff]  }
 0x652   : > { %v11662_v59 = vpop.f32.mrf.mxu1 }
 0x653   : > { %v12672_v59 = vld [vmem:[#allocation14 + $0x56c] ss:$16 sps:$4 sm:$0xff]  }
 0x66c   : > { %v3622_v60 = vpop.f32.mrf.mxu0 }
 0x66d   : > { %v3623_v1 = vadd.f32 %v3622_v60, %v3281_v44  ;;  %v12663_v60 = vld [vmem:[#allocation14 + $0x3ac] ss:$16 sps:$4 sm:$0xff]  }
 0x66e   : > { %v3624_v62 = vpop.f32.mrf.mxu0 }
 0x66f   : > { %v3625_v6 = vadd.f32 %v3624_v62, %v3283_v47  ;;  %v12652_v47 = vld [vmem:[#allocation14 + $0x5c8] ss:$16 sps:$4 sm:$0xff]  }
 0x670   : > { %v3626_v46 = vpop.f32.mrf.mxu0  ;;  %v12670_v62 = vld [vmem:[#allocation14 + $0x568] ss:$16 sps:$4 sm:$0xff]  }
 0x671   : > { %v12661_v46 = vld [vmem:[#allocation14 + $0x3a8] ss:$16 sps:$4 sm:$0xff]  }
 0x672   : > { %v3627_v61 = vpop.f32.mrf.mxu0 }
 0x673   : > { %v12678_v61 = vld [vmem:[#allocation14 + $0x54c] ss:$16 sps:$4 sm:$0xff]  }
 0x68c   : > { %v4034_v4 = vpop.f32.mrf.mxu1  ;;  %v11680_v5 = vpop.f32.mrf.mxu0 }
 0x68d   : > { %v4081_v7 = vadd.f32 %v4034_v4, %v3623_v1  ;;  %v12676_v1 = vld [vmem:[#allocation14 + $0x548] ss:$16 sps:$4 sm:$0xff]   ;;  %v12684_v4 = vld [vmem:[#allocation14 + $0x52c] ss:$16 sps:$4 sm:$0xff]  }
 0x68e   : > { %v4036_v10 = vpop.f32.mrf.mxu1  ;;  %v11681_v11 = vpop.f32.mrf.mxu0 }
 0x68f   : > { %v4101_v13 = vadd.f32 %v4089_v2, %v4081_v7  ;;  %v4082_v14 = vadd.f32 %v4036_v10, %v3625_v6  ;;  %v11682_v16 = vadd.f32 %v11681_v11, %v11680_v5  ;;  %v12667_v2 = vld [vmem:[#allocation14 + $0x388] ss:$16 sps:$4 sm:$0xff]   ;;  %v12675_v5 = vld [vmem:[#allocation14 + $0x36c] ss:$16 sps:$4 sm:$0xff]  }
 0x690   : > { %v4038_v18 = vpop.f32.mrf.mxu1  ;;  %v11683_v19 = vpop.f32.mrf.mxu0  ;;  %v12682_v6 = vld [vmem:[#allocation14 + $0x528] ss:$16 sps:$4 sm:$0xff]   ;;  %v12681_v10 = vld [vmem:[#allocation14 + $0x34c] ss:$16 sps:$4 sm:$0xff]  }
 0x691   : > { %v4102_v20 = vadd.f32 %v4093_v8, %v4082_v14  ;;  %v4083_v21 = vadd.f32 %v11682_v16, %v3664_v58  ;;  %v14763_v24 = vmax.f32 %v4101_v13, 0.0  ;;  %v12655_v58 = vld [vmem:[#allocation14 + $0x3c8] ss:$16 sps:$4 sm:$0xff]   ;;  %v12690_v8 = vld [vmem:[#allocation14 + $0x50c] ss:$16 sps:$4 sm:$0xff]  }
 0x692   : > { %v4039_v22 = vpop.f32.mrf.mxu1  ;;  %v11684_v23 = vpop.f32.mrf.mxu0  ;;  %v12673_v7 = vld [vmem:[#allocation14 + $0x368] ss:$16 sps:$4 sm:$0xff]   ;;  %v12696_v14 = vld [vmem:[#allocation14 + $0xe4] ss:$16 sps:$4 sm:$0xff]   ;;  %v12687_v16 = vld [vmem:[#allocation14 + $0x32c] ss:$16 sps:$4 sm:$0xff]  }
 0x693   : > { %v14765_v25 = vmax.f32 %v4102_v20, 0.0  ;;  %v4103_v26 = vadd.f32 %v4097_v17, %v4083_v21  ;;  %v12688_v11 = vld [vmem:[#allocation14 + $0x508] ss:$16 sps:$4 sm:$0xff]   ;;  %v12694_v17 = vld [vmem:[#allocation14 + $0xe0] ss:$16 sps:$4 sm:$0xff]  }
 0x694   : > { %v12679_v13 = vld [vmem:[#allocation14 + $0x348] ss:$16 sps:$4 sm:$0xff]   ;;  %v12702_v19 = vld [vmem:[#allocation14 + $0xc4] ss:$16 sps:$4 sm:$0xff]   ;;  %v12693_v20 = vld [vmem:[#allocation14 + $0x30c] ss:$16 sps:$4 sm:$0xff]  }
 0x695   : > { %v11560_v27 = vpack.c.bf16 %v14765_v25, %v14763_v24  ;;  %v4106_v28 = vmax.f32 %v4103_v26, 0.0  ;;  %v12685_v18 = vld [vmem:[#allocation14 + $0x328] ss:$16 sps:$4 sm:$0xff]   ;;  %v14785_v21 = vpack.c.bf16 %v14765_v25, %v14765_v25  ;;  %v12700_v22 = vld [vmem:[#allocation14 + $0xc0] ss:$16 sps:$4 sm:$0xff]  }
 0x696   : > { %v12691_v23 = vld [vmem:[#allocation14 + $0x308] ss:$16 sps:$4 sm:$0xff]   ;;  %v12708_v26 = vld [vmem:[#allocation14 + $0xa4] ss:$16 sps:$4 sm:$0xff]   ;;  %v12705_v25 = vld [vmem:[#allocation14 + $0x4cc] ss:$16 sps:$4 sm:$0xff]  }
 0x697   : > { %4120 = vst [vmem:[#allocation2 + $0x28] sm:$0xff] %v11560_v27  ;;  %v11561_v30 = vpack.c.bf16 %v4106_v28, %v4106_v28  ;;  %v10778_v31 = vcombine.high %v11560_v27, %v14769_v29  ;;  %v10777_v32 = vcombine.low %v11560_v27, %v14769_v29  ;;  %v12699_v27 = vld [vmem:[#allocation14 + $0x4ec] ss:$16 sps:$4 sm:$0xff]   ;;  %v12706_v28 = vld [vmem:[#allocation14 + $0xa0] ss:$16 sps:$4 sm:$0xff]  }
 0x699   : > { %4121 = vst [vmem:[#allocation2 + $0x10] sm:$0xf] %v11561_v30  ;;  %v4342_v33 = vshll.u32 %v10778_v31, 16  ;;  %v4335_v34 = vshll.u32 %v10777_v32, 16  ;;  %v4340_v35 = vshrl.u32 %v10778_v31, 16  ;;  %v4333_v37 = vshrl.u32 %v10777_v32, 16 }
 0x69a   : > { %v12697_v30 = vld [vmem:[#allocation14 + $0x4e8] ss:$16 sps:$4 sm:$0xff]   ;;  %v12714_v31 = vld [vmem:[#allocation14 + $0x84] ss:$16 sps:$4 sm:$0xff]   ;;  %v12712_v32 = vld [vmem:[#allocation14 + $0x80] ss:$16 sps:$4 sm:$0xff]  }
 0x69b   : > { %v4344_v36 = vrot.slane %v4342_v33, 1  ;;  %v4337_v38 = vrot.slane %v4335_v34, 1  ;;  %v12703_v33 = vld [vmem:[#allocation14 + $0x4c8] ss:$16 sps:$4 sm:$0xff]   ;;  %v12720_v34 = vld [vmem:[#allocation14 + $0x64] ss:$16 sps:$4 sm:$0xff]  }
 0x69d   : > { %v4345_v39 = vor.u32 %v4344_v36, %v4340_v35  ;;  %v14773_v41 = vor.u32 %v4337_v38, %v4333_v37  ;;  %v12711_v35 = vld [vmem:[#allocation14 + $0x4ac] ss:$16 sps:$4 sm:$0xff]   ;;  %v12718_v36 = vld [vmem:[#allocation14 + $0x60] ss:$16 sps:$4 sm:$0xff]   ;;  %v12709_v37 = vld [vmem:[#allocation14 + $0x4a8] ss:$16 sps:$4 sm:$0xff]  }
 0x69e   : > { %v12726_v38 = vld [vmem:[#allocation14 + $0x44] ss:$16 sps:$4 sm:$0xff]  }
 0x69f   : > { %4868 = vmatprep.mubr.bf16.mxu0 %v4345_v39 }
 0x6a0   : > { %4869 = vmatmul.mubr.bf16.vlgmr.msra.gmra.mxu0 %v14773_v41  ;;  %v14778_v44 = vld [vmem:[#allocation2 + $0x10] sm:$0xf] }
 0x6a1   : > { %4960 = vmatpush1.bf16.msra.mxu0 %v12645_v40  ;;  %v10779_v45 = vcombine.low %v14778_v44, %v14775_v42  ;;  %4991 = vmatprep.mubr.bf16.mxu0 %v14754_v55  ;;  %v12724_v40 = vld [vmem:[#allocation14 + $0x40] ss:$16 sps:$4 sm:$0xff]  }
 0x6a2   : > { %4961 = vmatprep.subr.bf16.mxu0 %v12654_v43  ;;  %v12715_v43 = vld [vmem:[#allocation14 + $0x488] ss:$16 sps:$4 sm:$0xff]  }
 0x6a3   : > { %v4349_v49 = vshll.u32 %v10779_v45, 16  ;;  %v4347_v50 = vshrl.u32 %v10779_v45, 16  ;;  %v12732_v45 = vld [vmem:[#allocation14 + $0x24] ss:$16 sps:$4 sm:$0xff]  }
 0x6a5   : > { %v4351_v51 = vrot.slane %v4349_v49, 1  ;;  %4962 = vmatpush1.bf16.msra.mxu0 %v12652_v47  ;;  %v12723_v47 = vld [vmem:[#allocation14 + $0x46c] ss:$16 sps:$4 sm:$0xff]   ;;  %v12721_v49 = vld [vmem:[#allocation14 + $0x468] ss:$16 sps:$4 sm:$0xff]  }
 0x6a6   : > { %4963 = vmatprep.subr.bf16.mxu0 %v12660_v48  ;;  %v12730_v48 = vld [vmem:[#allocation14 + $0x20] ss:$16 sps:$4 sm:$0xff]  }
 0x6a7   : > { %v4352_v54 = vor.u32 %v4351_v51, %v4347_v50  ;;  %v12738_v50 = vld [vmem:[#allocation14 + $0x4] ss:$16 sps:$4 sm:$0xff]   ;;  %v12729_v51 = vld [vmem:[#allocation14 + $0x44c] ss:$16 sps:$4 sm:$0xff]  }
 0x6a9   : > { %4910 = vmatmul.mubr.bf16.vlgmr.msra.gmra.mxu1 %v4352_v54  ;;  %4964 = vmatpush1.bf16.msra.mxu0 %v12658_v0  ;;  %v12736_v0 = vld [vmem:[#allocation14] ss:$16 sps:$4 sm:$0xff]  }
 0x6aa   : > { %4919 = vmatpush1.bf16.msra.mxu1 %v12648_v52  ;;  %4950 = vmatprep.mubr.bf16.mxu1 %v4345_v39  ;;  %v12717_v39 = vld [vmem:[#allocation14 + $0x48c] ss:$16 sps:$4 sm:$0xff]   ;;  %v12727_v52 = vld [vmem:[#allocation14 + $0x448] ss:$16 sps:$4 sm:$0xff]  }
 0x6ab   : > { %4920 = vmatprep.subr.bf16.mxu1 %v12657_v56  ;;  %4965 = vmatprep.subr.bf16.mxu0 %v12666_v57  ;;  %v12735_v56 = vld [vmem:[#allocation14 + $0x42c] ss:$16 sps:$4 sm:$0xff]   ;;  %v12742_v57 = vld [vmem:[#allocation14 + $0x1e0] ss:$16 sps:$4 sm:$0xff]  }
 0x6ad   : > { %4966 = vmatpush1.bf16.msra.mxu0 %v12664_v53  ;;  %v12733_v53 = vld [vmem:[#allocation14 + $0x428] ss:$16 sps:$4 sm:$0xff]  }
 0x6ae   : > { %4921 = vmatpush1.bf16.msra.mxu1 %v12655_v58  ;;  %4967 = vmatprep.subr.bf16.mxu0 %v12672_v59  ;;  %v12750_v58 = vld [vmem:[#allocation14 + $0x1c4] ss:$16 sps:$4 sm:$0xff]   ;;  %v12741_v59 = vld [vmem:[#allocation14 + $0x40c] ss:$16 sps:$4 sm:$0xff]  }
 0x6af   : > { %4922 = vmatprep.subr.bf16.mxu1 %v12663_v60  ;;  %v12748_v60 = vld [vmem:[#allocation14 + $0x1c0] ss:$16 sps:$4 sm:$0xff]  }
 0x6b1   : > { %4968 = vmatpush1.bf16.msra.mxu0 %v12670_v62  ;;  %v12739_v62 = vld [vmem:[#allocation14 + $0x408] ss:$16 sps:$4 sm:$0xff]  }
 0x6b2   : > { %4923 = vmatpush1.bf16.msra.mxu1 %v12661_v46  ;;  %4969 = vmatprep.subr.bf16.mxu0 %v12678_v61  ;;  %v12756_v46 = vld [vmem:[#allocation14 + $0x1a4] ss:$16 sps:$4 sm:$0xff]  }
 0x6b3   : > { %4924 = vmatprep.subr.bf16.mxu1 %v12669_v63  ;;  %v12747_v61 = vld [vmem:[#allocation14 + $0x2e4] ss:$16 sps:$4 sm:$0xff]   ;;  %v12754_v63 = vld [vmem:[#allocation14 + $0x1a0] ss:$16 sps:$4 sm:$0xff]  }
 0x6b5   : > { %4970 = vmatpush1.bf16.msra.mxu0 %v12676_v1  ;;  %v12745_v1 = vld [vmem:[#allocation14 + $0x2e0] ss:$16 sps:$4 sm:$0xff]  }
 0x6b6   : > { %4925 = vmatpush1.bf16.msra.mxu1 %v12667_v2  ;;  %4971 = vmatprep.subr.bf16.mxu0 %v12684_v4  ;;  %v12762_v2 = vld [vmem:[#allocation14 + $0x184] ss:$16 sps:$4 sm:$0xff]  }
 0x6b7   : > { %4926 = vmatprep.subr.bf16.mxu1 %v12675_v5  ;;  %v12753_v4 = vld [vmem:[#allocation14 + $0x2c4] ss:$16 sps:$4 sm:$0xff]   ;;  %v12760_v5 = vld [vmem:[#allocation14 + $0x180] ss:$16 sps:$4 sm:$0xff]  }
 0x6b9   : > { %4972 = vmatpush1.bf16.msra.mxu0 %v12682_v6  ;;  %v12751_v6 = vld [vmem:[#allocation14 + $0x2c0] ss:$16 sps:$4 sm:$0xff]  }
 0x6ba   : > { %4927 = vmatpush1.bf16.msra.mxu1 %v12673_v7  ;;  %4973 = vmatprep.subr.bf16.mxu0 %v12690_v8  ;;  %v12768_v7 = vld [vmem:[#allocation14 + $0x164] ss:$16 sps:$4 sm:$0xff]  }
 0x6bb   : > { %4928 = vmatprep.subr.bf16.mxu1 %v12681_v10  ;;  %v12759_v8 = vld [vmem:[#allocation14 + $0x2a4] ss:$16 sps:$4 sm:$0xff]   ;;  %v12766_v10 = vld [vmem:[#allocation14 + $0x160] ss:$16 sps:$4 sm:$0xff]  }
 0x6bd   : > { %4974 = vmatpush1.bf16.msra.mxu0 %v12688_v11  ;;  %v12757_v11 = vld [vmem:[#allocation14 + $0x2a0] ss:$16 sps:$4 sm:$0xff]  }
 0x6be   : > { %4929 = vmatpush1.bf16.msra.mxu1 %v12679_v13  ;;  %5486 = vmatprep.subr.bf16.mxu0 %v12696_v14  ;;  %v12774_v13 = vld [vmem:[#allocation14 + $0x144] ss:$16 sps:$4 sm:$0xff]  }
 0x6bf   : > { %4930 = vmatprep.subr.bf16.mxu1 %v12687_v16  ;;  %v12765_v14 = vld [vmem:[#allocation14 + $0x284] ss:$16 sps:$4 sm:$0xff]   ;;  %v12763_v16 = vld [vmem:[#allocation14 + $0x280] ss:$16 sps:$4 sm:$0xff]  }
 0x6c0   : > { %4992 = vmatmul.mubr.bf16.vlgmr.msra.gmra.mxu0 %v4352_v54  ;;  %v12744_v54 = vld [vmem:[#allocation14 + $0x1e4] ss:$16 sps:$4 sm:$0xff]  }
 0x6c1   : > { %5487 = vmatpush1.bf16.msra.mxu0 %v12694_v17  ;;  %5518 = vmatprep.mubr.bf16.mxu0 %v14785_v21  ;;  %v12780_v17 = vld [vmem:[#allocation14 + $0x124] ss:$16 sps:$4 sm:$0xff]  }
 0x6c2   : > { %4931 = vmatpush1.bf16.msra.mxu1 %v12685_v18  ;;  %5488 = vmatprep.subr.bf16.mxu0 %v12702_v19  ;;  %v12771_v18 = vld [vmem:[#allocation14 + $0x264] ss:$16 sps:$4 sm:$0xff]   ;;  %v12778_v19 = vld [vmem:[#allocation14 + $0x120] ss:$16 sps:$4 sm:$0xff]  }
 0x6c3   : > { %4932 = vmatprep.subr.bf16.mxu1 %v12693_v20  ;;  %v12769_v20 = vld [vmem:[#allocation14 + $0x260] ss:$16 sps:$4 sm:$0xff]  }
 0x6c5   : > { %5489 = vmatpush1.bf16.msra.mxu0 %v12700_v22  ;;  %v12786_v22 = vld [vmem:[#allocation14 + $0x104] ss:$16 sps:$4 sm:$0xff]  }
 0x6c6   : > { %4933 = vmatpush1.bf16.msra.mxu1 %v12691_v23  ;;  %5490 = vmatprep.subr.bf16.mxu0 %v12708_v26  ;;  %v12777_v23 = vld [vmem:[#allocation14 + $0x244] ss:$16 sps:$4 sm:$0xff]   ;;  %v12784_v26 = vld [vmem:[#allocation14 + $0x100] ss:$16 sps:$4 sm:$0xff]  }
 0x6c7   : > { %4934 = vmatprep.subr.bf16.mxu1 %v12699_v27  ;;  %v12775_v27 = vld [vmem:[#allocation14 + $0x240] ss:$16 sps:$4 sm:$0xff]  }
 0x6c9   : > { %5491 = vmatpush1.bf16.msra.mxu0 %v12706_v28  ;;  %v12792_v28 = vld [vmem:[#allocation14 + $0x2ec] ss:$16 sps:$4 sm:$0xff]  }
 0x6ca   : > { %4935 = vmatpush2.bf16.msra.mxu1 %v12697_v30  ;;  %5492 = vmatprep.subr.bf16.mxu0 %v12714_v31  ;;  %v12783_v30 = vld [vmem:[#allocation14 + $0x224] ss:$16 sps:$4 sm:$0xff]   ;;  %v12790_v31 = vld [vmem:[#allocation14 + $0x2e8] ss:$16 sps:$4 sm:$0xff]  }
 0x6cb   : > { %4936 = vmatprep.subr.bf16.mxu1 %v12705_v25  ;;  %v12781_v25 = vld [vmem:[#allocation14 + $0x220] ss:$16 sps:$4 sm:$0xff]  }
 0x6cd   : > { %5493 = vmatpush1.bf16.msra.mxu0 %v12712_v32  ;;  %v14792_v32 = vpack.c.bf16 %v14763_v24, %v14763_v24  ;;  %v12794_v24 = vld [vmem:[#allocation14 + $0xe8] ss:$16 sps:$4 sm:$0xff]  }
 0x6ce   : > { %4937 = vmatpush2.bf16.msra.mxu1 %v12703_v33  ;;  %5494 = vmatprep.subr.bf16.mxu0 %v12720_v34  ;;  %v12799_v33 = vld [vmem:[#allocation14 + $0x2cc] ss:$16 sps:$4 sm:$0xff]   ;;  %v12789_v34 = vld [vmem:[#allocation14 + $0x204] ss:$16 sps:$4 sm:$0xff]  }
 0x6cf   : > { %4938 = vmatprep.subr.bf16.mxu1 %v12711_v35  ;;  %v12797_v35 = vld [vmem:[#allocation14 + $0x2c8] ss:$16 sps:$4 sm:$0xff]  }
 0x6d1   : > { %5495 = vmatpush1.bf16.msra.mxu0 %v12718_v36  ;;  %v12787_v36 = vld [vmem:[#allocation14 + $0x200] ss:$16 sps:$4 sm:$0xff]  }
 0x6d2   : > { %4939 = vmatpush2.bf16.msra.mxu1 %v12709_v37  ;;  %5496 = vmatprep.subr.bf16.mxu0 %v12726_v38  ;;  %v12805_v37 = vld [vmem:[#allocation14 + $0x2ac] ss:$16 sps:$4 sm:$0xff]  }
 0x6d3   : > { %4940 = vmatprep.subr.bf16.mxu1 %v12717_v39  ;;  %v12796_v38 = vld [vmem:[#allocation14 + $0xec] ss:$16 sps:$4 sm:$0xff]   ;;  %v12803_v39 = vld [vmem:[#allocation14 + $0x2a8] ss:$16 sps:$4 sm:$0xff]  }
 0x6d5   : > { %5497 = vmatpush1.bf16.msra.mxu0 %v12724_v40  ;;  %v10878_v40 = vcombine.low %v14778_v44, %v14778_v44  ;;  %v12823_v44 = vld [vmem:[#allocation14 + $0x24c] ss:$16 sps:$4 sm:$0xff]  }
 0x6d6   : > { %4941 = vmatpush2.bf16.msra.mxu1 %v12715_v43  ;;  %5498 = vmatprep.subr.bf16.mxu0 %v12732_v45  ;;  %v12802_v43 = vld [vmem:[#allocation14 + $0xcc] ss:$16 sps:$4 sm:$0xff]  }
 0x6d7   : > { %4942 = vmatprep.subr.bf16.mxu1 %v12723_v47  ;;  %v12811_v45 = vld [vmem:[#allocation14 + $0x28c] ss:$16 sps:$4 sm:$0xff]   ;;  %v12800_v47 = vld [vmem:[#allocation14 + $0xc8] ss:$16 sps:$4 sm:$0xff]  }
 0x6d9   : > { %5499 = vmatpush1.bf16.msra.mxu0 %v12730_v48  ;;  %v12817_v48 = vld [vmem:[#allocation14 + $0x26c] ss:$16 sps:$4 sm:$0xff]  }
 0x6da   : > { %4943 = vmatpush2.bf16.msra.mxu1 %v12721_v49  ;;  %5500 = vmatprep.subr.bf16.mxu0 %v12738_v50  ;;  %v12808_v49 = vld [vmem:[#allocation14 + $0xac] ss:$16 sps:$4 sm:$0xff]   ;;  %v12815_v50 = vld [vmem:[#allocation14 + $0x268] ss:$16 sps:$4 sm:$0xff]  }
 0x6db   : > { %4944 = vmatprep.subr.bf16.mxu1 %v12729_v51  ;;  %v12806_v51 = vld [vmem:[#allocation14 + $0xa8] ss:$16 sps:$4 sm:$0xff]  }
 0x6dd   : > { %5501 = vmatpush1.bf16.msra.mxu0 %v12736_v0  ;;  %v12814_v0 = vld [vmem:[#allocation14 + $0x8c] ss:$16 sps:$4 sm:$0xff]  }
 0x6de   : > { %4945 = vmatpush2.bf16.msra.mxu1 %v12727_v52  ;;  %5502 = vmatprep.subr.bf16.mxu0 %v12744_v54  ;;  %v12821_v52 = vld [vmem:[#allocation14 + $0x248] ss:$16 sps:$4 sm:$0xff]  }
 0x6df   : > { %4946 = vmatprep.subr.bf16.mxu1 %v12735_v56  ;;  %v12812_v54 = vld [vmem:[#allocation14 + $0x88] ss:$16 sps:$4 sm:$0xff]   ;;  %v12829_v56 = vld [vmem:[#allocation14 + $0x22c] ss:$16 sps:$4 sm:$0xff]  }
 0x6e1   : > { %5503 = vmatpush2.bf16.msra.mxu0 %v12742_v57  ;;  %v12827_v57 = vld [vmem:[#allocation14 + $0x228] ss:$16 sps:$4 sm:$0xff]  }
 0x6e2   : > { %4947 = vmatpush2.bf16.msra.mxu1 %v12733_v53  ;;  %5504 = vmatprep.subr.bf16.mxu0 %v12750_v58  ;;  %v12818_v53 = vld [vmem:[#allocation14 + $0x68] ss:$16 sps:$4 sm:$0xff]   ;;  %v12835_v58 = vld [vmem:[#allocation14 + $0x20c] ss:$16 sps:$4 sm:$0xff]  }
 0x6e3   : > { %4948 = vmatprep.subr.bf16.mxu1 %v12741_v59  ;;  %v12826_v59 = vld [vmem:[#allocation14 + $0x4c] ss:$16 sps:$4 sm:$0xff]  }
 0x6e5   : > { %5505 = vmatpush2.bf16.msra.mxu0 %v12748_v60  ;;  %v14799_v60 = vld [vmem:[#allocation2 + $0x28] sm:$0xee] }
 0x6e6   : > { %4949 = vmatpush2.bf16.msra.mxu1 %v12739_v62  ;;  %5506 = vmatprep.subr.bf16.mxu0 %v12756_v46  ;;  %v12833_v62 = vld [vmem:[#allocation14 + $0x208] ss:$16 sps:$4 sm:$0xff]  }
 0x6e7   : > { %5527 = vmatprep.subr.bf16.mxu1 %v12747_v61  ;;  %v12824_v46 = vld [vmem:[#allocation14 + $0x48] ss:$16 sps:$4 sm:$0xff]   ;;  %v12841_v61 = vld [vmem:[#allocation14 + $0x6e4] ss:$16 sps:$4 sm:$0xff]  }
 0x6e9   : > { %4951 = vmatmul.mubr.bf16.vlgmr.msra.gmra.mxu1 %v14773_v41  ;;  %5507 = vmatpush2.bf16.msra.mxu0 %v12754_v63  ;;  %v12772_v41 = vld [vmem:[#allocation14 + $0x140] ss:$16 sps:$4 sm:$0xff]   ;;  %v12832_v63 = vld [vmem:[#allocation14 + $0x2c] ss:$16 sps:$4 sm:$0xff]  }
 0x6ea   : > { %5528 = vmatpush1.bf16.msra.mxu1 %v12745_v1  ;;  %5508 = vmatprep.subr.bf16.mxu0 %v12762_v2  ;;  %v10976_v1 = vcombine.high %v14799_v60, %v14769_v29  ;;  %v12839_v2 = vld [vmem:[#allocation14 + $0x6e0] ss:$16 sps:$4 sm:$0xff]  }
 0x6eb   : > { %5529 = vmatprep.subr.bf16.mxu1 %v12753_v4  ;;  %5559 = vmatprep.mubr.bf16.mxu1 %v14754_v55  ;;  %v12830_v4 = vld [vmem:[#allocation14 + $0x28] ss:$16 sps:$4 sm:$0xff]  }
 0x6ed   : > { %5509 = vmatpush2.bf16.msra.mxu0 %v12760_v5  ;;  %v12847_v5 = vld [vmem:[#allocation14 + $0x6c4] ss:$16 sps:$4 sm:$0xff]  }
 0x6ee   : > { %5530 = vmatpush1.bf16.msra.mxu1 %v12751_v6  ;;  %5510 = vmatprep.subr.bf16.mxu0 %v12768_v7  ;;  %v12838_v6 = vld [vmem:[#allocation14 + $0xc] ss:$16 sps:$4 sm:$0xff]   ;;  %v14803_v7 = vrot.slane %v10976_v1, 1  ;;  %v12925_v1 = vld [vmem:[#allocation14 + $0x724] ss:$16 sps:$4 sm:$0xff]  }
 0x6ef   : > { %5531 = vmatprep.subr.bf16.mxu1 %v12759_v8  ;;  %v12845_v8 = vld [vmem:[#allocation14 + $0x6c0] ss:$16 sps:$4 sm:$0xff]  }
 0x6f1   : > { %5511 = vmatpush2.bf16.msra.mxu0 %v12766_v10  ;;  %v12836_v10 = vld [vmem:[#allocation14 + $0x8] ss:$16 sps:$4 sm:$0xff]  }
 0x6f2   : > { %5532 = vmatpush1.bf16.msra.mxu1 %v12757_v11  ;;  %5512 = vmatprep.subr.bf16.mxu0 %v12774_v13  ;;  %v12853_v11 = vld [vmem:[#allocation14 + $0x6a4] ss:$16 sps:$4 sm:$0xff]   ;;  %v12844_v13 = vld [vmem:[#allocation14 + $0x1ec] ss:$16 sps:$4 sm:$0xff]  }
 0x6f3   : > { %5533 = vmatprep.subr.bf16.mxu1 %v12765_v14  ;;  %v12851_v14 = vld [vmem:[#allocation14 + $0x6a0] ss:$16 sps:$4 sm:$0xff]  }
 0x6f5   : > { %5513 = vmatpush2.bf16.msra.mxu0 %v12772_v41  ;;  %v12842_v41 = vld [vmem:[#allocation14 + $0x1e8] ss:$16 sps:$4 sm:$0xff]  }
 0x6f6   : > { %5534 = vmatpush1.bf16.msra.mxu1 %v12763_v16  ;;  %5514 = vmatprep.subr.bf16.mxu0 %v12780_v17  ;;  %v12859_v16 = vld [vmem:[#allocation14 + $0x684] ss:$16 sps:$4 sm:$0xff]   ;;  %v12850_v17 = vld [vmem:[#allocation14 + $0x1cc] ss:$16 sps:$4 sm:$0xff]  }
 0x6f7   : > { %5535 = vmatprep.subr.bf16.mxu1 %v12771_v18  ;;  %v12857_v18 = vld [vmem:[#allocation14 + $0x680] ss:$16 sps:$4 sm:$0xff]  }
 0x6f9   : > { %5515 = vmatpush2.bf16.msra.mxu0 %v12778_v19  ;;  %v12848_v19 = vld [vmem:[#allocation14 + $0x1c8] ss:$16 sps:$4 sm:$0xff]  }
 0x6fa   : > { %5536 = vmatpush1.bf16.msra.mxu1 %v12769_v20  ;;  %5516 = vmatprep.subr.bf16.mxu0 %v12786_v22  ;;  %v12865_v20 = vld [vmem:[#allocation14 + $0x664] ss:$16 sps:$4 sm:$0xff]   ;;  %v12856_v22 = vld [vmem:[#allocation14 + $0x1ac] ss:$16 sps:$4 sm:$0xff]  }
 0x6fb   : > { %5537 = vmatprep.subr.bf16.mxu1 %v12777_v23  ;;  %v12863_v23 = vld [vmem:[#allocation14 + $0x660] ss:$16 sps:$4 sm:$0xff]  }
 0x6fd   : > { %5517 = vmatpush2.bf16.msra.mxu0 %v12784_v26  ;;  %v12854_v26 = vld [vmem:[#allocation14 + $0x1a8] ss:$16 sps:$4 sm:$0xff]  }
 0x6fe   : > { %5538 = vmatpush1.bf16.msra.mxu1 %v12775_v27  ;;  %5609 = vmatprep.subr.bf16.mxu0 %v12792_v28  ;;  %v12871_v27 = vld [vmem:[#allocation14 + $0x644] ss:$16 sps:$4 sm:$0xff]   ;;  %v12862_v28 = vld [vmem:[#allocation14 + $0x18c] ss:$16 sps:$4 sm:$0xff]  }
 0x6ff   : > { %5539 = vmatprep.subr.bf16.mxu1 %v12783_v30  ;;  %v12869_v30 = vld [vmem:[#allocation14 + $0x640] ss:$16 sps:$4 sm:$0xff]  }
 0x700   : > { %5519 = vmatmul.mubr.bf16.vlgmr.msra.gmra.mxu0 %v14792_v32 }
 0x701   : > { %5610 = vmatpush1.bf16.msra.mxu0 %v12790_v31  ;;  %5641 = vmatprep.mubr.bf16.mxu0 %v14754_v55  ;;  %v12809_v55 = vld [vmem:[#allocation14 + $0x288] ss:$16 sps:$4 sm:$0xff]  }
 0x702   : > { %5540 = vmatpush1.bf16.msra.mxu1 %v12781_v25  ;;  %5611 = vmatprep.subr.bf16.mxu0 %v12799_v33  ;;  %v12860_v31 = vld [vmem:[#allocation14 + $0x188] ss:$16 sps:$4 sm:$0xff]   ;;  %v12877_v25 = vld [vmem:[#allocation14 + $0x624] ss:$16 sps:$4 sm:$0xff]   ;;  %v12868_v33 = vld [vmem:[#allocation14 + $0x16c] ss:$16 sps:$4 sm:$0xff]  }
 0x703   : > { %5541 = vmatprep.subr.bf16.mxu1 %v12789_v34  ;;  %v12875_v34 = vld [vmem:[#allocation14 + $0x620] ss:$16 sps:$4 sm:$0xff]  }
 0x705   : > { %5612 = vmatpush1.bf16.msra.mxu0 %v12797_v35  ;;  %v12866_v35 = vld [vmem:[#allocation14 + $0x168] ss:$16 sps:$4 sm:$0xff]  }
 0x706   : > { %5542 = vmatpush1.bf16.msra.mxu1 %v12787_v36  ;;  %5613 = vmatprep.subr.bf16.mxu0 %v12805_v37  ;;  %v12883_v36 = vld [vmem:[#allocation14 + $0x604] ss:$16 sps:$4 sm:$0xff]   ;;  %v12874_v37 = vld [vmem:[#allocation14 + $0x14c] ss:$16 sps:$4 sm:$0xff]  }
 0x707   : > { %5568 = vmatprep.subr.bf16.mxu1 %v12796_v38  ;;  %v12881_v38 = vld [vmem:[#allocation14 + $0x600] ss:$16 sps:$4 sm:$0xff]  }
 0x709   : > { %5560 = vmatmul.mubr.bf16.vlgmr.msra.gmra.mxu1 %v10878_v40  ;;  %5614 = vmatpush1.bf16.msra.mxu0 %v12803_v39  ;;  %v12872_v39 = vld [vmem:[#allocation14 + $0x148] ss:$16 sps:$4 sm:$0xff]  }
 0x70a   : > { %5569 = vmatpush1.bf16.msra.mxu1 %v12794_v24  ;;  %5600 = vmatprep.mubr.bf16.mxu1 %v14785_v21  ;;  %v12820_v21 = vld [vmem:[#allocation14 + $0x6c] ss:$16 sps:$4 sm:$0xff]   ;;  %v12889_v24 = vld [vmem:[#allocation14 + $0x7e4] ss:$16 sps:$4 sm:$0xff]  }
 0x70b   : > { %5570 = vmatprep.subr.bf16.mxu1 %v12802_v43  ;;  %5615 = vmatprep.subr.bf16.mxu0 %v12811_v45  ;;  %v12887_v43 = vld [vmem:[#allocation14 + $0x7e0] ss:$16 sps:$4 sm:$0xff]   ;;  %v12878_v45 = vld [vmem:[#allocation14 + $0x128] ss:$16 sps:$4 sm:$0xff]  }
 0x70d   : > { %5616 = vmatpush1.bf16.msra.mxu0 %v12809_v55  ;;  %v12895_v55 = vld [vmem:[#allocation14 + $0x7c4] ss:$16 sps:$4 sm:$0xff]  }
 0x70e   : > { %5571 = vmatpush1.bf16.msra.mxu1 %v12800_v47  ;;  %5617 = vmatprep.subr.bf16.mxu0 %v12817_v48  ;;  %v12886_v47 = vld [vmem:[#allocation14 + $0x10c] ss:$16 sps:$4 sm:$0xff]   ;;  %v12893_v48 = vld [vmem:[#allocation14 + $0x7c0] ss:$16 sps:$4 sm:$0xff]  }
 0x70f   : > { %5572 = vmatprep.subr.bf16.mxu1 %v12808_v49  ;;  %v12884_v49 = vld [vmem:[#allocation14 + $0x108] ss:$16 sps:$4 sm:$0xff]  }
 0x711   : > { %5618 = vmatpush1.bf16.msra.mxu0 %v12815_v50  ;;  %v12901_v50 = vld [vmem:[#allocation14 + $0x7a4] ss:$16 sps:$4 sm:$0xff]  }
 0x712   : > { %5573 = vmatpush1.bf16.msra.mxu1 %v12806_v51  ;;  %5619 = vmatprep.subr.bf16.mxu0 %v12823_v44  ;;  %v12892_v51 = vld [vmem:[#allocation14 + $0x8e4] ss:$16 sps:$4 sm:$0xff]   ;;  %v12899_v44 = vld [vmem:[#allocation14 + $0x7a0] ss:$16 sps:$4 sm:$0xff]  }
 0x713   : > { %5574 = vmatprep.subr.bf16.mxu1 %v12814_v0  ;;  %v12890_v0 = vld [vmem:[#allocation14 + $0x8e0] ss:$16 sps:$4 sm:$0xff]  }
 0x715   : > { %5620 = vmatpush1.bf16.msra.mxu0 %v12821_v52  ;;  %v12907_v52 = vld [vmem:[#allocation14 + $0x784] ss:$16 sps:$4 sm:$0xff]  }
 0x716   : > { %5575 = vmatpush1.bf16.msra.mxu1 %v12812_v54  ;;  %5621 = vmatprep.subr.bf16.mxu0 %v12829_v56  ;;  %v12898_v54 = vld [vmem:[#allocation14 + $0x8c4] ss:$16 sps:$4 sm:$0xff]   ;;  %v12905_v56 = vld [vmem:[#allocation14 + $0x780] ss:$16 sps:$4 sm:$0xff]  }
 0x717   : > { %5576 = vmatprep.subr.bf16.mxu1 %v12820_v21  ;;  %v12896_v21 = vld [vmem:[#allocation14 + $0x8c0] ss:$16 sps:$4 sm:$0xff]  }
 0x719   : > { %5622 = vmatpush1.bf16.msra.mxu0 %v12827_v57  ;;  %v12913_v57 = vld [vmem:[#allocation14 + $0x764] ss:$16 sps:$4 sm:$0xff]  }
 0x71a   : > { %5577 = vmatpush1.bf16.msra.mxu1 %v12818_v53  ;;  %5623 = vmatprep.subr.bf16.mxu0 %v12835_v58  ;;  %v12904_v53 = vld [vmem:[#allocation14 + $0x8a4] ss:$16 sps:$4 sm:$0xff]  }
 0x71b   : > { %5578 = vmatprep.subr.bf16.mxu1 %v12826_v59  ;;  %v13653_v58 = vld [vmem:[#allocation2] sm:$0xff] }
 0x71c   : > { %v12911_v59 = vld [vmem:[#allocation14 + $0x760] ss:$16 sps:$4 sm:$0xff]  }
 0x71d   : > { %5624 = vmatpush1.bf16.msra.mxu0 %v12833_v62  ;;  %v12902_v62 = vld [vmem:[#allocation14 + $0x8a0] ss:$16 sps:$4 sm:$0xff]  }
 0x71e   : > { %5579 = vmatpush1.bf16.msra.mxu1 %v12824_v46  ;;  %6243 = vmatprep.subr.bf16.mxu0 %v12841_v61  ;;  %v12919_v46 = vld [vmem:[#allocation14 + $0x744] ss:$16 sps:$4 sm:$0xff]  }
 0x71f   : > { %5580 = vmatprep.subr.bf16.mxu1 %v12832_v63  ;;  %v12910_v61 = vld [vmem:[#allocation14 + $0x884] ss:$16 sps:$4 sm:$0xff]   ;;  %v12908_v63 = vld [vmem:[#allocation14 + $0x880] ss:$16 sps:$4 sm:$0xff]  }
 0x720   : > { %5642 = vmatmul.mubr.bf16.vlgmr.msra.gmra.mxu0 %v10878_v40  ;;  %v12880_v40 = vld [vmem:[#allocation14 + $0x12c] ss:$16 sps:$4 sm:$0xff]  }
 0x721   : > { %6244 = vmatpush1.bf16.msra.mxu0 %v12839_v2  ;;  %6275 = vmatprep.mubr.bf16.mxu0 %v14803_v7  ;;  %v12916_v2 = vld [vmem:[#allocation14 + $0x864] ss:$16 sps:$4 sm:$0xff]  }
 0x722   : > { %5581 = vmatpush1.bf16.msra.mxu1 %v12830_v4  ;;  %6245 = vmatprep.subr.bf16.mxu0 %v12847_v5  ;;  %v12923_v4 = vld [vmem:[#allocation14 + $0x720] ss:$16 sps:$4 sm:$0xff]  }
 0x723   : > { %5582 = vmatprep.subr.bf16.mxu1 %v12838_v6  ;;  %v12914_v5 = vld [vmem:[#allocation14 + $0x860] ss:$16 sps:$4 sm:$0xff]   ;;  %v12931_v6 = vld [vmem:[#allocation14 + $0x704] ss:$16 sps:$4 sm:$0xff]  }
 0x725   : > { %6246 = vmatpush1.bf16.msra.mxu0 %v12845_v8  ;;  %v12922_v8 = vld [vmem:[#allocation14 + $0x844] ss:$16 sps:$4 sm:$0xff]  }
 0x726   : > { %5583 = vmatpush1.bf16.msra.mxu1 %v12836_v10  ;;  %6247 = vmatprep.subr.bf16.mxu0 %v12853_v11  ;;  %v12929_v10 = vld [vmem:[#allocation14 + $0x700] ss:$16 sps:$4 sm:$0xff]  }
 0x727   : > { %5584 = vmatprep.subr.bf16.mxu1 %v12844_v13  ;;  %v12920_v11 = vld [vmem:[#allocation14 + $0x840] ss:$16 sps:$4 sm:$0xff]   ;;  %v10975_v13 = vcombine.low %v14799_v60, %v14769_v29 }
 0x728   : > { %v12932_v29 = vld [vmem:[#allocation14 + $0x800] ss:$16 sps:$4 sm:$0xff]  }
 0x729   : > { %6248 = vmatpush1.bf16.msra.mxu0 %v12851_v14  ;;  %v12937_v14 = vld [vmem:[#allocation14 + $0x8ec] ss:$16 sps:$4 sm:$0xff]  }
 0x72a   : > { %5585 = vmatpush2.bf16.msra.mxu1 %v12842_v41  ;;  %6249 = vmatprep.subr.bf16.mxu0 %v12859_v16  ;;  %v12928_v41 = vld [vmem:[#allocation14 + $0x824] ss:$16 sps:$4 sm:$0xff]   ;;  %v12935_v16 = vld [vmem:[#allocation14 + $0x8e8] ss:$16 sps:$4 sm:$0xff]  }
 0x72b   : > { %5586 = vmatprep.subr.bf16.mxu1 %v12850_v17  ;;  %v12926_v17 = vld [vmem:[#allocation14 + $0x820] ss:$16 sps:$4 sm:$0xff]  }
 0x72d   : > { %6250 = vmatpush1.bf16.msra.mxu0 %v12857_v18  ;;  %v14809_v18 = vrot.slane %v10975_v13, 1  ;;  %v13014_v13 = vld [vmem:[#allocation15 + $0x4a0] ss:$16 sps:$4 sm:$0xff]  }
 0x72e   : > { %5587 = vmatpush2.bf16.msra.mxu1 %v12848_v19  ;;  %6251 = vmatprep.subr.bf16.mxu0 %v12865_v20  ;;  %v12944_v19 = vld [vmem:[#allocation14 + $0x8cc] ss:$16 sps:$4 sm:$0xff]   ;;  %v12934_v20 = vld [vmem:[#allocation14 + $0x804] ss:$16 sps:$4 sm:$0xff]  }
 0x72f   : > { %5588 = vmatprep.subr.bf16.mxu1 %v12856_v22 }
 0x731   : > { %6252 = vmatpush1.bf16.msra.mxu0 %v12863_v23  ;;  %v5651_v23 = vld [vmem:[#allocation2 + $0x10] sm:$0xe] }
 0x732   : > { %5589 = vmatpush2.bf16.msra.mxu1 %v12854_v26  ;;  %6253 = vmatprep.subr.bf16.mxu0 %v12871_v27  ;;  %v12942_v26 = vld [vmem:[#allocation14 + $0x8c8] ss:$16 sps:$4 sm:$0xff]   ;;  %v12950_v27 = vld [vmem:[#allocation14 + $0x8ac] ss:$16 sps:$4 sm:$0xff]  }
 0x733   : > { %5590 = vmatprep.subr.bf16.mxu1 %v12862_v28  ;;  %v10977_v28 = vcombine.low %v5651_v23, %v14775_v42  ;;  %v12945_v42 = vld [vmem:[#allocation14 + $0x6c8] ss:$16 sps:$4 sm:$0xff]   ;;  %v13022_v23 = vld [vmem:[#allocation15 + $0x464] ss:$16 sps:$4 sm:$0xff]  }
 0x735   : > { %6254 = vmatpush1.bf16.msra.mxu0 %v12869_v30  ;;  %v12941_v30 = vld [vmem:[#allocation14 + $0x6ec] ss:$16 sps:$4 sm:$0xff]  }
 0x736   : > { %5591 = vmatpush2.bf16.msra.mxu1 %v12860_v31  ;;  %6255 = vmatprep.subr.bf16.mxu0 %v12877_v25  ;;  %v12948_v25 = vld [vmem:[#allocation14 + $0x8a8] ss:$16 sps:$4 sm:$0xff]  }
 0x737   : > { %5592 = vmatprep.subr.bf16.mxu1 %v12868_v33  ;;  %v12939_v33 = vld [vmem:[#allocation14 + $0x6e8] ss:$16 sps:$4 sm:$0xff]  }
 0x739   : > { %6256 = vmatpush1.bf16.msra.mxu0 %v12875_v34 }
 0x73a   : > { %5593 = vmatpush2.bf16.msra.mxu1 %v12866_v35  ;;  %6257 = vmatprep.subr.bf16.mxu0 %v12883_v36  ;;  %v5759_v35 = vrot.slane %v10977_v28, 1  ;;  %v12947_v36 = vld [vmem:[#allocation14 + $0x6cc] ss:$16 sps:$4 sm:$0xff]   ;;  %v13023_v28 = vld [vmem:[#allocation15 + $0x440] ss:$16 sps:$4 sm:$0xff]  }
 0x73b   : > { %5594 = vmatprep.subr.bf16.mxu1 %v12874_v37  ;;  %v12956_v37 = vld [vmem:[#allocation14 + $0x88c] ss:$16 sps:$4 sm:$0xff]  }
 0x73d   : > { %6258 = vmatpush1.bf16.msra.mxu0 %v12881_v38 }
 0x73e   : > { %5595 = vmatpush2.bf16.msra.mxu1 %v12872_v39  ;;  %6259 = vmatprep.subr.bf16.mxu0 %v12889_v24  ;;  %v12954_v39 = vld [vmem:[#allocation14 + $0x888] ss:$16 sps:$4 sm:$0xff]  }
 0x73f   : > { %5596 = vmatprep.subr.bf16.mxu1 %v12880_v40  ;;  %v12962_v40 = vld [vmem:[#allocation14 + $0x86c] ss:$16 sps:$4 sm:$0xff]  }
 0x741   : > { %6260 = vmatpush2.bf16.msra.mxu0 %v12887_v43 }
 0x742   : > { %5597 = vmatpush2.bf16.msra.mxu1 %v12878_v45  ;;  %6261 = vmatprep.subr.bf16.mxu0 %v12895_v55  ;;  %v12953_v45 = vld [vmem:[#allocation14 + $0x6ac] ss:$16 sps:$4 sm:$0xff]  }
 0x743   : > { %5598 = vmatprep.subr.bf16.mxu1 %v12886_v47 }
 0x745   : > { %6262 = vmatpush2.bf16.msra.mxu0 %v12893_v48  ;;  %v12960_v48 = vld [vmem:[#allocation14 + $0x868] ss:$16 sps:$4 sm:$0xff]  }
 0x746   : > { %5599 = vmatpush2.bf16.msra.mxu1 %v12884_v49  ;;  %6263 = vmatprep.subr.bf16.mxu0 %v12901_v50  ;;  %v12951_v49 = vld [vmem:[#allocation14 + $0x6a8] ss:$16 sps:$4 sm:$0xff]   ;;  %v12968_v50 = vld [vmem:[#allocation14 + $0x84c] ss:$16 sps:$4 sm:$0xff]  }
 0x747   : > { %6284 = vmatprep.subr.bf16.mxu1 %v12892_v51 }
 0x749   : > { %5601 = vmatmul.mubr.bf16.vlgmr.msra.gmra.mxu1 %v14792_v32  ;;  %6264 = vmatpush2.bf16.msra.mxu0 %v12899_v44  ;;  %v12917_v32 = vld [vmem:[#allocation14 + $0x740] ss:$16 sps:$4 sm:$0xff]   ;;  %v12959_v44 = vld [vmem:[#allocation14 + $0x68c] ss:$16 sps:$4 sm:$0xff]  }
 0x74a   : > { %6285 = vmatpush1.bf16.msra.mxu1 %v12890_v0  ;;  %6265 = vmatprep.subr.bf16.mxu0 %v12907_v52  ;;  %v12957_v0 = vld [vmem:[#allocation14 + $0x688] ss:$16 sps:$4 sm:$0xff]   ;;  %v12974_v52 = vld [vmem:[#allocation14 + $0x82c] ss:$16 sps:$4 sm:$0xff]  }
 0x74b   : > { %6286 = vmatprep.subr.bf16.mxu1 %v12898_v54  ;;  %6316 = vmatprep.mubr.bf16.mxu1 %v13653_v58  ;;  %v12965_v54 = vld [vmem:[#allocation14 + $0x66c] ss:$16 sps:$4 sm:$0xff]  }
 0x74d   : > { %6266 = vmatpush2.bf16.msra.mxu0 %v12905_v56  ;;  %v12972_v56 = vld [vmem:[#allocation14 + $0x828] ss:$16 sps:$4 sm:$0xff]  }
 0x74e   : > { %6287 = vmatpush1.bf16.msra.mxu1 %v12896_v21  ;;  %6267 = vmatprep.subr.bf16.mxu0 %v12913_v57  ;;  %v12963_v21 = vld [vmem:[#allocation14 + $0x668] ss:$16 sps:$4 sm:$0xff]   ;;  %v12980_v57 = vld [vmem:[#allocation14 + $0x80c] ss:$16 sps:$4 sm:$0xff]  }
 0x74f   : > { %6288 = vmatprep.subr.bf16.mxu1 %v12904_v53  ;;  %v12971_v53 = vld [vmem:[#allocation14 + $0x64c] ss:$16 sps:$4 sm:$0xff]  }
 0x751   : > { %6268 = vmatpush2.bf16.msra.mxu0 %v12911_v59  ;;  %v12969_v59 = vld [vmem:[#allocation14 + $0x648] ss:$16 sps:$4 sm:$0xff]  }
 0x752   : > { %6289 = vmatpush1.bf16.msra.mxu1 %v12902_v62  ;;  %6269 = vmatprep.subr.bf16.mxu0 %v12919_v46  ;;  %v13010_v62 = vld [vmem:[#allocation15 + $0x4e4] ss:$16 sps:$4 sm:$0xff]   ;;  %v12977_v46 = vld [vmem:[#allocation14 + $0x62c] ss:$16 sps:$4 sm:$0xff]  }
 0x753   : > { %6290 = vmatprep.subr.bf16.mxu1 %v12910_v61  ;;  %v13008_v61 = vld [vmem:[#allocation15 + $0x4e0] ss:$16 sps:$4 sm:$0xff]  }
 0x755   : > { %6270 = vmatpush2.bf16.msra.mxu0 %v12917_v32  ;;  %v12975_v32 = vld [vmem:[#allocation14 + $0x628] ss:$16 sps:$4 sm:$0xff]  }
 0x756   : > { %6291 = vmatpush1.bf16.msra.mxu1 %v12908_v63  ;;  %6271 = vmatprep.subr.bf16.mxu0 %v12925_v1  ;;  %v12983_v63 = vld [vmem:[#allocation14 + $0x60c] ss:$16 sps:$4 sm:$0xff]  }
 0x757   : > { %6292 = vmatprep.subr.bf16.mxu1 %v12916_v2  ;;  %v13013_v2 = vld [vmem:[#allocation15 + $0x4c4] ss:$16 sps:$4 sm:$0xff]  }
 0x759   : > { %6272 = vmatpush2.bf16.msra.mxu0 %v12923_v4  ;;  %v13011_v4 = vld [vmem:[#allocation15 + $0x4c0] ss:$16 sps:$4 sm:$0xff]  }
 0x75a   : > { %6293 = vmatpush1.bf16.msra.mxu1 %v12914_v5  ;;  %6273 = vmatprep.subr.bf16.mxu0 %v12931_v6  ;;  %v12981_v5 = vld [vmem:[#allocation14 + $0x608] ss:$16 sps:$4 sm:$0xff]  }
 0x75b   : > { %6294 = vmatprep.subr.bf16.mxu1 %v12922_v8  ;;  %v12986_v8 = vld [vmem:[#allocation14 + $0x7ec] ss:$16 sps:$4 sm:$0xff]  }
 0x75d   : > { %6274 = vmatpush2.bf16.msra.mxu0 %v12929_v10 }
 0x75e   : > { %6295 = vmatpush1.bf16.msra.mxu1 %v12920_v11  ;;  %6366 = vmatprep.subr.bf16.mxu0 %v12937_v14  ;;  %v13016_v11 = vld [vmem:[#allocation15 + $0x4a4] ss:$16 sps:$4 sm:$0xff]   ;;  %v12984_v14 = vld [vmem:[#allocation14 + $0x7e8] ss:$16 sps:$4 sm:$0xff]  }
 0x75f   : > { %6296 = vmatprep.subr.bf16.mxu1 %v12928_v41 }
 0x760   : > { %6276 = vmatmul.mubr.bf16.vlgmr.msra.gmra.mxu0 %v14809_v18  ;;  %v4870_v22 = vpop.f32.mrf.mxu0 }
 0x761   : > { %6367 = vmatpush1.bf16.msra.mxu0 %v12935_v16  ;;  %6398 = vmatprep.mubr.bf16.mxu0 %v13653_v58  ;;  %v12978_v58 = vld [vmem:[#allocation14 + $0x808] ss:$16 sps:$4 sm:$0xff]   ;;  %v12989_v16 = vld [vmem:[#allocation14 + $0x7cc] ss:$16 sps:$4 sm:$0xff]  }
 0x762   : > { %6297 = vmatpush1.bf16.msra.mxu1 %v12926_v17  ;;  %v4872_v60 = vpop.f32.mrf.mxu0  ;;  %6368 = vmatprep.subr.bf16.mxu0 %v12944_v19  ;;  %v13019_v17 = vld [vmem:[#allocation15 + $0x484] ss:$16 sps:$4 sm:$0xff]   ;;  %v13017_v19 = vld [vmem:[#allocation15 + $0x480] ss:$16 sps:$4 sm:$0xff]  }
 0x763   : > { %6298 = vmatprep.subr.bf16.mxu1 %v12934_v20  ;;  %v12987_v20 = vld [vmem:[#allocation14 + $0x7c8] ss:$16 sps:$4 sm:$0xff]  }
 0x764   : > { %v4874_v31 = vpop.f32.mrf.mxu0 }
 0x765   : > { %6369 = vmatpush1.bf16.msra.mxu0 %v12942_v26  ;;  %v13020_v26 = vld [vmem:[#allocation15 + $0x460] ss:$16 sps:$4 sm:$0xff]   ;;  %v13028_v31 = vld [vmem:[#allocation15 + $0x424] ss:$16 sps:$4 sm:$0xff]  }
 0x766   : > { %6299 = vmatpush1.bf16.msra.mxu1 %v12932_v29  ;;  %v4875_v34 = vpop.f32.mrf.mxu0  ;;  %6370 = vmatprep.subr.bf16.mxu0 %v12950_v27  ;;  %v12990_v29 = vld [vmem:[#allocation14 + $0x7a8] ss:$16 sps:$4 sm:$0xff]   ;;  %v13025_v27 = vld [vmem:[#allocation15 + $0x444] ss:$16 sps:$4 sm:$0xff]  }
 0x767   : > { %6325 = vmatprep.subr.bf16.mxu1 %v12941_v30  ;;  %v12993_v30 = vld [vmem:[#allocation14 + $0x788] ss:$16 sps:$4 sm:$0xff]  }
 0x768   : > { %v12996_v34 = vld [vmem:[#allocation14 + $0x768] ss:$16 sps:$4 sm:$0xff]  }
 0x769   : > { %6317 = vmatmul.mubr.bf16.vlgmr.msra.gmra.mxu1 %v5759_v35  ;;  %v4911_v38 = vpop.f32.mrf.mxu1  ;;  %6371 = vmatpush1.bf16.msra.mxu0 %v12948_v25  ;;  %v12998_v25 = vld [vmem:[#allocation14 + $0x76c] ss:$16 sps:$4 sm:$0xff]  }
 0x76a   : > { %v14813_v24 = vadd.f32 %v4911_v38, %v4870_v22  ;;  %6326 = vmatpush1.bf16.msra.mxu1 %v12939_v33  ;;  %6357 = vmatprep.mubr.bf16.mxu1 %v14803_v7  ;;  %v12966_v7 = vld [vmem:[#allocation14 + $0x848] ss:$16 sps:$4 sm:$0xff]   ;;  %v12992_v22 = vld [vmem:[#allocation14 + $0x7ac] ss:$16 sps:$4 sm:$0xff]   ;;  %v13026_v33 = vld [vmem:[#allocation15 + $0x420] ss:$16 sps:$4 sm:$0xff]  }
 0x76b   : > { %v4913_v43 = vpop.f32.mrf.mxu1  ;;  %6327 = vmatprep.subr.bf16.mxu1 %v12947_v36  ;;  %6372 = vmatprep.subr.bf16.mxu0 %v12956_v37  ;;  %v13001_v36 = vld [vmem:[#allocation14 + $0x74c] ss:$16 sps:$4 sm:$0xff]   ;;  %v13029_v37 = vld [vmem:[#allocation15 + $0x400] ss:$16 sps:$4 sm:$0xff]   ;;  %v12999_v38 = vld [vmem:[#allocation14 + $0x748] ss:$16 sps:$4 sm:$0xff]  }
 0x76c   : > { %v14816_v55 = vadd.f32 %v4913_v43, %v4872_v60  ;;  %v12995_v60 = vld [vmem:[#allocation14 + $0x78c] ss:$16 sps:$4 sm:$0xff]   ;;  %v13002_v43 = vld [vmem:[#allocation14 + $0x728] ss:$16 sps:$4 sm:$0xff]  }
 0x76d   : > { %v4915_v47 = vpop.f32.mrf.mxu1  ;;  %6373 = vmatpush1.bf16.msra.mxu0 %v12954_v39  ;;  %v13034_v39 = vld [vmem:[#allocation15 + $0x5e4] ss:$16 sps:$4 sm:$0xff]  }
 0x76e   : > { %6328 = vmatpush1.bf16.msra.mxu1 %v12945_v42  ;;  %6374 = vmatprep.subr.bf16.mxu0 %v12962_v40  ;;  %v13004_v42 = vld [vmem:[#allocation14 + $0x72c] ss:$16 sps:$4 sm:$0xff]   ;;  %v13032_v40 = vld [vmem:[#allocation15 + $0x5e0] ss:$16 sps:$4 sm:$0xff]   ;;  %v13037_v47 = vld [vmem:[#allocation15 + $0x5c4] ss:$16 sps:$4 sm:$0xff]  }
 0x76f   : > { %v4916_v51 = vpop.f32.mrf.mxu1  ;;  %6329 = vmatprep.subr.bf16.mxu1 %v12953_v45  ;;  %v13007_v45 = vld [vmem:[#allocation14 + $0x70c] ss:$16 sps:$4 sm:$0xff]  }
 0x770   : > { %v13038_v51 = vld [vmem:[#allocation15 + $0x5a0] ss:$16 sps:$4 sm:$0xff]  }
 0x771   : > { %6375 = vmatpush1.bf16.msra.mxu0 %v12960_v48  ;;  %v13035_v48 = vld [vmem:[#allocation15 + $0x5c0] ss:$16 sps:$4 sm:$0xff]  }
 0x772   : > { %6330 = vmatpush1.bf16.msra.mxu1 %v12951_v49  ;;  %6376 = vmatprep.subr.bf16.mxu0 %v12968_v50  ;;  %v13005_v49 = vld [vmem:[#allocation14 + $0x708] ss:$16 sps:$4 sm:$0xff]   ;;  %v13040_v50 = vld [vmem:[#allocation15 + $0x5a4] ss:$16 sps:$4 sm:$0xff]  }
 0x773   : > { %6331 = vmatprep.subr.bf16.mxu1 %v12959_v44  ;;  %v13043_v44 = vld [vmem:[#allocation15 + $0x584] ss:$16 sps:$4 sm:$0xff]  }
 0x775   : > { %6377 = vmatpush1.bf16.msra.mxu0 %v12966_v7 }
 0x776   : > { %6332 = vmatpush1.bf16.msra.mxu1 %v12957_v0  ;;  %6378 = vmatprep.subr.bf16.mxu0 %v12974_v52  ;;  %v13041_v0 = vld [vmem:[#allocation15 + $0x580] ss:$16 sps:$4 sm:$0xff]  }
 0x777   : > { %6333 = vmatprep.subr.bf16.mxu1 %v12965_v54 }
 0x779   : > { %6379 = vmatpush1.bf16.msra.mxu0 %v12972_v56 }
 0x77a   : > { %6334 = vmatpush1.bf16.msra.mxu1 %v12963_v21  ;;  %6380 = vmatprep.subr.bf16.mxu0 %v12980_v57  ;;  %v13046_v21 = vld [vmem:[#allocation15 + $0x564] ss:$16 sps:$4 sm:$0xff]  }
 0x77b   : > { %6335 = vmatprep.subr.bf16.mxu1 %v12971_v53  ;;  %v13044_v53 = vld [vmem:[#allocation15 + $0x560] ss:$16 sps:$4 sm:$0xff]  }
 0x77d   : > { %6381 = vmatpush1.bf16.msra.mxu0 %v12978_v58 }
 0x77e   : > { %6336 = vmatpush1.bf16.msra.mxu1 %v12969_v59  ;;  %7408 = vmatprep.subr.bf16.mxu0 %v13010_v62  ;;  %v13049_v59 = vld [vmem:[#allocation15 + $0x544] ss:$16 sps:$4 sm:$0xff]   ;;  %v13047_v62 = vld [vmem:[#allocation15 + $0x540] ss:$16 sps:$4 sm:$0xff]  }
 0x77f   : > { %6337 = vmatprep.subr.bf16.mxu1 %v12977_v46  ;;  %v13050_v46 = vld [vmem:[#allocation15 + $0x520] ss:$16 sps:$4 sm:$0xff]  }
 0x780   : > { %v14818_v1 = vpop.f32.mrf.mxu0  ;;  %6399 = vmatmul.mubr.bf16.vlgmr.msra.gmra.mxu0 %v5759_v35  ;;  %v13031_v35 = vld [vmem:[#allocation15 + $0x404] ss:$16 sps:$4 sm:$0xff]  }
 0x781   : > { %7409 = vmatpush1.bf16.msra.mxu0 %v13008_v61  ;;  %v13055_v61 = vld [vmem:[#allocation15 + $0x504] ss:$16 sps:$4 sm:$0xff]  }
 0x782   : > { %6338 = vmatpush1.bf16.msra.mxu1 %v12975_v32  ;;  %v14820_v6 = vpop.f32.mrf.mxu0  ;;  %7410 = vmatprep.subr.bf16.mxu0 %v13013_v2  ;;  %v13053_v32 = vld [vmem:[#allocation15 + $0x500] ss:$16 sps:$4 sm:$0xff]  }
 0x783   : > { %6339 = vmatprep.subr.bf16.mxu1 %v12983_v63  ;;  %v13058_v63 = vld [vmem:[#allocation15 + $0x6e4] ss:$16 sps:$4 sm:$0xff]   ;;  %v13056_v2 = vld [vmem:[#allocation15 + $0x6e0] ss:$16 sps:$4 sm:$0xff]  }
 0x784   : > { %v4997_v10 = vpop.f32.mrf.mxu0 }
 0x785   : > { %7411 = vmatpush1.bf16.msra.mxu0 %v13011_v4  ;;  %v13062_v10 = vld [vmem:[#allocation15 + $0x6c0] ss:$16 sps:$4 sm:$0xff]  }
 0x786   : > { %6340 = vmatpush1.bf16.msra.mxu1 %v12981_v5  ;;  %v4998_v41 = vpop.f32.mrf.mxu0  ;;  %7412 = vmatprep.subr.bf16.mxu0 %v13016_v11 }
 0x787   : > { %6341 = vmatprep.subr.bf16.mxu1 %v12986_v8 }
 0x789   : > { %7413 = vmatpush1.bf16.msra.mxu0 %v13014_v13 }
 0x78a   : > { %6342 = vmatpush2.bf16.msra.mxu1 %v12984_v14  ;;  %7414 = vmatprep.subr.bf16.mxu0 %v13019_v17  ;;  %v13070_v14 = vld [vmem:[#allocation15 + $0x6a4] ss:$16 sps:$4 sm:$0xff]   ;;  %v13074_v17 = vld [vmem:[#allocation15 + $0x680] ss:$16 sps:$4 sm:$0xff]  }
 0x78b   : > { %6343 = vmatprep.subr.bf16.mxu1 %v12989_v16  ;;  %v13068_v16 = vld [vmem:[#allocation15 + $0x6a0] ss:$16 sps:$4 sm:$0xff]  }
 0x78d   : > { %7415 = vmatpush1.bf16.msra.mxu0 %v13017_v19  ;;  %v13076_v19 = vld [vmem:[#allocation15 + $0x684] ss:$16 sps:$4 sm:$0xff]  }
 0x78e   : > { %6344 = vmatpush2.bf16.msra.mxu1 %v12987_v20  ;;  %7416 = vmatprep.subr.bf16.mxu0 %v13022_v23 }
 0x78f   : > { %6345 = vmatprep.subr.bf16.mxu1 %v12992_v22 }
 0x791   : > { %7417 = vmatpush1.bf16.msra.mxu0 %v13020_v26  ;;  %v13080_v26 = vld [vmem:[#allocation15 + $0x660] ss:$16 sps:$4 sm:$0xff]  }
 0x792   : > { %6346 = vmatpush2.bf16.msra.mxu1 %v12990_v29  ;;  %7418 = vmatprep.subr.bf16.mxu0 %v13025_v27  ;;  %v13086_v27 = vld [vmem:[#allocation15 + $0x640] ss:$16 sps:$4 sm:$0xff]  }
 0x793   : > { %6347 = vmatprep.subr.bf16.mxu1 %v12995_v60 }
 0x795   : > { %7419 = vmatpush1.bf16.msra.mxu0 %v13023_v28  ;;  %v13088_v28 = vld [vmem:[#allocation15 + $0x644] ss:$16 sps:$4 sm:$0xff]  }
 0x796   : > { %6348 = vmatpush2.bf16.msra.mxu1 %v12993_v30  ;;  %7420 = vmatprep.subr.bf16.mxu0 %v13028_v31  ;;  %v13092_v30 = vld [vmem:[#allocation15 + $0x620] ss:$16 sps:$4 sm:$0xff]   ;;  %v13094_v31 = vld [vmem:[#allocation15 + $0x624] ss:$16 sps:$4 sm:$0xff]  }
 0x797   : > { %6349 = vmatprep.subr.bf16.mxu1 %v12998_v25  ;;  %v13098_v25 = vld [vmem:[#allocation15 + $0x600] ss:$16 sps:$4 sm:$0xff]  }
 0x799   : > { %7421 = vmatpush1.bf16.msra.mxu0 %v13026_v33  ;;  %v13100_v33 = vld [vmem:[#allocation15 + $0x604] ss:$16 sps:$4 sm:$0xff]  }
 0x79a   : > { %6350 = vmatpush2.bf16.msra.mxu1 %v12996_v34  ;;  %7422 = vmatprep.subr.bf16.mxu0 %v13031_v35  ;;  %v13104_v34 = vld [vmem:[#allocation15 + $0x7e0] ss:$16 sps:$4 sm:$0xff]   ;;  %v13106_v35 = vld [vmem:[#allocation15 + $0x7e4] ss:$16 sps:$4 sm:$0xff]  }
 0x79b   : > { %6351 = vmatprep.subr.bf16.mxu1 %v13001_v36 }
 0x79d   : > { %7423 = vmatpush1.bf16.msra.mxu0 %v13029_v37  ;;  %v13112_v37 = vld [vmem:[#allocation15 + $0x7c4] ss:$16 sps:$4 sm:$0xff]  }
 0x79e   : > { %6352 = vmatpush2.bf16.msra.mxu1 %v12999_v38  ;;  %7424 = vmatprep.subr.bf16.mxu0 %v13034_v39  ;;  %v13110_v39 = vld [vmem:[#allocation15 + $0x7c0] ss:$16 sps:$4 sm:$0xff]  }
 0x79f   : > { %6353 = vmatprep.subr.bf16.mxu1 %v13004_v42 }
 0x7a1   : > { %7425 = vmatpush2.bf16.msra.mxu0 %v13032_v40  ;;  %v13118_v40 = vld [vmem:[#allocation15 + $0x7a4] ss:$16 sps:$4 sm:$0xff]  }
 0x7a2   : > { %6354 = vmatpush2.bf16.msra.mxu1 %v13002_v43  ;;  %7426 = vmatprep.subr.bf16.mxu0 %v13037_v47  ;;  %v13124_v47 = vld [vmem:[#allocation15 + $0x784] ss:$16 sps:$4 sm:$0xff]  }
 0x7a3   : > { %6355 = vmatprep.subr.bf16.mxu1 %v13007_v45  ;;  %v13116_v45 = vld [vmem:[#allocation15 + $0x7a0] ss:$16 sps:$4 sm:$0xff]  }
 0x7a5   : > { %7427 = vmatpush2.bf16.msra.mxu0 %v13035_v48  ;;  %v13122_v48 = vld [vmem:[#allocation15 + $0x780] ss:$16 sps:$4 sm:$0xff]  }
 0x7a6   : > { %6356 = vmatpush2.bf16.msra.mxu1 %v13005_v49  ;;  %7428 = vmatprep.subr.bf16.mxu0 %v13040_v50  ;;  %v13130_v49 = vld [vmem:[#allocation15 + $0x764] ss:$16 sps:$4 sm:$0xff]   ;;  %v13128_v50 = vld [vmem:[#allocation15 + $0x760] ss:$16 sps:$4 sm:$0xff]  }
 0x7a7   : > { %7449 = vmatprep.subr.bf16.mxu1 %v13058_v63 }
 0x7a9   : > { %v4952_v7 = vpop.f32.mrf.mxu1  ;;  %6358 = vmatmul.mubr.bf16.vlgmr.msra.gmra.mxu1 %v14809_v18  ;;  %7429 = vmatpush2.bf16.msra.mxu0 %v13038_v51  ;;  %v13052_v18 = vld [vmem:[#allocation15 + $0x524] ss:$16 sps:$4 sm:$0xff]  }
 0x7aa   : > { %v14824_v52 = vadd.f32 %v14818_v1, %v4952_v7  ;;  %7430 = vmatprep.subr.bf16.mxu0 %v13043_v44  ;;  %v13061_v1 = vld [vmem:[#allocation15 + $0x4ec] ss:$16 sps:$4 sm:$0xff]   ;;  %7450 = vmatpush1.bf16.msra.mxu1 %v13056_v2  ;;  %v13136_v51 = vld [vmem:[#allocation15 + $0x744] ss:$16 sps:$4 sm:$0xff]   ;;  %v13134_v44 = vld [vmem:[#allocation15 + $0x740] ss:$16 sps:$4 sm:$0xff]  }
 0x7ab   : > { %v4954_v54 = vpop.f32.mrf.mxu1  ;;  %v13142_v7 = vld [vmem:[#allocation15 + $0x724] ss:$16 sps:$4 sm:$0xff]  }
 0x7ac   : > { %v14827_v56 = vadd.f32 %v14820_v6, %v4954_v54  ;;  %v13064_v6 = vld [vmem:[#allocation15 + $0x6c4] ss:$16 sps:$4 sm:$0xff]   ;;  %v13146_v54 = vld [vmem:[#allocation15 + $0x700] ss:$16 sps:$4 sm:$0xff]  }
 0x7ad   : > { %v4956_v57 = vpop.f32.mrf.mxu1  ;;  %7431 = vmatpush2.bf16.msra.mxu0 %v13041_v0  ;;  %7451 = vmatprep.subr.bf16.mxu1 %v13064_v6  ;;  %v13140_v0 = vld [vmem:[#allocation15 + $0x720] ss:$16 sps:$4 sm:$0xff]  }
 0x7ae   : > { %7432 = vmatprep.subr.bf16.mxu0 %v13046_v21  ;;  %7452 = vmatpush1.bf16.msra.mxu1 %v13062_v10  ;;  %v13148_v21 = vld [vmem:[#allocation15 + $0x704] ss:$16 sps:$4 sm:$0xff]   ;;  %v13154_v57 = vld [vmem:[#allocation15 + $0x6ec] ss:$16 sps:$4 sm:$0xff]  }
 0x7af   : > { %v4957_v58 = vpop.f32.mrf.mxu1  ;;  %7453 = vmatprep.subr.bf16.mxu1 %v13070_v14 }
 0x7b1   : > { %7433 = vmatpush2.bf16.msra.mxu0 %v13044_v53 }
 0x7b2   : > { %7434 = vmatprep.subr.bf16.mxu0 %v13049_v59  ;;  %7454 = vmatpush1.bf16.msra.mxu1 %v13068_v16 }
 0x7b3   : > { %7455 = vmatprep.subr.bf16.mxu1 %v13076_v19 }
 0x7b5   : > { %7435 = vmatpush2.bf16.msra.mxu0 %v13047_v62 }
 0x7b6   : > { %7436 = vmatprep.subr.bf16.mxu0 %v13052_v18  ;;  %7456 = vmatpush1.bf16.msra.mxu1 %v13074_v17 }
 0x7b9   : > { %7437 = vmatpush2.bf16.msra.mxu0 %v13050_v46 }
 0x7ba   : > { %7438 = vmatprep.subr.bf16.mxu0 %v13055_v61 }
 0x7bd   : > { %7439 = vmatpush2.bf16.msra.mxu0 %v13053_v32 }
 0x7be   : > { %7490 = vmatprep.subr.bf16.mxu0 %v13061_v1 }
 0x7c0   : > { %v5520_v4 = vpop.f32.mrf.mxu0 }
 0x7c1   : > { %v5521_v5 = vadd.f32 %v5520_v4, %v14813_v24 }
 0x7c2   : > { %v5522_v8 = vpop.f32.mrf.mxu0 }
 0x7c3   : > { %v5523_v11 = vadd.f32 %v5522_v8, %v14816_v55  ;;  %v13082_v55 = vld [vmem:[#allocation15 + $0x664] ss:$16 sps:$4 sm:$0xff]  }
 0x7c4   : > { %v5524_v13 = vpop.f32.mrf.mxu0  ;;  %7457 = vmatprep.subr.bf16.mxu1 %v13082_v55  ;;  %v14855_v55 = vld [vmem:[#allocation2 + $0x8] sm:$0x11] }
 0x7c5   : > { %7458 = vmatpush1.bf16.msra.mxu1 %v13080_v26 }
 0x7c6   : > { %v5525_v41 = vpop.f32.mrf.mxu0  ;;  %7459 = vmatprep.subr.bf16.mxu1 %v13088_v28 }
 0x7c9   : > { %v5561_v20 = vpop.f32.mrf.mxu1  ;;  %7460 = vmatpush1.bf16.msra.mxu1 %v13086_v27 }
 0x7ca   : > { %v14831_v22 = vadd.f32 %v5561_v20, %v5521_v5  ;;  %7461 = vmatprep.subr.bf16.mxu1 %v13094_v31  ;;  %v14841_v5 = vld [vmem:[#allocation26] sm:$0xf] }
 0x7cb   : > { %v5563_v24 = vpop.f32.mrf.mxu1 }
 0x7cc   : > { %v14833_v23 = vadd.f32 %v5563_v24, %v5523_v11 }
 0x7cd   : > { %v5565_v29 = vpop.f32.mrf.mxu1  ;;  %7462 = vmatpush1.bf16.msra.mxu1 %v13092_v30 }
 0x7ce   : > { %7463 = vmatprep.subr.bf16.mxu1 %v13100_v33  ;;  %v13059_v33 = vld [vmem:[#allocation15 + $0x4e8] ss:$16 sps:$4 sm:$0xff]  }
 0x7cf   : > { %v5566_v60 = vpop.f32.mrf.mxu1 }
 0x7d1   : > { %7464 = vmatpush1.bf16.msra.mxu1 %v13098_v25 }
 0x7d2   : > { %7465 = vmatprep.subr.bf16.mxu1 %v13106_v35  ;;  %v13067_v35 = vld [vmem:[#allocation15 + $0x4cc] ss:$16 sps:$4 sm:$0xff]  }
 0x7d5   : > { %7466 = vmatpush2.bf16.msra.mxu1 %v13104_v34 }
 0x7d6   : > { %7467 = vmatprep.subr.bf16.mxu1 %v13112_v37  ;;  %v13065_v37 = vld [vmem:[#allocation15 + $0x4c8] ss:$16 sps:$4 sm:$0xff]  }
 0x7d9   : > { %7468 = vmatpush2.bf16.msra.mxu1 %v13110_v39 }
 0x7da   : > { %7469 = vmatprep.subr.bf16.mxu1 %v13118_v40  ;;  %v13071_v40 = vld [vmem:[#allocation15 + $0x4a8] ss:$16 sps:$4 sm:$0xff]  }
 0x7dd   : > { %7470 = vmatpush2.bf16.msra.mxu1 %v13116_v45 }
 0x7de   : > { %7471 = vmatprep.subr.bf16.mxu1 %v13124_v47  ;;  %v13077_v47 = vld [vmem:[#allocation15 + $0x488] ss:$16 sps:$4 sm:$0xff]  }
 0x7e0   : > { %v5643_v36 = vpop.f32.mrf.mxu0 }
 0x7e1   : > { %7472 = vmatpush2.bf16.msra.mxu1 %v13122_v48  ;;  %v13085_v48 = vld [vmem:[#allocation15 + $0x46c] ss:$16 sps:$4 sm:$0xff]  }
 0x7e2   : > { %v5645_v38 = vpop.f32.mrf.mxu0  ;;  %7473 = vmatprep.subr.bf16.mxu1 %v13130_v49  ;;  %v13083_v49 = vld [vmem:[#allocation15 + $0x468] ss:$16 sps:$4 sm:$0xff]  }
 0x7e4   : > { %v5647_v42 = vpop.f32.mrf.mxu0 }
 0x7e5   : > { %7474 = vmatpush2.bf16.msra.mxu1 %v13128_v50  ;;  %v13091_v50 = vld [vmem:[#allocation15 + $0x44c] ss:$16 sps:$4 sm:$0xff]  }
 0x7e6   : > { %v5648_v43 = vpop.f32.mrf.mxu0  ;;  %7475 = vmatprep.subr.bf16.mxu1 %v13136_v51  ;;  %v13089_v51 = vld [vmem:[#allocation15 + $0x448] ss:$16 sps:$4 sm:$0xff]  }
 0x7e7   : > { %v13079_v43 = vld [vmem:[#allocation15 + $0x48c] ss:$16 sps:$4 sm:$0xff]  }
 0x7e9   : > { %7476 = vmatpush2.bf16.msra.mxu1 %v13134_v44  ;;  %v13097_v44 = vld [vmem:[#allocation15 + $0x42c] ss:$16 sps:$4 sm:$0xff]  }
 0x7ea   : > { %7477 = vmatprep.subr.bf16.mxu1 %v13142_v7  ;;  %v13095_v7 = vld [vmem:[#allocation15 + $0x428] ss:$16 sps:$4 sm:$0xff]  }
 0x7ed   : > { %7478 = vmatpush2.bf16.msra.mxu1 %v13140_v0  ;;  %v13103_v0 = vld [vmem:[#allocation15 + $0x40c] ss:$16 sps:$4 sm:$0xff]  }
 0x7ee   : > { %7479 = vmatprep.subr.bf16.mxu1 %v13148_v21  ;;  %v13109_v21 = vld [vmem:[#allocation15 + $0x5ec] ss:$16 sps:$4 sm:$0xff]  }
 0x7f1   : > { %7480 = vmatpush2.bf16.msra.mxu1 %v13146_v54  ;;  %v13101_v54 = vld [vmem:[#allocation15 + $0x408] ss:$16 sps:$4 sm:$0xff]  }
 0x7f2   : > { %7531 = vmatprep.subr.bf16.mxu1 %v13154_v57  ;;  %v13107_v57 = vld [vmem:[#allocation15 + $0x5e8] ss:$16 sps:$4 sm:$0xff]  }
 0x809   : > { %v5602_v53 = vpop.f32.mrf.mxu1 }
 0x80a   : > { %v5603_v58 = vadd.f32 %v5602_v53, %v14824_v52  ;;  %v6416_v52 = vrot.slane %v14841_v5, %v14715_v12  ;;  %v13115_v53 = vld [vmem:[#allocation15 + $0x5cc] ss:$16 sps:$4 sm:$0xff]  }
 0x80b   : > { %v5604_v59 = vpop.f32.mrf.mxu1 }
 0x80c   : > { %v14836_v62 = vadd.f32 %v5643_v36, %v5603_v58  ;;  %v5605_v18 = vadd.f32 %v5604_v59, %v14827_v56  ;;  %v6420_v56 = vrot.slane %v14841_v5, %v14718_v15  ;;  %v13113_v58 = vld [vmem:[#allocation15 + $0x5c8] ss:$16 sps:$4 sm:$0xff]   ;;  %v13121_v59 = vld [vmem:[#allocation15 + $0x5ac] ss:$16 sps:$4 sm:$0xff]  }
 0x80d   : > { %v5606_v46 = vpop.f32.mrf.mxu1 }
 0x80e   : > { %v14839_v61 = vadd.f32 %v5645_v38, %v5605_v18  ;;  %v13073_v38 = vld [vmem:[#allocation15 + $0x4ac] ss:$16 sps:$4 sm:$0xff]   ;;  %v13119_v18 = vld [vmem:[#allocation15 + $0x5a8] ss:$16 sps:$4 sm:$0xff]  }
 0x80f   : > { %v5607_v32 = vpop.f32.mrf.mxu1  ;;  %v13127_v46 = vld [vmem:[#allocation15 + $0x58c] ss:$16 sps:$4 sm:$0xff]  }
 0x810   : > { %v6427_v32 = vsub.s32 3, %v14712_v9 }
 0x820   : > { %v6277_v63 = vpop.f32.mrf.mxu0 }
 0x822   : > { %v6279_v1 = vpop.f32.mrf.mxu0 }
 0x824   : > { %v6281_v2 = vpop.f32.mrf.mxu0 }
 0x825   : > { %v13133_v2 = vld [vmem:[#allocation15 + $0x56c] ss:$16 sps:$4 sm:$0xff]  }
 0x826   : > { %v6282_v4 = vpop.f32.mrf.mxu0 }
 0x829   : > { %v6318_v6 = vpop.f32.mrf.mxu1 }
 0x82a   : > { %v6319_v8 = vadd.f32 %v6318_v6, %v6277_v63  ;;  %v13125_v63 = vld [vmem:[#allocation15 + $0x588] ss:$16 sps:$4 sm:$0xff]   ;;  %v6424_v6 = vrot.slane %v14841_v5, %v14759_v3 }
 0x82b   : > { %v6320_v10 = vpop.f32.mrf.mxu1 }
 0x82c   : > { %v6407_v11 = vadd.f32 %v6319_v8, %v14831_v22  ;;  %v6321_v13 = vadd.f32 %v6320_v10, %v6279_v1 }
 0x82d   : > { %v6322_v14 = vpop.f32.mrf.mxu1 }
 0x82e   : > { %v6433_v41 = vadd.f32 %v6416_v52, %v6407_v11  ;;  %v6408_v16 = vadd.f32 %v6321_v13, %v14833_v23  ;;  %v6428_v11 = vrot.slane %v14841_v5, %v6427_v32  ;;  %v13131_v13 = vld [vmem:[#allocation15 + $0x568] ss:$16 sps:$4 sm:$0xff]   ;;  %v13139_v14 = vld [vmem:[#allocation15 + $0x54c] ss:$16 sps:$4 sm:$0xff]  }
 0x82f   : > { %v6323_v17 = vpop.f32.mrf.mxu1 }
 0x830   : > { %v6434_v19 = vadd.f32 %v6420_v56, %v6408_v16  ;;  %v14849_v20 = vmax.f32 %v6433_v41, 0.0 }
 0x832   : > { %v14851_v24 = vmax.f32 %v6434_v19, 0.0 }
 0x834   : > { %v11562_v26 = vpack.c.bf16 %v14851_v24, %v14849_v20 }
 0x836   : > { %6457 = vst [vmem:[#allocation2 + $0x28] sm:$0xff] %v11562_v26  ;;  %v11077_v22 = vcombine.high %v11562_v26, %v14855_v55  ;;  %v11076_v29 = vcombine.low %v11562_v26, %v14855_v55  ;;  %v13137_v26 = vld [vmem:[#allocation15 + $0x548] ss:$16 sps:$4 sm:$0xff]  }
 0x838   : > { %v6746_v60 = vshll.u32 %v11077_v22, 16  ;;  %v6739_v27 = vshll.u32 %v11076_v29, 16  ;;  %v6744_v28 = vshrl.u32 %v11077_v22, 16  ;;  %v6737_v30 = vshrl.u32 %v11076_v29, 16  ;;  %v13145_v22 = vld [vmem:[#allocation15 + $0x52c] ss:$16 sps:$4 sm:$0xff]  }
 0x83a   : > { %v6748_v23 = vrot.slane %v6746_v60, 1  ;;  %v6741_v31 = vrot.slane %v6739_v27, 1  ;;  %v14874_v60 = vld [vmem:[#allocation2] sm:$0x11]  ;;  %v13143_v27 = vld [vmem:[#allocation15 + $0x528] ss:$16 sps:$4 sm:$0xff]  }
 0x83c   : > { %v6749_v25 = vor.u32 %v6748_v23, %v6744_v28  ;;  %v14859_v34 = vor.u32 %v6741_v31, %v6737_v30  ;;  %v13151_v28 = vld [vmem:[#allocation15 + $0x50c] ss:$16 sps:$4 sm:$0xff]   ;;  %v13149_v30 = vld [vmem:[#allocation15 + $0x508] ss:$16 sps:$4 sm:$0xff]  }
 0x83e   : > { %7440 = vmatprep.mubr.bf16.mxu0 %v6749_v25 }
 0x83f   : > { %7441 = vmatmul.mubr.bf16.vlgmr.msra.gmra.mxu0 %v14859_v34 }
 0x840   : > { %7491 = vmatpush1.bf16.msra.mxu0 %v13059_v33  ;;  %v6400_v36 = vpop.f32.mrf.mxu0  ;;  %7522 = vmatprep.mubr.bf16.mxu0 %v6749_v25  ;;  %v13157_v33 = vld [vmem:[#allocation15 + $0xe4] ss:$16 sps:$4 sm:$0xff]  }
 0x841   : > { %7492 = vmatprep.subr.bf16.mxu0 %v13067_v35 }
 0x842   : > { %v6402_v39 = vpop.f32.mrf.mxu0 }
 0x844   : > { %7493 = vmatpush1.bf16.msra.mxu0 %v13065_v37  ;;  %v6404_v42 = vpop.f32.mrf.mxu0 }
 0x845   : > { %7494 = vmatprep.subr.bf16.mxu0 %v13073_v38  ;;  %v13152_v42 = vld [vmem:[#allocation15 + $0x6e8] ss:$16 sps:$4 sm:$0xff]  }
 0x846   : > { %v6405_v45 = vpop.f32.mrf.mxu0 }
 0x847   : > { %v13160_v45 = vld [vmem:[#allocation15 + $0x6cc] ss:$16 sps:$4 sm:$0xff]  }
 0x848   : > { %7495 = vmatpush1.bf16.msra.mxu0 %v13071_v40  ;;  %v13155_v40 = vld [vmem:[#allocation15 + $0xe0] ss:$16 sps:$4 sm:$0xff]  }
 0x849   : > { %7496 = vmatprep.subr.bf16.mxu0 %v13079_v43 }
 0x84c   : > { %7497 = vmatpush1.bf16.msra.mxu0 %v13077_v47  ;;  %v13163_v47 = vld [vmem:[#allocation15 + $0xc4] ss:$16 sps:$4 sm:$0xff]  }
 0x84d   : > { %7498 = vmatprep.subr.bf16.mxu0 %v13085_v48  ;;  %v14886_v48 = vpack.c.bf16 %v14851_v24, %v14851_v24  ;;  %v13175_v24 = vld [vmem:[#allocation15 + $0x84] ss:$16 sps:$4 sm:$0xff]  }
 0x850   : > { %7499 = vmatpush1.bf16.msra.mxu0 %v13083_v49  ;;  %v13158_v49 = vld [vmem:[#allocation15 + $0x6c8] ss:$16 sps:$4 sm:$0xff]  }
 0x851   : > { %7500 = vmatprep.subr.bf16.mxu0 %v13091_v50  ;;  %v13161_v50 = vld [vmem:[#allocation15 + $0xc0] ss:$16 sps:$4 sm:$0xff]  }
 0x854   : > { %7501 = vmatpush1.bf16.msra.mxu0 %v13089_v51  ;;  %v13166_v51 = vld [vmem:[#allocation15 + $0x6ac] ss:$16 sps:$4 sm:$0xff]  }
 0x855   : > { %7502 = vmatprep.subr.bf16.mxu0 %v13097_v44  ;;  %v13169_v44 = vld [vmem:[#allocation15 + $0xa4] ss:$16 sps:$4 sm:$0xff]  }
 0x858   : > { %7503 = vmatpush1.bf16.msra.mxu0 %v13095_v7  ;;  %v13167_v7 = vld [vmem:[#allocation15 + $0xa0] ss:$16 sps:$4 sm:$0xff]  }
 0x859   : > { %7504 = vmatprep.subr.bf16.mxu0 %v13103_v0  ;;  %v13172_v0 = vld [vmem:[#allocation15 + $0x68c] ss:$16 sps:$4 sm:$0xff]  }
 0x85c   : > { %7505 = vmatpush1.bf16.msra.mxu0 %v13101_v54  ;;  %v13170_v54 = vld [vmem:[#allocation15 + $0x688] ss:$16 sps:$4 sm:$0xff]  }
 0x85d   : > { %7506 = vmatprep.subr.bf16.mxu0 %v13109_v21  ;;  %v13173_v21 = vld [vmem:[#allocation15 + $0x80] ss:$16 sps:$4 sm:$0xff]  }
 0x860   : > { %7507 = vmatpush2.bf16.msra.mxu0 %v13107_v57  ;;  %v13178_v57 = vld [vmem:[#allocation15 + $0x66c] ss:$16 sps:$4 sm:$0xff]  }
 0x861   : > { %7508 = vmatprep.subr.bf16.mxu0 %v13115_v53  ;;  %v13181_v53 = vld [vmem:[#allocation15 + $0x64] ss:$16 sps:$4 sm:$0xff]  }
 0x864   : > { %7509 = vmatpush2.bf16.msra.mxu0 %v13113_v58  ;;  %v13176_v58 = vld [vmem:[#allocation15 + $0x668] ss:$16 sps:$4 sm:$0xff]  }
 0x865   : > { %7510 = vmatprep.subr.bf16.mxu0 %v13121_v59  ;;  %v13179_v59 = vld [vmem:[#allocation15 + $0x60] ss:$16 sps:$4 sm:$0xff]  }
 0x868   : > { %7511 = vmatpush2.bf16.msra.mxu0 %v13119_v18  ;;  %v13184_v18 = vld [vmem:[#allocation15 + $0x64c] ss:$16 sps:$4 sm:$0xff]  }
 0x869   : > { %v6359_v1 = vpop.f32.mrf.mxu1  ;;  %7512 = vmatprep.subr.bf16.mxu0 %v13127_v46  ;;  %v13187_v46 = vld [vmem:[#allocation15 + $0x44] ss:$16 sps:$4 sm:$0xff]  }
 0x86a   : > { %v6401_v4 = vadd.f32 %v6400_v36, %v6359_v1  ;;  %v13185_v1 = vld [vmem:[#allocation15 + $0x40] ss:$16 sps:$4 sm:$0xff]  }
 0x86b   : > { %v6361_v8 = vpop.f32.mrf.mxu1 }
 0x86c   : > { %v6409_v52 = vadd.f32 %v6401_v4, %v14836_v62  ;;  %v6403_v10 = vadd.f32 %v6402_v39, %v6361_v8  ;;  %7513 = vmatpush2.bf16.msra.mxu0 %v13125_v63  ;;  %v13182_v63 = vld [vmem:[#allocation15 + $0x648] ss:$16 sps:$4 sm:$0xff]   ;;  %v13193_v4 = vld [vmem:[#allocation15 + $0x24] ss:$16 sps:$4 sm:$0xff]   ;;  %v13191_v8 = vld [vmem:[#allocation15 + $0x20] ss:$16 sps:$4 sm:$0xff]  }
 0x86d   : > { %v6363_v56 = vpop.f32.mrf.mxu1  ;;  %7514 = vmatprep.subr.bf16.mxu0 %v13133_v2  ;;  %v13190_v2 = vld [vmem:[#allocation15 + $0x62c] ss:$16 sps:$4 sm:$0xff]  }
 0x86e   : > { %v6435_v41 = vadd.f32 %v6424_v6, %v6409_v52  ;;  %v6410_v16 = vadd.f32 %v6403_v10, %v14839_v61  ;;  %v13188_v6 = vld [vmem:[#allocation15 + $0x628] ss:$16 sps:$4 sm:$0xff]   ;;  %v13196_v52 = vld [vmem:[#allocation15 + $0x60c] ss:$16 sps:$4 sm:$0xff]   ;;  %v13199_v10 = vld [vmem:[#allocation15 + $0x4] ss:$16 sps:$4 sm:$0xff]  }
 0x86f   : > { %v6364_v17 = vpop.f32.mrf.mxu1  ;;  %v13202_v56 = vld [vmem:[#allocation15 + $0x7ec] ss:$16 sps:$4 sm:$0xff]  }
 0x870   : > { %v6436_v19 = vadd.f32 %v6428_v11, %v6410_v16  ;;  %7515 = vmatpush2.bf16.msra.mxu0 %v13131_v13  ;;  %v14870_v62 = vmax.f32 %v6435_v41, 0.0  ;;  %v13194_v11 = vld [vmem:[#allocation15 + $0x608] ss:$16 sps:$4 sm:$0xff]   ;;  %v13197_v13 = vld [vmem:[#allocation15] ss:$16 sps:$4 sm:$0xff]  }
 0x871   : > { %7516 = vmatprep.subr.bf16.mxu0 %v13139_v14  ;;  %v13205_v14 = vld [vmem:[#allocation15 + $0x1e4] ss:$16 sps:$4 sm:$0xff]   ;;  %v13200_v41 = vld [vmem:[#allocation15 + $0x7e8] ss:$16 sps:$4 sm:$0xff]   ;;  %v13203_v16 = vld [vmem:[#allocation15 + $0x1e0] ss:$16 sps:$4 sm:$0xff]  }
 0x872   : > { %v14872_v29 = vmax.f32 %v6436_v19, 0.0  ;;  %v13208_v17 = vld [vmem:[#allocation15 + $0x7cc] ss:$16 sps:$4 sm:$0xff]   ;;  %v13211_v19 = vld [vmem:[#allocation15 + $0x1c4] ss:$16 sps:$4 sm:$0xff]  }
 0x874   : > { %v11563_v5 = vpack.c.bf16 %v14872_v29, %v14870_v62  ;;  %7517 = vmatpush2.bf16.msra.mxu0 %v13137_v26  ;;  %v13206_v26 = vld [vmem:[#allocation15 + $0x7c8] ss:$16 sps:$4 sm:$0xff]  }
 0x875   : > { %7518 = vmatprep.subr.bf16.mxu0 %v13145_v22  ;;  %v13209_v22 = vld [vmem:[#allocation15 + $0x1c0] ss:$16 sps:$4 sm:$0xff]  }
 0x876   : > { %6458 = vst [vmem:[#allocation2 + $0x10] sm:$0xff] %v11563_v5  ;;  %v11079_v61 = vcombine.high %v11563_v5, %v14874_v60  ;;  %v11078_v23 = vcombine.low %v11563_v5, %v14874_v60  ;;  %v13214_v5 = vld [vmem:[#allocation15 + $0x7ac] ss:$16 sps:$4 sm:$0xff]  }
 0x878   : > { %7519 = vmatpush2.bf16.msra.mxu0 %v13143_v27  ;;  %v6760_v31 = vshll.u32 %v11079_v61, 16  ;;  %v6753_v25 = vshll.u32 %v11078_v23, 16  ;;  %v6758_v35 = vshrl.u32 %v11079_v61, 16  ;;  %v6751_v37 = vshrl.u32 %v11078_v23, 16  ;;  %v13217_v27 = vld [vmem:[#allocation15 + $0x1a4] ss:$16 sps:$4 sm:$0xff]  }
 0x879   : > { %7520 = vmatprep.subr.bf16.mxu0 %v13151_v28  ;;  %v13212_v28 = vld [vmem:[#allocation15 + $0x7a8] ss:$16 sps:$4 sm:$0xff]   ;;  %v13215_v61 = vld [vmem:[#allocation15 + $0x1a0] ss:$16 sps:$4 sm:$0xff]   ;;  %v13220_v23 = vld [vmem:[#allocation15 + $0x78c] ss:$16 sps:$4 sm:$0xff]  }
 0x87a   : > { %v6762_v36 = vrot.slane %v6760_v31, 1  ;;  %v6755_v38 = vrot.slane %v6753_v25, 1  ;;  %v13218_v31 = vld [vmem:[#allocation15 + $0x788] ss:$16 sps:$4 sm:$0xff]   ;;  %v13221_v25 = vld [vmem:[#allocation15 + $0x180] ss:$16 sps:$4 sm:$0xff]  }
 0x87c   : > { %7521 = vmatpush2.bf16.msra.mxu0 %v13149_v30  ;;  %v6763_v39 = vor.u32 %v6762_v36, %v6758_v35  ;;  %v14880_v43 = vor.u32 %v6755_v38, %v6751_v37  ;;  %v13223_v30 = vld [vmem:[#allocation15 + $0x184] ss:$16 sps:$4 sm:$0xff]   ;;  %v13224_v36 = vld [vmem:[#allocation15 + $0x768] ss:$16 sps:$4 sm:$0xff]   ;;  %v13227_v37 = vld [vmem:[#allocation15 + $0x160] ss:$16 sps:$4 sm:$0xff]  }
 0x87d   : > { %8220 = vmatprep.subr.bf16.mxu0 %v13157_v33  ;;  %v13226_v33 = vld [vmem:[#allocation15 + $0x76c] ss:$16 sps:$4 sm:$0xff]   ;;  %v13229_v35 = vld [vmem:[#allocation15 + $0x164] ss:$16 sps:$4 sm:$0xff]  }
 0x87e   : > { %7481 = vmatprep.mubr.bf16.mxu1 %v6763_v39  ;;  %v13232_v38 = vld [vmem:[#allocation15 + $0x74c] ss:$16 sps:$4 sm:$0xff]  }
 0x87f   : > { %7523 = vmatmul.mubr.bf16.vlgmr.msra.gmra.mxu0 %v14859_v34  ;;  %7482 = vmatmul.mubr.bf16.vlgmr.msra.gmra.mxu1 %v14880_v43  ;;  %v13164_v34 = vld [vmem:[#allocation15 + $0x6a8] ss:$16 sps:$4 sm:$0xff]  }
 0x880   : > { %7532 = vmatpush1.bf16.msra.mxu1 %v13152_v42  ;;  %8221 = vmatpush1.bf16.msra.mxu0 %v13155_v40  ;;  %v13230_v42 = vld [vmem:[#allocation15 + $0x748] ss:$16 sps:$4 sm:$0xff]   ;;  %v13233_v40 = vld [vmem:[#allocation15 + $0x140] ss:$16 sps:$4 sm:$0xff]  }
 0x881   : > { %8252 = vmatprep.mubr.bf16.mxu0 %v14886_v48  ;;  %7563 = vmatprep.mubr.bf16.mxu1 %v6763_v39  ;;  %v13235_v39 = vld [vmem:[#allocation15 + $0x144] ss:$16 sps:$4 sm:$0xff]  }
 0x882   : > { %7533 = vmatprep.subr.bf16.mxu1 %v13160_v45  ;;  %8222 = vmatprep.subr.bf16.mxu0 %v13163_v47  ;;  %v13238_v45 = vld [vmem:[#allocation15 + $0x72c] ss:$16 sps:$4 sm:$0xff]   ;;  %v13241_v47 = vld [vmem:[#allocation15 + $0x124] ss:$16 sps:$4 sm:$0xff]  }
 0x884   : > { %7534 = vmatpush1.bf16.msra.mxu1 %v13158_v49  ;;  %8223 = vmatpush1.bf16.msra.mxu0 %v13161_v50  ;;  %v13236_v49 = vld [vmem:[#allocation15 + $0x728] ss:$16 sps:$4 sm:$0xff]   ;;  %v13239_v50 = vld [vmem:[#allocation15 + $0x120] ss:$16 sps:$4 sm:$0xff]  }
 0x885   : > { %7535 = vmatprep.subr.bf16.mxu1 %v13166_v51  ;;  %8224 = vmatprep.subr.bf16.mxu0 %v13169_v44  ;;  %v13244_v51 = vld [vmem:[#allocation15 + $0x70c] ss:$16 sps:$4 sm:$0xff]   ;;  %v13247_v44 = vld [vmem:[#allocation15 + $0x104] ss:$16 sps:$4 sm:$0xff]  }
 0x888   : > { %7536 = vmatpush1.bf16.msra.mxu1 %v13164_v34  ;;  %8225 = vmatpush1.bf16.msra.mxu0 %v13167_v7  ;;  %v13242_v34 = vld [vmem:[#allocation15 + $0x708] ss:$16 sps:$4 sm:$0xff]   ;;  %v13245_v7 = vld [vmem:[#allocation15 + $0x100] ss:$16 sps:$4 sm:$0xff]  }
 0x889   : > { %7537 = vmatprep.subr.bf16.mxu1 %v13172_v0  ;;  %8226 = vmatprep.subr.bf16.mxu0 %v13175_v24  ;;  %v13250_v0 = vld [vmem:[#allocation15 + $0x2e4] ss:$16 sps:$4 sm:$0xff]   ;;  %v13253_v24 = vld [vmem:[#allocation15 + $0xec] ss:$16 sps:$4 sm:$0xff]  }
 0x88c   : > { %7538 = vmatpush1.bf16.msra.mxu1 %v13170_v54  ;;  %8227 = vmatpush1.bf16.msra.mxu0 %v13173_v21  ;;  %v13248_v54 = vld [vmem:[#allocation15 + $0x2e0] ss:$16 sps:$4 sm:$0xff]   ;;  %v14891_v21 = vpack.c.bf16 %v14849_v20, %v14849_v20  ;;  %v13257_v20 = vld [vmem:[#allocation15 + $0xc8] ss:$16 sps:$4 sm:$0xff]  }
 0x88d   : > { %7539 = vmatprep.subr.bf16.mxu1 %v13178_v57  ;;  %8228 = vmatprep.subr.bf16.mxu0 %v13181_v53  ;;  %v13251_v57 = vld [vmem:[#allocation15 + $0xe8] ss:$16 sps:$4 sm:$0xff]   ;;  %v14895_v53 = vpack.c.bf16 %v14872_v29, %v14872_v29  ;;  %v13260_v29 = vld [vmem:[#allocation15 + $0x2a0] ss:$16 sps:$4 sm:$0xff]  }
 0x890   : > { %7540 = vmatpush1.bf16.msra.mxu1 %v13176_v58  ;;  %8229 = vmatpush1.bf16.msra.mxu0 %v13179_v59  ;;  %v13256_v58 = vld [vmem:[#allocation15 + $0x2c4] ss:$16 sps:$4 sm:$0xff]   ;;  %v13259_v59 = vld [vmem:[#allocation15 + $0xcc] ss:$16 sps:$4 sm:$0xff]  }
 0x891   : > { %7541 = vmatprep.subr.bf16.mxu1 %v13184_v18  ;;  %8230 = vmatprep.subr.bf16.mxu0 %v13187_v46  ;;  %v13254_v18 = vld [vmem:[#allocation15 + $0x2c0] ss:$16 sps:$4 sm:$0xff]   ;;  %v13262_v46 = vld [vmem:[#allocation15 + $0x2a4] ss:$16 sps:$4 sm:$0xff]  }
 0x894   : > { %7542 = vmatpush1.bf16.msra.mxu1 %v13182_v63  ;;  %8231 = vmatpush1.bf16.msra.mxu0 %v13185_v1  ;;  %v13265_v63 = vld [vmem:[#allocation15 + $0xac] ss:$16 sps:$4 sm:$0xff]   ;;  %v13263_v1 = vld [vmem:[#allocation15 + $0xa8] ss:$16 sps:$4 sm:$0xff]  }
 0x895   : > { %7543 = vmatprep.subr.bf16.mxu1 %v13190_v2  ;;  %8232 = vmatprep.subr.bf16.mxu0 %v13193_v4  ;;  %v13271_v2 = vld [vmem:[#allocation15 + $0x8c] ss:$16 sps:$4 sm:$0xff]   ;;  %v13266_v4 = vld [vmem:[#allocation15 + $0x280] ss:$16 sps:$4 sm:$0xff]  }
 0x898   : > { %7544 = vmatpush1.bf16.msra.mxu1 %v13188_v6  ;;  %8233 = vmatpush1.bf16.msra.mxu0 %v13191_v8  ;;  %v13269_v6 = vld [vmem:[#allocation15 + $0x88] ss:$16 sps:$4 sm:$0xff]   ;;  %v13274_v8 = vld [vmem:[#allocation15 + $0x264] ss:$16 sps:$4 sm:$0xff]  }
 0x899   : > { %7545 = vmatprep.subr.bf16.mxu1 %v13196_v52  ;;  %8234 = vmatprep.subr.bf16.mxu0 %v13199_v10  ;;  %v13272_v52 = vld [vmem:[#allocation15 + $0x260] ss:$16 sps:$4 sm:$0xff]   ;;  %v13275_v10 = vld [vmem:[#allocation15 + $0x68] ss:$16 sps:$4 sm:$0xff]  }
 0x89c   : > { %7546 = vmatpush1.bf16.msra.mxu1 %v13194_v11  ;;  %8235 = vmatpush1.bf16.msra.mxu0 %v13197_v13  ;;  %v13280_v11 = vld [vmem:[#allocation15 + $0x244] ss:$16 sps:$4 sm:$0xff]   ;;  %v13283_v13 = vld [vmem:[#allocation15 + $0x4c] ss:$16 sps:$4 sm:$0xff]  }
 0x89d   : > { %7547 = vmatprep.subr.bf16.mxu1 %v13202_v56  ;;  %8236 = vmatprep.subr.bf16.mxu0 %v13205_v14  ;;  %v13278_v56 = vld [vmem:[#allocation15 + $0x240] ss:$16 sps:$4 sm:$0xff]   ;;  %v13281_v14 = vld [vmem:[#allocation15 + $0x48] ss:$16 sps:$4 sm:$0xff]  }
 0x8a0   : > { %7548 = vmatpush2.bf16.msra.mxu1 %v13200_v41  ;;  %8237 = vmatpush2.bf16.msra.mxu0 %v13203_v16  ;;  %v13286_v41 = vld [vmem:[#allocation15 + $0x224] ss:$16 sps:$4 sm:$0xff]   ;;  %v13289_v16 = vld [vmem:[#allocation15 + $0x2c] ss:$16 sps:$4 sm:$0xff]  }
 0x8a1   : > { %7549 = vmatprep.subr.bf16.mxu1 %v13208_v17  ;;  %8238 = vmatprep.subr.bf16.mxu0 %v13211_v19  ;;  %v13284_v17 = vld [vmem:[#allocation15 + $0x220] ss:$16 sps:$4 sm:$0xff]   ;;  %v13287_v19 = vld [vmem:[#allocation15 + $0x28] ss:$16 sps:$4 sm:$0xff]  }
 0x8a4   : > { %7550 = vmatpush2.bf16.msra.mxu1 %v13206_v26  ;;  %8239 = vmatpush2.bf16.msra.mxu0 %v13209_v22  ;;  %v13292_v26 = vld [vmem:[#allocation15 + $0x204] ss:$16 sps:$4 sm:$0xff]   ;;  %v13295_v22 = vld [vmem:[#allocation15 + $0xc] ss:$16 sps:$4 sm:$0xff]  }
 0x8a5   : > { %7551 = vmatprep.subr.bf16.mxu1 %v13214_v5  ;;  %8240 = vmatprep.subr.bf16.mxu0 %v13217_v27  ;;  %v13290_v5 = vld [vmem:[#allocation15 + $0x200] ss:$16 sps:$4 sm:$0xff]   ;;  %v13293_v27 = vld [vmem:[#allocation15 + $0x8] ss:$16 sps:$4 sm:$0xff]  }
 0x8a8   : > { %7552 = vmatpush2.bf16.msra.mxu1 %v13212_v28  ;;  %8241 = vmatpush2.bf16.msra.mxu0 %v13215_v61  ;;  %v13298_v28 = vld [vmem:[#allocation15 + $0x3e4] ss:$16 sps:$4 sm:$0xff]   ;;  %v13301_v61 = vld [vmem:[#allocation15 + $0x1ec] ss:$16 sps:$4 sm:$0xff]  }
 0x8a9   : > { %7553 = vmatprep.subr.bf16.mxu1 %v13220_v23  ;;  %8242 = vmatprep.subr.bf16.mxu0 %v13223_v30  ;;  %v13296_v23 = vld [vmem:[#allocation15 + $0x3e0] ss:$16 sps:$4 sm:$0xff]   ;;  %v13299_v30 = vld [vmem:[#allocation15 + $0x1e8] ss:$16 sps:$4 sm:$0xff]  }
 0x8ac   : > { %7554 = vmatpush2.bf16.msra.mxu1 %v13218_v31  ;;  %8243 = vmatpush2.bf16.msra.mxu0 %v13221_v25  ;;  %v13304_v31 = vld [vmem:[#allocation15 + $0x3c4] ss:$16 sps:$4 sm:$0xff]   ;;  %v13307_v25 = vld [vmem:[#allocation15 + $0x1cc] ss:$16 sps:$4 sm:$0xff]  }
 0x8ad   : > { %7555 = vmatprep.subr.bf16.mxu1 %v13226_v33  ;;  %8244 = vmatprep.subr.bf16.mxu0 %v13229_v35  ;;  %v13302_v33 = vld [vmem:[#allocation15 + $0x3c0] ss:$16 sps:$4 sm:$0xff]   ;;  %v13305_v35 = vld [vmem:[#allocation15 + $0x1c8] ss:$16 sps:$4 sm:$0xff]  }
 0x8b0   : > { %7556 = vmatpush2.bf16.msra.mxu1 %v13224_v36  ;;  %8245 = vmatpush2.bf16.msra.mxu0 %v13227_v37  ;;  %v13310_v36 = vld [vmem:[#allocation15 + $0x3a4] ss:$16 sps:$4 sm:$0xff]   ;;  %v13313_v37 = vld [vmem:[#allocation15 + $0x1ac] ss:$16 sps:$4 sm:$0xff]  }
 0x8b1   : > { %7557 = vmatprep.subr.bf16.mxu1 %v13232_v38  ;;  %8246 = vmatprep.subr.bf16.mxu0 %v13235_v39  ;;  %v13308_v38 = vld [vmem:[#allocation15 + $0x3a0] ss:$16 sps:$4 sm:$0xff]   ;;  %v13311_v39 = vld [vmem:[#allocation15 + $0x1a8] ss:$16 sps:$4 sm:$0xff]  }
 0x8b4   : > { %7558 = vmatpush2.bf16.msra.mxu1 %v13230_v42  ;;  %8247 = vmatpush2.bf16.msra.mxu0 %v13233_v40  ;;  %v13316_v42 = vld [vmem:[#allocation15 + $0x384] ss:$16 sps:$4 sm:$0xff]   ;;  %v13319_v40 = vld [vmem:[#allocation15 + $0x18c] ss:$16 sps:$4 sm:$0xff]  }
 0x8b5   : > { %7559 = vmatprep.subr.bf16.mxu1 %v13238_v45  ;;  %8248 = vmatprep.subr.bf16.mxu0 %v13241_v47  ;;  %v13314_v45 = vld [vmem:[#allocation15 + $0x380] ss:$16 sps:$4 sm:$0xff]   ;;  %v13317_v47 = vld [vmem:[#allocation15 + $0x188] ss:$16 sps:$4 sm:$0xff]  }
 0x8b8   : > { %7560 = vmatpush2.bf16.msra.mxu1 %v13236_v49  ;;  %8249 = vmatpush2.bf16.msra.mxu0 %v13239_v50  ;;  %v13322_v49 = vld [vmem:[#allocation15 + $0x364] ss:$16 sps:$4 sm:$0xff]   ;;  %v13325_v50 = vld [vmem:[#allocation15 + $0x16c] ss:$16 sps:$4 sm:$0xff]  }
 0x8b9   : > { %7561 = vmatprep.subr.bf16.mxu1 %v13244_v51  ;;  %8250 = vmatprep.subr.bf16.mxu0 %v13247_v44  ;;  %v13320_v51 = vld [vmem:[#allocation15 + $0x360] ss:$16 sps:$4 sm:$0xff]   ;;  %v13323_v44 = vld [vmem:[#allocation15 + $0x168] ss:$16 sps:$4 sm:$0xff]  }
 0x8bc   : > { %7562 = vmatpush2.bf16.msra.mxu1 %v13242_v34  ;;  %8251 = vmatpush2.bf16.msra.mxu0 %v13245_v7  ;;  %v13328_v34 = vld [vmem:[#allocation15 + $0x344] ss:$16 sps:$4 sm:$0xff]   ;;  %v13331_v7 = vld [vmem:[#allocation15 + $0x14c] ss:$16 sps:$4 sm:$0xff]  }
 0x8bd   : > { %8261 = vmatprep.subr.bf16.mxu1 %v13250_v0  ;;  %8302 = vmatprep.subr.bf16.mxu0 %v13253_v24  ;;  %v13326_v0 = vld [vmem:[#allocation15 + $0x340] ss:$16 sps:$4 sm:$0xff]   ;;  %v13329_v24 = vld [vmem:[#allocation15 + $0x148] ss:$16 sps:$4 sm:$0xff]  }
 0x8bf   : > { %7564 = vmatmul.mubr.bf16.vlgmr.msra.gmra.mxu1 %v14880_v43  ;;  %8253 = vmatmul.mubr.bf16.vlgmr.msra.gmra.mxu0 %v14891_v21  ;;  %v13268_v43 = vld [vmem:[#allocation15 + $0x284] ss:$16 sps:$4 sm:$0xff]  }
 0x8c0   : > { %8262 = vmatpush1.bf16.msra.mxu1 %v13248_v54  ;;  %8293 = vmatprep.mubr.bf16.mxu1 %v14895_v53  ;;  %v13334_v54 = vld [vmem:[#allocation15 + $0x324] ss:$16 sps:$4 sm:$0xff]  }
 0x8c1   : > { %8303 = vmatpush1.bf16.msra.mxu0 %v13251_v57  ;;  %8334 = vmatprep.mubr.bf16.mxu0 %v14886_v48  ;;  %v13277_v48 = vld [vmem:[#allocation15 + $0x6c] ss:$16 sps:$4 sm:$0xff]  }
 0x8c2   : > { %8263 = vmatprep.subr.bf16.mxu1 %v13256_v58  ;;  %8304 = vmatprep.subr.bf16.mxu0 %v13259_v59  ;;  %v13337_v57 = vld [vmem:[#allocation15 + $0x12c] ss:$16 sps:$4 sm:$0xff]   ;;  %v13332_v58 = vld [vmem:[#allocation15 + $0x320] ss:$16 sps:$4 sm:$0xff]   ;;  %v13335_v59 = vld [vmem:[#allocation15 + $0x128] ss:$16 sps:$4 sm:$0xff]  }
 0x8c4   : > { %8264 = vmatpush1.bf16.msra.mxu1 %v13254_v18  ;;  %v13340_v18 = vld [vmem:[#allocation15 + $0x304] ss:$16 sps:$4 sm:$0xff]  }
 0x8c5   : > { %8305 = vmatpush1.bf16.msra.mxu0 %v13257_v20  ;;  %8265 = vmatprep.subr.bf16.mxu1 %v13262_v46  ;;  %v13343_v20 = vld [vmem:[#allocation15 + $0x10c] ss:$16 sps:$4 sm:$0xff]   ;;  %v13338_v46 = vld [vmem:[#allocation15 + $0x300] ss:$16 sps:$4 sm:$0xff]  }
 0x8c6   : > { %8306 = vmatprep.subr.bf16.mxu0 %v13265_v63  ;;  %v13341_v63 = vld [vmem:[#allocation15 + $0x108] ss:$16 sps:$4 sm:$0xff]  }
 0x8c8   : > { %8266 = vmatpush1.bf16.msra.mxu1 %v13260_v29  ;;  %v13346_v29 = vld [vmem:[#allocation15 + $0x2ec] ss:$16 sps:$4 sm:$0xff]  }
 0x8c9   : > { %8307 = vmatpush1.bf16.msra.mxu0 %v13263_v1  ;;  %8267 = vmatprep.subr.bf16.mxu1 %v13268_v43  ;;  %v14901_v1 = vld [vmem:[#allocation2 + $0x28] sm:$0xee]  ;;  %v13349_v43 = vld [vmem:[#allocation15 + $0x8e4] ss:$16 sps:$4 sm:$0xff]  }
 0x8ca   : > { %8308 = vmatprep.subr.bf16.mxu0 %v13271_v2  ;;  %v13344_v2 = vld [vmem:[#allocation15 + $0x2e8] ss:$16 sps:$4 sm:$0xff]  }
 0x8cc   : > { %8268 = vmatpush1.bf16.msra.mxu1 %v13266_v4  ;;  %v11341_v4 = vcombine.high %v14901_v1, %v14855_v55  ;;  %v13350_v55 = vld [vmem:[#allocation15 + $0x2c8] ss:$16 sps:$4 sm:$0xff]  }
 0x8cd   : > { %8309 = vmatpush1.bf16.msra.mxu0 %v13269_v6  ;;  %8269 = vmatprep.subr.bf16.mxu1 %v13274_v8  ;;  %v14907_v6 = vpack.c.bf16 %v14870_v62, %v14870_v62  ;;  %v13347_v8 = vld [vmem:[#allocation15 + $0x8e0] ss:$16 sps:$4 sm:$0xff]  }
 0x8ce   : > { %8310 = vmatprep.subr.bf16.mxu0 %v13277_v48  ;;  %v13352_v48 = vld [vmem:[#allocation15 + $0x2cc] ss:$16 sps:$4 sm:$0xff]  }
 0x8d0   : > { %8270 = vmatpush1.bf16.msra.mxu1 %v13272_v52 }
 0x8d1   : > { %8311 = vmatpush1.bf16.msra.mxu0 %v13275_v10  ;;  %8271 = vmatprep.subr.bf16.mxu1 %v13280_v11  ;;  %v13355_v10 = vld [vmem:[#allocation15 + $0x8c4] ss:$16 sps:$4 sm:$0xff]   ;;  %v14913_v11 = vrot.slane %v11341_v4, 1 }
 0x8d2   : > { %8312 = vmatprep.subr.bf16.mxu0 %v13283_v13  ;;  %v13353_v13 = vld [vmem:[#allocation15 + $0x8c0] ss:$16 sps:$4 sm:$0xff]   ;;  %v13427_v4 = vld [vmem:[#allocation15 + $0x944] ss:$16 sps:$4 sm:$0xff]  }
 0x8d4   : > { %8272 = vmatpush1.bf16.msra.mxu1 %v13278_v56  ;;  %v13358_v56 = vld [vmem:[#allocation15 + $0x2ac] ss:$16 sps:$4 sm:$0xff]  }
 0x8d5   : > { %8313 = vmatpush1.bf16.msra.mxu0 %v13281_v14  ;;  %8273 = vmatprep.subr.bf16.mxu1 %v13286_v41  ;;  %v13361_v14 = vld [vmem:[#allocation15 + $0x8a4] ss:$16 sps:$4 sm:$0xff]  }
 0x8d6   : > { %8314 = vmatprep.subr.bf16.mxu0 %v13289_v16  ;;  %v13356_v16 = vld [vmem:[#allocation15 + $0x2a8] ss:$16 sps:$4 sm:$0xff]  }
 0x8d8   : > { %8274 = vmatpush1.bf16.msra.mxu1 %v13284_v17  ;;  %v13359_v17 = vld [vmem:[#allocation15 + $0x8a0] ss:$16 sps:$4 sm:$0xff]  }
 0x8d9   : > { %8315 = vmatpush1.bf16.msra.mxu0 %v13287_v19  ;;  %8275 = vmatprep.subr.bf16.mxu1 %v13292_v26  ;;  %v13364_v19 = vld [vmem:[#allocation15 + $0x28c] ss:$16 sps:$4 sm:$0xff]   ;;  %v13362_v26 = vld [vmem:[#allocation15 + $0x288] ss:$16 sps:$4 sm:$0xff]  }
 0x8da   : > { %8316 = vmatprep.subr.bf16.mxu0 %v13295_v22  ;;  %v13365_v22 = vld [vmem:[#allocation15 + $0x880] ss:$16 sps:$4 sm:$0xff]  }
 0x8dc   : > { %8276 = vmatpush1.bf16.msra.mxu1 %v13290_v5  ;;  %v13370_v5 = vld [vmem:[#allocation15 + $0x26c] ss:$16 sps:$4 sm:$0xff]  }
 0x8dd   : > { %8317 = vmatpush1.bf16.msra.mxu0 %v13293_v27  ;;  %8277 = vmatprep.subr.bf16.mxu1 %v13298_v28  ;;  %v13373_v27 = vld [vmem:[#allocation15 + $0x864] ss:$16 sps:$4 sm:$0xff]   ;;  %v13368_v28 = vld [vmem:[#allocation15 + $0x268] ss:$16 sps:$4 sm:$0xff]  }
 0x8de   : > { %8318 = vmatprep.subr.bf16.mxu0 %v13301_v61  ;;  %v13371_v61 = vld [vmem:[#allocation15 + $0x860] ss:$16 sps:$4 sm:$0xff]  }
 0x8e0   : > { %8278 = vmatpush2.bf16.msra.mxu1 %v13296_v23  ;;  %v13376_v23 = vld [vmem:[#allocation15 + $0x24c] ss:$16 sps:$4 sm:$0xff]  }
 0x8e1   : > { %8319 = vmatpush2.bf16.msra.mxu0 %v13299_v30  ;;  %8279 = vmatprep.subr.bf16.mxu1 %v13304_v31  ;;  %v13379_v30 = vld [vmem:[#allocation15 + $0x844] ss:$16 sps:$4 sm:$0xff]   ;;  %v13374_v31 = vld [vmem:[#allocation15 + $0x248] ss:$16 sps:$4 sm:$0xff]  }
 0x8e2   : > { %8320 = vmatprep.subr.bf16.mxu0 %v13307_v25  ;;  %v13377_v25 = vld [vmem:[#allocation15 + $0x840] ss:$16 sps:$4 sm:$0xff]  }
 0x8e4   : > { %8280 = vmatpush2.bf16.msra.mxu1 %v13302_v33  ;;  %v13382_v33 = vld [vmem:[#allocation15 + $0x22c] ss:$16 sps:$4 sm:$0xff]  }
 0x8e5   : > { %8321 = vmatpush2.bf16.msra.mxu0 %v13305_v35  ;;  %8281 = vmatprep.subr.bf16.mxu1 %v13310_v36  ;;  %v13385_v35 = vld [vmem:[#allocation15 + $0x824] ss:$16 sps:$4 sm:$0xff]   ;;  %v13380_v36 = vld [vmem:[#allocation15 + $0x228] ss:$16 sps:$4 sm:$0xff]  }
 0x8e6   : > { %8322 = vmatprep.subr.bf16.mxu0 %v13313_v37  ;;  %v13383_v37 = vld [vmem:[#allocation15 + $0x820] ss:$16 sps:$4 sm:$0xff]  }
 0x8e8   : > { %8282 = vmatpush2.bf16.msra.mxu1 %v13308_v38  ;;  %v13388_v38 = vld [vmem:[#allocation15 + $0x20c] ss:$16 sps:$4 sm:$0xff]  }
 0x8e9   : > { %8323 = vmatpush2.bf16.msra.mxu0 %v13311_v39  ;;  %8283 = vmatprep.subr.bf16.mxu1 %v13316_v42  ;;  %v13391_v39 = vld [vmem:[#allocation15 + $0x804] ss:$16 sps:$4 sm:$0xff]   ;;  %v13386_v42 = vld [vmem:[#allocation15 + $0x208] ss:$16 sps:$4 sm:$0xff]  }
 0x8ea   : > { %8324 = vmatprep.subr.bf16.mxu0 %v13319_v40  ;;  %v13389_v40 = vld [vmem:[#allocation15 + $0x800] ss:$16 sps:$4 sm:$0xff]  }
 0x8ec   : > { %8284 = vmatpush2.bf16.msra.mxu1 %v13314_v45  ;;  %v13394_v45 = vld [vmem:[#allocation15 + $0x3ec] ss:$16 sps:$4 sm:$0xff]  }
 0x8ed   : > { %8325 = vmatpush2.bf16.msra.mxu0 %v13317_v47  ;;  %8285 = vmatprep.subr.bf16.mxu1 %v13322_v49  ;;  %v13397_v47 = vld [vmem:[#allocation15 + $0x9e4] ss:$16 sps:$4 sm:$0xff]   ;;  %v13392_v49 = vld [vmem:[#allocation15 + $0x3e8] ss:$16 sps:$4 sm:$0xff]  }
 0x8ee   : > { %8326 = vmatprep.subr.bf16.mxu0 %v13325_v50  ;;  %v13395_v50 = vld [vmem:[#allocation15 + $0x9e0] ss:$16 sps:$4 sm:$0xff]  }
 0x8f0   : > { %8286 = vmatpush2.bf16.msra.mxu1 %v13320_v51  ;;  %v13400_v51 = vld [vmem:[#allocation15 + $0x3cc] ss:$16 sps:$4 sm:$0xff]  }
 0x8f1   : > { %8327 = vmatpush2.bf16.msra.mxu0 %v13323_v44  ;;  %8287 = vmatprep.subr.bf16.mxu1 %v13328_v34  ;;  %v13403_v44 = vld [vmem:[#allocation15 + $0x9c4] ss:$16 sps:$4 sm:$0xff]   ;;  %v13398_v34 = vld [vmem:[#allocation15 + $0x3c8] ss:$16 sps:$4 sm:$0xff]  }
 0x8f2   : > { %8328 = vmatprep.subr.bf16.mxu0 %v13331_v7  ;;  %v13401_v7 = vld [vmem:[#allocation15 + $0x9c0] ss:$16 sps:$4 sm:$0xff]  }
 0x8f4   : > { %8288 = vmatpush2.bf16.msra.mxu1 %v13326_v0  ;;  %v13406_v0 = vld [vmem:[#allocation15 + $0x3ac] ss:$16 sps:$4 sm:$0xff]  }
 0x8f5   : > { %8329 = vmatpush2.bf16.msra.mxu0 %v13329_v24  ;;  %8289 = vmatprep.subr.bf16.mxu1 %v13334_v54  ;;  %v13409_v24 = vld [vmem:[#allocation15 + $0x9a4] ss:$16 sps:$4 sm:$0xff]   ;;  %v13404_v54 = vld [vmem:[#allocation15 + $0x3a8] ss:$16 sps:$4 sm:$0xff]  }
 0x8f6   : > { %8330 = vmatprep.subr.bf16.mxu0 %v13337_v57  ;;  %v13407_v57 = vld [vmem:[#allocation15 + $0x9a0] ss:$16 sps:$4 sm:$0xff]  }
 0x8f8   : > { %8290 = vmatpush2.bf16.msra.mxu1 %v13332_v58  ;;  %v13412_v58 = vld [vmem:[#allocation15 + $0x38c] ss:$16 sps:$4 sm:$0xff]  }
 0x8f9   : > { %8331 = vmatpush2.bf16.msra.mxu0 %v13335_v59  ;;  %8291 = vmatprep.subr.bf16.mxu1 %v13340_v18  ;;  %v13415_v59 = vld [vmem:[#allocation15 + $0x984] ss:$16 sps:$4 sm:$0xff]   ;;  %v13410_v18 = vld [vmem:[#allocation15 + $0x388] ss:$16 sps:$4 sm:$0xff]  }
 0x8fa   : > { %8332 = vmatprep.subr.bf16.mxu0 %v13343_v20  ;;  %v13413_v20 = vld [vmem:[#allocation15 + $0x980] ss:$16 sps:$4 sm:$0xff]  }
 0x8fc   : > { %8292 = vmatpush2.bf16.msra.mxu1 %v13338_v46  ;;  %v13418_v46 = vld [vmem:[#allocation15 + $0x36c] ss:$16 sps:$4 sm:$0xff]  }
 0x8fd   : > { %8333 = vmatpush2.bf16.msra.mxu0 %v13341_v63  ;;  %8343 = vmatprep.subr.bf16.mxu1 %v13346_v29  ;;  %v13421_v63 = vld [vmem:[#allocation15 + $0x964] ss:$16 sps:$4 sm:$0xff]   ;;  %v13416_v29 = vld [vmem:[#allocation15 + $0x368] ss:$16 sps:$4 sm:$0xff]  }
 0x8fe   : > { %9173 = vmatprep.subr.bf16.mxu0 %v13349_v43  ;;  %v13419_v43 = vld [vmem:[#allocation15 + $0x960] ss:$16 sps:$4 sm:$0xff]  }
 0x8ff   : > { %8294 = vmatmul.mubr.bf16.vlgmr.msra.gmra.mxu1 %v14907_v6  ;;  %v14910_v52 = vpop.f32.mrf.mxu0 }
 0x900   : > { %8335 = vmatmul.mubr.bf16.vlgmr.msra.gmra.mxu0 %v14891_v21  ;;  %8344 = vmatpush1.bf16.msra.mxu1 %v13344_v2  ;;  %v13424_v2 = vld [vmem:[#allocation15 + $0x34c] ss:$16 sps:$4 sm:$0xff]  }
 0x901   : > { %8375 = vmatprep.mubr.bf16.mxu1 %v14895_v53  ;;  %9174 = vmatpush1.bf16.msra.mxu0 %v13347_v8  ;;  %v14916_v62 = vpop.f32.mrf.mxu0  ;;  %v13367_v53 = vld [vmem:[#allocation15 + $0x884] ss:$16 sps:$4 sm:$0xff]   ;;  %v13422_v8 = vld [vmem:[#allocation15 + $0x348] ss:$16 sps:$4 sm:$0xff]  }
 0x902   : > { %9205 = vmatprep.mubr.bf16.mxu0 %v14913_v11  ;;  %8345 = vmatprep.subr.bf16.mxu1 %v13352_v48  ;;  %v13425_v48 = vld [vmem:[#allocation15 + $0x940] ss:$16 sps:$4 sm:$0xff]  }
 0x903   : > { %9175 = vmatprep.subr.bf16.mxu0 %v13355_v10  ;;  %v7446_v41 = vpop.f32.mrf.mxu0  ;;  %v13430_v10 = vld [vmem:[#allocation15 + $0x32c] ss:$16 sps:$4 sm:$0xff]  }
 0x904   : > { %8346 = vmatpush1.bf16.msra.mxu1 %v13350_v55  ;;  %v13433_v55 = vld [vmem:[#allocation15 + $0x924] ss:$16 sps:$4 sm:$0xff]  }
 0x905   : > { %9176 = vmatpush1.bf16.msra.mxu0 %v13353_v13  ;;  %v7447_v21 = vpop.f32.mrf.mxu0  ;;  %8347 = vmatprep.subr.bf16.mxu1 %v13358_v56  ;;  %v13428_v13 = vld [vmem:[#allocation15 + $0x328] ss:$16 sps:$4 sm:$0xff]   ;;  %v13431_v56 = vld [vmem:[#allocation15 + $0x920] ss:$16 sps:$4 sm:$0xff]   ;;  %v13439_v41 = vld [vmem:[#allocation15 + $0x904] ss:$16 sps:$4 sm:$0xff]  }
 0x906   : > { %9177 = vmatprep.subr.bf16.mxu0 %v13361_v14  ;;  %v13436_v14 = vld [vmem:[#allocation15 + $0x30c] ss:$16 sps:$4 sm:$0xff]   ;;  %v14919_v21 = vld [vmem:[#allocation2 + $0x10] sm:$0xee] }
 0x908   : > { %8348 = vmatpush1.bf16.msra.mxu1 %v13356_v16  ;;  %v13434_v16 = vld [vmem:[#allocation15 + $0x308] ss:$16 sps:$4 sm:$0xff]  }
 0x909   : > { %9178 = vmatpush1.bf16.msra.mxu0 %v13359_v17  ;;  %8349 = vmatprep.subr.bf16.mxu1 %v13364_v19  ;;  %v13437_v17 = vld [vmem:[#allocation15 + $0x900] ss:$16 sps:$4 sm:$0xff]   ;;  %v13442_v19 = vld [vmem:[#allocation15 + $0xae4] ss:$16 sps:$4 sm:$0xff]  }
 0x90a   : > { %9179 = vmatprep.subr.bf16.mxu0 %v13367_v53  ;;  %v13654_v53 = vld [vmem:[#allocation2 + $0x8] sm:$0x11] }
 0x90c   : > { %8350 = vmatpush1.bf16.msra.mxu1 %v13362_v26  ;;  %v11340_v26 = vcombine.low %v14901_v1, %v13654_v53  ;;  %v13452_v1 = vld [vmem:[#allocation15 + $0x8cc] ss:$16 sps:$4 sm:$0xff]   ;;  %v13509_v53 = vld [vmem:[#allocation15 + $0xb84] ss:$16 sps:$4 sm:$0xff]  }
 0x90d   : > { %9180 = vmatpush1.bf16.msra.mxu0 %v13365_v22  ;;  %8351 = vmatprep.subr.bf16.mxu1 %v13370_v5  ;;  %v13445_v22 = vld [vmem:[#allocation15 + $0x8ec] ss:$16 sps:$4 sm:$0xff]   ;;  %v11343_v5 = vcombine.high %v14919_v21, %v14874_v60 }
 0x90e   : > { %9181 = vmatprep.subr.bf16.mxu0 %v13373_v27  ;;  %v13440_v27 = vld [vmem:[#allocation15 + $0xae0] ss:$16 sps:$4 sm:$0xff]  }
 0x910   : > { %8352 = vmatpush1.bf16.msra.mxu1 %v13368_v28  ;;  %v13443_v28 = vld [vmem:[#allocation15 + $0x8e8] ss:$16 sps:$4 sm:$0xff]  }
 0x911   : > { %9182 = vmatpush1.bf16.msra.mxu0 %v13371_v61  ;;  %8353 = vmatprep.subr.bf16.mxu1 %v13376_v23  ;;  %v14924_v61 = vrot.slane %v11340_v26, 1  ;;  %v13449_v23 = vld [vmem:[#allocation15 + $0xac4] ss:$16 sps:$4 sm:$0xff]   ;;  %v13512_v26 = vld [vmem:[#allocation15 + $0x98c] ss:$16 sps:$4 sm:$0xff]  }
 0x912   : > { %9183 = vmatprep.subr.bf16.mxu0 %v13379_v30 }
 0x914   : > { %8354 = vmatpush1.bf16.msra.mxu1 %v13374_v31 }
 0x915   : > { %9184 = vmatpush1.bf16.msra.mxu0 %v13377_v25  ;;  %8355 = vmatprep.subr.bf16.mxu1 %v13382_v33  ;;  %v14929_v25 = vrot.slane %v11343_v5, 1  ;;  %v13447_v33 = vld [vmem:[#allocation15 + $0xac0] ss:$16 sps:$4 sm:$0xff]   ;;  %v13510_v5 = vld [vmem:[#allocation15 + $0x988] ss:$16 sps:$4 sm:$0xff]  }
 0x916   : > { %9185 = vmatprep.subr.bf16.mxu0 %v13385_v35 }
 0x918   : > { %8356 = vmatpush1.bf16.msra.mxu1 %v13380_v36 }
 0x919   : > { %9186 = vmatpush1.bf16.msra.mxu0 %v13383_v37  ;;  %8357 = vmatprep.subr.bf16.mxu1 %v13388_v38  ;;  %v13450_v37 = vld [vmem:[#allocation15 + $0x8c8] ss:$16 sps:$4 sm:$0xff]   ;;  %v13455_v38 = vld [vmem:[#allocation15 + $0xaa4] ss:$16 sps:$4 sm:$0xff]  }
 0x91a   : > { %9187 = vmatprep.subr.bf16.mxu0 %v13391_v39  ;;  %v13458_v39 = vld [vmem:[#allocation15 + $0x8ac] ss:$16 sps:$4 sm:$0xff]  }
 0x91c   : > { %8358 = vmatpush1.bf16.msra.mxu1 %v13386_v42 }
 0x91d   : > { %9188 = vmatpush1.bf16.msra.mxu0 %v13389_v40  ;;  %8359 = vmatprep.subr.bf16.mxu1 %v13394_v45  ;;  %v13453_v40 = vld [vmem:[#allocation15 + $0xaa0] ss:$16 sps:$4 sm:$0xff]  }
 0x91e   : > { %9189 = vmatprep.subr.bf16.mxu0 %v13397_v47 }
 0x920   : > { %8360 = vmatpush2.bf16.msra.mxu1 %v13392_v49  ;;  %v13456_v49 = vld [vmem:[#allocation15 + $0x8a8] ss:$16 sps:$4 sm:$0xff]  }
 0x921   : > { %9190 = vmatpush2.bf16.msra.mxu0 %v13395_v50  ;;  %8361 = vmatprep.subr.bf16.mxu1 %v13400_v51  ;;  %v13461_v50 = vld [vmem:[#allocation15 + $0xa84] ss:$16 sps:$4 sm:$0xff]   ;;  %v13464_v51 = vld [vmem:[#allocation15 + $0x88c] ss:$16 sps:$4 sm:$0xff]  }
 0x922   : > { %9191 = vmatprep.subr.bf16.mxu0 %v13403_v44  ;;  %v13467_v44 = vld [vmem:[#allocation15 + $0xa64] ss:$16 sps:$4 sm:$0xff]  }
 0x924   : > { %8362 = vmatpush2.bf16.msra.mxu1 %v13398_v34  ;;  %v13470_v34 = vld [vmem:[#allocation15 + $0x86c] ss:$16 sps:$4 sm:$0xff]  }
 0x925   : > { %9192 = vmatpush2.bf16.msra.mxu0 %v13401_v7  ;;  %8363 = vmatprep.subr.bf16.mxu1 %v13406_v0  ;;  %v13465_v7 = vld [vmem:[#allocation15 + $0xa60] ss:$16 sps:$4 sm:$0xff]   ;;  %v13468_v0 = vld [vmem:[#allocation15 + $0x868] ss:$16 sps:$4 sm:$0xff]  }
 0x926   : > { %9193 = vmatprep.subr.bf16.mxu0 %v13409_v24  ;;  %v13473_v24 = vld [vmem:[#allocation15 + $0xa44] ss:$16 sps:$4 sm:$0xff]  }
 0x928   : > { %8364 = vmatpush2.bf16.msra.mxu1 %v13404_v54  ;;  %v13476_v54 = vld [vmem:[#allocation15 + $0x84c] ss:$16 sps:$4 sm:$0xff]  }
 0x929   : > { %9194 = vmatpush2.bf16.msra.mxu0 %v13407_v57  ;;  %8365 = vmatprep.subr.bf16.mxu1 %v13412_v58  ;;  %v13471_v57 = vld [vmem:[#allocation15 + $0xa40] ss:$16 sps:$4 sm:$0xff]   ;;  %v13474_v58 = vld [vmem:[#allocation15 + $0x848] ss:$16 sps:$4 sm:$0xff]  }
 0x92a   : > { %9195 = vmatprep.subr.bf16.mxu0 %v13415_v59  ;;  %v13479_v59 = vld [vmem:[#allocation15 + $0xa24] ss:$16 sps:$4 sm:$0xff]  }
 0x92c   : > { %8366 = vmatpush2.bf16.msra.mxu1 %v13410_v18  ;;  %v13482_v18 = vld [vmem:[#allocation15 + $0x82c] ss:$16 sps:$4 sm:$0xff]  }
 0x92d   : > { %9196 = vmatpush2.bf16.msra.mxu0 %v13413_v20  ;;  %8367 = vmatprep.subr.bf16.mxu1 %v13418_v46  ;;  %v13477_v20 = vld [vmem:[#allocation15 + $0xa20] ss:$16 sps:$4 sm:$0xff]   ;;  %v13480_v46 = vld [vmem:[#allocation15 + $0x828] ss:$16 sps:$4 sm:$0xff]  }
 0x92e   : > { %9197 = vmatprep.subr.bf16.mxu0 %v13421_v63  ;;  %v13485_v63 = vld [vmem:[#allocation15 + $0xa04] ss:$16 sps:$4 sm:$0xff]  }
 0x930   : > { %8368 = vmatpush2.bf16.msra.mxu1 %v13416_v29  ;;  %v13488_v29 = vld [vmem:[#allocation15 + $0x80c] ss:$16 sps:$4 sm:$0xff]  }
 0x931   : > { %9198 = vmatpush2.bf16.msra.mxu0 %v13419_v43  ;;  %8369 = vmatprep.subr.bf16.mxu1 %v13424_v2  ;;  %v13483_v43 = vld [vmem:[#allocation15 + $0xa00] ss:$16 sps:$4 sm:$0xff]   ;;  %v13486_v2 = vld [vmem:[#allocation15 + $0x808] ss:$16 sps:$4 sm:$0xff]  }
 0x932   : > { %9199 = vmatprep.subr.bf16.mxu0 %v13427_v4  ;;  %v13491_v4 = vld [vmem:[#allocation15 + $0xbe4] ss:$16 sps:$4 sm:$0xff]  }
 0x934   : > { %8370 = vmatpush2.bf16.msra.mxu1 %v13422_v8  ;;  %v13494_v8 = vld [vmem:[#allocation15 + $0x9ec] ss:$16 sps:$4 sm:$0xff]  }
 0x935   : > { %9200 = vmatpush2.bf16.msra.mxu0 %v13425_v48  ;;  %8371 = vmatprep.subr.bf16.mxu1 %v13430_v10  ;;  %v13489_v48 = vld [vmem:[#allocation15 + $0xbe0] ss:$16 sps:$4 sm:$0xff]   ;;  %v13492_v10 = vld [vmem:[#allocation15 + $0x9e8] ss:$16 sps:$4 sm:$0xff]  }
 0x936   : > { %9201 = vmatprep.subr.bf16.mxu0 %v13433_v55  ;;  %v13497_v55 = vld [vmem:[#allocation15 + $0xbc4] ss:$16 sps:$4 sm:$0xff]  }
 0x938   : > { %8372 = vmatpush2.bf16.msra.mxu1 %v13428_v13  ;;  %v13500_v13 = vld [vmem:[#allocation15 + $0x9cc] ss:$16 sps:$4 sm:$0xff]  }
 0x939   : > { %9202 = vmatpush2.bf16.msra.mxu0 %v13431_v56  ;;  %8373 = vmatprep.subr.bf16.mxu1 %v13436_v14  ;;  %v13495_v56 = vld [vmem:[#allocation15 + $0xbc0] ss:$16 sps:$4 sm:$0xff]   ;;  %v13498_v14 = vld [vmem:[#allocation15 + $0x9c8] ss:$16 sps:$4 sm:$0xff]  }
 0x93a   : > { %9203 = vmatprep.subr.bf16.mxu0 %v13439_v41  ;;  %v13503_v41 = vld [vmem:[#allocation15 + $0xba4] ss:$16 sps:$4 sm:$0xff]  }
 0x93c   : > { %8374 = vmatpush2.bf16.msra.mxu1 %v13434_v16  ;;  %v13506_v16 = vld [vmem:[#allocation15 + $0x9ac] ss:$16 sps:$4 sm:$0xff]  }
 0x93d   : > { %9204 = vmatpush2.bf16.msra.mxu0 %v13437_v17  ;;  %9214 = vmatprep.subr.bf16.mxu1 %v13442_v19  ;;  %v13501_v17 = vld [vmem:[#allocation15 + $0xba0] ss:$16 sps:$4 sm:$0xff]   ;;  %v13504_v19 = vld [vmem:[#allocation15 + $0x9a8] ss:$16 sps:$4 sm:$0xff]  }
 0x93e   : > { %9255 = vmatprep.subr.bf16.mxu0 %v13445_v22  ;;  %v13507_v22 = vld [vmem:[#allocation15 + $0xb80] ss:$16 sps:$4 sm:$0xff]  }
 0x93f   : > { %v14926_v30 = vpop.f32.mrf.mxu0  ;;  %8376 = vmatmul.mubr.bf16.vlgmr.msra.gmra.mxu1 %v14907_v6  ;;  %v7483_v31 = vpop.f32.mrf.mxu1 }
 0x940   : > { %9206 = vmatmul.mubr.bf16.vlgmr.msra.gmra.mxu0 %v14924_v61  ;;  %v14933_v60 = vadd.f32 %v7483_v31, %v14910_v52  ;;  %9215 = vmatpush1.bf16.msra.mxu1 %v13440_v27  ;;  %v13515_v27 = vld [vmem:[#allocation15 + $0xb64] ss:$16 sps:$4 sm:$0xff]   ;;  %v13516_v31 = vld [vmem:[#allocation15 + $0x968] ss:$16 sps:$4 sm:$0xff]  }
 0x941   : > { %9246 = vmatprep.mubr.bf16.mxu1 %v14929_v25  ;;  %9256 = vmatpush1.bf16.msra.mxu0 %v13443_v28  ;;  %v14936_v35 = vpop.f32.mrf.mxu0  ;;  %v7485_v36 = vpop.f32.mrf.mxu1  ;;  %v13518_v28 = vld [vmem:[#allocation15 + $0x96c] ss:$16 sps:$4 sm:$0xff]  }
 0x942   : > { %9287 = vmatprep.mubr.bf16.mxu0 %v14913_v11  ;;  %v14940_v6 = vadd.f32 %v7485_v36, %v14916_v62  ;;  %9216 = vmatprep.subr.bf16.mxu1 %v13449_v23  ;;  %v13459_v11 = vld [vmem:[#allocation15 + $0xa80] ss:$16 sps:$4 sm:$0xff]   ;;  %v13462_v62 = vld [vmem:[#allocation15 + $0x888] ss:$16 sps:$4 sm:$0xff]  }
 0x943   : > { %v7528_v42 = vpop.f32.mrf.mxu0  ;;  %9257 = vmatprep.subr.bf16.mxu0 %v13452_v1  ;;  %v7487_v52 = vpop.f32.mrf.mxu1  ;;  %v13513_v23 = vld [vmem:[#allocation15 + $0xb60] ss:$16 sps:$4 sm:$0xff]   ;;  %v13521_v1 = vld [vmem:[#allocation15 + $0xb44] ss:$16 sps:$4 sm:$0xff]  }
 0x944   : > { %9217 = vmatpush1.bf16.msra.mxu1 %v13447_v33  ;;  %v13524_v33 = vld [vmem:[#allocation15 + $0x94c] ss:$16 sps:$4 sm:$0xff]   ;;  %v13519_v36 = vld [vmem:[#allocation15 + $0xb40] ss:$16 sps:$4 sm:$0xff]   ;;  %v13528_v52 = vld [vmem:[#allocation15 + $0x928] ss:$16 sps:$4 sm:$0xff]  }
 0x945   : > { %9258 = vmatpush1.bf16.msra.mxu0 %v13450_v37  ;;  %v7529_v45 = vpop.f32.mrf.mxu0  ;;  %v7488_v47 = vpop.f32.mrf.mxu1  ;;  %9218 = vmatprep.subr.bf16.mxu1 %v13455_v38  ;;  %v13522_v37 = vld [vmem:[#allocation15 + $0x948] ss:$16 sps:$4 sm:$0xff]   ;;  %v13527_v38 = vld [vmem:[#allocation15 + $0xb24] ss:$16 sps:$4 sm:$0xff]   ;;  %v13525_v42 = vld [vmem:[#allocation15 + $0xb20] ss:$16 sps:$4 sm:$0xff]  }
 0x946   : > { %9259 = vmatprep.subr.bf16.mxu0 %v13458_v39  ;;  %v13530_v39 = vld [vmem:[#allocation15 + $0x92c] ss:$16 sps:$4 sm:$0xff]   ;;  %v13531_v47 = vld [vmem:[#allocation15 + $0xb00] ss:$16 sps:$4 sm:$0xff]  }
 0x947   : > { %v13536_v45 = vld [vmem:[#allocation15 + $0x90c] ss:$16 sps:$4 sm:$0xff]  }
 0x948   : > { %9219 = vmatpush1.bf16.msra.mxu1 %v13453_v40  ;;  %v13533_v40 = vld [vmem:[#allocation15 + $0xb04] ss:$16 sps:$4 sm:$0xff]  }
 0x949   : > { %9260 = vmatpush1.bf16.msra.mxu0 %v13456_v49  ;;  %9220 = vmatprep.subr.bf16.mxu1 %v13461_v50  ;;  %v13534_v49 = vld [vmem:[#allocation15 + $0x908] ss:$16 sps:$4 sm:$0xff]   ;;  %v13655_v50 = vld [vmem:[#allocation2] sm:$0x11] }
 0x94a   : > { %9261 = vmatprep.subr.bf16.mxu0 %v13464_v51  ;;  %v11342_v51 = vcombine.low %v14919_v21, %v13655_v50  ;;  %v13541_v21 = vld [vmem:[#allocation15 + $0xac8] ss:$16 sps:$4 sm:$0xff]   ;;  %v13593_v50 = vld [vmem:[#allocation17 + $0x120] sm:$0xff]  }
 0x94c   : > { %9221 = vmatpush1.bf16.msra.mxu1 %v13459_v11  ;;  %v13540_v11 = vld [vmem:[#allocation15 + $0xaec] ss:$16 sps:$4 sm:$0xff]  }
 0x94d   : > { %9262 = vmatpush1.bf16.msra.mxu0 %v13462_v62  ;;  %9222 = vmatprep.subr.bf16.mxu1 %v13467_v44  ;;  %v13538_v62 = vld [vmem:[#allocation15 + $0xae8] ss:$16 sps:$4 sm:$0xff]   ;;  %v14943_v44 = vrot.slane %v11342_v51, 1 }
 0x94e   : > { %9263 = vmatprep.subr.bf16.mxu0 %v13470_v34  ;;  %v13543_v34 = vld [vmem:[#allocation15 + $0xacc] ss:$16 sps:$4 sm:$0xff]  }
 0x950   : > { %9223 = vmatpush1.bf16.msra.mxu1 %v13465_v7 }
 0x951   : > { %9264 = vmatpush1.bf16.msra.mxu0 %v13468_v0  ;;  %9224 = vmatprep.subr.bf16.mxu1 %v13473_v24 }
 0x952   : > { %9265 = vmatprep.subr.bf16.mxu0 %v13476_v54 }
 0x954   : > { %9225 = vmatpush1.bf16.msra.mxu1 %v13471_v57 }
 0x955   : > { %9266 = vmatpush1.bf16.msra.mxu0 %v13474_v58  ;;  %9226 = vmatprep.subr.bf16.mxu1 %v13479_v59  ;;  %v13546_v59 = vld [vmem:[#allocation15 + $0xaac] ss:$16 sps:$4 sm:$0xff]  }
 0x956   : > { %9267 = vmatprep.subr.bf16.mxu0 %v13482_v18 }
 0x958   : > { %9227 = vmatpush1.bf16.msra.mxu1 %v13477_v20 }
 0x959   : > { %9268 = vmatpush1.bf16.msra.mxu0 %v13480_v46  ;;  %9228 = vmatprep.subr.bf16.mxu1 %v13485_v63 }
 0x95a   : > { %9269 = vmatprep.subr.bf16.mxu0 %v13488_v29  ;;  %v13549_v29 = vld [vmem:[#allocation15 + $0xa8c] ss:$16 sps:$4 sm:$0xff]  }
 0x95c   : > { %9229 = vmatpush1.bf16.msra.mxu1 %v13483_v43  ;;  %v13586_v43 = vld [vmem:[#allocation17 + $0x178] sm:$0xff]  }
 0x95d   : > { %9270 = vmatpush1.bf16.msra.mxu0 %v13486_v2  ;;  %9230 = vmatprep.subr.bf16.mxu1 %v13491_v4  ;;  %v13547_v2 = vld [vmem:[#allocation15 + $0xa88] ss:$16 sps:$4 sm:$0xff]   ;;  %v13552_v4 = vld [vmem:[#allocation15 + $0xa6c] ss:$16 sps:$4 sm:$0xff]  }
 0x95e   : > { %9271 = vmatprep.subr.bf16.mxu0 %v13494_v8  ;;  %v13553_v8 = vld [vmem:[#allocation15 + $0xa48] ss:$16 sps:$4 sm:$0xff]  }
 0x960   : > { %9231 = vmatpush2.bf16.msra.mxu1 %v13489_v48  ;;  %v13558_v48 = vld [vmem:[#allocation15 + $0xa2c] ss:$16 sps:$4 sm:$0xff]  }
 0x961   : > { %9272 = vmatpush2.bf16.msra.mxu0 %v13492_v10  ;;  %9232 = vmatprep.subr.bf16.mxu1 %v13497_v55  ;;  %v13556_v10 = vld [vmem:[#allocation15 + $0xa28] ss:$16 sps:$4 sm:$0xff]   ;;  %v13561_v55 = vld [vmem:[#allocation15 + $0xa0c] ss:$16 sps:$4 sm:$0xff]  }
 0x962   : > { %9273 = vmatprep.subr.bf16.mxu0 %v13500_v13  ;;  %v13559_v13 = vld [vmem:[#allocation15 + $0xa08] ss:$16 sps:$4 sm:$0xff]  }
 0x964   : > { %9233 = vmatpush2.bf16.msra.mxu1 %v13495_v56  ;;  %v13564_v56 = vld [vmem:[#allocation15 + $0xbec] ss:$16 sps:$4 sm:$0xff]  }
 0x965   : > { %9274 = vmatpush2.bf16.msra.mxu0 %v13498_v14  ;;  %9234 = vmatprep.subr.bf16.mxu1 %v13503_v41  ;;  %v13562_v14 = vld [vmem:[#allocation15 + $0xbe8] ss:$16 sps:$4 sm:$0xff]   ;;  %v13567_v41 = vld [vmem:[#allocation15 + $0xbcc] ss:$16 sps:$4 sm:$0xff]  }
 0x966   : > { %9275 = vmatprep.subr.bf16.mxu0 %v13506_v16  ;;  %v13565_v16 = vld [vmem:[#allocation15 + $0xbc8] ss:$16 sps:$4 sm:$0xff]  }
 0x968   : > { %9235 = vmatpush2.bf16.msra.mxu1 %v13501_v17  ;;  %v13570_v17 = vld [vmem:[#allocation15 + $0xbac] ss:$16 sps:$4 sm:$0xff]  }
 0x969   : > { %9276 = vmatpush2.bf16.msra.mxu0 %v13504_v19  ;;  %9236 = vmatprep.subr.bf16.mxu1 %v13509_v53  ;;  %v13568_v19 = vld [vmem:[#allocation15 + $0xba8] ss:$16 sps:$4 sm:$0xff]   ;;  %v13573_v53 = vld [vmem:[#allocation15 + $0xb8c] ss:$16 sps:$4 sm:$0xff]  }
 0x96a   : > { %9277 = vmatprep.subr.bf16.mxu0 %v13512_v26  ;;  %v13571_v26 = vld [vmem:[#allocation15 + $0xb88] ss:$16 sps:$4 sm:$0xff]  }
 0x96c   : > { %9237 = vmatpush2.bf16.msra.mxu1 %v13507_v22  ;;  %v13576_v22 = vld [vmem:[#allocation15 + $0xb6c] ss:$16 sps:$4 sm:$0xff]  }
 0x96d   : > { %9278 = vmatpush2.bf16.msra.mxu0 %v13510_v5  ;;  %9238 = vmatprep.subr.bf16.mxu1 %v13515_v27  ;;  %v13574_v5 = vld [vmem:[#allocation15 + $0xb68] ss:$16 sps:$4 sm:$0xff]   ;;  %v13579_v27 = vld [vmem:[#allocation15 + $0xb4c] ss:$16 sps:$4 sm:$0xff]  }
 0x96e   : > { %9279 = vmatprep.subr.bf16.mxu0 %v13518_v28  ;;  %v13577_v28 = vld [vmem:[#allocation15 + $0xb48] ss:$16 sps:$4 sm:$0xff]  }
 0x970   : > { %9239 = vmatpush2.bf16.msra.mxu1 %v13513_v23  ;;  %v13582_v23 = vld [vmem:[#allocation15 + $0xb2c] ss:$16 sps:$4 sm:$0xff]  }
 0x971   : > { %9280 = vmatpush2.bf16.msra.mxu0 %v13516_v31  ;;  %9240 = vmatprep.subr.bf16.mxu1 %v13521_v1  ;;  %v13580_v31 = vld [vmem:[#allocation15 + $0xb28] ss:$16 sps:$4 sm:$0xff]   ;;  %v13585_v1 = vld [vmem:[#allocation15 + $0xb0c] ss:$16 sps:$4 sm:$0xff]  }
 0x972   : > { %9281 = vmatprep.subr.bf16.mxu0 %v13524_v33  ;;  %v13583_v33 = vld [vmem:[#allocation15 + $0xb08] ss:$16 sps:$4 sm:$0xff]  }
 0x974   : > { %9241 = vmatpush2.bf16.msra.mxu1 %v13519_v36  ;;  %v13588_v36 = vld [vmem:[#allocation17 + $0x170] sm:$0xff]  }
 0x975   : > { %9282 = vmatpush2.bf16.msra.mxu0 %v13522_v37  ;;  %9242 = vmatprep.subr.bf16.mxu1 %v13527_v38  ;;  %v13589_v37 = vld [vmem:[#allocation17 + $0x130] sm:$0xff]   ;;  %v13590_v38 = vld [vmem:[#allocation17 + $0x168] sm:$0xff]  }
 0x976   : > { %9283 = vmatprep.subr.bf16.mxu0 %v13530_v39  ;;  %v13591_v39 = vld [vmem:[#allocation17 + $0x128] sm:$0xff]  }
 0x978   : > { %9243 = vmatpush2.bf16.msra.mxu1 %v13525_v42 }
 0x979   : > { %9284 = vmatpush2.bf16.msra.mxu0 %v13528_v52  ;;  %9244 = vmatprep.subr.bf16.mxu1 %v13533_v40 }
 0x97a   : > { %9285 = vmatprep.subr.bf16.mxu0 %v13536_v45  ;;  %v13592_v45 = vld [vmem:[#allocation17 + $0x160] sm:$0xff]  }
 0x97c   : > { %9245 = vmatpush2.bf16.msra.mxu1 %v13531_v47 }
 0x97d   : > { %9286 = vmatpush2.bf16.msra.mxu0 %v13534_v49  ;;  %9296 = vmatprep.subr.bf16.mxu1 %v13540_v11 }
 0x97e   : > { %11686 = vmatprep.subr.bf16.mxu0 %v13586_v43  ;;  %v13623_v43 = vld [vmem:[#allocation17 + $0x1a8] sm:$0xff]  }
 0x97f   : > { %v7565_v7 = vpop.f32.mrf.mxu1  ;;  %v8254_v0 = vpop.f32.mrf.mxu0  ;;  %9247 = vmatmul.mubr.bf16.vlgmr.msra.gmra.mxu1 %v14943_v44 }
 0x980   : > { %v14947_v24 = vadd.f32 %v7565_v7, %v14926_v30  ;;  %v14950_v54 = vadd.f32 %v8254_v0, %v14933_v60  ;;  %9288 = vmatmul.mubr.bf16.vlgmr.msra.gmra.mxu0 %v14924_v61  ;;  %9297 = vmatpush1.bf16.msra.mxu1 %v13538_v62  ;;  %v13544_v60 = vld [vmem:[#allocation15 + $0xaa8] ss:$16 sps:$4 sm:$0xff]  }
 0x981   : > { %9328 = vmatprep.mubr.bf16.mxu1 %v14929_v25  ;;  %v7567_v57 = vpop.f32.mrf.mxu1  ;;  %v8256_v58 = vpop.f32.mrf.mxu0  ;;  %9298 = vmatprep.subr.bf16.mxu1 %v13543_v34  ;;  %v13587_v25 = vld [vmem:[#allocation17 + $0x138] sm:$0xff]  }
 0x982   : > { %v14955_v18 = vadd.f32 %v7567_v57, %v14936_v35  ;;  %v14958_v20 = vadd.f32 %v8256_v58, %v14940_v6  ;;  %11687 = vmatpush3.bf16.msra.mxu0 %v13587_v25  ;;  %v13550_v35 = vld [vmem:[#allocation15 + $0xa68] ss:$16 sps:$4 sm:$0xff]   ;;  %v13555_v6 = vld [vmem:[#allocation15 + $0xa4c] ss:$16 sps:$4 sm:$0xff]   ;;  %v13596_v57 = vld [vmem:[#allocation17 + $0x150] sm:$0xff]  }
 0x983   : > { %v7569_v30 = vpop.f32.mrf.mxu1  ;;  %v8258_v46 = vpop.f32.mrf.mxu0  ;;  %11688 = vmatprep.subr.bf16.mxu0 %v13588_v36  ;;  %v13594_v7 = vld [vmem:[#allocation17 + $0x158] sm:$0xff]   ;;  %v13598_v58 = vld [vmem:[#allocation17 + $0x148] sm:$0xff]  }
 0x984   : > { %9299 = vmatpush1.bf16.msra.mxu1 %v13541_v21  ;;  %v13601_v30 = vld [vmem:[#allocation17 + $0x100] sm:$0xff]   ;;  %v13618_v46 = vld [vmem:[#allocation17 + $0x1f8] sm:$0xff]  }
 0x985   : > { %v7570_v63 = vpop.f32.mrf.mxu1  ;;  %v8259_v61 = vpop.f32.mrf.mxu0  ;;  %9300 = vmatprep.subr.bf16.mxu1 %v13546_v59  ;;  %v13599_v59 = vld [vmem:[#allocation17 + $0x108] sm:$0xff]  }
 0x986   : > { %11689 = vmatpush3.bf16.msra.mxu0 %v13589_v37  ;;  %v13620_v63 = vld [vmem:[#allocation17 + $0x1f0] sm:$0xff]  }
 0x987   : > { %11690 = vmatprep.subr.bf16.mxu0 %v13590_v38  ;;  %v13621_v61 = vld [vmem:[#allocation17 + $0x1b0] sm:$0xff]  }
 0x988   : > { %9301 = vmatpush1.bf16.msra.mxu1 %v13544_v60  ;;  %v13619_v60 = vld [vmem:[#allocation17 + $0x1b8] sm:$0xff]  }
 0x989   : > { %9302 = vmatprep.subr.bf16.mxu1 %v13549_v29  ;;  %v13622_v29 = vld [vmem:[#allocation17 + $0x1e8] sm:$0xff]  }
 0x98a   : > { %11691 = vmatpush3.bf16.msra.mxu0 %v13591_v39 }
 0x98b   : > { %11692 = vmatprep.subr.bf16.mxu0 %v13592_v45 }
 0x98c   : > { %9303 = vmatpush1.bf16.msra.mxu1 %v13547_v2 }
 0x98d   : > { %9304 = vmatprep.subr.bf16.mxu1 %v13552_v4 }
 0x98e   : > { %11693 = vmatpush3.bf16.msra.mxu0 %v13593_v50 }
 0x98f   : > { %11694 = vmatprep.subr.bf16.mxu0 %v13594_v7  ;;  %v9455_v7 = vld [vmem:[#allocation2 + $0x8] sm:$0x11] }
 0x990   : > { %9305 = vmatpush1.bf16.msra.mxu1 %v13550_v35  ;;  %v13624_v35 = vld [vmem:[#allocation17 + $0x1e0] sm:$0xff]  }
 0x991   : > { %9306 = vmatprep.subr.bf16.mxu1 %v13555_v6 }
 0x994   : > { %9307 = vmatpush1.bf16.msra.mxu1 %v13553_v8  ;;  %v13625_v8 = vld [vmem:[#allocation17 + $0x1a0] sm:$0xff]  }
 0x995   : > { %9308 = vmatprep.subr.bf16.mxu1 %v13558_v48 }
 0x998   : > { %9309 = vmatpush1.bf16.msra.mxu1 %v13556_v10 }
 0x999   : > { %9310 = vmatprep.subr.bf16.mxu1 %v13561_v55 }
 0x99c   : > { %9311 = vmatpush1.bf16.msra.mxu1 %v13559_v13 }
 0x99d   : > { %9312 = vmatprep.subr.bf16.mxu1 %v13564_v56  ;;  %v13626_v56 = vld [vmem:[#allocation17 + $0x1d8] sm:$0xff]  }
 0x9a0   : > { %9313 = vmatpush2.bf16.msra.mxu1 %v13562_v14 }
 0x9a1   : > { %9314 = vmatprep.subr.bf16.mxu1 %v13567_v41  ;;  %v13627_v41 = vld [vmem:[#allocation17 + $0x198] sm:$0xff]  }
 0x9a4   : > { %9315 = vmatpush2.bf16.msra.mxu1 %v13565_v16 }
 0x9a5   : > { %9316 = vmatprep.subr.bf16.mxu1 %v13570_v17  ;;  %v13628_v17 = vld [vmem:[#allocation17 + $0x1d0] sm:$0xff]  }
 0x9a8   : > { %9317 = vmatpush2.bf16.msra.mxu1 %v13568_v19  ;;  %v13629_v19 = vld [vmem:[#allocation17 + $0x190] sm:$0xff]  }
 0x9a9   : > { %9318 = vmatprep.subr.bf16.mxu1 %v13573_v53  ;;  %v13630_v53 = vld [vmem:[#allocation17 + $0x1c8] sm:$0xff]  }
 0x9ac   : > { %9319 = vmatpush2.bf16.msra.mxu1 %v13571_v26  ;;  %v13631_v26 = vld [vmem:[#allocation17 + $0x188] sm:$0xff]  }
 0x9ad   : > { %9320 = vmatprep.subr.bf16.mxu1 %v13576_v22  ;;  %v13632_v22 = vld [vmem:[#allocation17 + $0x1c0] sm:$0xff]  }
 0x9b0   : > { %9321 = vmatpush2.bf16.msra.mxu1 %v13574_v5  ;;  %v13633_v5 = vld [vmem:[#allocation17 + $0x180] sm:$0xff]  }
 0x9b1   : > { %9322 = vmatprep.subr.bf16.mxu1 %v13579_v27  ;;  %v13634_v27 = vld [vmem:[#allocation17 + $0xf8] sm:$0xff]  }
 0x9b4   : > { %9323 = vmatpush2.bf16.msra.mxu1 %v13577_v28  ;;  %v14973_v28 = vld [vmem:[#allocation27] sm:$0xf] }
 0x9b5   : > { %9324 = vmatprep.subr.bf16.mxu1 %v13582_v23  ;;  %v9350_v39 = vrot.slane %v14973_v28, %v14718_v15 }
 0x9b8   : > { %9325 = vmatpush2.bf16.msra.mxu1 %v13580_v31 }
 0x9b9   : > { %9326 = vmatprep.subr.bf16.mxu1 %v13585_v1  ;;  %v9346_v1 = vrot.slane %v14973_v28, %v14715_v12 }
 0x9bc   : > { %9327 = vmatpush2.bf16.msra.mxu1 %v13583_v33 }
 0x9bd   : > { %11708 = vmatprep.subr.bf16.mxu1 %v13618_v46  ;;  %v13605_v46 = vld [vmem:[#allocation17 + $0x30] sm:$0xff]  }
 0x9bf   : > { %v8295_v42 = vpop.f32.mrf.mxu1  ;;  %9329 = vmatmul.mubr.bf16.vlgmr.msra.gmra.mxu1 %v14943_v44 }
 0x9c0   : > { %v14962_v52 = vadd.f32 %v8295_v42, %v14950_v54  ;;  %v8336_v40 = vpop.f32.mrf.mxu0  ;;  %v13595_v54 = vld [vmem:[#allocation17 + $0x118] sm:$0xff]   ;;  %11709 = vmatpush3.bf16.msra.mxu1 %v13619_v60  ;;  %v13606_v60 = vld [vmem:[#allocation17 + $0x68] sm:$0xff]  }
 0x9c1   : > { %v8337_v47 = vadd.f32 %v8336_v40, %v14947_v24  ;;  %v8297_v49 = vpop.f32.mrf.mxu1  ;;  %11695 = vmatpush3.bf16.msra.mxu0 %v13595_v54  ;;  %v13597_v24 = vld [vmem:[#allocation17 + $0x110] sm:$0xff]   ;;  %11710 = vmatprep.subr.bf16.mxu1 %v13620_v63  ;;  %v13607_v63 = vld [vmem:[#allocation17 + $0x28] sm:$0xff]  }
 0x9c2   : > { %v14966_v51 = vadd.f32 %v8297_v49, %v14958_v20  ;;  %v8338_v11 = vpop.f32.mrf.mxu0  ;;  %11696 = vmatprep.subr.bf16.mxu0 %v13596_v57  ;;  %v13600_v20 = vld [vmem:[#allocation17 + $0x140] sm:$0xff]  }
 0x9c3   : > { %v8339_v62 = vadd.f32 %v8338_v11, %v14955_v18  ;;  %v8299_v34 = vpop.f32.mrf.mxu1  ;;  %v13602_v18 = vld [vmem:[#allocation17 + $0x78] sm:$0xff]  }
 0x9c4   : > { %v8340_v44 = vpop.f32.mrf.mxu0  ;;  %11711 = vmatpush3.bf16.msra.mxu1 %v13621_v61  ;;  %v13608_v61 = vld [vmem:[#allocation17 + $0x60] sm:$0xff]  }
 0x9c5   : > { %v8300_v0 = vpop.f32.mrf.mxu1  ;;  %11697 = vmatpush3.bf16.msra.mxu0 %v13597_v24  ;;  %11712 = vmatprep.subr.bf16.mxu1 %v13622_v29  ;;  %v13609_v29 = vld [vmem:[#allocation17 + $0x20] sm:$0xff]  }
 0x9c6   : > { %v8341_v21 = vpop.f32.mrf.mxu0  ;;  %11698 = vmatprep.subr.bf16.mxu0 %v13598_v58 }
 0x9c8   : > { %11713 = vmatpush3.bf16.msra.mxu1 %v13623_v43  ;;  %v13610_v43 = vld [vmem:[#allocation17 + $0x58] sm:$0xff]  }
 0x9c9   : > { %11699 = vmatpush3.bf16.msra.mxu0 %v13599_v59  ;;  %11714 = vmatprep.subr.bf16.mxu1 %v13624_v35  ;;  %v13613_v35 = vld [vmem:[#allocation17 + $0x10] sm:$0xff]  }
 0x9ca   : > { %11700 = vmatprep.subr.bf16.mxu0 %v13600_v20 }
 0x9cc   : > { %11715 = vmatpush3.bf16.msra.mxu1 %v13625_v8  ;;  %v13615_v8 = vld [vmem:[#allocation17 + $0x8] sm:$0xff]  }
 0x9cd   : > { %11701 = vmatpush3.bf16.msra.mxu0 %v13601_v30  ;;  %11716 = vmatprep.subr.bf16.mxu1 %v13626_v56  ;;  %v13604_v30 = vld [vmem:[#allocation17 + $0x70] sm:$0xff]  }
 0x9ce   : > { %11730 = vmatprep.subr.bf16.mxu0 %v13602_v18 }
 0x9d0   : > { %11717 = vmatpush3.bf16.msra.mxu1 %v13627_v41  ;;  %v9354_v41 = vrot.slane %v14973_v28, %v14759_v3 }
 0x9d1   : > { %11718 = vmatprep.subr.bf16.mxu1 %v13628_v17 }
 0x9d4   : > { %11719 = vmatpush3.bf16.msra.mxu1 %v13629_v19 }
 0x9d5   : > { %11720 = vmatprep.subr.bf16.mxu1 %v13630_v53  ;;  %v9358_v53 = vrot.slane %v14973_v28, %v6427_v32 }
 0x9d8   : > { %11721 = vmatpush3.bf16.msra.mxu1 %v13631_v26 }
 0x9d9   : > { %11722 = vmatprep.subr.bf16.mxu1 %v13632_v22 }
 0x9dc   : > { %11723 = vmatpush3.bf16.msra.mxu1 %v13633_v5 }
 0x9dd   : > { %11752 = vmatprep.subr.bf16.mxu1 %v13634_v27 }
 0x9ff   : > { %v8377_v25 = vpop.f32.mrf.mxu1 }
 0xa00   : > { %v14969_v2 = vadd.f32 %v8377_v25, %v8337_v47  ;;  %v9207_v4 = vpop.f32.mrf.mxu0  ;;  %v13611_v25 = vld [vmem:[#allocation17 + $0x18] sm:$0xff]  }
 0xa01   : > { %v8379_v6 = vpop.f32.mrf.mxu1 }
 0xa02   : > { %v14971_v48 = vadd.f32 %v8379_v6, %v8339_v62  ;;  %v9209_v10 = vpop.f32.mrf.mxu0  ;;  %v13614_v6 = vld [vmem:[#allocation17 + $0x48] sm:$0xff]  }
 0xa03   : > { %v8381_v55 = vpop.f32.mrf.mxu1 }
 0xa04   : > { %v9211_v13 = vpop.f32.mrf.mxu0  ;;  %v13617_v55 = vld [vmem:[#allocation17] sm:$0xff]  }
 0xa05   : > { %v8382_v14 = vpop.f32.mrf.mxu1 }
 0xa06   : > { %v9212_v16 = vpop.f32.mrf.mxu0 }
 0xa3f   : > { %v9248_v23 = vpop.f32.mrf.mxu1 }
 0xa40   : > { %v9249_v31 = vadd.f32 %v9248_v23, %v9207_v4  ;;  %v14977_v33 = vpop.f32.mrf.mxu0  ;;  %v13612_v4 = vld [vmem:[#allocation17 + $0x50] sm:$0xff]  }
 0xa41   : > { %v9250_v36 = vpop.f32.mrf.mxu1 }
 0xa42   : > { %v9337_v37 = vadd.f32 %v9249_v31, %v14962_v52  ;;  %v9251_v38 = vadd.f32 %v9250_v36, %v9209_v10  ;;  %v14982_v42 = vpop.f32.mrf.mxu0  ;;  %v13616_v10 = vld [vmem:[#allocation17 + $0x40] sm:$0xff]  }
 0xa43   : > { %v9252_v40 = vpop.f32.mrf.mxu1 }
 0xa44   : > { %v9363_v45 = vadd.f32 %v9346_v1, %v9337_v37  ;;  %v9338_v47 = vadd.f32 %v9251_v38, %v14966_v51  ;;  %v9293_v49 = vpop.f32.mrf.mxu0  ;;  %v13603_v51 = vld [vmem:[#allocation17 + $0x38] sm:$0xff]  }
 0xa45   : > { %v9253_v50 = vpop.f32.mrf.mxu1  ;;  %v13637_v49 = vld [vmem:[#allocation17 + $0xb0] sm:$0xff]  }
 0xa46   : > { %v9364_v11 = vadd.f32 %v9350_v39, %v9338_v47  ;;  %v9294_v62 = vpop.f32.mrf.mxu0  ;;  %v9367_v12 = vmax.f32 %v9363_v45, 0.0  ;;  %v13635_v45 = vld [vmem:[#allocation17 + $0xb8] sm:$0xff]   ;;  %v13636_v47 = vld [vmem:[#allocation17 + $0xf0] sm:$0xff]   ;;  %v13638_v50 = vld [vmem:[#allocation17 + $0xe8] sm:$0xff]  }
 0xa47   : > { %v13640_v62 = vld [vmem:[#allocation17 + $0xe0] sm:$0xff]  }
 0xa48   : > { %v9368_v34 = vmax.f32 %v9364_v11, 0.0  ;;  %v13667_v13 = vpack.c.bf16 %v9367_v12, %v9367_v12  ;;  %v13639_v11 = vld [vmem:[#allocation17 + $0xa8] sm:$0xff]  }
 0xa4a   : > { %v11564_v44 = vpack.c.bf16 %v9368_v34, %v9367_v12  ;;  %v13666_v18 = vpack.c.bf16 %v9368_v34, %v9368_v34  ;;  %v13641_v12 = vld [vmem:[#allocation17 + $0xa0] sm:$0xff]   ;;  %v13642_v34 = vld [vmem:[#allocation17 + $0xd8] sm:$0xff]  }
 0xa4c   : > { %9387 = vst [vmem:[#allocation2 + $0x28] sm:$0xff] %v11564_v44  ;;  %v11474_v52 = vcombine.low %v11564_v44, %v9455_v7  ;;  %v11475_v0 = vcombine.high %v11564_v44, %v9455_v7  ;;  %v13643_v44 = vld [vmem:[#allocation17 + $0x98] sm:$0xff]   ;;  %v13644_v7 = vld [vmem:[#allocation17 + $0xd0] sm:$0xff]  }
 0xa4e   : > { %v9548_v54 = vshll.u32 %v11475_v0, 16  ;;  %v9541_v21 = vshll.u32 %v11474_v52, 16  ;;  %v9546_v15 = vshrl.u32 %v11475_v0, 16  ;;  %v9539_v24 = vshrl.u32 %v11474_v52, 16  ;;  %v13645_v52 = vld [vmem:[#allocation17 + $0x90] sm:$0xff]   ;;  %v13646_v0 = vld [vmem:[#allocation17 + $0xc8] sm:$0xff]  }
 0xa50   : > { %v9550_v57 = vrot.slane %v9548_v54, 1  ;;  %v9543_v58 = vrot.slane %v9541_v21, 1  ;;  %v13647_v54 = vld [vmem:[#allocation17 + $0x88] sm:$0xff]   ;;  %v13648_v21 = vld [vmem:[#allocation17 + $0xc0] sm:$0xff]  }
 0xa52   : > { %v9551_v59 = vor.u32 %v9550_v57, %v9546_v15  ;;  %v9544_v20 = vor.u32 %v9543_v58, %v9539_v24  ;;  %v13649_v15 = vld [vmem:[#allocation17 + $0x80] sm:$0xff]  }
 0xa54   : > { %9794 = vmatprep.mubr.bf16.mxu0 %v9551_v59 }
 0xa55   : > { %9795 = vmatmul.mubr.bf16.vlgmr.msra.gmra.mxu0 %v9544_v20 }
 0xa56   : > { %11731 = vmatpush3.bf16.msra.mxu0 %v13603_v51  ;;  %10074 = vmatprep.mubr.bf16.mxu0 %v13666_v18 }
 0xa57   : > { %11732 = vmatprep.subr.bf16.mxu0 %v13604_v30 }
 0xa5a   : > { %11733 = vmatpush3.bf16.msra.mxu0 %v13605_v46 }
 0xa5b   : > { %11734 = vmatprep.subr.bf16.mxu0 %v13606_v60 }
 0xa5e   : > { %11735 = vmatpush3.bf16.msra.mxu0 %v13607_v63 }
 0xa5f   : > { %11736 = vmatprep.subr.bf16.mxu0 %v13608_v61 }
 0xa62   : > { %11737 = vmatpush3.bf16.msra.mxu0 %v13609_v29 }
 0xa63   : > { %11738 = vmatprep.subr.bf16.mxu0 %v13610_v43 }
 0xa66   : > { %11739 = vmatpush3.bf16.msra.mxu0 %v13611_v25 }
 0xa67   : > { %11740 = vmatprep.subr.bf16.mxu0 %v13612_v4 }
 0xa6a   : > { %11741 = vmatpush3.bf16.msra.mxu0 %v13613_v35 }
 0xa6b   : > { %11742 = vmatprep.subr.bf16.mxu0 %v13614_v6 }
 0xa6e   : > { %11743 = vmatpush3.bf16.msra.mxu0 %v13615_v8 }
 0xa6f   : > { %11744 = vmatprep.subr.bf16.mxu0 %v13616_v10 }
 0xa72   : > { %11745 = vmatpush3.bf16.msra.mxu0 %v13617_v55 }
 0xa75   : > { %10075 = vmatmul.mubr.bf16.vlgmr.msra.gmra.mxu0 %v13667_v13  ;;  %v11546_v13 = vld [vmem:[#allocation29] ss:$0 sm:$0xff] }
 0xa7f   : > { %v9330_v56 = vpop.f32.mrf.mxu1 }
 0xa80   : > { %v9331_v14 = vadd.f32 %v9330_v56, %v14977_v33  ;;  %v9456_v33 = vld [vmem:[#allocation2] sm:$0x11] }
 0xa81   : > { %v9332_v16 = vpop.f32.mrf.mxu1 }
 0xa82   : > { %v9339_v17 = vadd.f32 %v9331_v14, %v14969_v2  ;;  %v9333_v19 = vadd.f32 %v9332_v16, %v14982_v42 }
 0xa83   : > { %v9334_v26 = vpop.f32.mrf.mxu1 }
 0xa84   : > { %v9365_v22 = vadd.f32 %v9354_v41, %v9339_v17  ;;  %v9340_v5 = vadd.f32 %v9333_v19, %v14971_v48 }
 0xa85   : > { %v9335_v27 = vpop.f32.mrf.mxu1 }
 0xa86   : > { %v9366_v23 = vadd.f32 %v9358_v53, %v9340_v5  ;;  %v9369_v31 = vmax.f32 %v9365_v22, 0.0 }
 0xa88   : > { %v9370_v1 = vmax.f32 %v9366_v23, 0.0  ;;  %v13669_v57 = vpack.c.bf16 %v9369_v31, %v9369_v31 }
 0xa8a   : > { %v11565_v36 = vpack.c.bf16 %v9370_v1, %v9369_v31  ;;  %v13668_v48 = vpack.c.bf16 %v9370_v1, %v9370_v1 }
 0xa8c   : > { %9388 = vst [vmem:[#allocation2 + $0x10] sm:$0xff] %v11565_v36  ;;  %v11476_v3 = vcombine.low %v11565_v36, %v9456_v33  ;;  %v11477_v37 = vcombine.high %v11565_v36, %v9456_v33 }
 0xa8e   : > { %v9562_v2 = vshll.u32 %v11477_v37, 16  ;;  %v9555_v38 = vshll.u32 %v11476_v3, 16  ;;  %v9560_v39 = vshrl.u32 %v11477_v37, 16  ;;  %v9553_v9 = vshrl.u32 %v11476_v3, 16 }
 0xa90   : > { %v9564_v42 = vrot.slane %v9562_v2, 1  ;;  %v9557_v40 = vrot.slane %v9555_v38, 1 }
 0xa92   : > { %v9565_v32 = vor.u32 %v9564_v42, %v9560_v39  ;;  %v9558_v28 = vor.u32 %v9557_v40, %v9553_v9 }
 0xa94   : > { %9834 = vmatprep.mubr.bf16.mxu1 %v9565_v32 }
 0xa95   : > { %9835 = vmatmul.mubr.bf16.vlgmr.msra.gmra.mxu1 %v9558_v28 }
 0xa96   : > { %11753 = vmatpush3.bf16.msra.mxu1 %v13635_v45  ;;  %10114 = vmatprep.mubr.bf16.mxu1 %v13668_v48 }
 0xa97   : > { %11754 = vmatprep.subr.bf16.mxu1 %v13636_v47 }
 0xa9a   : > { %11755 = vmatpush3.bf16.msra.mxu1 %v13637_v49 }
 0xa9b   : > { %11756 = vmatprep.subr.bf16.mxu1 %v13638_v50 }
 0xa9e   : > { %11757 = vmatpush3.bf16.msra.mxu1 %v13639_v11 }
 0xa9f   : > { %11758 = vmatprep.subr.bf16.mxu1 %v13640_v62 }
 0xaa2   : > { %11759 = vmatpush3.bf16.msra.mxu1 %v13641_v12 }
 0xaa3   : > { %11760 = vmatprep.subr.bf16.mxu1 %v13642_v34 }
 0xaa6   : > { %11761 = vmatpush3.bf16.msra.mxu1 %v13643_v44 }
 0xaa7   : > { %11762 = vmatprep.subr.bf16.mxu1 %v13644_v7 }
 0xaaa   : > { %11763 = vmatpush3.bf16.msra.mxu1 %v13645_v52 }
 0xaab   : > { %11764 = vmatprep.subr.bf16.mxu1 %v13646_v0 }
 0xaae   : > { %11765 = vmatpush3.bf16.msra.mxu1 %v13647_v54 }
 0xaaf   : > { %11766 = vmatprep.subr.bf16.mxu1 %v13648_v21 }
 0xab2   : > { %11767 = vmatpush3.bf16.msra.mxu1 %v13649_v15 }
 0xab5   : > { %10115 = vmatmul.mubr.bf16.vlgmr.msra.gmra.mxu1 %v13669_v57 }
 0xb15   : > { %v11702_v24 = vpop.f32.mrf.mxu0 }
 0xb17   : > { %v11703_v58 = vpop.f32.mrf.mxu0 }
 0xb18   : > { %v11704_v59 = vadd.f32 %v11703_v58, %v11702_v24 }
 0xb19   : > { %v11705_v20 = vpop.f32.mrf.mxu0 }
 0xb1b   : > { %v11706_v51 = vpop.f32.mrf.mxu0 }
 0xb35   : > { %v11746_v30 = vpop.f32.mrf.mxu0 }
 0xb37   : > { %v11747_v18 = vpop.f32.mrf.mxu0 }
 0xb38   : > { %v11748_v25 = vadd.f32 %v11747_v18, %v11746_v30 }
 0xb39   : > { %v11749_v46 = vpop.f32.mrf.mxu0 }
 0xb3b   : > { %v11750_v60 = vpop.f32.mrf.mxu0 }
 0xb55   : > { %v11724_v63 = vpop.f32.mrf.mxu1 }
 0xb57   : > { %v11725_v61 = vpop.f32.mrf.mxu1 }
 0xb58   : > { %v11726_v29 = vadd.f32 %v11725_v61, %v11724_v63 }
 0xb59   : > { %v11727_v43 = vpop.f32.mrf.mxu1 }
 0xb5a   : > { %v9837_v4 = vadd.f32 %v11726_v29, %v11704_v59 }
 0xb5b   : > { %v11728_v35 = vpop.f32.mrf.mxu1 }
 0xb5c   : > { %v10077_v6 = vadd.f32 %v11748_v25, %v9837_v4 }
 0xb75   : > { %v11768_v8 = vpop.f32.mrf.mxu1 }
 0xb77   : > { %v11769_v10 = vpop.f32.mrf.mxu1 }
 0xb78   : > { %v11770_v55 = vadd.f32 %v11769_v10, %v11768_v8 }
 0xb79   : > { %v11771_v56 = vpop.f32.mrf.mxu1 }
 0xb7a   : > { %v10117_v14 = vadd.f32 %v11770_v55, %v10077_v6 }
 0xb7b   : > { %v11772_v41 = vpop.f32.mrf.mxu1 }
 0xb7c   : > { %v10129_v16 = vadd.f32 %v11546_v13, %v10117_v14 }
 0xb7e   : > { %10130 = vst [vmem:[%s782_s30] sm:$0xff] %v10129_v16 }
 0xb7f   : > { %14127 = shalt.err (!%p14124_p8)
}
 0xb80   : > { %s14128_s20 = scalar_lea.hbm %s10143_s17, 128  ;;  %s14132_s5 = scalar_lea.hbm %s15128_s3, 256 }
 0xb81   : > { %p14129_p12 = scmp.ne.s32.totalorder %s10143_s17, %s14128_s20  ;;  %p14133_p6 = scmp.lt.s32.totalorder %s10143_s17, %s15128_s3 }
 0xb82   : > { %p14134_p10 = scmp.lt.s32.totalorder %s14132_s5, %s14128_s20 }
 0xb83   : > { %p14130_p13 = pnand %p14129_p12, %p15129_p3 }
 0xb84   : > { %p14135_p9 = por %p14134_p10, %p14133_p6 }
 0xb85   : > { %p14131_p7 = pneg %p14130_p13 }
 0xb87   : > { %p14136_p11 = pnand %p14135_p9, %p14131_p7 }
 0xb89   : > { %14139 = shalt.err (!%p14136_p11)
}
 0xb8a   : > { %11960 = dma.vmem_to_hbm [thread:$0]  (%p15129_p3), %s10146_s19, 128, %s10143_s17, %s10132_s23  }
 0xb8b PF: > { %s15130_s0 = sld [smem:[#allocation41_spill]]  ;;  %p15131_p1 = scmp.ne.s32.totalorder %s15105_s2, 0 }
 0xb8c   : > { %p15132_p4 = scmp.ge.s32.totalorder %s14210_s27, 2 }
 0xb8e   : > { %p12016_p0 = pnand %p15132_p4, %p15131_p1 }
 0xb90   : > { %p12017_p2 = pneg %p12016_p0 }
 0xb91   : > { %s10157_s29 = sand.u32 1, %s15130_s0  }
 0xb92   : > { %s10158_s24 = scalar_lea.sflag [#allocation5], %s10157_s29 }
 0xb93   : > { %14193 = dma.done.wait (%p12017_p2), %s10158_s24, 128  }
 0xb94   : > { %14195 = vsyncadd (%p12017_p2), %s10158_s24, 4294967168  ;;  %p38_p5 = scmp.ge.s32.totalorder %s14521_s1, 4   ;;  %s15133_s24 = smov %s14202_s25 }
 0xb95   : > { %s15134_s25 = smov %s14206_s26  ;;  %s15135_s26 = smov %s14532_s28 }
 0xb96   : > { %s15136_s27 = smov %s14521_s1  ;;  %40 = sbr.rel (!%p38_p5) target bundleno = 25 (0x19), region = 212 }
 0xb9b   :  { %10163 = vsyncpa [#allocation4], 1 }
 0xb9c   :  { %10165 = vsyncpa [#allocation4 + $0x1], 1 }
 0xb9d   :  { %10166 = vsyncpa [#allocation7], 1 }
 0xb9e   :  { %10167 = vsyncpa [#allocation10], 1 }
 0xb9f   :  { %10168 = vsyncpa [#allocation13], 1 }
 0xba0   :  { %10169 = vsyncpa [#allocation16], 1 }
 0xba1   :  { %10170 = vsyncpa [#allocation19], 1 }
 0xba2   :  { %10171 = vsyncpa [#allocation22], 1 }
 0xba3   :  { %10172 = vsyncpa [#allocation25], 1 }
 0xba4   :  { %10173 = vsyncpa [#allocation28], 1 }
 0xba5   :  { %10174 = vsyncpa [#allocation5], 1 }
 0xba6   :  { %10176 = vsyncpa [#allocation5 + $0x1], 1 }

</bundles_post_ra>
